<compile_context>
chip_gen: v7x
topology: tpu7x:2x2x1
jax: 0.10.0
libtpu: 0.0.40
codegen_flags: <defaults>
</compile_context>

<pallas_src>
import jax
import jax.numpy as jnp
from jax.experimental import pallas as pl
from jax.experimental.pallas import tpu as pltpu

W28 = 28          # flat "full width" used by both convs (last 2-4 cols are scrap)
H1_ROWS = 736     # conv1 flat rows: 26*28 = 728, padded to 736 (covers tap reads)
H2_ROWS = 672     # conv2 flat rows: 24*28


# ----------------------------- Pallas kernels ------------------------------

def _conv_pool_kernel(xcols_ref, w1_ref, b1_ref, w2_ref, b2_ref, out_ref,
                      h1_scr, h2_scr, hy_scr, pool_scr):
    """One image per program: conv1+ReLU, conv2+ReLU, fused 2x2 max-pool.

    Flat-width trick: row r = y*28 + x, so the (kh,kw) tap of a 3x3 conv is the
    contiguous row slice [kh*28+kw : kh*28+kw+rows].  Columns x >= 24/26 of the
    flat buffers are scrap and are never read by valid outputs.
    """
    # conv1 (1->32): single (736,16)@(16,32) bf16 matmul on prebuilt taps.
    a1 = jnp.dot(xcols_ref[0], w1_ref[...], preferred_element_type=jnp.float32)
    h1_scr[...] = jnp.maximum(a1 + b1_ref[...], 0.0)                 # (736,32) f32

    # conv2 (32->64): 9 shifted matmuls against the VMEM-resident conv1 output.
    acc = None
    for kh in range(3):
        for kw in range(3):
            off = kh * W28 + kw
            lhs = h1_scr[pl.ds(off, H2_ROWS), :].astype(jnp.bfloat16)
            t = jnp.dot(lhs, w2_ref[kh * 3 + kw],
                        preferred_element_type=jnp.float32)
            acc = t if acc is None else acc + t
    h2_scr[...] = jnp.maximum(acc + b2_ref[...], 0.0)                # (672,64) f32

    # fused 2x2 max-pool (stride 2): first y-pairs, then x-pairs.
    for py in range(12):
        hy_scr[py, :, :] = jnp.maximum(
            h2_scr[pl.ds((2 * py) * W28, W28), :],
            h2_scr[pl.ds((2 * py + 1) * W28, W28), :])               # (12,28,64)
    for px in range(12):
        pool_scr[:, px:px + 1, :] = jnp.maximum(
            hy_scr[:, pl.ds(2 * px, 1), :],
            hy_scr[:, pl.ds(2 * px + 1, 1), :])                      # (12,12,64)

    out_ref[0, :, :, :] = pool_scr[...].astype(out_ref.dtype)


def _mlp_head_kernel(x_ref, w1_ref, b1_ref, w2_ref, b2_ref, o_ref):
    """fc1 + ReLU + fc2 + log_softmax for one batch row tile."""
    h = jnp.dot(x_ref[...], w1_ref[...], preferred_element_type=jnp.float32)
    h = jnp.maximum(h + b1_ref[...], 0.0)                            # fc1 + relu
    z = jnp.dot(h.astype(w2_ref.dtype), w2_ref[...],
                preferred_element_type=jnp.float32) + b2_ref[...]    # fc2
    m = jnp.max(z, axis=-1, keepdims=True)                           # log_softmax
    lse = jnp.log(jnp.sum(jnp.exp(z - m), axis=-1, keepdims=True)) + m
    o_ref[...] = (z - lse).astype(o_ref.dtype)


# ----------------------------- Pallas wrappers ------------------------------

def conv_pool(x_cols, w1, b1, w2, b2):
    B = x_cols.shape[0]
    flops = B * (2 * H1_ROWS * 16 * 32 + 9 * 2 * H2_ROWS * 32 * 64)
    bytes_acc = (x_cols.size * 2 + w1.size * 2 + w2.size * 2
                 + (b1.size + b2.size) * 4 + B * 12 * 12 * 64 * 2)
    return pl.pallas_call(
        _conv_pool_kernel,
        out_shape=jax.ShapeDtypeStruct((B, 12, 12, 64), jnp.bfloat16),
        grid=(B,),
        in_specs=[
            pl.BlockSpec((1, H1_ROWS, 16), lambda b: (b, 0, 0)),   # conv1 taps
            pl.BlockSpec((16, 32), lambda b: (0, 0)),              # w1 (resident)
            pl.BlockSpec((1, 32), lambda b: (0, 0)),               # b1
            pl.BlockSpec((9, 32, 64), lambda b: (0, 0, 0)),        # w2 (resident)
            pl.BlockSpec((1, 64), lambda b: (0, 0)),               # b2
        ],
        out_specs=pl.BlockSpec((1, 12, 12, 64), lambda b: (b, 0, 0, 0)),
        scratch_shapes=[
            pltpu.VMEM((H1_ROWS, 32), jnp.float32),                # conv1 act
            pltpu.VMEM((H2_ROWS, 64), jnp.float32),                # conv2 act
            pltpu.VMEM((12, W28, 64), jnp.float32),                # y-pooled
            pltpu.VMEM((12, 12, 64), jnp.float32),                 # fully pooled
        ],
        compiler_params=pltpu.CompilerParams(
            dimension_semantics=("parallel",)),
        cost_estimate=pl.CostEstimate(flops=flops, transcendentals=0,
                                      bytes_accessed=bytes_acc),
    )(x_cols, w1, b1, w2, b2)


def mlp_head(x, w1, b1, w2, b2, *, tb):
    Bp, K = x.shape
    N1, N2 = w1.shape[1], w2.shape[1]
    flops = 2 * Bp * K * N1 + 2 * Bp * N1 * N2
    bytes_acc = (x.size * 2 + w1.size * 2 + w2.size * 2
                 + (b1.size + b2.size) * 4 + Bp * N2 * 4)
    return pl.pallas_call(
        _mlp_head_kernel,
        out_shape=jax.ShapeDtypeStruct((Bp, N2), jnp.float32),
        grid=(Bp // tb,),
        in_specs=[
            pl.BlockSpec((tb, K), lambda i: (i, 0)),               # activation tile
            pl.BlockSpec((K, N1), lambda i: (0, 0)),               # wfc1 (resident)
            pl.BlockSpec((1, N1), lambda i: (0, 0)),
            pl.BlockSpec((N1, N2), lambda i: (0, 0)),              # wfc2 (resident)
            pl.BlockSpec((1, N2), lambda i: (0, 0)),
        ],
        out_specs=pl.BlockSpec((tb, N2), lambda i: (i, 0)),
        compiler_params=pltpu.CompilerParams(
            dimension_semantics=("parallel",),
            vmem_limit_bytes=48 * 1024 * 1024),
        cost_estimate=pl.CostEstimate(flops=flops, transcendentals=Bp * N2,
                                      bytes_accessed=bytes_acc),
    )(x, w1, b1, w2, b2)


# ------------------------------- glue (JAX) ---------------------------------

def _round_up(x, m):
    return (x + m - 1) // m * m


def _conv1_taps(x_nchw):
    """(B,1,28,28) -> (B,736,16) bf16: conv1 im2col taps in the flat-width layout.

    Only conv1 is im2col'd (Cin=1, so this is a tiny expansion of the raw
    image); conv2's taps are fully fused inside the Pallas kernel.
    """
    B = x_nchw.shape[0]
    x_flat = x_nchw.reshape(B, 28 * 28)
    x_flat = jnp.pad(x_flat, ((0, 0), (0, 16)))        # cover offset 735 + 58
    taps = [x_flat[:, kh * W28 + kw: kh * W28 + kw + H1_ROWS]
            for kh in range(3) for kw in range(3)]
    taps += [jnp.zeros_like(taps[0])] * 7              # pad K: 9 -> 16
    return jnp.stack(taps, axis=-1).astype(jnp.bfloat16)


def net_forward(params, x_nchw):
    """x_nchw: (B, 1, 28, 28) float32 -> (B, 10) log-probabilities."""
    B = x_nchw.shape[0]
    x_cols = _conv1_taps(x_nchw)

    # conv1+relu+conv2+relu+maxpool fused; output (B,12,12,64) NHWC bf16.
    pooled = conv_pool(x_cols, params["w1"], params["b1"],
                       params["w2"], params["b2"])

    # dropout1: inference-mode identity.
    # NHWC flatten; wfc1 rows were permuted at init to match, so no transpose.
    flat = pooled.reshape(B, 12 * 12 * 64)

    tb = min(256, _round_up(B, 8))
    b_pad = _round_up(B, tb)
    if b_pad != B:
        flat = jnp.pad(flat, ((0, b_pad - B), (0, 0)))

    # dropout2: inference-mode identity.
    out = mlp_head(flat, params["wfc1"], params["bfc1"],
                   params["wfc2"], params["bfc2"], tb=tb)
    return out[:B]


# ------------------------------ parameters ----------------------------------

def init_torch_params(key):
    """Deterministic synthetic parameters in PyTorch layouts."""
    ks = jax.random.split(key, 8)
    return dict(
        w1=jax.random.normal(ks[0], (32, 1, 3, 3), jnp.float32) * 0.10,
        w2=jax.random.normal(ks[1], (64, 32, 3, 3), jnp.float32) * 0.05,
        wfc1=jax.random.normal(ks[2], (128, 9216), jnp.float32) * 0.01,
        wfc2=jax.random.normal(ks[3], (10, 128), jnp.float32) * 0.05,
        b1=jax.random.normal(ks[4], (32,), jnp.float32) * 0.01,
        b2=jax.random.normal(ks[5], (64,), jnp.float32) * 0.01,
        bfc1=jax.random.normal(ks[6], (128,), jnp.float32) * 0.01,
        bfc2=jax.random.normal(ks[7], (10,), jnp.float32) * 0.01,
    )


def convert_params(tp):
    """PyTorch-layout params -> layouts the Pallas kernels consume (bf16)."""
    w1 = jnp.transpose(tp["w1"], (2, 3, 1, 0)).reshape(9, 32)      # (kh*3+kw, cout)
    w1 = jnp.pad(w1, ((0, 7), (0, 0))).astype(jnp.bfloat16)        # K: 9 -> 16
    w2 = jnp.transpose(tp["w2"], (2, 3, 1, 0)).reshape(9, 32, 64).astype(jnp.bfloat16)
    # fc1: permute input features from NCHW flatten (c*144+s) to NHWC flatten
    # (s*64+c) so the kernel-side flatten needs no runtime transpose.
    wfc1 = tp["wfc1"].T.reshape(64, 144, 128)
    wfc1 = jnp.transpose(wfc1, (1, 0, 2)).reshape(9216, 128).astype(jnp.bfloat16)
    wfc2 = tp["wfc2"].T.astype(jnp.bfloat16)                       # (128, 10)
    return dict(
        w1=w1, b1=tp["b1"].reshape(1, 32),
        w2=w2, b2=tp["b2"].reshape(1, 64),
        wfc1=wfc1, bfc1=tp["bfc1"].reshape(1, 128),
        wfc2=wfc2, bfc2=tp["bfc2"].reshape(1, 10),
    )


def net_forward_ref(tp, x):
    """Pure-JAX f32 reference of the PyTorch module (eval mode)."""
    dn = ("NCHW", "OIHW", "NCHW")
    y = jax.lax.conv_general_dilated(x, tp["w1"], (1, 1), "VALID",
                                     dimension_numbers=dn)
    y = jax.nn.relu(y + tp["b1"].reshape(1, 32, 1, 1))
    y = jax.lax.conv_general_dilated(y, tp["w2"], (1, 1), "VALID",
                                     dimension_numbers=dn)
    y = jax.nn.relu(y + tp["b2"].reshape(1, 64, 1, 1))
    B = x.shape[0]
    y = y.reshape(B, 64, 12, 2, 12, 2).max(axis=(3, 5))            # 2x2 max-pool
    y = y.reshape(B, 9216)                                          # NCHW flatten
    y = jax.nn.relu(y @ tp["wfc1"].T + tp["bfc1"])
    y = y @ tp["wfc2"].T + tp["bfc2"]
    return jax.nn.log_softmax(y, axis=1)


if __name__ == "__main__":
    key = jax.random.PRNGKey(0)
    k_x, k_p = jax.random.split(key)
    # fc1 (9216 = 64*12*12) fixes the input to 28x28, 1 channel.
    x = jax.random.normal(k_x, (2, 1, 28, 28), jnp.float32)
    torch_params = init_torch_params(k_p)
    params = convert_params(torch_params)

    out = jax.jit(net_forward)(params, x)
    out = jax.block_until_ready(out)

    assert out.shape == (2, 10) and out.dtype == jnp.float32
    # log_softmax rows must exponentiate-and-sum to ~1
    assert bool(jnp.all(jnp.abs(jnp.sum(jnp.exp(out), axis=1) - 1.0) < 1e-4))
    # cross-check against the pure-JAX f32 reference (loose tol: bf16 weights)
    ref = net_forward_ref(torch_params, x)
    assert bool(jnp.max(jnp.abs(out - ref)) < 5e-2)
    print("KERNEL_OK")
</pallas_src>

<mosaic_0001>
module attributes {stable_mosaic.version = 11 : i64} {
  func.func @_conv_pool_kernel(%arg0: i32, %arg1: memref<1x736x16xbf16, #tpu.memory_space<vmem>>, %arg2: memref<16x32xbf16, #tpu.memory_space<vmem>>, %arg3: memref<1x32xf32, #tpu.memory_space<vmem>>, %arg4: memref<9x32x64xbf16, #tpu.memory_space<vmem>>, %arg5: memref<1x64xf32, #tpu.memory_space<vmem>>, %arg6: memref<1x12x12x64xbf16, #tpu.memory_space<vmem>>, %arg7: memref<736x32xf32, #tpu.memory_space<vmem>>, %arg8: memref<672x64xf32, #tpu.memory_space<vmem>>, %arg9: memref<12x28x64xf32, #tpu.memory_space<vmem>>, %arg10: memref<12x12x64xf32, #tpu.memory_space<vmem>>) attributes {dimension_semantics = [#tpu.dimension_semantics<parallel>], iteration_bounds = array<i64: 2>, scalar_prefetch = 0 : i64, scratch_operands = 4 : i64, tpu.core_type = #tpu.core_type<tc>, window_params = [{transform_indices = @transform_0, window_bounds = array<i64: 1, 736, 16>}, {pipeline_mode = #tpu.pipeline_mode<synchronous>, transform_indices = @transform_1, window_bounds = array<i64: 16, 32>}, {pipeline_mode = #tpu.pipeline_mode<synchronous>, transform_indices = @transform_2, window_bounds = array<i64: 1, 32>}, {pipeline_mode = #tpu.pipeline_mode<synchronous>, transform_indices = @transform_3, window_bounds = array<i64: 9, 32, 64>}, {pipeline_mode = #tpu.pipeline_mode<synchronous>, transform_indices = @transform_4, window_bounds = array<i64: 1, 64>}, {transform_indices = @transform_5, window_bounds = array<i64: 1, 12, 12, 64>}]} {
    %c0 = arith.constant 0 : index
    %c0_0 = arith.constant 0 : index
    %c0_1 = arith.constant 0 : index
    %0 = vector.load %arg1[%c0, %c0_0, %c0_1] : memref<1x736x16xbf16, #tpu.memory_space<vmem>>, vector<1x736x16xbf16>
    %1 = vector.shape_cast %0 : vector<1x736x16xbf16> to vector<736x16xbf16>
    %c0_2 = arith.constant 0 : index
    %c0_3 = arith.constant 0 : index
    %2 = vector.load %arg2[%c0_2, %c0_3] : memref<16x32xbf16, #tpu.memory_space<vmem>>, vector<16x32xbf16>
    %cst = arith.constant dense<0.000000e+00> : vector<736x32xf32>
    %3 = tpu.matmul %1, %2, %cst {dimension_numbers = #tpu.dot_dimension_numbers<[1], [0], [0], [1], [0, 0, 1, 1], [], []>} : vector<736x16xbf16>, vector<16x32xbf16>, vector<736x32xf32> -> vector<736x32xf32>
    %c0_4 = arith.constant 0 : index
    %c0_5 = arith.constant 0 : index
    %4 = vector.load %arg3[%c0_4, %c0_5] : memref<1x32xf32, #tpu.memory_space<vmem>>, vector<1x32xf32>
    %5 = vector.broadcast %4 : vector<1x32xf32> to vector<736x32xf32>
    %6 = arith.addf %3, %5 : vector<736x32xf32>
    %cst_6 = arith.constant 0.000000e+00 : f32
    %7 = vector.broadcast %cst_6 : f32 to vector<736x32xf32>
    %8 = arith.maximumf %6, %7 : vector<736x32xf32>
    %c0_7 = arith.constant 0 : index
    %c0_8 = arith.constant 0 : index
    %9 = vector.load %arg7[%c0_7, %c0_8] : memref<736x32xf32, #tpu.memory_space<vmem>>, vector<736x32xf32>
    tpu.vector_store %arg7[%c0_7, %c0_8], %8 {strides = array<i32>} : memref<736x32xf32, #tpu.memory_space<vmem>>, vector<736x32xf32>,
    %c0_9 = arith.constant 0 : index
    %c0_10 = arith.constant 0 : index
    %10 = vector.load %arg7[%c0_9, %c0_10] : memref<736x32xf32, #tpu.memory_space<vmem>>, vector<672x32xf32>
    %11 = arith.truncf %10 : vector<672x32xf32> to vector<672x32xbf16>
    %c0_11 = arith.constant 0 : index
    %c0_12 = arith.constant 0 : index
    %c0_13 = arith.constant 0 : index
    %12 = vector.load %arg4[%c0_11, %c0_12, %c0_13] : memref<9x32x64xbf16, #tpu.memory_space<vmem>>, vector<1x32x64xbf16>
    %13 = vector.shape_cast %12 : vector<1x32x64xbf16> to vector<32x64xbf16>
    %cst_14 = arith.constant dense<0.000000e+00> : vector<672x64xf32>
    %14 = tpu.matmul %11, %13, %cst_14 {dimension_numbers = #tpu.dot_dimension_numbers<[1], [0], [0], [1], [0, 0, 1, 1], [], []>} : vector<672x32xbf16>, vector<32x64xbf16>, vector<672x64xf32> -> vector<672x64xf32>
    %c1 = arith.constant 1 : index
    %c0_15 = arith.constant 0 : index
    %15 = vector.load %arg7[%c1, %c0_15] : memref<736x32xf32, #tpu.memory_space<vmem>>, vector<672x32xf32>
    %16 = arith.truncf %15 : vector<672x32xf32> to vector<672x32xbf16>
    %c1_16 = arith.constant 1 : index
    %c0_17 = arith.constant 0 : index
    %c0_18 = arith.constant 0 : index
    %17 = vector.load %arg4[%c1_16, %c0_17, %c0_18] : memref<9x32x64xbf16, #tpu.memory_space<vmem>>, vector<1x32x64xbf16>
    %18 = vector.shape_cast %17 : vector<1x32x64xbf16> to vector<32x64xbf16>
    %cst_19 = arith.constant dense<0.000000e+00> : vector<672x64xf32>
    %19 = tpu.matmul %16, %18, %cst_19 {dimension_numbers = #tpu.dot_dimension_numbers<[1], [0], [0], [1], [0, 0, 1, 1], [], []>} : vector<672x32xbf16>, vector<32x64xbf16>, vector<672x64xf32> -> vector<672x64xf32>
    %20 = arith.addf %14, %19 : vector<672x64xf32>
    %c2 = arith.constant 2 : index
    %c0_20 = arith.constant 0 : index
    %21 = vector.load %arg7[%c2, %c0_20] : memref<736x32xf32, #tpu.memory_space<vmem>>, vector<672x32xf32>
    %22 = arith.truncf %21 : vector<672x32xf32> to vector<672x32xbf16>
    %c2_21 = arith.constant 2 : index
    %c0_22 = arith.constant 0 : index
    %c0_23 = arith.constant 0 : index
    %23 = vector.load %arg4[%c2_21, %c0_22, %c0_23] : memref<9x32x64xbf16, #tpu.memory_space<vmem>>, vector<1x32x64xbf16>
    %24 = vector.shape_cast %23 : vector<1x32x64xbf16> to vector<32x64xbf16>
    %cst_24 = arith.constant dense<0.000000e+00> : vector<672x64xf32>
    %25 = tpu.matmul %22, %24, %cst_24 {dimension_numbers = #tpu.dot_dimension_numbers<[1], [0], [0], [1], [0, 0, 1, 1], [], []>} : vector<672x32xbf16>, vector<32x64xbf16>, vector<672x64xf32> -> vector<672x64xf32>
    %26 = arith.addf %20, %25 : vector<672x64xf32>
    %c28 = arith.constant 28 : index
    %c0_25 = arith.constant 0 : index
    %27 = vector.load %arg7[%c28, %c0_25] : memref<736x32xf32, #tpu.memory_space<vmem>>, vector<672x32xf32>
    %28 = arith.truncf %27 : vector<672x32xf32> to vector<672x32xbf16>
    %c3 = arith.constant 3 : index
    %c0_26 = arith.constant 0 : index
    %c0_27 = arith.constant 0 : index
    %29 = vector.load %arg4[%c3, %c0_26, %c0_27] : memref<9x32x64xbf16, #tpu.memory_space<vmem>>, vector<1x32x64xbf16>
    %30 = vector.shape_cast %29 : vector<1x32x64xbf16> to vector<32x64xbf16>
    %cst_28 = arith.constant dense<0.000000e+00> : vector<672x64xf32>
    %31 = tpu.matmul %28, %30, %cst_28 {dimension_numbers = #tpu.dot_dimension_numbers<[1], [0], [0], [1], [0, 0, 1, 1], [], []>} : vector<672x32xbf16>, vector<32x64xbf16>, vector<672x64xf32> -> vector<672x64xf32>
    %32 = arith.addf %26, %31 : vector<672x64xf32>
    %c29 = arith.constant 29 : index
    %c0_29 = arith.constant 0 : index
    %33 = vector.load %arg7[%c29, %c0_29] : memref<736x32xf32, #tpu.memory_space<vmem>>, vector<672x32xf32>
    %34 = arith.truncf %33 : vector<672x32xf32> to vector<672x32xbf16>
    %c4 = arith.constant 4 : index
    %c0_30 = arith.constant 0 : index
    %c0_31 = arith.constant 0 : index
    %35 = vector.load %arg4[%c4, %c0_30, %c0_31] : memref<9x32x64xbf16, #tpu.memory_space<vmem>>, vector<1x32x64xbf16>
    %36 = vector.shape_cast %35 : vector<1x32x64xbf16> to vector<32x64xbf16>
    %cst_32 = arith.constant dense<0.000000e+00> : vector<672x64xf32>
    %37 = tpu.matmul %34, %36, %cst_32 {dimension_numbers = #tpu.dot_dimension_numbers<[1], [0], [0], [1], [0, 0, 1, 1], [], []>} : vector<672x32xbf16>, vector<32x64xbf16>, vector<672x64xf32> -> vector<672x64xf32>
    %38 = arith.addf %32, %37 : vector<672x64xf32>
    %c30 = arith.constant 30 : index
    %c0_33 = arith.constant 0 : index
    %39 = vector.load %arg7[%c30, %c0_33] : memref<736x32xf32, #tpu.memory_space<vmem>>, vector<672x32xf32>
    %40 = arith.truncf %39 : vector<672x32xf32> to vector<672x32xbf16>
    %c5 = arith.constant 5 : index
    %c0_34 = arith.constant 0 : index
    %c0_35 = arith.constant 0 : index
    %41 = vector.load %arg4[%c5, %c0_34, %c0_35] : memref<9x32x64xbf16, #tpu.memory_space<vmem>>, vector<1x32x64xbf16>
    %42 = vector.shape_cast %41 : vector<1x32x64xbf16> to vector<32x64xbf16>
    %cst_36 = arith.constant dense<0.000000e+00> : vector<672x64xf32>
    %43 = tpu.matmul %40, %42, %cst_36 {dimension_numbers = #tpu.dot_dimension_numbers<[1], [0], [0], [1], [0, 0, 1, 1], [], []>} : vector<672x32xbf16>, vector<32x64xbf16>, vector<672x64xf32> -> vector<672x64xf32>
    %44 = arith.addf %38, %43 : vector<672x64xf32>
    %c56 = arith.constant 56 : index
    %c0_37 = arith.constant 0 : index
    %45 = vector.load %arg7[%c56, %c0_37] : memref<736x32xf32, #tpu.memory_space<vmem>>, vector<672x32xf32>
    %46 = arith.truncf %45 : vector<672x32xf32> to vector<672x32xbf16>
    %c6 = arith.constant 6 : index
    %c0_38 = arith.constant 0 : index
    %c0_39 = arith.constant 0 : index
    %47 = vector.load %arg4[%c6, %c0_38, %c0_39] : memref<9x32x64xbf16, #tpu.memory_space<vmem>>, vector<1x32x64xbf16>
    %48 = vector.shape_cast %47 : vector<1x32x64xbf16> to vector<32x64xbf16>
    %cst_40 = arith.constant dense<0.000000e+00> : vector<672x64xf32>
    %49 = tpu.matmul %46, %48, %cst_40 {dimension_numbers = #tpu.dot_dimension_numbers<[1], [0], [0], [1], [0, 0, 1, 1], [], []>} : vector<672x32xbf16>, vector<32x64xbf16>, vector<672x64xf32> -> vector<672x64xf32>
    %50 = arith.addf %44, %49 : vector<672x64xf32>
    %c57 = arith.constant 57 : index
    %c0_41 = arith.constant 0 : index
    %51 = vector.load %arg7[%c57, %c0_41] : memref<736x32xf32, #tpu.memory_space<vmem>>, vector<672x32xf32>
    %52 = arith.truncf %51 : vector<672x32xf32> to vector<672x32xbf16>
    %c7 = arith.constant 7 : index
    %c0_42 = arith.constant 0 : index
    %c0_43 = arith.constant 0 : index
    %53 = vector.load %arg4[%c7, %c0_42, %c0_43] : memref<9x32x64xbf16, #tpu.memory_space<vmem>>, vector<1x32x64xbf16>
    %54 = vector.shape_cast %53 : vector<1x32x64xbf16> to vector<32x64xbf16>
    %cst_44 = arith.constant dense<0.000000e+00> : vector<672x64xf32>
    %55 = tpu.matmul %52, %54, %cst_44 {dimension_numbers = #tpu.dot_dimension_numbers<[1], [0], [0], [1], [0, 0, 1, 1], [], []>} : vector<672x32xbf16>, vector<32x64xbf16>, vector<672x64xf32> -> vector<672x64xf32>
    %56 = arith.addf %50, %55 : vector<672x64xf32>
    %c58 = arith.constant 58 : index
    %c0_45 = arith.constant 0 : index
    %57 = vector.load %arg7[%c58, %c0_45] : memref<736x32xf32, #tpu.memory_space<vmem>>, vector<672x32xf32>
    %58 = arith.truncf %57 : vector<672x32xf32> to vector<672x32xbf16>
    %c8 = arith.constant 8 : index
    %c0_46 = arith.constant 0 : index
    %c0_47 = arith.constant 0 : index
    %59 = vector.load %arg4[%c8, %c0_46, %c0_47] : memref<9x32x64xbf16, #tpu.memory_space<vmem>>, vector<1x32x64xbf16>
    %60 = vector.shape_cast %59 : vector<1x32x64xbf16> to vector<32x64xbf16>
    %cst_48 = arith.constant dense<0.000000e+00> : vector<672x64xf32>
    %61 = tpu.matmul %58, %60, %cst_48 {dimension_numbers = #tpu.dot_dimension_numbers<[1], [0], [0], [1], [0, 0, 1, 1], [], []>} : vector<672x32xbf16>, vector<32x64xbf16>, vector<672x64xf32> -> vector<672x64xf32>
    %62 = arith.addf %56, %61 : vector<672x64xf32>
    %c0_49 = arith.constant 0 : index
    %c0_50 = arith.constant 0 : index
    %63 = vector.load %arg5[%c0_49, %c0_50] : memref<1x64xf32, #tpu.memory_space<vmem>>, vector<1x64xf32>
    %64 = vector.broadcast %63 : vector<1x64xf32> to vector<672x64xf32>
    %65 = arith.addf %62, %64 : vector<672x64xf32>
    %cst_51 = arith.constant 0.000000e+00 : f32
    %66 = vector.broadcast %cst_51 : f32 to vector<672x64xf32>
    %67 = arith.maximumf %65, %66 : vector<672x64xf32>
    %c0_52 = arith.constant 0 : index
    %c0_53 = arith.constant 0 : index
    %68 = vector.load %arg8[%c0_52, %c0_53] : memref<672x64xf32, #tpu.memory_space<vmem>>, vector<672x64xf32>
    tpu.vector_store %arg8[%c0_52, %c0_53], %67 {strides = array<i32>} : memref<672x64xf32, #tpu.memory_space<vmem>>, vector<672x64xf32>,
    %c0_54 = arith.constant 0 : index
    %c0_55 = arith.constant 0 : index
    %69 = vector.load %arg8[%c0_54, %c0_55] : memref<672x64xf32, #tpu.memory_space<vmem>>, vector<28x64xf32>
    %c28_56 = arith.constant 28 : index
    %c0_57 = arith.constant 0 : index
    %70 = vector.load %arg8[%c28_56, %c0_57] : memref<672x64xf32, #tpu.memory_space<vmem>>, vector<28x64xf32>
    %71 = arith.maximumf %69, %70 : vector<28x64xf32>
    %c0_58 = arith.constant 0 : index
    %c0_59 = arith.constant 0 : index
    %c0_60 = arith.constant 0 : index
    %72 = vector.load %arg9[%c0_58, %c0_59, %c0_60] : memref<12x28x64xf32, #tpu.memory_space<vmem>>, vector<1x28x64xf32>
    %73 = vector.shape_cast %72 : vector<1x28x64xf32> to vector<28x64xf32>
    %74 = vector.shape_cast %71 : vector<28x64xf32> to vector<1x28x64xf32>
    tpu.vector_store %arg9[%c0_58, %c0_59, %c0_60], %74 {strides = array<i32>} : memref<12x28x64xf32, #tpu.memory_space<vmem>>, vector<1x28x64xf32>,
    %c56_61 = arith.constant 56 : index
    %c0_62 = arith.constant 0 : index
    %75 = vector.load %arg8[%c56_61, %c0_62] : memref<672x64xf32, #tpu.memory_space<vmem>>, vector<28x64xf32>
    %c84 = arith.constant 84 : index
    %c0_63 = arith.constant 0 : index
    %76 = vector.load %arg8[%c84, %c0_63] : memref<672x64xf32, #tpu.memory_space<vmem>>, vector<28x64xf32>
    %77 = arith.maximumf %75, %76 : vector<28x64xf32>
    %c1_64 = arith.constant 1 : index
    %c0_65 = arith.constant 0 : index
    %c0_66 = arith.constant 0 : index
    %78 = vector.load %arg9[%c1_64, %c0_65, %c0_66] : memref<12x28x64xf32, #tpu.memory_space<vmem>>, vector<1x28x64xf32>
    %79 = vector.shape_cast %78 : vector<1x28x64xf32> to vector<28x64xf32>
    %80 = vector.shape_cast %77 : vector<28x64xf32> to vector<1x28x64xf32>
    tpu.vector_store %arg9[%c1_64, %c0_65, %c0_66], %80 {strides = array<i32>} : memref<12x28x64xf32, #tpu.memory_space<vmem>>, vector<1x28x64xf32>,
    %c112 = arith.constant 112 : index
    %c0_67 = arith.constant 0 : index
    %81 = vector.load %arg8[%c112, %c0_67] : memref<672x64xf32, #tpu.memory_space<vmem>>, vector<28x64xf32>
    %c140 = arith.constant 140 : index
    %c0_68 = arith.constant 0 : index
    %82 = vector.load %arg8[%c140, %c0_68] : memref<672x64xf32, #tpu.memory_space<vmem>>, vector<28x64xf32>
    %83 = arith.maximumf %81, %82 : vector<28x64xf32>
    %c2_69 = arith.constant 2 : index
    %c0_70 = arith.constant 0 : index
    %c0_71 = arith.constant 0 : index
    %84 = vector.load %arg9[%c2_69, %c0_70, %c0_71] : memref<12x28x64xf32, #tpu.memory_space<vmem>>, vector<1x28x64xf32>
    %85 = vector.shape_cast %84 : vector<1x28x64xf32> to vector<28x64xf32>
    %86 = vector.shape_cast %83 : vector<28x64xf32> to vector<1x28x64xf32>
    tpu.vector_store %arg9[%c2_69, %c0_70, %c0_71], %86 {strides = array<i32>} : memref<12x28x64xf32, #tpu.memory_space<vmem>>, vector<1x28x64xf32>,
    %c168 = arith.constant 168 : index
    %c0_72 = arith.constant 0 : index
    %87 = vector.load %arg8[%c168, %c0_72] : memref<672x64xf32, #tpu.memory_space<vmem>>, vector<28x64xf32>
    %c196 = arith.constant 196 : index
    %c0_73 = arith.constant 0 : index
    %88 = vector.load %arg8[%c196, %c0_73] : memref<672x64xf32, #tpu.memory_space<vmem>>, vector<28x64xf32>
    %89 = arith.maximumf %87, %88 : vector<28x64xf32>
    %c3_74 = arith.constant 3 : index
    %c0_75 = arith.constant 0 : index
    %c0_76 = arith.constant 0 : index
    %90 = vector.load %arg9[%c3_74, %c0_75, %c0_76] : memref<12x28x64xf32, #tpu.memory_space<vmem>>, vector<1x28x64xf32>
    %91 = vector.shape_cast %90 : vector<1x28x64xf32> to vector<28x64xf32>
    %92 = vector.shape_cast %89 : vector<28x64xf32> to vector<1x28x64xf32>
    tpu.vector_store %arg9[%c3_74, %c0_75, %c0_76], %92 {strides = array<i32>} : memref<12x28x64xf32, #tpu.memory_space<vmem>>, vector<1x28x64xf32>,
    %c224 = arith.constant 224 : index
    %c0_77 = arith.constant 0 : index
    %93 = vector.load %arg8[%c224, %c0_77] : memref<672x64xf32, #tpu.memory_space<vmem>>, vector<28x64xf32>
    %c252 = arith.constant 252 : index
    %c0_78 = arith.constant 0 : index
    %94 = vector.load %arg8[%c252, %c0_78] : memref<672x64xf32, #tpu.memory_space<vmem>>, vector<28x64xf32>
    %95 = arith.maximumf %93, %94 : vector<28x64xf32>
    %c4_79 = arith.constant 4 : index
    %c0_80 = arith.constant 0 : index
    %c0_81 = arith.constant 0 : index
    %96 = vector.load %arg9[%c4_79, %c0_80, %c0_81] : memref<12x28x64xf32, #tpu.memory_space<vmem>>, vector<1x28x64xf32>
    %97 = vector.shape_cast %96 : vector<1x28x64xf32> to vector<28x64xf32>
    %98 = vector.shape_cast %95 : vector<28x64xf32> to vector<1x28x64xf32>
    tpu.vector_store %arg9[%c4_79, %c0_80, %c0_81], %98 {strides = array<i32>} : memref<12x28x64xf32, #tpu.memory_space<vmem>>, vector<1x28x64xf32>,
    %c280 = arith.constant 280 : index
    %c0_82 = arith.constant 0 : index
    %99 = vector.load %arg8[%c280, %c0_82] : memref<672x64xf32, #tpu.memory_space<vmem>>, vector<28x64xf32>
    %c308 = arith.constant 308 : index
    %c0_83 = arith.constant 0 : index
    %100 = vector.load %arg8[%c308, %c0_83] : memref<672x64xf32, #tpu.memory_space<vmem>>, vector<28x64xf32>
    %101 = arith.maximumf %99, %100 : vector<28x64xf32>
    %c5_84 = arith.constant 5 : index
    %c0_85 = arith.constant 0 : index
    %c0_86 = arith.constant 0 : index
    %102 = vector.load %arg9[%c5_84, %c0_85, %c0_86] : memref<12x28x64xf32, #tpu.memory_space<vmem>>, vector<1x28x64xf32>
    %103 = vector.shape_cast %102 : vector<1x28x64xf32> to vector<28x64xf32>
    %104 = vector.shape_cast %101 : vector<28x64xf32> to vector<1x28x64xf32>
    tpu.vector_store %arg9[%c5_84, %c0_85, %c0_86], %104 {strides = array<i32>} : memref<12x28x64xf32, #tpu.memory_space<vmem>>, vector<1x28x64xf32>,
    %c336 = arith.constant 336 : index
    %c0_87 = arith.constant 0 : index
    %105 = vector.load %arg8[%c336, %c0_87] : memref<672x64xf32, #tpu.memory_space<vmem>>, vector<28x64xf32>
    %c364 = arith.constant 364 : index
    %c0_88 = arith.constant 0 : index
    %106 = vector.load %arg8[%c364, %c0_88] : memref<672x64xf32, #tpu.memory_space<vmem>>, vector<28x64xf32>
    %107 = arith.maximumf %105, %106 : vector<28x64xf32>
    %c6_89 = arith.constant 6 : index
    %c0_90 = arith.constant 0 : index
    %c0_91 = arith.constant 0 : index
    %108 = vector.load %arg9[%c6_89, %c0_90, %c0_91] : memref<12x28x64xf32, #tpu.memory_space<vmem>>, vector<1x28x64xf32>
    %109 = vector.shape_cast %108 : vector<1x28x64xf32> to vector<28x64xf32>
    %110 = vector.shape_cast %107 : vector<28x64xf32> to vector<1x28x64xf32>
    tpu.vector_store %arg9[%c6_89, %c0_90, %c0_91], %110 {strides = array<i32>} : memref<12x28x64xf32, #tpu.memory_space<vmem>>, vector<1x28x64xf32>,
    %c392 = arith.constant 392 : index
    %c0_92 = arith.constant 0 : index
    %111 = vector.load %arg8[%c392, %c0_92] : memref<672x64xf32, #tpu.memory_space<vmem>>, vector<28x64xf32>
    %c420 = arith.constant 420 : index
    %c0_93 = arith.constant 0 : index
    %112 = vector.load %arg8[%c420, %c0_93] : memref<672x64xf32, #tpu.memory_space<vmem>>, vector<28x64xf32>
    %113 = arith.maximumf %111, %112 : vector<28x64xf32>
    %c7_94 = arith.constant 7 : index
    %c0_95 = arith.constant 0 : index
    %c0_96 = arith.constant 0 : index
    %114 = vector.load %arg9[%c7_94, %c0_95, %c0_96] : memref<12x28x64xf32, #tpu.memory_space<vmem>>, vector<1x28x64xf32>
    %115 = vector.shape_cast %114 : vector<1x28x64xf32> to vector<28x64xf32>
    %116 = vector.shape_cast %113 : vector<28x64xf32> to vector<1x28x64xf32>
    tpu.vector_store %arg9[%c7_94, %c0_95, %c0_96], %116 {strides = array<i32>} : memref<12x28x64xf32, #tpu.memory_space<vmem>>, vector<1x28x64xf32>,
    %c448 = arith.constant 448 : index
    %c0_97 = arith.constant 0 : index
    %117 = vector.load %arg8[%c448, %c0_97] : memref<672x64xf32, #tpu.memory_space<vmem>>, vector<28x64xf32>
    %c476 = arith.constant 476 : index
    %c0_98 = arith.constant 0 : index
    %118 = vector.load %arg8[%c476, %c0_98] : memref<672x64xf32, #tpu.memory_space<vmem>>, vector<28x64xf32>
    %119 = arith.maximumf %117, %118 : vector<28x64xf32>
    %c8_99 = arith.constant 8 : index
    %c0_100 = arith.constant 0 : index
    %c0_101 = arith.constant 0 : index
    %120 = vector.load %arg9[%c8_99, %c0_100, %c0_101] : memref<12x28x64xf32, #tpu.memory_space<vmem>>, vector<1x28x64xf32>
    %121 = vector.shape_cast %120 : vector<1x28x64xf32> to vector<28x64xf32>
    %122 = vector.shape_cast %119 : vector<28x64xf32> to vector<1x28x64xf32>
    tpu.vector_store %arg9[%c8_99, %c0_100, %c0_101], %122 {strides = array<i32>} : memref<12x28x64xf32, #tpu.memory_space<vmem>>, vector<1x28x64xf32>,
    %c504 = arith.constant 504 : index
    %c0_102 = arith.constant 0 : index
    %123 = vector.load %arg8[%c504, %c0_102] : memref<672x64xf32, #tpu.memory_space<vmem>>, vector<28x64xf32>
    %c532 = arith.constant 532 : index
    %c0_103 = arith.constant 0 : index
    %124 = vector.load %arg8[%c532, %c0_103] : memref<672x64xf32, #tpu.memory_space<vmem>>, vector<28x64xf32>
    %125 = arith.maximumf %123, %124 : vector<28x64xf32>
    %c9 = arith.constant 9 : index
    %c0_104 = arith.constant 0 : index
    %c0_105 = arith.constant 0 : index
    %126 = vector.load %arg9[%c9, %c0_104, %c0_105] : memref<12x28x64xf32, #tpu.memory_space<vmem>>, vector<1x28x64xf32>
    %127 = vector.shape_cast %126 : vector<1x28x64xf32> to vector<28x64xf32>
    %128 = vector.shape_cast %125 : vector<28x64xf32> to vector<1x28x64xf32>
    tpu.vector_store %arg9[%c9, %c0_104, %c0_105], %128 {strides = array<i32>} : memref<12x28x64xf32, #tpu.memory_space<vmem>>, vector<1x28x64xf32>,
    %c560 = arith.constant 560 : index
    %c0_106 = arith.constant 0 : index
    %129 = vector.load %arg8[%c560, %c0_106] : memref<672x64xf32, #tpu.memory_space<vmem>>, vector<28x64xf32>
    %c588 = arith.constant 588 : index
    %c0_107 = arith.constant 0 : index
    %130 = vector.load %arg8[%c588, %c0_107] : memref<672x64xf32, #tpu.memory_space<vmem>>, vector<28x64xf32>
    %131 = arith.maximumf %129, %130 : vector<28x64xf32>
    %c10 = arith.constant 10 : index
    %c0_108 = arith.constant 0 : index
    %c0_109 = arith.constant 0 : index
    %132 = vector.load %arg9[%c10, %c0_108, %c0_109] : memref<12x28x64xf32, #tpu.memory_space<vmem>>, vector<1x28x64xf32>
    %133 = vector.shape_cast %132 : vector<1x28x64xf32> to vector<28x64xf32>
    %134 = vector.shape_cast %131 : vector<28x64xf32> to vector<1x28x64xf32>
    tpu.vector_store %arg9[%c10, %c0_108, %c0_109], %134 {strides = array<i32>} : memref<12x28x64xf32, #tpu.memory_space<vmem>>, vector<1x28x64xf32>,
    %c616 = arith.constant 616 : index
    %c0_110 = arith.constant 0 : index
    %135 = vector.load %arg8[%c616, %c0_110] : memref<672x64xf32, #tpu.memory_space<vmem>>, vector<28x64xf32>
    %c644 = arith.constant 644 : index
    %c0_111 = arith.constant 0 : index
    %136 = vector.load %arg8[%c644, %c0_111] : memref<672x64xf32, #tpu.memory_space<vmem>>, vector<28x64xf32>
    %137 = arith.maximumf %135, %136 : vector<28x64xf32>
    %c11 = arith.constant 11 : index
    %c0_112 = arith.constant 0 : index
    %c0_113 = arith.constant 0 : index
    %138 = vector.load %arg9[%c11, %c0_112, %c0_113] : memref<12x28x64xf32, #tpu.memory_space<vmem>>, vector<1x28x64xf32>
    %139 = vector.shape_cast %138 : vector<1x28x64xf32> to vector<28x64xf32>
    %140 = vector.shape_cast %137 : vector<28x64xf32> to vector<1x28x64xf32>
    tpu.vector_store %arg9[%c11, %c0_112, %c0_113], %140 {strides = array<i32>} : memref<12x28x64xf32, #tpu.memory_space<vmem>>, vector<1x28x64xf32>,
    %c0_114 = arith.constant 0 : index
    %c0_115 = arith.constant 0 : index
    %c0_116 = arith.constant 0 : index
    %141 = vector.load %arg9[%c0_114, %c0_115, %c0_116] : memref<12x28x64xf32, #tpu.memory_space<vmem>>, vector<12x1x64xf32>
    %c0_117 = arith.constant 0 : index
    %c1_118 = arith.constant 1 : index
    %c0_119 = arith.constant 0 : index
    %142 = vector.load %arg9[%c0_117, %c1_118, %c0_119] : memref<12x28x64xf32, #tpu.memory_space<vmem>>, vector<12x1x64xf32>
    %143 = arith.maximumf %141, %142 : vector<12x1x64xf32>
    %c0_120 = arith.constant 0 : index
    %c0_121 = arith.constant 0 : index
    %c0_122 = arith.constant 0 : index
    %144 = vector.load %arg10[%c0_120, %c0_121, %c0_122] : memref<12x12x64xf32, #tpu.memory_space<vmem>>, vector<12x1x64xf32>
    tpu.vector_store %arg10[%c0_120, %c0_121, %c0_122], %143 {strides = array<i32>} : memref<12x12x64xf32, #tpu.memory_space<vmem>>, vector<12x1x64xf32>,
    %c0_123 = arith.constant 0 : index
    %c2_124 = arith.constant 2 : index
    %c0_125 = arith.constant 0 : index
    %145 = vector.load %arg9[%c0_123, %c2_124, %c0_125] : memref<12x28x64xf32, #tpu.memory_space<vmem>>, vector<12x1x64xf32>
    %c0_126 = arith.constant 0 : index
    %c3_127 = arith.constant 3 : index
    %c0_128 = arith.constant 0 : index
    %146 = vector.load %arg9[%c0_126, %c3_127, %c0_128] : memref<12x28x64xf32, #tpu.memory_space<vmem>>, vector<12x1x64xf32>
    %147 = arith.maximumf %145, %146 : vector<12x1x64xf32>
    %c0_129 = arith.constant 0 : index
    %c1_130 = arith.constant 1 : index
    %c0_131 = arith.constant 0 : index
    %148 = vector.load %arg10[%c0_129, %c1_130, %c0_131] : memref<12x12x64xf32, #tpu.memory_space<vmem>>, vector<12x1x64xf32>
    tpu.vector_store %arg10[%c0_129, %c1_130, %c0_131], %147 {strides = array<i32>} : memref<12x12x64xf32, #tpu.memory_space<vmem>>, vector<12x1x64xf32>,
    %c0_132 = arith.constant 0 : index
    %c4_133 = arith.constant 4 : index
    %c0_134 = arith.constant 0 : index
    %149 = vector.load %arg9[%c0_132, %c4_133, %c0_134] : memref<12x28x64xf32, #tpu.memory_space<vmem>>, vector<12x1x64xf32>
    %c0_135 = arith.constant 0 : index
    %c5_136 = arith.constant 5 : index
    %c0_137 = arith.constant 0 : index
    %150 = vector.load %arg9[%c0_135, %c5_136, %c0_137] : memref<12x28x64xf32, #tpu.memory_space<vmem>>, vector<12x1x64xf32>
    %151 = arith.maximumf %149, %150 : vector<12x1x64xf32>
    %c0_138 = arith.constant 0 : index
    %c2_139 = arith.constant 2 : index
    %c0_140 = arith.constant 0 : index
    %152 = vector.load %arg10[%c0_138, %c2_139, %c0_140] : memref<12x12x64xf32, #tpu.memory_space<vmem>>, vector<12x1x64xf32>
    tpu.vector_store %arg10[%c0_138, %c2_139, %c0_140], %151 {strides = array<i32>} : memref<12x12x64xf32, #tpu.memory_space<vmem>>, vector<12x1x64xf32>,
    %c0_141 = arith.constant 0 : index
    %c6_142 = arith.constant 6 : index
    %c0_143 = arith.constant 0 : index
    %153 = vector.load %arg9[%c0_141, %c6_142, %c0_143] : memref<12x28x64xf32, #tpu.memory_space<vmem>>, vector<12x1x64xf32>
    %c0_144 = arith.constant 0 : index
    %c7_145 = arith.constant 7 : index
    %c0_146 = arith.constant 0 : index
    %154 = vector.load %arg9[%c0_144, %c7_145, %c0_146] : memref<12x28x64xf32, #tpu.memory_space<vmem>>, vector<12x1x64xf32>
    %155 = arith.maximumf %153, %154 : vector<12x1x64xf32>
    %c0_147 = arith.constant 0 : index
    %c3_148 = arith.constant 3 : index
    %c0_149 = arith.constant 0 : index
    %156 = vector.load %arg10[%c0_147, %c3_148, %c0_149] : memref<12x12x64xf32, #tpu.memory_space<vmem>>, vector<12x1x64xf32>
    tpu.vector_store %arg10[%c0_147, %c3_148, %c0_149], %155 {strides = array<i32>} : memref<12x12x64xf32, #tpu.memory_space<vmem>>, vector<12x1x64xf32>,
    %c0_150 = arith.constant 0 : index
    %c8_151 = arith.constant 8 : index
    %c0_152 = arith.constant 0 : index
    %157 = vector.load %arg9[%c0_150, %c8_151, %c0_152] : memref<12x28x64xf32, #tpu.memory_space<vmem>>, vector<12x1x64xf32>
    %c0_153 = arith.constant 0 : index
    %c9_154 = arith.constant 9 : index
    %c0_155 = arith.constant 0 : index
    %158 = vector.load %arg9[%c0_153, %c9_154, %c0_155] : memref<12x28x64xf32, #tpu.memory_space<vmem>>, vector<12x1x64xf32>
    %159 = arith.maximumf %157, %158 : vector<12x1x64xf32>
    %c0_156 = arith.constant 0 : index
    %c4_157 = arith.constant 4 : index
    %c0_158 = arith.constant 0 : index
    %160 = vector.load %arg10[%c0_156, %c4_157, %c0_158] : memref<12x12x64xf32, #tpu.memory_space<vmem>>, vector<12x1x64xf32>
    tpu.vector_store %arg10[%c0_156, %c4_157, %c0_158], %159 {strides = array<i32>} : memref<12x12x64xf32, #tpu.memory_space<vmem>>, vector<12x1x64xf32>,
    %c0_159 = arith.constant 0 : index
    %c10_160 = arith.constant 10 : index
    %c0_161 = arith.constant 0 : index
    %161 = vector.load %arg9[%c0_159, %c10_160, %c0_161] : memref<12x28x64xf32, #tpu.memory_space<vmem>>, vector<12x1x64xf32>
    %c0_162 = arith.constant 0 : index
    %c11_163 = arith.constant 11 : index
    %c0_164 = arith.constant 0 : index
    %162 = vector.load %arg9[%c0_162, %c11_163, %c0_164] : memref<12x28x64xf32, #tpu.memory_space<vmem>>, vector<12x1x64xf32>
    %163 = arith.maximumf %161, %162 : vector<12x1x64xf32>
    %c0_165 = arith.constant 0 : index
    %c5_166 = arith.constant 5 : index
    %c0_167 = arith.constant 0 : index
    %164 = vector.load %arg10[%c0_165, %c5_166, %c0_167] : memref<12x12x64xf32, #tpu.memory_space<vmem>>, vector<12x1x64xf32>
    tpu.vector_store %arg10[%c0_165, %c5_166, %c0_167], %163 {strides = array<i32>} : memref<12x12x64xf32, #tpu.memory_space<vmem>>, vector<12x1x64xf32>,
    %c0_168 = arith.constant 0 : index
    %c12 = arith.constant 12 : index
    %c0_169 = arith.constant 0 : index
    %165 = vector.load %arg9[%c0_168, %c12, %c0_169] : memref<12x28x64xf32, #tpu.memory_space<vmem>>, vector<12x1x64xf32>
    %c0_170 = arith.constant 0 : index
    %c13 = arith.constant 13 : index
    %c0_171 = arith.constant 0 : index
    %166 = vector.load %arg9[%c0_170, %c13, %c0_171] : memref<12x28x64xf32, #tpu.memory_space<vmem>>, vector<12x1x64xf32>
    %167 = arith.maximumf %165, %166 : vector<12x1x64xf32>
    %c0_172 = arith.constant 0 : index
    %c6_173 = arith.constant 6 : index
    %c0_174 = arith.constant 0 : index
    %168 = vector.load %arg10[%c0_172, %c6_173, %c0_174] : memref<12x12x64xf32, #tpu.memory_space<vmem>>, vector<12x1x64xf32>
    tpu.vector_store %arg10[%c0_172, %c6_173, %c0_174], %167 {strides = array<i32>} : memref<12x12x64xf32, #tpu.memory_space<vmem>>, vector<12x1x64xf32>,
    %c0_175 = arith.constant 0 : index
    %c14 = arith.constant 14 : index
    %c0_176 = arith.constant 0 : index
    %169 = vector.load %arg9[%c0_175, %c14, %c0_176] : memref<12x28x64xf32, #tpu.memory_space<vmem>>, vector<12x1x64xf32>
    %c0_177 = arith.constant 0 : index
    %c15 = arith.constant 15 : index
    %c0_178 = arith.constant 0 : index
    %170 = vector.load %arg9[%c0_177, %c15, %c0_178] : memref<12x28x64xf32, #tpu.memory_space<vmem>>, vector<12x1x64xf32>
    %171 = arith.maximumf %169, %170 : vector<12x1x64xf32>
    %c0_179 = arith.constant 0 : index
    %c7_180 = arith.constant 7 : index
    %c0_181 = arith.constant 0 : index
    %172 = vector.load %arg10[%c0_179, %c7_180, %c0_181] : memref<12x12x64xf32, #tpu.memory_space<vmem>>, vector<12x1x64xf32>
    tpu.vector_store %arg10[%c0_179, %c7_180, %c0_181], %171 {strides = array<i32>} : memref<12x12x64xf32, #tpu.memory_space<vmem>>, vector<12x1x64xf32>,
    %c0_182 = arith.constant 0 : index
    %c16 = arith.constant 16 : index
    %c0_183 = arith.constant 0 : index
    %173 = vector.load %arg9[%c0_182, %c16, %c0_183] : memref<12x28x64xf32, #tpu.memory_space<vmem>>, vector<12x1x64xf32>
    %c0_184 = arith.constant 0 : index
    %c17 = arith.constant 17 : index
    %c0_185 = arith.constant 0 : index
    %174 = vector.load %arg9[%c0_184, %c17, %c0_185] : memref<12x28x64xf32, #tpu.memory_space<vmem>>, vector<12x1x64xf32>
    %175 = arith.maximumf %173, %174 : vector<12x1x64xf32>
    %c0_186 = arith.constant 0 : index
    %c8_187 = arith.constant 8 : index
    %c0_188 = arith.constant 0 : index
    %176 = vector.load %arg10[%c0_186, %c8_187, %c0_188] : memref<12x12x64xf32, #tpu.memory_space<vmem>>, vector<12x1x64xf32>
    tpu.vector_store %arg10[%c0_186, %c8_187, %c0_188], %175 {strides = array<i32>} : memref<12x12x64xf32, #tpu.memory_space<vmem>>, vector<12x1x64xf32>,
    %c0_189 = arith.constant 0 : index
    %c18 = arith.constant 18 : index
    %c0_190 = arith.constant 0 : index
    %177 = vector.load %arg9[%c0_189, %c18, %c0_190] : memref<12x28x64xf32, #tpu.memory_space<vmem>>, vector<12x1x64xf32>
    %c0_191 = arith.constant 0 : index
    %c19 = arith.constant 19 : index
    %c0_192 = arith.constant 0 : index
    %178 = vector.load %arg9[%c0_191, %c19, %c0_192] : memref<12x28x64xf32, #tpu.memory_space<vmem>>, vector<12x1x64xf32>
    %179 = arith.maximumf %177, %178 : vector<12x1x64xf32>
    %c0_193 = arith.constant 0 : index
    %c9_194 = arith.constant 9 : index
    %c0_195 = arith.constant 0 : index
    %180 = vector.load %arg10[%c0_193, %c9_194, %c0_195] : memref<12x12x64xf32, #tpu.memory_space<vmem>>, vector<12x1x64xf32>
    tpu.vector_store %arg10[%c0_193, %c9_194, %c0_195], %179 {strides = array<i32>} : memref<12x12x64xf32, #tpu.memory_space<vmem>>, vector<12x1x64xf32>,
    %c0_196 = arith.constant 0 : index
    %c20 = arith.constant 20 : index
    %c0_197 = arith.constant 0 : index
    %181 = vector.load %arg9[%c0_196, %c20, %c0_197] : memref<12x28x64xf32, #tpu.memory_space<vmem>>, vector<12x1x64xf32>
    %c0_198 = arith.constant 0 : index
    %c21 = arith.constant 21 : index
    %c0_199 = arith.constant 0 : index
    %182 = vector.load %arg9[%c0_198, %c21, %c0_199] : memref<12x28x64xf32, #tpu.memory_space<vmem>>, vector<12x1x64xf32>
    %183 = arith.maximumf %181, %182 : vector<12x1x64xf32>
    %c0_200 = arith.constant 0 : index
    %c10_201 = arith.constant 10 : index
    %c0_202 = arith.constant 0 : index
    %184 = vector.load %arg10[%c0_200, %c10_201, %c0_202] : memref<12x12x64xf32, #tpu.memory_space<vmem>>, vector<12x1x64xf32>
    tpu.vector_store %arg10[%c0_200, %c10_201, %c0_202], %183 {strides = array<i32>} : memref<12x12x64xf32, #tpu.memory_space<vmem>>, vector<12x1x64xf32>,
    %c0_203 = arith.constant 0 : index
    %c22 = arith.constant 22 : index
    %c0_204 = arith.constant 0 : index
    %185 = vector.load %arg9[%c0_203, %c22, %c0_204] : memref<12x28x64xf32, #tpu.memory_space<vmem>>, vector<12x1x64xf32>
    %c0_205 = arith.constant 0 : index
    %c23 = arith.constant 23 : index
    %c0_206 = arith.constant 0 : index
    %186 = vector.load %arg9[%c0_205, %c23, %c0_206] : memref<12x28x64xf32, #tpu.memory_space<vmem>>, vector<12x1x64xf32>
    %187 = arith.maximumf %185, %186 : vector<12x1x64xf32>
    %c0_207 = arith.constant 0 : index
    %c11_208 = arith.constant 11 : index
    %c0_209 = arith.constant 0 : index
    %188 = vector.load %arg10[%c0_207, %c11_208, %c0_209] : memref<12x12x64xf32, #tpu.memory_space<vmem>>, vector<12x1x64xf32>
    tpu.vector_store %arg10[%c0_207, %c11_208, %c0_209], %187 {strides = array<i32>} : memref<12x12x64xf32, #tpu.memory_space<vmem>>, vector<12x1x64xf32>,
    %c0_210 = arith.constant 0 : index
    %c0_211 = arith.constant 0 : index
    %c0_212 = arith.constant 0 : index
    %189 = vector.load %arg10[%c0_210, %c0_211, %c0_212] : memref<12x12x64xf32, #tpu.memory_space<vmem>>, vector<12x12x64xf32>
    %190 = arith.truncf %189 : vector<12x12x64xf32> to vector<12x12x64xbf16>
    %c0_213 = arith.constant 0 : index
    %c0_214 = arith.constant 0 : index
    %c0_215 = arith.constant 0 : index
    %c0_216 = arith.constant 0 : index
    %191 = vector.load %arg6[%c0_213, %c0_214, %c0_215, %c0_216] : memref<1x12x12x64xbf16, #tpu.memory_space<vmem>>, vector<1x12x12x64xbf16>
    %192 = vector.shape_cast %191 : vector<1x12x12x64xbf16> to vector<12x12x64xbf16>
    %193 = vector.shape_cast %190 : vector<12x12x64xbf16> to vector<1x12x12x64xbf16>
    tpu.vector_store %arg6[%c0_213, %c0_214, %c0_215, %c0_216], %193 {strides = array<i32>} : memref<1x12x12x64xbf16, #tpu.memory_space<vmem>>, vector<1x12x12x64xbf16>,
    return
  }
  func.func @transform_0(%arg0: i32) -> (i32, i32, i32) {
    %c0_i32 = arith.constant 0 : i32
    %c0_i32_0 = arith.constant 0 : i32
    %c0_i32_1 = arith.constant 0 : i32
    return %arg0, %c0_i32, %c0_i32_0 : i32, i32, i32
  }
  func.func @transform_1(%arg0: i32) -> (i32, i32) {
    %c0_i32 = arith.constant 0 : i32
    %c0_i32_0 = arith.constant 0 : i32
    %c0_i32_1 = arith.constant 0 : i32
    return %c0_i32, %c0_i32_0 : i32, i32
  }
  func.func @transform_2(%arg0: i32) -> (i32, i32) {
    %c0_i32 = arith.constant 0 : i32
    %c0_i32_0 = arith.constant 0 : i32
    %c0_i32_1 = arith.constant 0 : i32
    return %c0_i32, %c0_i32_0 : i32, i32
  }
  func.func @transform_3(%arg0: i32) -> (i32, i32, i32) {
    %c0_i32 = arith.constant 0 : i32
    %c0_i32_0 = arith.constant 0 : i32
    %c0_i32_1 = arith.constant 0 : i32
    %c0_i32_2 = arith.constant 0 : i32
    return %c0_i32, %c0_i32_0, %c0_i32_1 : i32, i32, i32
  }
  func.func @transform_4(%arg0: i32) -> (i32, i32) {
    %c0_i32 = arith.constant 0 : i32
    %c0_i32_0 = arith.constant 0 : i32
    %c0_i32_1 = arith.constant 0 : i32
    return %c0_i32, %c0_i32_0 : i32, i32
  }
  func.func @transform_5(%arg0: i32) -> (i32, i32, i32, i32) {
    %c0_i32 = arith.constant 0 : i32
    %c0_i32_0 = arith.constant 0 : i32
    %c0_i32_1 = arith.constant 0 : i32
    %c0_i32_2 = arith.constant 0 : i32
    return %arg0, %c0_i32, %c0_i32_0, %c0_i32_1 : i32, i32, i32, i32
  }
}

module attributes {stable_mosaic.version = 11 : i64} {
  func.func @_mlp_head_kernel(%arg0: i32, %arg1: memref<8x9216xbf16, #tpu.memory_space<vmem>>, %arg2: memref<9216x128xbf16, #tpu.memory_space<vmem>>, %arg3: memref<1x128xf32, #tpu.memory_space<vmem>>, %arg4: memref<128x10xbf16, #tpu.memory_space<vmem>>, %arg5: memref<1x10xf32, #tpu.memory_space<vmem>>, %arg6: memref<8x10xf32, #tpu.memory_space<vmem>>) attributes {dimension_semantics = [#tpu.dimension_semantics<parallel>], iteration_bounds = array<i64: 1>, scalar_prefetch = 0 : i64, scratch_operands = 0 : i64, tpu.core_type = #tpu.core_type<tc>, window_params = [{transform_indices = @transform_0, window_bounds = array<i64: 8, 9216>}, {pipeline_mode = #tpu.pipeline_mode<synchronous>, transform_indices = @transform_1, window_bounds = array<i64: 9216, 128>}, {pipeline_mode = #tpu.pipeline_mode<synchronous>, transform_indices = @transform_2, window_bounds = array<i64: 1, 128>}, {pipeline_mode = #tpu.pipeline_mode<synchronous>, transform_indices = @transform_3, window_bounds = array<i64: 128, 10>}, {pipeline_mode = #tpu.pipeline_mode<synchronous>, transform_indices = @transform_4, window_bounds = array<i64: 1, 10>}, {transform_indices = @transform_5, window_bounds = array<i64: 8, 10>}]} {
    %c0 = arith.constant 0 : index
    %c0_0 = arith.constant 0 : index
    %0 = vector.load %arg1[%c0, %c0_0] : memref<8x9216xbf16, #tpu.memory_space<vmem>>, vector<8x9216xbf16>
    %c0_1 = arith.constant 0 : index
    %c0_2 = arith.constant 0 : index
    %1 = vector.load %arg2[%c0_1, %c0_2] : memref<9216x128xbf16, #tpu.memory_space<vmem>>, vector<9216x128xbf16>
    %cst = arith.constant dense<0.000000e+00> : vector<8x128xf32>
    %2 = tpu.matmul %0, %1, %cst {dimension_numbers = #tpu.dot_dimension_numbers<[1], [0], [0], [1], [0, 0, 1, 1], [], []>} : vector<8x9216xbf16>, vector<9216x128xbf16>, vector<8x128xf32> -> vector<8x128xf32>
    %c0_3 = arith.constant 0 : index
    %c0_4 = arith.constant 0 : index
    %3 = vector.load %arg3[%c0_3, %c0_4] : memref<1x128xf32, #tpu.memory_space<vmem>>, vector<1x128xf32>
    %4 = vector.broadcast %3 : vector<1x128xf32> to vector<8x128xf32>
    %5 = arith.addf %2, %4 : vector<8x128xf32>
    %cst_5 = arith.constant 0.000000e+00 : f32
    %6 = vector.broadcast %cst_5 : f32 to vector<8x128xf32>
    %7 = arith.maximumf %5, %6 : vector<8x128xf32>
    %8 = arith.truncf %7 : vector<8x128xf32> to vector<8x128xbf16>
    %c0_6 = arith.constant 0 : index
    %c0_7 = arith.constant 0 : index
    %9 = vector.load %arg4[%c0_6, %c0_7] : memref<128x10xbf16, #tpu.memory_space<vmem>>, vector<128x10xbf16>
    %cst_8 = arith.constant dense<0.000000e+00> : vector<8x10xf32>
    %10 = tpu.matmul %8, %9, %cst_8 {dimension_numbers = #tpu.dot_dimension_numbers<[1], [0], [0], [1], [0, 0, 1, 1], [], []>} : vector<8x128xbf16>, vector<128x10xbf16>, vector<8x10xf32> -> vector<8x10xf32>
    %c0_9 = arith.constant 0 : index
    %c0_10 = arith.constant 0 : index
    %11 = vector.load %arg5[%c0_9, %c0_10] : memref<1x10xf32, #tpu.memory_space<vmem>>, vector<1x10xf32>
    %12 = vector.broadcast %11 : vector<1x10xf32> to vector<8x10xf32>
    %13 = arith.addf %10, %12 : vector<8x10xf32>
    %cst_11 = arith.constant dense<0xFF800000> : vector<8xf32>
    %14 = vector.multi_reduction <maximumf>, %13, %cst_11 [1] : vector<8x10xf32> to vector<8xf32>
    %15 = vector.shape_cast %14 : vector<8xf32> to vector<8x1xf32>
    %16 = vector.broadcast %15 : vector<8x1xf32> to vector<8x10xf32>
    %17 = arith.subf %13, %16 : vector<8x10xf32>
    %18 = math.exp %17 : vector<8x10xf32>
    %cst_12 = arith.constant dense<0.000000e+00> : vector<8xf32>
    %19 = vector.multi_reduction <add>, %18, %cst_12 [1] : vector<8x10xf32> to vector<8xf32>
    %20 = vector.shape_cast %19 : vector<8xf32> to vector<8x1xf32>
    %21 = math.log %20 : vector<8x1xf32>
    %22 = arith.addf %21, %15 : vector<8x1xf32>
    %23 = vector.broadcast %22 : vector<8x1xf32> to vector<8x10xf32>
    %24 = arith.subf %13, %23 : vector<8x10xf32>
    %c0_13 = arith.constant 0 : index
    %c0_14 = arith.constant 0 : index
    %25 = vector.load %arg6[%c0_13, %c0_14] : memref<8x10xf32, #tpu.memory_space<vmem>>, vector<8x10xf32>
    tpu.vector_store %arg6[%c0_13, %c0_14], %24 {strides = array<i32>} : memref<8x10xf32, #tpu.memory_space<vmem>>, vector<8x10xf32>,
    return
  }
  func.func @transform_0(%arg0: i32) -> (i32, i32) {
    %c0_i32 = arith.constant 0 : i32
    %c0_i32_0 = arith.constant 0 : i32
    return %arg0, %c0_i32 : i32, i32
  }
  func.func @transform_1(%arg0: i32) -> (i32, i32) {
    %c0_i32 = arith.constant 0 : i32
    %c0_i32_0 = arith.constant 0 : i32
    %c0_i32_1 = arith.constant 0 : i32
    return %c0_i32, %c0_i32_0 : i32, i32
  }
  func.func @transform_2(%arg0: i32) -> (i32, i32) {
    %c0_i32 = arith.constant 0 : i32
    %c0_i32_0 = arith.constant 0 : i32
    %c0_i32_1 = arith.constant 0 : i32
    return %c0_i32, %c0_i32_0 : i32, i32
  }
  func.func @transform_3(%arg0: i32) -> (i32, i32) {
    %c0_i32 = arith.constant 0 : i32
    %c0_i32_0 = arith.constant 0 : i32
    %c0_i32_1 = arith.constant 0 : i32
    return %c0_i32, %c0_i32_0 : i32, i32
  }
  func.func @transform_4(%arg0: i32) -> (i32, i32) {
    %c0_i32 = arith.constant 0 : i32
    %c0_i32_0 = arith.constant 0 : i32
    %c0_i32_1 = arith.constant 0 : i32
    return %c0_i32, %c0_i32_0 : i32, i32
  }
  func.func @transform_5(%arg0: i32) -> (i32, i32) {
    %c0_i32 = arith.constant 0 : i32
    %c0_i32_0 = arith.constant 0 : i32
    return %arg0, %c0_i32 : i32, i32
  }
}

</mosaic_0001>

<bundles_post_ra>
// kernel: net_forward.2
= control target key start
LH: loop header
LB: loop body
LE: loop exit
PB: predicated region body
PF: predicated region fallthrough
CT: control target
= control target key end

     0   :  { %s11561_s18 = smov 0   ;;  %s12992_s0 = inlined_call_operand.vmem [shape: bf16[2,736,16], index: 0, kind: input, shape index: {}]   ;;  %s12993_s1 = inlined_call_operand.vmem [shape: bf16[16,32], index: 1, kind: input, shape index: {}]   ;;  %s12994_s2 = inlined_call_operand.vmem [shape: f32[1,32], index: 2, kind: input, shape index: {}]   ;;  %s12995_s3 = inlined_call_operand.vmem [shape: bf16[9,32,64], index: 3, kind: input, shape index: {}]   ;;  %s12996_s4 = inlined_call_operand.vmem [shape: f32[1,64], index: 4, kind: input, shape index: {}]   ;;  %s12997_s5 = inlined_call_operand.vmem [shape: bf16[2,12,12,64], index: 5, kind: output, shape index: {}]  }
   0x1 LB: > { %s8858_s19 = sadd.s32 4294967295, %s11529_s18   ;;  %p8862_p0 = scmp.ge.s32.totalorder %s11529_s18, 1  ;;  %s11529_s18 = sphi %s11561_s18, %s15_s18  }
   0x2   : > { %p187_p1 = scmp.lt.s32.totalorder %s11529_s18, 3 }
   0x4   : > { %p188_p2 = pnand %p8862_p0, %p187_p1 }
   0x6   : > { %191 = sbr.rel (%p188_p2) target bundleno = 1593 (0x639), region = 40 }
   0xd   : > { %v11453_v0 = vld [vmem:[%s12993_s1] sm:$0xff]   ;;  %p215_p3 = scmp.lt.s32.totalorder %s8858_s19, 1  ;;  %vm563_vm0 = vcmask 130048   ;;  %v11500_v28 = vld [vmem:[%s12995_s3 + $0x10] sm:$0xff]   ;;  %v11501_v31 = vld [vmem:[%s12995_s3 + $0x18] sm:$0xff]   ;;  %vm1195_vm1 = vcmask 261120  }
   0xe   : > { %9881 = vmatprep.subr.bf16.mxu0 %v11453_v0  ;;  %v11681_v49 = vld [vmem:[%s12994_s2] ss:$0 sm:$0xff]  ;;  %vm7792_vm2 = vcmask 523264   ;;  %vm7892_vm3 = vcmask 519168   ;;  %vm8117_vm4 = vcmask 516096   ;;  %vm8779_vm5 = vcmask 517120  }
   0xf   : > { %s13069_s19 = smov (!%p215_p3, %s8858_s19), 1  ;;  %9882 = vmatpush3.bf16.msra.mxu0 %v11453_v0 }
  0x10   : > { %s11443_s22 = smul.u32 368, %s13069_s19  ;;  %9975 = vmatprep.subr.bf16.mxu0 %v11500_v28 }
  0x11   : > { %s11444_s26 = smul.u32 96, %s13069_s19 }
  0x12   : > { %s11578_s25 = scalar_lea.vmem %s12992_s0, %s11443_s22 }
  0x13   : > { %v11454_v1 = vld [vmem:[%s11578_s25] sm:$0xff]   ;;  %v11455_v2 = vld [vmem:[%s11578_s25 + $0x8] sm:$0xff]   ;;  %v11456_v3 = vld [vmem:[%s11578_s25 + $0x10] sm:$0xff]   ;;  %s12571_s28 = scalar_lea.vmem %s12997_s5, %s11444_s26 }
  0x14   : > { %9883 = vmatprep.mubr.msk.bf16.mxu0 %vm563_vm0, %v11454_v1  ;;  %v11457_v4 = vld [vmem:[%s11578_s25 + $0x18] sm:$0xff]   ;;  %v11458_v5 = vld [vmem:[%s11578_s25 + $0x20] sm:$0xff]   ;;  %v11459_v6 = vld [vmem:[%s11578_s25 + $0x28] sm:$0xff]  }
  0x15   : > { %9884 = vmatmul.mubr.msk.bf16.vlgmr.msra.gmra.mrb[0].mxu0 %vm563_vm0, %v11455_v2  ;;  %v11460_v7 = vld [vmem:[%s11578_s25 + $0x30] sm:$0xff]   ;;  %v11461_v8 = vld [vmem:[%s11578_s25 + $0x38] sm:$0xff]   ;;  %v11462_v9 = vld [vmem:[%s11578_s25 + $0x40] sm:$0xff]  }
  0x16   : > { %9887 = vmatprep.mubr.msk.bf16.mxu0 %vm563_vm0, %v11456_v3  ;;  %v11463_v10 = vld [vmem:[%s11578_s25 + $0x48] sm:$0xff]   ;;  %v11464_v11 = vld [vmem:[%s11578_s25 + $0x50] sm:$0xff]   ;;  %v11465_v12 = vld [vmem:[%s11578_s25 + $0x58] sm:$0xff]   ;;  %9976 = vmatpush3.bf16.msra.mxu0 %v11500_v28 }
  0x17   : > { %v11466_v13 = vld [vmem:[%s11578_s25 + $0x60] sm:$0xff]   ;;  %v11467_v14 = vld [vmem:[%s11578_s25 + $0x68] sm:$0xff]   ;;  %v11468_v15 = vld [vmem:[%s11578_s25 + $0x70] sm:$0xff]   ;;  %9977 = vmatprep.subr.bf16.mxu0 %v11501_v31 }
  0x18   : > { %v11469_v16 = vld [vmem:[%s11578_s25 + $0x78] sm:$0xff]   ;;  %v11470_v17 = vld [vmem:[%s11578_s25 + $0x80] sm:$0xff]   ;;  %v11471_v18 = vld [vmem:[%s11578_s25 + $0x88] sm:$0xff]  }
  0x19   : > { %v11472_v19 = vld [vmem:[%s11578_s25 + $0x90] sm:$0xff]   ;;  %v11473_v20 = vld [vmem:[%s11578_s25 + $0x98] sm:$0xff]   ;;  %v11474_v21 = vld [vmem:[%s11578_s25 + $0xa0] sm:$0xff]  }
  0x1a   : > { %v11475_v22 = vld [vmem:[%s11578_s25 + $0xa8] sm:$0xff]   ;;  %v11476_v23 = vld [vmem:[%s11578_s25 + $0xb0] sm:$0xff]   ;;  %v11477_v24 = vld [vmem:[%s11578_s25 + $0xb8] sm:$0xff]   ;;  %9978 = vmatpush3.bf16.msra.mxu0 %v11501_v31 }
  0x1b   : > { %v11478_v25 = vld [vmem:[%s11578_s25 + $0xc0] sm:$0xff]   ;;  %v11479_v26 = vld [vmem:[%s11578_s25 + $0xc8] sm:$0xff]   ;;  %v11480_v27 = vld [vmem:[%s11578_s25 + $0xd0] sm:$0xff]  }
  0x1c   : > { %v11481_v29 = vld [vmem:[%s11578_s25 + $0xd8] sm:$0xff]   ;;  %v11482_v30 = vld [vmem:[%s11578_s25 + $0xe0] sm:$0xff]   ;;  %v11483_v32 = vld [vmem:[%s11578_s25 + $0xe8] sm:$0xff]  }
  0x1d   : > { %9888 = vmatmul.mubr.msk.bf16.gmra.mrb[4].mxu0 %vm563_vm0, %v11457_v4  ;;  %v11484_v33 = vld [vmem:[%s11578_s25 + $0xf0] sm:$0xff]   ;;  %v11485_v34 = vld [vmem:[%s11578_s25 + $0xf8] sm:$0xff]   ;;  %v11486_v35 = vld [vmem:[%s11578_s25 + $0x100] sm:$0xff]  }
  0x1e   : > { %9891 = vmatprep.mubr.msk.bf16.mxu0 %vm563_vm0, %v11458_v5  ;;  %v11487_v36 = vld [vmem:[%s11578_s25 + $0x108] sm:$0xff]   ;;  %v11488_v37 = vld [vmem:[%s11578_s25 + $0x110] sm:$0xff]   ;;  %v11489_v38 = vld [vmem:[%s11578_s25 + $0x118] sm:$0xff]  }
  0x1f   : > { %v11490_v39 = vld [vmem:[%s11578_s25 + $0x120] sm:$0xff]   ;;  %v11491_v40 = vld [vmem:[%s11578_s25 + $0x128] sm:$0xff]   ;;  %v11492_v41 = vld [vmem:[%s11578_s25 + $0x130] sm:$0xff]  }
  0x20   : > { %v11493_v42 = vld [vmem:[%s11578_s25 + $0x138] sm:$0xff]   ;;  %v11494_v43 = vld [vmem:[%s11578_s25 + $0x140] sm:$0xff]   ;;  %v11495_v44 = vld [vmem:[%s11578_s25 + $0x148] sm:$0xff]  }
  0x21   : > { %v11496_v45 = vld [vmem:[%s11578_s25 + $0x150] sm:$0xff]   ;;  %v11497_v46 = vld [vmem:[%s11578_s25 + $0x158] sm:$0xff]   ;;  %v11498_v47 = vld [vmem:[%s11578_s25 + $0x160] sm:$0xff]  }
  0x22   : > { %v11499_v48 = vld [vmem:[%s11578_s25 + $0x168] sm:$0xff]  }
  0x25   : > { %9892 = vmatmul.mubr.msk.bf16.gmra.mrb[8].mxu0 %vm563_vm0, %v11459_v6 }
  0x26   : > { %9895 = vmatprep.mubr.msk.bf16.mxu0 %vm563_vm0, %v11460_v7 }
  0x2d   : > { %9896 = vmatmul.mubr.msk.bf16.gmra.mrb[12].mxu0 %vm563_vm0, %v11461_v8 }
  0x2e   : > { %9899 = vmatprep.mubr.msk.bf16.mxu0 %vm563_vm0, %v11462_v9 }
  0x35   : > { %9900 = vmatmul.mubr.msk.bf16.gmra.mrb[16].mxu0 %vm563_vm0, %v11463_v10 }
  0x36   : > { %9903 = vmatprep.mubr.msk.bf16.mxu0 %vm563_vm0, %v11464_v11 }
  0x3d   : > { %9904 = vmatmul.mubr.msk.bf16.gmra.mrb[20].mxu0 %vm563_vm0, %v11465_v12 }
  0x3e   : > { %9907 = vmatprep.mubr.msk.bf16.mxu0 %vm563_vm0, %v11466_v13 }
  0x45   : > { %9908 = vmatmul.mubr.msk.bf16.gmra.mrb[24].mxu0 %vm563_vm0, %v11467_v14 }
  0x46   : > { %9911 = vmatprep.mubr.msk.bf16.mxu0 %vm563_vm0, %v11468_v15 }
  0x4d   : > { %9912 = vmatmul.mubr.msk.bf16.gmra.mrb[28].mxu0 %vm563_vm0, %v11469_v16 }
  0x4e   : > { %9915 = vmatprep.mubr.msk.bf16.mxu0 %vm563_vm0, %v11470_v17 }
  0x55   : > { %9916 = vmatmul.mubr.msk.bf16.gmra.mrb[32].mxu0 %vm563_vm0, %v11471_v18 }
  0x56   : > { %9919 = vmatprep.mubr.msk.bf16.mxu0 %vm563_vm0, %v11472_v19 }
  0x5d   : > { %9920 = vmatmul.mubr.msk.bf16.gmra.mrb[36].mxu0 %vm563_vm0, %v11473_v20 }
  0x5e   : > { %9923 = vmatprep.mubr.msk.bf16.mxu0 %vm563_vm0, %v11474_v21 }
  0x65   : > { %9924 = vmatmul.mubr.msk.bf16.gmra.mrb[40].mxu0 %vm563_vm0, %v11475_v22 }
  0x66   : > { %9927 = vmatprep.mubr.msk.bf16.mxu0 %vm563_vm0, %v11476_v23 }
  0x6d   : > { %9928 = vmatmul.mubr.msk.bf16.gmra.mrb[44].mxu0 %vm563_vm0, %v11477_v24 }
  0x6e   : > { %9931 = vmatprep.mubr.msk.bf16.mxu0 %vm563_vm0, %v11478_v25 }
  0x75   : > { %9932 = vmatmul.mubr.msk.bf16.gmra.mrb[48].mxu0 %vm563_vm0, %v11479_v26 }
  0x76   : > { %9935 = vmatprep.mubr.msk.bf16.mxu0 %vm563_vm0, %v11480_v27 }
  0x7d   : > { %9936 = vmatmul.mubr.msk.bf16.gmra.mrb[52].mxu0 %vm563_vm0, %v11481_v29 }
  0x7e   : > { %9939 = vmatprep.mubr.msk.bf16.mxu0 %vm563_vm0, %v11482_v30 }
  0x85   : > { %9940 = vmatmul.mubr.msk.bf16.gmra.mrb[56].mxu0 %vm563_vm0, %v11483_v32 }
  0x86   : > { %9943 = vmatprep.mubr.msk.bf16.mxu0 %vm563_vm0, %v11484_v33 }
  0x8d   : > { %9944 = vmatmul.mubr.msk.bf16.gmra.mrb[60].mxu0 %vm563_vm0, %v11485_v34 }
  0x8e   : > { %9947 = vmatprep.mubr.msk.bf16.mxu0 %vm563_vm0, %v11486_v35 }
  0x95   : > { %9948 = vmatmul.mubr.msk.bf16.gmra.mrb[64].mxu0 %vm563_vm0, %v11487_v36 }
  0x96   : > { %9951 = vmatprep.mubr.msk.bf16.mxu0 %vm563_vm0, %v11488_v37 }
  0x9d   : > { %9952 = vmatmul.mubr.msk.bf16.gmra.mrb[68].mxu0 %vm563_vm0, %v11489_v38 }
  0x9e   : > { %9955 = vmatprep.mubr.msk.bf16.mxu0 %vm563_vm0, %v11490_v39 }
  0xa5   : > { %9956 = vmatmul.mubr.msk.bf16.gmra.mrb[72].mxu0 %vm563_vm0, %v11491_v40 }
  0xa6   : > { %9959 = vmatprep.mubr.msk.bf16.mxu0 %vm563_vm0, %v11492_v41 }
  0xad   : > { %9960 = vmatmul.mubr.msk.bf16.gmra.mrb[76].mxu0 %vm563_vm0, %v11493_v42 }
  0xae   : > { %9963 = vmatprep.mubr.msk.bf16.mxu0 %vm563_vm0, %v11494_v43 }
  0xb5   : > { %9964 = vmatmul.mubr.msk.bf16.gmra.mrb[80].mxu0 %vm563_vm0, %v11495_v44 }
  0xb6   : > { %9967 = vmatprep.mubr.msk.bf16.mxu0 %vm563_vm0, %v11496_v45 }
  0xbd   : > { %9968 = vmatmul.mubr.msk.bf16.gmra.mrb[84].mxu0 %vm563_vm0, %v11497_v46 }
  0xbe   : > { %9971 = vmatprep.mubr.msk.bf16.mxu0 %vm563_vm0, %v11498_v47 }
  0xc5   : > { %9972 = vmatmul.mubr.msk.bf16.gmra.mrb[88].mxu0 %vm563_vm0, %v11499_v48 }
  0xe8   : > { %v9885_v50 = vpop.f32.mrb[0].mxu0 }
  0xe9   : > { %v745_v51 = vadd.f32 %v9885_v50, %v11681_v49  ;;  %v736_v52 = vpop.f32.mrb[1].mxu0 }
  0xea   : > { %v737_v53 = vadd.f32 %v11681_v49, %v736_v52  ;;  %v9886_v54 = vpop.f32.mrb[2].mxu0 }
  0xeb   : > { %v1105_v55 = vmax.f32 %v745_v51, 0.0  ;;  %v748_v56 = vadd.f32 %v9886_v54, %v11681_v49  ;;  %v739_v57 = vpop.f32.mrb[3].mxu0 }
  0xec   : > { %v1103_v58 = vmax.f32 %v737_v53, 0.0  ;;  %v740_v59 = vadd.f32 %v11681_v49, %v739_v57 }
  0xed   : > { %1198 = vst.msk [vmem:[#allocation2 + $0x10] sm:$0xff] %vm1195_vm1, %v1105_v55  ;;  %v1106_v60 = vmax.f32 %v748_v56, 0.0 }
  0xee   : > { %1196 = vst.msk [vmem:[#allocation2] sm:$0xff] %vm1195_vm1, %v1103_v58  ;;  %v1104_v61 = vmax.f32 %v740_v59, 0.0 }
  0xef   : > { %1199 = vst.msk [vmem:[#allocation2 + $0x18] sm:$0xff] %vm1195_vm1, %v1106_v60 }
  0xf0   : > { %1197 = vst.msk [vmem:[#allocation2 + $0x8] sm:$0xff] %vm1195_vm1, %v1104_v61  ;;  %v9889_v62 = vpop.f32.mrb[4].mxu0 }
  0xf1   : > { %v761_v63 = vadd.f32 %v9889_v62, %v11681_v49  ;;  %v752_v0 = vpop.f32.mrb[5].mxu0 }
  0xf2   : > { %v753_v1 = vadd.f32 %v11681_v49, %v752_v0  ;;  %v9890_v2 = vpop.f32.mrb[6].mxu0 }
  0xf3   : > { %v1109_v3 = vmax.f32 %v761_v63, 0.0  ;;  %v764_v4 = vadd.f32 %v9890_v2, %v11681_v49  ;;  %v755_v5 = vpop.f32.mrb[7].mxu0 }
  0xf4   : > { %v1107_v6 = vmax.f32 %v753_v1, 0.0  ;;  %v756_v7 = vadd.f32 %v11681_v49, %v755_v5 }
  0xf5   : > { %1202 = vst.msk [vmem:[#allocation2 + $0x30] sm:$0xff] %vm1195_vm1, %v1109_v3  ;;  %v1110_v8 = vmax.f32 %v764_v4, 0.0 }
  0xf6   : > { %1200 = vst.msk [vmem:[#allocation2 + $0x20] sm:$0xff] %vm1195_vm1, %v1107_v6  ;;  %v1108_v9 = vmax.f32 %v756_v7, 0.0  ;;  %v1420_v24 = vld [vmem:[#allocation2 + $0x11] sm:$0xff] }
  0xf7   : > { %1203 = vst.msk [vmem:[#allocation2 + $0x38] sm:$0xff] %vm1195_vm1, %v1110_v8  ;;  %v1418_v10 = vld [vmem:[#allocation2 + $0x1] sm:$0xff]  ;;  %v1419_v11 = vld [vmem:[#allocation2 + $0x9] sm:$0xff] }
  0xf8   : > { %1201 = vst.msk [vmem:[#allocation2 + $0x28] sm:$0xff] %vm1195_vm1, %v1108_v9  ;;  %v9893_v12 = vpop.f32.mrb[8].mxu0  ;;  %v1502_v13 = vpack.c.bf16 %v1419_v11, %v1418_v10 }
  0xf9   : > { %v777_v14 = vadd.f32 %v9893_v12, %v11681_v49  ;;  %v768_v15 = vpop.f32.mrb[9].mxu0 }
  0xfa   : > { %v769_v16 = vadd.f32 %v11681_v49, %v768_v15  ;;  %v9894_v17 = vpop.f32.mrb[10].mxu0  ;;  %9979 = vmatprep.mubr.msk.bf16.mxu0 %vm1195_vm1, %v1502_v13 }
  0xfb   : > { %v1113_v18 = vmax.f32 %v777_v14, 0.0  ;;  %v780_v19 = vadd.f32 %v9894_v17, %v11681_v49  ;;  %v771_v20 = vpop.f32.mrb[11].mxu0 }
  0xfc   : > { %v1111_v21 = vmax.f32 %v769_v16, 0.0  ;;  %v772_v22 = vadd.f32 %v11681_v49, %v771_v20 }
  0xfd   : > { %1206 = vst.msk [vmem:[#allocation2 + $0x50] sm:$0xff] %vm1195_vm1, %v1113_v18  ;;  %v1114_v23 = vmax.f32 %v780_v19, 0.0  ;;  %v1421_v25 = vld [vmem:[#allocation2 + $0x19] sm:$0xff] }
  0xfe   : > { %1204 = vst.msk [vmem:[#allocation2 + $0x40] sm:$0xff] %vm1195_vm1, %v1111_v21  ;;  %v1112_v26 = vmax.f32 %v772_v22, 0.0  ;;  %v1503_v27 = vpack.c.bf16 %v1421_v25, %v1420_v24  ;;  %v1424_v42 = vld [vmem:[#allocation2 + $0x31] sm:$0xff] }
  0xff   : > { %1207 = vst.msk [vmem:[#allocation2 + $0x58] sm:$0xff] %vm1195_vm1, %v1114_v23  ;;  %v1422_v28 = vld [vmem:[#allocation2 + $0x21] sm:$0xff]  ;;  %v1423_v29 = vld [vmem:[#allocation2 + $0x29] sm:$0xff] }
 0x100   : > { %1205 = vst.msk [vmem:[#allocation2 + $0x48] sm:$0xff] %vm1195_vm1, %v1112_v26  ;;  %v9897_v30 = vpop.f32.mrb[12].mxu0  ;;  %9980 = vmatmul.mubr.msk.bf16.vlgmr.msra.gmra.mrb[92].mxu0 %vm1195_vm1, %v1503_v27  ;;  %v1504_v31 = vpack.c.bf16 %v1423_v29, %v1422_v28  ;;  %v11502_v25 = vld [vmem:[%s12995_s3 + $0x30] sm:$0xff]  }
 0x101   : > { %v793_v32 = vadd.f32 %v9897_v30, %v11681_v49  ;;  %v784_v33 = vpop.f32.mrb[13].mxu0  ;;  %10767 = vmatprep.subr.bf16.mxu1 %v11502_v25 }
 0x102   : > { %v785_v34 = vadd.f32 %v11681_v49, %v784_v33  ;;  %v9898_v35 = vpop.f32.mrb[14].mxu0  ;;  %9983 = vmatprep.mubr.msk.bf16.mxu0 %vm1195_vm1, %v1504_v31  ;;  %10769 = vmatpush3.bf16.msra.mxu1 %v11502_v25 }
 0x103   : > { %v1117_v36 = vmax.f32 %v793_v32, 0.0  ;;  %v796_v37 = vadd.f32 %v9898_v35, %v11681_v49  ;;  %v787_v38 = vpop.f32.mrb[15].mxu0 }
 0x104   : > { %v1115_v39 = vmax.f32 %v785_v34, 0.0  ;;  %v788_v40 = vadd.f32 %v11681_v49, %v787_v38 }
 0x105   : > { %1210 = vst.msk [vmem:[#allocation2 + $0x70] sm:$0xff] %vm1195_vm1, %v1117_v36  ;;  %v1118_v41 = vmax.f32 %v796_v37, 0.0  ;;  %v1425_v43 = vld [vmem:[#allocation2 + $0x39] sm:$0xff] }
 0x106   : > { %1208 = vst.msk [vmem:[#allocation2 + $0x60] sm:$0xff] %vm1195_vm1, %v1115_v39  ;;  %v1116_v44 = vmax.f32 %v788_v40, 0.0  ;;  %v1505_v45 = vpack.c.bf16 %v1425_v43, %v1424_v42  ;;  %v1428_v61 = vld [vmem:[#allocation2 + $0x51] sm:$0xff]  ;;  %v11504_v39 = vld [vmem:[%s12995_s3] sm:$0xff]  }
 0x107   : > { %1211 = vst.msk [vmem:[#allocation2 + $0x78] sm:$0xff] %vm1195_vm1, %v1118_v41  ;;  %v1426_v46 = vld [vmem:[#allocation2 + $0x41] sm:$0xff]  ;;  %v1427_v47 = vld [vmem:[#allocation2 + $0x49] sm:$0xff]  ;;  %v11503_v36 = vld [vmem:[%s12995_s3 + $0x38] sm:$0xff]   ;;  %10063 = vmatprep.subr.bf16.mxu0 %v11504_v39 }
 0x108   : > { %1209 = vst.msk [vmem:[#allocation2 + $0x68] sm:$0xff] %vm1195_vm1, %v1116_v44  ;;  %v9901_v48 = vpop.f32.mrb[16].mxu0  ;;  %9984 = vmatmul.mubr.msk.bf16.gmra.mrb[96].mxu0 %vm1195_vm1, %v1505_v45  ;;  %v1506_v50 = vpack.c.bf16 %v1427_v47, %v1426_v46  ;;  %10768 = vmatprep.subr.bf16.mxu1 %v11503_v36  ;;  %v11762_v46 = vld [vmem:[%s12995_s3 + $0x40] sm:$0xff]  }
 0x109   : > { %v809_v51 = vadd.f32 %v9901_v48, %v11681_v49  ;;  %v800_v52 = vpop.f32.mrb[17].mxu0  ;;  %10770 = vmatpush3.bf16.msra.mxu1 %v11503_v36  ;;  %10064 = vmatpush3.bf16.msra.mxu0 %v11504_v39 }
 0x10a   : > { %v801_v53 = vadd.f32 %v11681_v49, %v800_v52  ;;  %v9902_v54 = vpop.f32.mrb[18].mxu0  ;;  %9987 = vmatprep.mubr.msk.bf16.mxu0 %vm1195_vm1, %v1506_v50  ;;  %v11506_v50 = vld [vmem:[%s12995_s3 + $0x8] sm:$0xff]   ;;  %10327 = vmatprep.subr.bf16.mxu1 %v11762_v46 }
 0x10b   : > { %v1121_v55 = vmax.f32 %v809_v51, 0.0  ;;  %v812_v56 = vadd.f32 %v9902_v54, %v11681_v49  ;;  %v803_v57 = vpop.f32.mrb[19].mxu0  ;;  %10065 = vmatprep.subr.bf16.mxu0 %v11506_v50 }
 0x10c   : > { %v1119_v58 = vmax.f32 %v801_v53, 0.0  ;;  %v804_v59 = vadd.f32 %v11681_v49, %v803_v57 }
 0x10d   : > { %1214 = vst.msk [vmem:[#allocation2 + $0x90] sm:$0xff] %vm1195_vm1, %v1121_v55  ;;  %v1122_v60 = vmax.f32 %v812_v56, 0.0  ;;  %v1429_v62 = vld [vmem:[#allocation2 + $0x59] sm:$0xff]  ;;  %10066 = vmatpush3.bf16.msra.mxu0 %v11506_v50 }
 0x10e   : > { %1212 = vst.msk [vmem:[#allocation2 + $0x80] sm:$0xff] %vm1195_vm1, %v1119_v58  ;;  %v1120_v63 = vmax.f32 %v804_v59, 0.0  ;;  %v1507_v0 = vpack.c.bf16 %v1429_v62, %v1428_v61  ;;  %v1432_v15 = vld [vmem:[#allocation2 + $0x71] sm:$0xff] }
 0x10f   : > { %1215 = vst.msk [vmem:[#allocation2 + $0x98] sm:$0xff] %vm1195_vm1, %v1122_v60  ;;  %v1430_v1 = vld [vmem:[#allocation2 + $0x61] sm:$0xff]  ;;  %v1431_v2 = vld [vmem:[#allocation2 + $0x69] sm:$0xff] }
 0x110   : > { %1213 = vst.msk [vmem:[#allocation2 + $0x88] sm:$0xff] %vm1195_vm1, %v1120_v63  ;;  %v9905_v3 = vpop.f32.mrb[20].mxu0  ;;  %9988 = vmatmul.mubr.msk.bf16.gmra.mrb[100].mxu0 %vm1195_vm1, %v1507_v0  ;;  %v1508_v4 = vpack.c.bf16 %v1431_v2, %v1430_v1 }
 0x111   : > { %v825_v5 = vadd.f32 %v9905_v3, %v11681_v49  ;;  %v816_v6 = vpop.f32.mrb[21].mxu0 }
 0x112   : > { %v817_v7 = vadd.f32 %v11681_v49, %v816_v6  ;;  %v9906_v8 = vpop.f32.mrb[22].mxu0  ;;  %9991 = vmatprep.mubr.msk.bf16.mxu0 %vm1195_vm1, %v1508_v4 }
 0x113   : > { %v1125_v9 = vmax.f32 %v825_v5, 0.0  ;;  %v828_v10 = vadd.f32 %v9906_v8, %v11681_v49  ;;  %v819_v11 = vpop.f32.mrb[23].mxu0 }
 0x114   : > { %v1123_v12 = vmax.f32 %v817_v7, 0.0  ;;  %v820_v13 = vadd.f32 %v11681_v49, %v819_v11 }
 0x115   : > { %1218 = vst.msk [vmem:[#allocation2 + $0xb0] sm:$0xff] %vm1195_vm1, %v1125_v9  ;;  %v1126_v14 = vmax.f32 %v828_v10, 0.0  ;;  %v1433_v16 = vld [vmem:[#allocation2 + $0x79] sm:$0xff] }
 0x116   : > { %1216 = vst.msk [vmem:[#allocation2 + $0xa0] sm:$0xff] %vm1195_vm1, %v1123_v12  ;;  %v1124_v17 = vmax.f32 %v820_v13, 0.0  ;;  %v1509_v18 = vpack.c.bf16 %v1433_v16, %v1432_v15  ;;  %v1436_v34 = vld [vmem:[#allocation2 + $0x91] sm:$0xff] }
 0x117   : > { %1219 = vst.msk [vmem:[#allocation2 + $0xb8] sm:$0xff] %vm1195_vm1, %v1126_v14  ;;  %v1434_v19 = vld [vmem:[#allocation2 + $0x81] sm:$0xff]  ;;  %v1435_v20 = vld [vmem:[#allocation2 + $0x89] sm:$0xff] }
 0x118   : > { %1217 = vst.msk [vmem:[#allocation2 + $0xa8] sm:$0xff] %vm1195_vm1, %v1124_v17  ;;  %v9909_v21 = vpop.f32.mrb[24].mxu0  ;;  %9992 = vmatmul.mubr.msk.bf16.gmra.mrb[104].mxu0 %vm1195_vm1, %v1509_v18  ;;  %v1510_v22 = vpack.c.bf16 %v1435_v20, %v1434_v19 }
 0x119   : > { %v841_v23 = vadd.f32 %v9909_v21, %v11681_v49  ;;  %v832_v24 = vpop.f32.mrb[25].mxu0 }
 0x11a   : > { %v833_v26 = vadd.f32 %v11681_v49, %v832_v24  ;;  %v9910_v27 = vpop.f32.mrb[26].mxu0  ;;  %9995 = vmatprep.mubr.msk.bf16.mxu0 %vm1195_vm1, %v1510_v22 }
 0x11b   : > { %v1129_v28 = vmax.f32 %v841_v23, 0.0  ;;  %v844_v29 = vadd.f32 %v9910_v27, %v11681_v49  ;;  %v835_v30 = vpop.f32.mrb[27].mxu0 }
 0x11c   : > { %v1127_v31 = vmax.f32 %v833_v26, 0.0  ;;  %v836_v32 = vadd.f32 %v11681_v49, %v835_v30 }
 0x11d   : > { %1222 = vst.msk [vmem:[#allocation2 + $0xd0] sm:$0xff] %vm1195_vm1, %v1129_v28  ;;  %v1130_v33 = vmax.f32 %v844_v29, 0.0  ;;  %v1437_v35 = vld [vmem:[#allocation2 + $0x99] sm:$0xff] }
 0x11e   : > { %1220 = vst.msk [vmem:[#allocation2 + $0xc0] sm:$0xff] %vm1195_vm1, %v1127_v31  ;;  %v1128_v37 = vmax.f32 %v836_v32, 0.0  ;;  %v1511_v38 = vpack.c.bf16 %v1437_v35, %v1436_v34  ;;  %v1440_v57 = vld [vmem:[#allocation2 + $0xb1] sm:$0xff] }
 0x11f   : > { %1223 = vst.msk [vmem:[#allocation2 + $0xd8] sm:$0xff] %vm1195_vm1, %v1130_v33  ;;  %v1438_v40 = vld [vmem:[#allocation2 + $0xa1] sm:$0xff]  ;;  %v1439_v41 = vld [vmem:[#allocation2 + $0xa9] sm:$0xff] }
 0x120   : > { %1221 = vst.msk [vmem:[#allocation2 + $0xc8] sm:$0xff] %vm1195_vm1, %v1128_v37  ;;  %v9913_v42 = vpop.f32.mrb[28].mxu0  ;;  %9996 = vmatmul.mubr.msk.bf16.gmra.mrb[108].mxu0 %vm1195_vm1, %v1511_v38  ;;  %v1512_v43 = vpack.c.bf16 %v1439_v41, %v1438_v40 }
 0x121   : > { %v857_v44 = vadd.f32 %v9913_v42, %v11681_v49  ;;  %v848_v45 = vpop.f32.mrb[29].mxu0 }
 0x122   : > { %v849_v47 = vadd.f32 %v11681_v49, %v848_v45  ;;  %v9914_v48 = vpop.f32.mrb[30].mxu0  ;;  %9999 = vmatprep.mubr.msk.bf16.mxu0 %vm1195_vm1, %v1512_v43 }
 0x123   : > { %v1133_v51 = vmax.f32 %v857_v44, 0.0  ;;  %v860_v52 = vadd.f32 %v9914_v48, %v11681_v49  ;;  %v851_v53 = vpop.f32.mrb[31].mxu0 }
 0x124   : > { %v1131_v54 = vmax.f32 %v849_v47, 0.0  ;;  %v852_v55 = vadd.f32 %v11681_v49, %v851_v53 }
 0x125   : > { %1226 = vst.msk [vmem:[#allocation2 + $0xf0] sm:$0xff] %vm1195_vm1, %v1133_v51  ;;  %v1134_v56 = vmax.f32 %v860_v52, 0.0  ;;  %v1441_v58 = vld [vmem:[#allocation2 + $0xb9] sm:$0xff] }
 0x126   : > { %1224 = vst.msk [vmem:[#allocation2 + $0xe0] sm:$0xff] %vm1195_vm1, %v1131_v54  ;;  %v1132_v59 = vmax.f32 %v852_v55, 0.0  ;;  %v1513_v60 = vpack.c.bf16 %v1441_v58, %v1440_v57  ;;  %v1444_v11 = vld [vmem:[#allocation2 + $0xd1] sm:$0xff] }
 0x127   : > { %1227 = vst.msk [vmem:[#allocation2 + $0xf8] sm:$0xff] %vm1195_vm1, %v1134_v56  ;;  %v1442_v61 = vld [vmem:[#allocation2 + $0xc1] sm:$0xff]  ;;  %v1443_v62 = vld [vmem:[#allocation2 + $0xc9] sm:$0xff] }
 0x128   : > { %1225 = vst.msk [vmem:[#allocation2 + $0xe8] sm:$0xff] %vm1195_vm1, %v1132_v59  ;;  %v9917_v63 = vpop.f32.mrb[32].mxu0  ;;  %10000 = vmatmul.mubr.msk.bf16.gmra.mrb[112].mxu0 %vm1195_vm1, %v1513_v60  ;;  %v1514_v0 = vpack.c.bf16 %v1443_v62, %v1442_v61 }
 0x129   : > { %v873_v1 = vadd.f32 %v9917_v63, %v11681_v49  ;;  %v864_v2 = vpop.f32.mrb[33].mxu0 }
 0x12a   : > { %v865_v3 = vadd.f32 %v11681_v49, %v864_v2  ;;  %v9918_v4 = vpop.f32.mrb[34].mxu0  ;;  %10003 = vmatprep.mubr.msk.bf16.mxu0 %vm1195_vm1, %v1514_v0 }
 0x12b   : > { %v1137_v5 = vmax.f32 %v873_v1, 0.0  ;;  %v876_v6 = vadd.f32 %v9918_v4, %v11681_v49  ;;  %v867_v7 = vpop.f32.mrb[35].mxu0 }
 0x12c   : > { %v1135_v8 = vmax.f32 %v865_v3, 0.0  ;;  %v868_v9 = vadd.f32 %v11681_v49, %v867_v7 }
 0x12d   : > { %1230 = vst.msk [vmem:[#allocation2 + $0x110] sm:$0xff] %vm1195_vm1, %v1137_v5  ;;  %v1138_v10 = vmax.f32 %v876_v6, 0.0  ;;  %v1445_v12 = vld [vmem:[#allocation2 + $0xd9] sm:$0xff] }
 0x12e   : > { %1228 = vst.msk [vmem:[#allocation2 + $0x100] sm:$0xff] %vm1195_vm1, %v1135_v8  ;;  %v1136_v13 = vmax.f32 %v868_v9, 0.0  ;;  %v1515_v14 = vpack.c.bf16 %v1445_v12, %v1444_v11  ;;  %v1448_v29 = vld [vmem:[#allocation2 + $0xf1] sm:$0xff] }
 0x12f   : > { %1231 = vst.msk [vmem:[#allocation2 + $0x118] sm:$0xff] %vm1195_vm1, %v1138_v10  ;;  %v1446_v15 = vld [vmem:[#allocation2 + $0xe1] sm:$0xff]  ;;  %v1447_v16 = vld [vmem:[#allocation2 + $0xe9] sm:$0xff] }
 0x130   : > { %1229 = vst.msk [vmem:[#allocation2 + $0x108] sm:$0xff] %vm1195_vm1, %v1136_v13  ;;  %v9921_v17 = vpop.f32.mrb[36].mxu0  ;;  %10004 = vmatmul.mubr.msk.bf16.gmra.mrb[116].mxu0 %vm1195_vm1, %v1515_v14  ;;  %v1516_v18 = vpack.c.bf16 %v1447_v16, %v1446_v15 }
 0x131   : > { %v889_v19 = vadd.f32 %v9921_v17, %v11681_v49  ;;  %v880_v20 = vpop.f32.mrb[37].mxu0 }
 0x132   : > { %v881_v21 = vadd.f32 %v11681_v49, %v880_v20  ;;  %v9922_v22 = vpop.f32.mrb[38].mxu0  ;;  %10007 = vmatprep.mubr.msk.bf16.mxu0 %vm1195_vm1, %v1516_v18 }
 0x133   : > { %v1141_v23 = vmax.f32 %v889_v19, 0.0  ;;  %v892_v24 = vadd.f32 %v9922_v22, %v11681_v49  ;;  %v883_v25 = vpop.f32.mrb[39].mxu0 }
 0x134   : > { %v1139_v26 = vmax.f32 %v881_v21, 0.0  ;;  %v884_v27 = vadd.f32 %v11681_v49, %v883_v25 }
 0x135   : > { %1234 = vst.msk [vmem:[#allocation2 + $0x130] sm:$0xff] %vm1195_vm1, %v1141_v23  ;;  %v1142_v28 = vmax.f32 %v892_v24, 0.0  ;;  %v1449_v30 = vld [vmem:[#allocation2 + $0xf9] sm:$0xff] }
 0x136   : > { %1232 = vst.msk [vmem:[#allocation2 + $0x120] sm:$0xff] %vm1195_vm1, %v1139_v26  ;;  %v1140_v31 = vmax.f32 %v884_v27, 0.0  ;;  %v1517_v32 = vpack.c.bf16 %v1449_v30, %v1448_v29  ;;  %v1452_v48 = vld [vmem:[#allocation2 + $0x111] sm:$0xff] }
 0x137   : > { %1235 = vst.msk [vmem:[#allocation2 + $0x138] sm:$0xff] %vm1195_vm1, %v1142_v28  ;;  %v1450_v33 = vld [vmem:[#allocation2 + $0x101] sm:$0xff]  ;;  %v1451_v34 = vld [vmem:[#allocation2 + $0x109] sm:$0xff] }
 0x138   : > { %1233 = vst.msk [vmem:[#allocation2 + $0x128] sm:$0xff] %vm1195_vm1, %v1140_v31  ;;  %v9925_v35 = vpop.f32.mrb[40].mxu0  ;;  %10008 = vmatmul.mubr.msk.bf16.gmra.mrb[120].mxu0 %vm1195_vm1, %v1517_v32  ;;  %v1518_v36 = vpack.c.bf16 %v1451_v34, %v1450_v33 }
 0x139   : > { %v905_v37 = vadd.f32 %v9925_v35, %v11681_v49  ;;  %v896_v38 = vpop.f32.mrb[41].mxu0 }
 0x13a   : > { %v897_v39 = vadd.f32 %v11681_v49, %v896_v38  ;;  %v9926_v40 = vpop.f32.mrb[42].mxu0  ;;  %10011 = vmatprep.mubr.msk.bf16.mxu0 %vm1195_vm1, %v1518_v36 }
 0x13b   : > { %v1145_v41 = vmax.f32 %v905_v37, 0.0  ;;  %v908_v42 = vadd.f32 %v9926_v40, %v11681_v49  ;;  %v899_v43 = vpop.f32.mrb[43].mxu0 }
 0x13c   : > { %v1143_v44 = vmax.f32 %v897_v39, 0.0  ;;  %v900_v45 = vadd.f32 %v11681_v49, %v899_v43 }
 0x13d   : > { %1238 = vst.msk [vmem:[#allocation2 + $0x150] sm:$0xff] %vm1195_vm1, %v1145_v41  ;;  %v1146_v47 = vmax.f32 %v908_v42, 0.0  ;;  %v1453_v50 = vld [vmem:[#allocation2 + $0x119] sm:$0xff] }
 0x13e   : > { %1236 = vst.msk [vmem:[#allocation2 + $0x140] sm:$0xff] %vm1195_vm1, %v1143_v44  ;;  %v1144_v51 = vmax.f32 %v900_v45, 0.0  ;;  %v1519_v52 = vpack.c.bf16 %v1453_v50, %v1452_v48  ;;  %v1456_v3 = vld [vmem:[#allocation2 + $0x131] sm:$0xff] }
 0x13f   : > { %1239 = vst.msk [vmem:[#allocation2 + $0x158] sm:$0xff] %vm1195_vm1, %v1146_v47  ;;  %v1454_v53 = vld [vmem:[#allocation2 + $0x121] sm:$0xff]  ;;  %v1455_v54 = vld [vmem:[#allocation2 + $0x129] sm:$0xff] }
 0x140   : > { %1237 = vst.msk [vmem:[#allocation2 + $0x148] sm:$0xff] %vm1195_vm1, %v1144_v51  ;;  %v9929_v55 = vpop.f32.mrb[44].mxu0  ;;  %10012 = vmatmul.mubr.msk.bf16.gmra.mrb[124].mxu0 %vm1195_vm1, %v1519_v52  ;;  %v1520_v56 = vpack.c.bf16 %v1455_v54, %v1454_v53 }
 0x141   : > { %v921_v57 = vadd.f32 %v9929_v55, %v11681_v49  ;;  %v912_v58 = vpop.f32.mrb[45].mxu0 }
 0x142   : > { %v913_v59 = vadd.f32 %v11681_v49, %v912_v58  ;;  %v9930_v60 = vpop.f32.mrb[46].mxu0  ;;  %10015 = vmatprep.mubr.msk.bf16.mxu0 %vm1195_vm1, %v1520_v56 }
 0x143   : > { %v1149_v61 = vmax.f32 %v921_v57, 0.0  ;;  %v924_v62 = vadd.f32 %v9930_v60, %v11681_v49  ;;  %v915_v63 = vpop.f32.mrb[47].mxu0 }
 0x144   : > { %v1147_v0 = vmax.f32 %v913_v59, 0.0  ;;  %v916_v1 = vadd.f32 %v11681_v49, %v915_v63 }
 0x145   : > { %1242 = vst.msk [vmem:[#allocation2 + $0x170] sm:$0xff] %vm1195_vm1, %v1149_v61  ;;  %v1150_v2 = vmax.f32 %v924_v62, 0.0  ;;  %v1457_v4 = vld [vmem:[#allocation2 + $0x139] sm:$0xff] }
 0x146   : > { %1240 = vst.msk [vmem:[#allocation2 + $0x160] sm:$0xff] %vm1195_vm1, %v1147_v0  ;;  %v1148_v5 = vmax.f32 %v916_v1, 0.0  ;;  %v1521_v6 = vpack.c.bf16 %v1457_v4, %v1456_v3  ;;  %v1460_v21 = vld [vmem:[#allocation2 + $0x151] sm:$0xff] }
 0x147   : > { %1243 = vst.msk [vmem:[#allocation2 + $0x178] sm:$0xff] %vm1195_vm1, %v1150_v2  ;;  %v1458_v7 = vld [vmem:[#allocation2 + $0x141] sm:$0xff]  ;;  %v1459_v8 = vld [vmem:[#allocation2 + $0x149] sm:$0xff] }
 0x148   : > { %1241 = vst.msk [vmem:[#allocation2 + $0x168] sm:$0xff] %vm1195_vm1, %v1148_v5  ;;  %v9933_v9 = vpop.f32.mrb[48].mxu0  ;;  %10016 = vmatmul.mubr.msk.bf16.gmra.mrb[128].mxu0 %vm1195_vm1, %v1521_v6  ;;  %v1522_v10 = vpack.c.bf16 %v1459_v8, %v1458_v7 }
 0x149   : > { %v937_v11 = vadd.f32 %v9933_v9, %v11681_v49  ;;  %v928_v12 = vpop.f32.mrb[49].mxu0 }
 0x14a   : > { %v929_v13 = vadd.f32 %v11681_v49, %v928_v12  ;;  %v9934_v14 = vpop.f32.mrb[50].mxu0  ;;  %10019 = vmatprep.mubr.msk.bf16.mxu0 %vm1195_vm1, %v1522_v10 }
 0x14b   : > { %v1153_v15 = vmax.f32 %v937_v11, 0.0  ;;  %v940_v16 = vadd.f32 %v9934_v14, %v11681_v49  ;;  %v931_v17 = vpop.f32.mrb[51].mxu0 }
 0x14c   : > { %v1151_v18 = vmax.f32 %v929_v13, 0.0  ;;  %v932_v19 = vadd.f32 %v11681_v49, %v931_v17 }
 0x14d   : > { %1246 = vst.msk [vmem:[#allocation2 + $0x190] sm:$0xff] %vm1195_vm1, %v1153_v15  ;;  %v1154_v20 = vmax.f32 %v940_v16, 0.0  ;;  %v1461_v22 = vld [vmem:[#allocation2 + $0x159] sm:$0xff] }
 0x14e   : > { %1244 = vst.msk [vmem:[#allocation2 + $0x180] sm:$0xff] %vm1195_vm1, %v1151_v18  ;;  %v1152_v23 = vmax.f32 %v932_v19, 0.0  ;;  %v1523_v24 = vpack.c.bf16 %v1461_v22, %v1460_v21  ;;  %v1464_v39 = vld [vmem:[#allocation2 + $0x171] sm:$0xff] }
 0x14f   : > { %1247 = vst.msk [vmem:[#allocation2 + $0x198] sm:$0xff] %vm1195_vm1, %v1154_v20  ;;  %v1462_v25 = vld [vmem:[#allocation2 + $0x161] sm:$0xff]  ;;  %v1463_v26 = vld [vmem:[#allocation2 + $0x169] sm:$0xff] }
 0x150   : > { %1245 = vst.msk [vmem:[#allocation2 + $0x188] sm:$0xff] %vm1195_vm1, %v1152_v23  ;;  %v9937_v27 = vpop.f32.mrb[52].mxu0  ;;  %10020 = vmatmul.mubr.msk.bf16.gmra.mrb[132].mxu0 %vm1195_vm1, %v1523_v24  ;;  %v1524_v28 = vpack.c.bf16 %v1463_v26, %v1462_v25 }
 0x151   : > { %v953_v29 = vadd.f32 %v9937_v27, %v11681_v49  ;;  %v944_v30 = vpop.f32.mrb[53].mxu0 }
 0x152   : > { %v945_v31 = vadd.f32 %v11681_v49, %v944_v30  ;;  %v9938_v32 = vpop.f32.mrb[54].mxu0  ;;  %10023 = vmatprep.mubr.msk.bf16.mxu0 %vm1195_vm1, %v1524_v28 }
 0x153   : > { %v1157_v33 = vmax.f32 %v953_v29, 0.0  ;;  %v956_v34 = vadd.f32 %v9938_v32, %v11681_v49  ;;  %v947_v35 = vpop.f32.mrb[55].mxu0 }
 0x154   : > { %v1155_v36 = vmax.f32 %v945_v31, 0.0  ;;  %v948_v37 = vadd.f32 %v11681_v49, %v947_v35 }
 0x155   : > { %1250 = vst.msk [vmem:[#allocation2 + $0x1b0] sm:$0xff] %vm1195_vm1, %v1157_v33  ;;  %v1158_v38 = vmax.f32 %v956_v34, 0.0  ;;  %v1465_v40 = vld [vmem:[#allocation2 + $0x179] sm:$0xff] }
 0x156   : > { %1248 = vst.msk [vmem:[#allocation2 + $0x1a0] sm:$0xff] %vm1195_vm1, %v1155_v36  ;;  %v1156_v41 = vmax.f32 %v948_v37, 0.0  ;;  %v1525_v42 = vpack.c.bf16 %v1465_v40, %v1464_v39  ;;  %v1468_v59 = vld [vmem:[#allocation2 + $0x191] sm:$0xff] }
 0x157   : > { %1251 = vst.msk [vmem:[#allocation2 + $0x1b8] sm:$0xff] %vm1195_vm1, %v1158_v38  ;;  %v1466_v43 = vld [vmem:[#allocation2 + $0x181] sm:$0xff]  ;;  %v1467_v44 = vld [vmem:[#allocation2 + $0x189] sm:$0xff] }
 0x158   : > { %1249 = vst.msk [vmem:[#allocation2 + $0x1a8] sm:$0xff] %vm1195_vm1, %v1156_v41  ;;  %v9941_v45 = vpop.f32.mrb[56].mxu0  ;;  %10024 = vmatmul.mubr.msk.bf16.gmra.mrb[136].mxu0 %vm1195_vm1, %v1525_v42  ;;  %v1526_v47 = vpack.c.bf16 %v1467_v44, %v1466_v43 }
 0x159   : > { %v969_v48 = vadd.f32 %v9941_v45, %v11681_v49  ;;  %v960_v50 = vpop.f32.mrb[57].mxu0 }
 0x15a   : > { %v961_v51 = vadd.f32 %v11681_v49, %v960_v50  ;;  %v9942_v52 = vpop.f32.mrb[58].mxu0  ;;  %10027 = vmatprep.mubr.msk.bf16.mxu0 %vm1195_vm1, %v1526_v47 }
 0x15b   : > { %v1161_v53 = vmax.f32 %v969_v48, 0.0  ;;  %v972_v54 = vadd.f32 %v9942_v52, %v11681_v49  ;;  %v963_v55 = vpop.f32.mrb[59].mxu0 }
 0x15c   : > { %v1159_v56 = vmax.f32 %v961_v51, 0.0  ;;  %v964_v57 = vadd.f32 %v11681_v49, %v963_v55 }
 0x15d   : > { %1254 = vst.msk [vmem:[#allocation2 + $0x1d0] sm:$0xff] %vm1195_vm1, %v1161_v53  ;;  %v1162_v58 = vmax.f32 %v972_v54, 0.0  ;;  %v1469_v60 = vld [vmem:[#allocation2 + $0x199] sm:$0xff] }
 0x15e   : > { %1252 = vst.msk [vmem:[#allocation2 + $0x1c0] sm:$0xff] %vm1195_vm1, %v1159_v56  ;;  %v1160_v61 = vmax.f32 %v964_v57, 0.0  ;;  %v1527_v62 = vpack.c.bf16 %v1469_v60, %v1468_v59  ;;  %v1472_v13 = vld [vmem:[#allocation2 + $0x1b1] sm:$0xff] }
 0x15f   : > { %1255 = vst.msk [vmem:[#allocation2 + $0x1d8] sm:$0xff] %vm1195_vm1, %v1162_v58  ;;  %v1470_v63 = vld [vmem:[#allocation2 + $0x1a1] sm:$0xff]  ;;  %v1471_v0 = vld [vmem:[#allocation2 + $0x1a9] sm:$0xff] }
 0x160   : > { %1253 = vst.msk [vmem:[#allocation2 + $0x1c8] sm:$0xff] %vm1195_vm1, %v1160_v61  ;;  %v9945_v1 = vpop.f32.mrb[60].mxu0  ;;  %10028 = vmatmul.mubr.msk.bf16.gmra.mrb[140].mxu0 %vm1195_vm1, %v1527_v62  ;;  %v1528_v2 = vpack.c.bf16 %v1471_v0, %v1470_v63 }
 0x161   : > { %v985_v3 = vadd.f32 %v9945_v1, %v11681_v49  ;;  %v976_v4 = vpop.f32.mrb[61].mxu0 }
 0x162   : > { %v977_v5 = vadd.f32 %v11681_v49, %v976_v4  ;;  %v9946_v6 = vpop.f32.mrb[62].mxu0  ;;  %10031 = vmatprep.mubr.msk.bf16.mxu0 %vm1195_vm1, %v1528_v2 }
 0x163   : > { %v1165_v7 = vmax.f32 %v985_v3, 0.0  ;;  %v988_v8 = vadd.f32 %v9946_v6, %v11681_v49  ;;  %v979_v9 = vpop.f32.mrb[63].mxu0 }
 0x164   : > { %v1163_v10 = vmax.f32 %v977_v5, 0.0  ;;  %v980_v11 = vadd.f32 %v11681_v49, %v979_v9 }
 0x165   : > { %1258 = vst.msk [vmem:[#allocation2 + $0x1f0] sm:$0xff] %vm1195_vm1, %v1165_v7  ;;  %v1166_v12 = vmax.f32 %v988_v8, 0.0  ;;  %v1473_v14 = vld [vmem:[#allocation2 + $0x1b9] sm:$0xff] }
 0x166   : > { %1256 = vst.msk [vmem:[#allocation2 + $0x1e0] sm:$0xff] %vm1195_vm1, %v1163_v10  ;;  %v1164_v15 = vmax.f32 %v980_v11, 0.0  ;;  %v1529_v16 = vpack.c.bf16 %v1473_v14, %v1472_v13  ;;  %v1476_v31 = vld [vmem:[#allocation2 + $0x1d1] sm:$0xff] }
 0x167   : > { %1259 = vst.msk [vmem:[#allocation2 + $0x1f8] sm:$0xff] %vm1195_vm1, %v1166_v12  ;;  %v1474_v17 = vld [vmem:[#allocation2 + $0x1c1] sm:$0xff]  ;;  %v1475_v18 = vld [vmem:[#allocation2 + $0x1c9] sm:$0xff] }
 0x168   : > { %1257 = vst.msk [vmem:[#allocation2 + $0x1e8] sm:$0xff] %vm1195_vm1, %v1164_v15  ;;  %v9949_v19 = vpop.f32.mrb[64].mxu0  ;;  %10032 = vmatmul.mubr.msk.bf16.gmra.mrb[144].mxu0 %vm1195_vm1, %v1529_v16  ;;  %v1530_v20 = vpack.c.bf16 %v1475_v18, %v1474_v17 }
 0x169   : > { %v1001_v21 = vadd.f32 %v9949_v19, %v11681_v49  ;;  %v992_v22 = vpop.f32.mrb[65].mxu0 }
 0x16a   : > { %v993_v23 = vadd.f32 %v11681_v49, %v992_v22  ;;  %v9950_v24 = vpop.f32.mrb[66].mxu0  ;;  %10035 = vmatprep.mubr.msk.bf16.mxu0 %vm1195_vm1, %v1530_v20 }
 0x16b   : > { %v1169_v25 = vmax.f32 %v1001_v21, 0.0  ;;  %v1004_v26 = vadd.f32 %v9950_v24, %v11681_v49  ;;  %v995_v27 = vpop.f32.mrb[67].mxu0 }
 0x16c   : > { %v1167_v28 = vmax.f32 %v993_v23, 0.0  ;;  %v996_v29 = vadd.f32 %v11681_v49, %v995_v27 }
 0x16d   : > { %1262 = vst.msk [vmem:[#allocation2 + $0x210] sm:$0xff] %vm1195_vm1, %v1169_v25  ;;  %v1170_v30 = vmax.f32 %v1004_v26, 0.0  ;;  %v1477_v32 = vld [vmem:[#allocation2 + $0x1d9] sm:$0xff] }
 0x16e   : > { %1260 = vst.msk [vmem:[#allocation2 + $0x200] sm:$0xff] %vm1195_vm1, %v1167_v28  ;;  %v1168_v33 = vmax.f32 %v996_v29, 0.0  ;;  %v1531_v34 = vpack.c.bf16 %v1477_v32, %v1476_v31  ;;  %v1480_v51 = vld [vmem:[#allocation2 + $0x1f1] sm:$0xff] }
 0x16f   : > { %1263 = vst.msk [vmem:[#allocation2 + $0x218] sm:$0xff] %vm1195_vm1, %v1170_v30  ;;  %v1478_v35 = vld [vmem:[#allocation2 + $0x1e1] sm:$0xff]  ;;  %v1479_v36 = vld [vmem:[#allocation2 + $0x1e9] sm:$0xff] }
 0x170   : > { %1261 = vst.msk [vmem:[#allocation2 + $0x208] sm:$0xff] %vm1195_vm1, %v1168_v33  ;;  %v9953_v37 = vpop.f32.mrb[68].mxu0  ;;  %10036 = vmatmul.mubr.msk.bf16.gmra.mrb[148].mxu0 %vm1195_vm1, %v1531_v34  ;;  %v1532_v38 = vpack.c.bf16 %v1479_v36, %v1478_v35 }
 0x171   : > { %v1017_v39 = vadd.f32 %v9953_v37, %v11681_v49  ;;  %v1008_v40 = vpop.f32.mrb[69].mxu0 }
 0x172   : > { %v1009_v41 = vadd.f32 %v11681_v49, %v1008_v40  ;;  %v9954_v42 = vpop.f32.mrb[70].mxu0  ;;  %10039 = vmatprep.mubr.msk.bf16.mxu0 %vm1195_vm1, %v1532_v38 }
 0x173   : > { %v1173_v43 = vmax.f32 %v1017_v39, 0.0  ;;  %v1020_v44 = vadd.f32 %v9954_v42, %v11681_v49  ;;  %v1011_v45 = vpop.f32.mrb[71].mxu0 }
 0x174   : > { %v1171_v47 = vmax.f32 %v1009_v41, 0.0  ;;  %v1012_v48 = vadd.f32 %v11681_v49, %v1011_v45 }
 0x175   : > { %1266 = vst.msk [vmem:[#allocation2 + $0x230] sm:$0xff] %vm1195_vm1, %v1173_v43  ;;  %v1174_v50 = vmax.f32 %v1020_v44, 0.0  ;;  %v1481_v52 = vld [vmem:[#allocation2 + $0x1f9] sm:$0xff] }
 0x176   : > { %1264 = vst.msk [vmem:[#allocation2 + $0x220] sm:$0xff] %vm1195_vm1, %v1171_v47  ;;  %v1172_v53 = vmax.f32 %v1012_v48, 0.0  ;;  %v1533_v54 = vpack.c.bf16 %v1481_v52, %v1480_v51  ;;  %v1484_v5 = vld [vmem:[#allocation2 + $0x211] sm:$0xff] }
 0x177   : > { %1267 = vst.msk [vmem:[#allocation2 + $0x238] sm:$0xff] %vm1195_vm1, %v1174_v50  ;;  %v1482_v55 = vld [vmem:[#allocation2 + $0x201] sm:$0xff]  ;;  %v1483_v56 = vld [vmem:[#allocation2 + $0x209] sm:$0xff] }
 0x178   : > { %1265 = vst.msk [vmem:[#allocation2 + $0x228] sm:$0xff] %vm1195_vm1, %v1172_v53  ;;  %v9957_v57 = vpop.f32.mrb[72].mxu0  ;;  %10040 = vmatmul.mubr.msk.bf16.gmra.mrb[152].mxu0 %vm1195_vm1, %v1533_v54  ;;  %v1534_v58 = vpack.c.bf16 %v1483_v56, %v1482_v55  ;;  %v11518_v56 = vld [vmem:[%s12994_s2] ss:$0 sm:$0xff] }
 0x179   : > { %v1033_v59 = vadd.f32 %v9957_v57, %v11681_v49  ;;  %v1024_v60 = vpop.f32.mrb[73].mxu0 }
 0x17a   : > { %v1025_v61 = vadd.f32 %v11681_v49, %v1024_v60  ;;  %v9958_v62 = vpop.f32.mrb[74].mxu0  ;;  %10043 = vmatprep.mubr.msk.bf16.mxu0 %vm1195_vm1, %v1534_v58 }
 0x17b   : > { %v1177_v63 = vmax.f32 %v1033_v59, 0.0  ;;  %v1036_v0 = vadd.f32 %v9958_v62, %v11681_v49  ;;  %v1027_v1 = vpop.f32.mrb[75].mxu0 }
 0x17c   : > { %v1175_v2 = vmax.f32 %v1025_v61, 0.0  ;;  %v1028_v3 = vadd.f32 %v11681_v49, %v1027_v1 }
 0x17d   : > { %1270 = vst.msk [vmem:[#allocation2 + $0x250] sm:$0xff] %vm1195_vm1, %v1177_v63  ;;  %v1178_v4 = vmax.f32 %v1036_v0, 0.0  ;;  %v1485_v6 = vld [vmem:[#allocation2 + $0x219] sm:$0xff] }
 0x17e   : > { %1268 = vst.msk [vmem:[#allocation2 + $0x240] sm:$0xff] %vm1195_vm1, %v1175_v2  ;;  %v1176_v7 = vmax.f32 %v1028_v3, 0.0  ;;  %v1535_v8 = vpack.c.bf16 %v1485_v6, %v1484_v5  ;;  %v1488_v23 = vld [vmem:[#allocation2 + $0x231] sm:$0xff] }
 0x17f   : > { %1271 = vst.msk [vmem:[#allocation2 + $0x258] sm:$0xff] %vm1195_vm1, %v1178_v4  ;;  %v1486_v9 = vld [vmem:[#allocation2 + $0x221] sm:$0xff]  ;;  %v1487_v10 = vld [vmem:[#allocation2 + $0x229] sm:$0xff] }
 0x180   : > { %1269 = vst.msk [vmem:[#allocation2 + $0x248] sm:$0xff] %vm1195_vm1, %v1176_v7  ;;  %v9961_v11 = vpop.f32.mrb[76].mxu0  ;;  %10044 = vmatmul.mubr.msk.bf16.gmra.mrb[156].mxu0 %vm1195_vm1, %v1535_v8  ;;  %v1536_v12 = vpack.c.bf16 %v1487_v10, %v1486_v9 }
 0x181   : > { %v1049_v13 = vadd.f32 %v9961_v11, %v11681_v49  ;;  %v1040_v14 = vpop.f32.mrb[77].mxu0 }
 0x182   : > { %v1041_v15 = vadd.f32 %v11681_v49, %v1040_v14  ;;  %v9962_v16 = vpop.f32.mrb[78].mxu0  ;;  %10047 = vmatprep.mubr.msk.bf16.mxu0 %vm1195_vm1, %v1536_v12  ;;  %v1289_v14 = vld [vmem:[#allocation2 + $0x8] sm:$0xff] }
 0x183   : > { %v1181_v17 = vmax.f32 %v1049_v13, 0.0  ;;  %v1052_v18 = vadd.f32 %v9962_v16, %v11681_v49  ;;  %v1043_v19 = vpop.f32.mrb[79].mxu0 }
 0x184   : > { %v1179_v20 = vmax.f32 %v1041_v15, 0.0  ;;  %v1044_v21 = vadd.f32 %v11681_v49, %v1043_v19 }
 0x185   : > { %1274 = vst.msk [vmem:[#allocation2 + $0x270] sm:$0xff] %vm1195_vm1, %v1181_v17  ;;  %v1182_v22 = vmax.f32 %v1052_v18, 0.0  ;;  %v1489_v24 = vld [vmem:[#allocation2 + $0x239] sm:$0xff] }
 0x186   : > { %1272 = vst.msk [vmem:[#allocation2 + $0x260] sm:$0xff] %vm1195_vm1, %v1179_v20  ;;  %v1180_v25 = vmax.f32 %v1044_v21, 0.0  ;;  %v1537_v26 = vpack.c.bf16 %v1489_v24, %v1488_v23  ;;  %v1492_v41 = vld [vmem:[#allocation2 + $0x251] sm:$0xff]  ;;  %v1288_v20 = vld [vmem:[#allocation2] sm:$0xff] }
 0x187   : > { %1275 = vst.msk [vmem:[#allocation2 + $0x278] sm:$0xff] %vm1195_vm1, %v1182_v22  ;;  %v1490_v27 = vld [vmem:[#allocation2 + $0x241] sm:$0xff]  ;;  %v1491_v28 = vld [vmem:[#allocation2 + $0x249] sm:$0xff]  ;;  %v1372_v23 = vpack.c.bf16 %v1289_v14, %v1288_v20 }
 0x188   : > { %1273 = vst.msk [vmem:[#allocation2 + $0x268] sm:$0xff] %vm1195_vm1, %v1180_v25  ;;  %v9965_v29 = vpop.f32.mrb[80].mxu0  ;;  %10048 = vmatmul.mubr.msk.bf16.gmra.mrb[160].mxu0 %vm1195_vm1, %v1537_v26  ;;  %v1538_v30 = vpack.c.bf16 %v1491_v28, %v1490_v27  ;;  %v4008_v22 = vld [vmem:[#allocation2 + $0x25] sm:$0xff]  ;;  %v1306_v20 = vld [vmem:[#allocation2 + $0x90] sm:$0xff] }
 0x189   : > { %v1065_v31 = vadd.f32 %v9965_v29, %v11681_v49  ;;  %v1056_v32 = vpop.f32.mrb[81].mxu0  ;;  %v4007_v29 = vld [vmem:[#allocation2 + $0x1d] sm:$0xff]  ;;  %v4024_v14 = vld [vmem:[#allocation2 + $0xa5] sm:$0xff] }
 0x18a   : > { %v1057_v33 = vadd.f32 %v11681_v49, %v1056_v32  ;;  %v9966_v34 = vpop.f32.mrb[82].mxu0  ;;  %10051 = vmatprep.mubr.msk.bf16.mxu0 %vm1195_vm1, %v1538_v30  ;;  %v11507_v30 = vld [vmem:[%s12995_s3 + $0x48] sm:$0xff]   ;;  %v1291_v32 = vld [vmem:[#allocation2 + $0x18] sm:$0xff] }
 0x18b   : > { %v1185_v35 = vmax.f32 %v1065_v31, 0.0  ;;  %v1068_v36 = vadd.f32 %v9966_v34, %v11681_v49  ;;  %v1059_v37 = vpop.f32.mrb[83].mxu0  ;;  %v4091_v31 = vpack.c.bf16 %v4008_v22, %v4007_v29  ;;  %v1290_v34 = vld [vmem:[#allocation2 + $0x10] sm:$0xff]  ;;  %v1308_v22 = vld [vmem:[#allocation2 + $0xa0] sm:$0xff] }
 0x18c   : > { %v1183_v38 = vmax.f32 %v1057_v33, 0.0  ;;  %v1060_v39 = vadd.f32 %v11681_v49, %v1059_v37  ;;  %v1293_v33 = vld [vmem:[#allocation2 + $0x28] sm:$0xff]  ;;  %v1292_v37 = vld [vmem:[#allocation2 + $0x20] sm:$0xff] }
 0x18d   : > { %1278 = vst.msk [vmem:[#allocation2 + $0x290] sm:$0xff] %vm1195_vm1, %v1185_v35  ;;  %v1186_v40 = vmax.f32 %v1068_v36, 0.0  ;;  %v1493_v42 = vld [vmem:[#allocation2 + $0x259] sm:$0xff]  ;;  %v11508_v35 = vld [vmem:[%s12995_s3 + $0x50] sm:$0xff]   ;;  %v1373_v36 = vpack.c.bf16 %v1291_v32, %v1290_v34  ;;  %v11511_v32 = vld [vmem:[%s12995_s3 + $0x28] sm:$0xff]  }
 0x18e   : > { %1276 = vst.msk [vmem:[#allocation2 + $0x280] sm:$0xff] %vm1195_vm1, %v1183_v38  ;;  %v1184_v43 = vmax.f32 %v1060_v39, 0.0  ;;  %v1539_v44 = vpack.c.bf16 %v1493_v42, %v1492_v41  ;;  %v1496_v62 = vld [vmem:[#allocation2 + $0x271] sm:$0xff]  ;;  %v4012_v41 = vld [vmem:[#allocation2 + $0x45] sm:$0xff]  ;;  %v4011_v42 = vld [vmem:[#allocation2 + $0x3d] sm:$0xff] }
 0x18f   : > { %1279 = vst.msk [vmem:[#allocation2 + $0x298] sm:$0xff] %vm1195_vm1, %v1186_v40  ;;  %v1494_v45 = vld [vmem:[#allocation2 + $0x261] sm:$0xff]  ;;  %v1495_v47 = vld [vmem:[#allocation2 + $0x269] sm:$0xff]  ;;  %v4010_v39 = vld [vmem:[#allocation2 + $0x35] sm:$0xff]  ;;  %v1374_v40 = vpack.c.bf16 %v1293_v33, %v1292_v37 }
 0x190   : > { %1277 = vst.msk [vmem:[#allocation2 + $0x288] sm:$0xff] %vm1195_vm1, %v1184_v43  ;;  %v9969_v48 = vpop.f32.mrb[84].mxu0  ;;  %10052 = vmatmul.mubr.msk.bf16.gmra.mrb[164].mxu0 %vm1195_vm1, %v1539_v44  ;;  %v1540_v50 = vpack.c.bf16 %v1495_v47, %v1494_v45  ;;  %v4009_v38 = vld [vmem:[#allocation2 + $0x2d] sm:$0xff]  ;;  %v11509_v43 = vld [vmem:[%s12995_s3 + $0x58] sm:$0xff]   ;;  %v4093_v44 = vpack.c.bf16 %v4012_v41, %v4011_v42 }
 0x191   : > { %v1081_v51 = vadd.f32 %v9969_v48, %v11681_v49  ;;  %v1072_v52 = vpop.f32.mrb[85].mxu0  ;;  %v1295_v45 = vld [vmem:[#allocation2 + $0x38] sm:$0xff]  ;;  %v1297_v47 = vld [vmem:[#allocation2 + $0x48] sm:$0xff]  ;;  %v1294_v48 = vld [vmem:[#allocation2 + $0x30] sm:$0xff] }
 0x192   : > { %v1073_v53 = vadd.f32 %v11681_v49, %v1072_v52  ;;  %v9970_v54 = vpop.f32.mrb[86].mxu0  ;;  %10055 = vmatprep.mubr.msk.bf16.mxu0 %vm1195_vm1, %v1540_v50  ;;  %v1375_v50 = vpack.c.bf16 %v1295_v45, %v1294_v48  ;;  %v4013_v52 = vld [vmem:[#allocation2 + $0x4d] sm:$0xff]  ;;  %v4027_v29 = vld [vmem:[#allocation2 + $0xbd] sm:$0xff] }
 0x193   : > { %v1189_v55 = vmax.f32 %v1081_v51, 0.0  ;;  %v1084_v57 = vadd.f32 %v11518_v56, %v9970_v54  ;;  %v1075_v58 = vpop.f32.mrb[87].mxu0  ;;  %v1296_v51 = vld [vmem:[#allocation2 + $0x40] sm:$0xff]  ;;  %v1313_v33 = vld [vmem:[#allocation2 + $0xc8] sm:$0xff]  ;;  %v1310_v34 = vld [vmem:[#allocation2 + $0xb0] sm:$0xff] }
 0x194   : > { %v1187_v59 = vmax.f32 %v1073_v53, 0.0  ;;  %v1076_v60 = vadd.f32 %v11518_v56, %v1075_v58  ;;  %v4014_v53 = vld [vmem:[#allocation2 + $0x55] sm:$0xff]  ;;  %v1376_v54 = vpack.c.bf16 %v1297_v47, %v1296_v51  ;;  %v4029_v37 = vld [vmem:[#allocation2 + $0xcd] sm:$0xff]  ;;  %v4031_v42 = vld [vmem:[#allocation2 + $0xdd] sm:$0xff] }
 0x195   : > { %1282 = vst.msk [vmem:[#allocation2 + $0x2b0] sm:$0xff] %vm1195_vm1, %v1189_v55  ;;  %v1190_v61 = vmax.f32 %v1084_v57, 0.0  ;;  %v1497_v63 = vld [vmem:[#allocation2 + $0x279] sm:$0xff]  ;;  %v4016_v55 = vld [vmem:[#allocation2 + $0x65] sm:$0xff]  ;;  %v11968_v41 = vld [vmem:[%s12995_s3 + $0x30] sm:$0xff]  }
 0x196   : > { %1280 = vst.msk [vmem:[#allocation2 + $0x2a0] sm:$0xff] %vm1195_vm1, %v1187_v59  ;;  %v1188_v49 = vmax.f32 %v1076_v60, 0.0  ;;  %v1541_v0 = vpack.c.bf16 %v1497_v63, %v1496_v62  ;;  %v1500_v16 = vld [vmem:[#allocation2 + $0x291] sm:$0xff]  ;;  %v4015_v57 = vld [vmem:[#allocation2 + $0x5d] sm:$0xff]  ;;  %v1301_v60 = vld [vmem:[#allocation2 + $0x68] sm:$0xff] }
 0x197   : > { %1283 = vst.msk [vmem:[#allocation2 + $0x2b8] sm:$0xff] %vm1195_vm1, %v1190_v61  ;;  %v1498_v1 = vld [vmem:[#allocation2 + $0x281] sm:$0xff]  ;;  %v1499_v2 = vld [vmem:[#allocation2 + $0x289] sm:$0xff]  ;;  %v4095_v58 = vpack.c.bf16 %v4016_v55, %v4015_v57  ;;  %v1299_v59 = vld [vmem:[#allocation2 + $0x58] sm:$0xff] }
 0x198   : > { %1281 = vst.msk [vmem:[#allocation2 + $0x2a8] sm:$0xff] %vm1195_vm1, %v1188_v49  ;;  %v9973_v3 = vpop.f32.mrb[88].mxu0  ;;  %10056 = vmatmul.mubr.msk.bf16.gmra.mrb[168].mxu0 %vm1195_vm1, %v1541_v0  ;;  %v1542_v4 = vpack.c.bf16 %v1499_v2, %v1498_v1  ;;  %v1298_v61 = vld [vmem:[#allocation2 + $0x50] sm:$0xff]  ;;  %v1300_v63 = vld [vmem:[#allocation2 + $0x60] sm:$0xff]  ;;  %v1315_v45 = vld [vmem:[#allocation2 + $0xd8] sm:$0xff] }
 0x199   : > { %v1097_v5 = vadd.f32 %v11518_v56, %v9973_v3  ;;  %v1088_v6 = vpop.f32.mrb[89].mxu0  ;;  %v1377_v62 = vpack.c.bf16 %v1299_v59, %v1298_v61  ;;  %v4017_v49 = vld [vmem:[#allocation2 + $0x6d] sm:$0xff]  ;;  %v4018_v0 = vld [vmem:[#allocation2 + $0x75] sm:$0xff]  ;;  %v1378_v1 = vpack.c.bf16 %v1301_v60, %v1300_v63  ;;  %v4020_v2 = vld [vmem:[#allocation2 + $0x85] sm:$0xff] }
 0x19a   : > { %v1089_v7 = vadd.f32 %v11518_v56, %v1088_v6  ;;  %v9974_v8 = vpop.f32.mrb[90].mxu0  ;;  %10059 = vmatprep.mubr.msk.bf16.mxu0 %vm1195_vm1, %v1542_v4  ;;  %v4096_v3 = vpack.c.bf16 %v4018_v0, %v4017_v49  ;;  %v4019_v4 = vld [vmem:[#allocation2 + $0x7d] sm:$0xff]  ;;  %v1317_v47 = vld [vmem:[#allocation2 + $0xe8] sm:$0xff]  ;;  %v1314_v48 = vld [vmem:[#allocation2 + $0xd0] sm:$0xff] }
 0x19b   : > { %v1193_v9 = vmax.f32 %v1097_v5, 0.0  ;;  %v1100_v10 = vadd.f32 %v11518_v56, %v9974_v8  ;;  %v1091_v11 = vpop.f32.mrb[91].mxu0  ;;  %v4097_v5 = vpack.c.bf16 %v4020_v2, %v4019_v4  ;;  %v1303_v6 = vld [vmem:[#allocation2 + $0x78] sm:$0xff]  ;;  %v1302_v8 = vld [vmem:[#allocation2 + $0x70] sm:$0xff]  ;;  %v1316_v51 = vld [vmem:[#allocation2 + $0xe0] sm:$0xff] }
 0x19c   : > { %v1191_v12 = vmax.f32 %v1089_v7, 0.0  ;;  %v1092_v13 = vadd.f32 %v11518_v56, %v1091_v11  ;;  %v4094_v56 = vpack.c.bf16 %v4014_v53, %v4013_v52  ;;  %v1305_v7 = vld [vmem:[#allocation2 + $0x88] sm:$0xff]  ;;  %v4034_v53 = vld [vmem:[#allocation2 + $0xf5] sm:$0xff]  ;;  %v4035_v57 = vld [vmem:[#allocation2 + $0xfd] sm:$0xff] }
 0x19d   : > { %1286 = vst.msk [vmem:[#allocation2 + $0x2d0] sm:$0xff] %vm1195_vm1, %v1193_v9  ;;  %v1194_v15 = vmax.f32 %v1100_v10, 0.0  ;;  %v1501_v17 = vld [vmem:[#allocation2 + $0x299] sm:$0xff]  ;;  %v1379_v9 = vpack.c.bf16 %v1303_v6, %v1302_v8  ;;  %v4021_v11 = vld [vmem:[#allocation2 + $0x8d] sm:$0xff]  ;;  %v4036_v55 = vld [vmem:[#allocation2 + $0x105] sm:$0xff] }
 0x19e   : > { %1284 = vst.msk [vmem:[#allocation2 + $0x2c0] sm:$0xff] %vm1195_vm1, %v1191_v12  ;;  %v1192_v18 = vmax.f32 %v1092_v13, 0.0  ;;  %v1543_v19 = vpack.c.bf16 %v1501_v17, %v1500_v16  ;;  %v3368_v21 = vld [vmem:[#allocation2 + $0x2b4] sm:$0xff]  ;;  %v3365_v24 = vld [vmem:[#allocation2 + $0x29c] sm:$0xff]  ;;  %v1321_v60 = vld [vmem:[#allocation2 + $0x108] sm:$0xff] }
 0x19f   : > { %1287 = vst.msk [vmem:[#allocation2 + $0x2d8] sm:$0xff] %vm1195_vm1, %v1194_v15  ;;  %v3366_v25 = vld [vmem:[#allocation2 + $0x2a4] sm:$0xff]  ;;  %v3367_v26 = vld [vmem:[#allocation2 + $0x2ac] sm:$0xff]  ;;  %v4022_v12 = vld [vmem:[#allocation2 + $0x95] sm:$0xff] }
 0x1a0   : > { %1285 = vst.msk [vmem:[#allocation2 + $0x2c8] sm:$0xff] %vm1195_vm1, %v1192_v18  ;;  %10060 = vmatmul.mubr.msk.bf16.gmra.mrb[172].mxu0 %vm1195_vm1, %v1543_v19  ;;  %v3409_v27 = vpack.c.bf16 %v3366_v25, %v3365_v24  ;;  %v3410_v28 = vpack.c.bf16 %v3368_v21, %v3367_v26  ;;  %v1304_v10 = vld [vmem:[#allocation2 + $0x80] sm:$0xff]  ;;  %v4098_v15 = vpack.c.bf16 %v4022_v12, %v4021_v11  ;;  %v1307_v18 = vld [vmem:[#allocation2 + $0x98] sm:$0xff]  ;;  %v1309_v19 = vld [vmem:[#allocation2 + $0xa8] sm:$0xff] }
 0x1a1   : > { %10067 = vmatprep.mubr.msk.bf16.mxu0 %vm1195_vm1, %v1372_v23  ;;  %v1380_v13 = vpack.c.bf16 %v1305_v7, %v1304_v10  ;;  %v4023_v16 = vld [vmem:[#allocation2 + $0x9d] sm:$0xff]  ;;  %v1381_v21 = vpack.c.bf16 %v1307_v18, %v1306_v20  ;;  %v4025_v23 = vld [vmem:[#allocation2 + $0xad] sm:$0xff]  ;;  %v4026_v24 = vld [vmem:[#allocation2 + $0xb5] sm:$0xff]  ;;  %v1382_v25 = vpack.c.bf16 %v1309_v19, %v1308_v22 }
 0x1a2   : > { %10323 = vmatprep.mubr.msk.bf16.mxu1 %vm1195_vm1, %v3409_v27  ;;  %v4099_v17 = vpack.c.bf16 %v4024_v14, %v4023_v16  ;;  %v4028_v26 = vld [vmem:[#allocation2 + $0xc5] sm:$0xff]  ;;  %v4033_v52 = vld [vmem:[#allocation2 + $0xed] sm:$0xff]  ;;  %v1319_v59 = vld [vmem:[#allocation2 + $0xf8] sm:$0xff] }
 0x1a3   : > { %10324 = vmatmul.mubr.msk.bf16.vlgmr.msra.gmra.mrb[0].mxu1 %vm1195_vm1, %v3410_v28  ;;  %v11510_v27 = vld [vmem:[%s12995_s3 + $0x20] sm:$0xff]   ;;  %v4100_v28 = vpack.c.bf16 %v4026_v24, %v4025_v23  ;;  %v1318_v61 = vld [vmem:[#allocation2 + $0xf0] sm:$0xff]  ;;  %v1323_v6 = vld [vmem:[#allocation2 + $0x118] sm:$0xff] }
 0x1a4   : > { %10328 = vmatpush3.bf16.msra.mxu1 %v11762_v46  ;;  %10331 = vmatprep.mubr.msk.bf16.mxu1 %vm1195_vm1, %v4091_v31  ;;  %v4092_v46 = vpack.c.bf16 %v4010_v39, %v4009_v38  ;;  %v1311_v31 = vld [vmem:[#allocation2 + $0xb8] sm:$0xff]  ;;  %v1320_v63 = vld [vmem:[#allocation2 + $0x100] sm:$0xff]  ;;  %v4037_v49 = vld [vmem:[#allocation2 + $0x10d] sm:$0xff] }
 0x1a5   : > { %10329 = vmatprep.subr.bf16.mxu1 %v11507_v30  ;;  %10151 = vmatprep.subr.bf16.mxu0 %v11510_v27  ;;  %v4030_v38 = vld [vmem:[#allocation2 + $0xd5] sm:$0xff]  ;;  %v4040_v2 = vld [vmem:[#allocation2 + $0x125] sm:$0xff]  ;;  %v4039_v4 = vld [vmem:[#allocation2 + $0x11d] sm:$0xff] }
 0x1a6   : > { %v4038_v0 = vld [vmem:[#allocation2 + $0x115] sm:$0xff]  ;;  %v1325_v7 = vld [vmem:[#allocation2 + $0x128] sm:$0xff]  ;;  %v1324_v10 = vld [vmem:[#allocation2 + $0x120] sm:$0xff] }
 0x1a7   : > { %v1322_v8 = vld [vmem:[#allocation2 + $0x110] sm:$0xff]  ;;  %v4044_v14 = vld [vmem:[#allocation2 + $0x145] sm:$0xff]  ;;  %v4043_v16 = vld [vmem:[#allocation2 + $0x13d] sm:$0xff] }
 0x1a8   : > { %10330 = vmatpush3.bf16.msra.mxu1 %v11507_v30  ;;  %10068 = vmatmul.mubr.msk.bf16.vlgmr.msra.gmra.mrb[92].mxu0 %vm1195_vm1, %v1373_v36  ;;  %v4101_v30 = vpack.c.bf16 %v4028_v26, %v4027_v29  ;;  %v1312_v36 = vld [vmem:[#allocation2 + $0xc0] sm:$0xff]  ;;  %v4041_v11 = vld [vmem:[#allocation2 + $0x12d] sm:$0xff]  ;;  %v4042_v12 = vld [vmem:[#allocation2 + $0x135] sm:$0xff] }
 0x1a9   : > { %10071 = vmatprep.mubr.msk.bf16.mxu0 %vm1195_vm1, %v1374_v40  ;;  %10415 = vmatprep.subr.bf16.mxu1 %v11508_v35  ;;  %v1384_v39 = vpack.c.bf16 %v1313_v33, %v1312_v36  ;;  %v4032_v40 = vld [vmem:[#allocation2 + $0xe5] sm:$0xff]  ;;  %v1327_v18 = vld [vmem:[#allocation2 + $0x138] sm:$0xff]  ;;  %v1326_v20 = vld [vmem:[#allocation2 + $0x130] sm:$0xff] }
 0x1aa   : > { %10152 = vmatpush3.bf16.msra.mxu0 %v11510_v27  ;;  %v1329_v19 = vld [vmem:[#allocation2 + $0x148] sm:$0xff]  ;;  %v1328_v22 = vld [vmem:[#allocation2 + $0x140] sm:$0xff]  ;;  %v4046_v24 = vld [vmem:[#allocation2 + $0x155] sm:$0xff] }
 0x1ab   : > { %10332 = vmatmul.mubr.msk.bf16.vlgmr.msra.gmra.mrb[4].mxu1 %vm1195_vm1, %v4092_v46  ;;  %10153 = vmatprep.subr.bf16.mxu0 %v11511_v32  ;;  %v4102_v46 = vpack.c.bf16 %v4030_v38, %v4029_v37  ;;  %v4045_v23 = vld [vmem:[#allocation2 + $0x14d] sm:$0xff]  ;;  %v4048_v26 = vld [vmem:[#allocation2 + $0x165] sm:$0xff]  ;;  %v4050_v36 = vld [vmem:[#allocation2 + $0x175] sm:$0xff] }
 0x1ac   : > { %10416 = vmatpush3.bf16.msra.mxu1 %v11508_v35  ;;  %10335 = vmatprep.mubr.msk.bf16.mxu1 %vm1195_vm1, %v4093_v44  ;;  %v1383_v35 = vpack.c.bf16 %v1311_v31, %v1310_v34  ;;  %v4103_v44 = vpack.c.bf16 %v4032_v40, %v4031_v42  ;;  %v4110_v27 = vpack.c.bf16 %v4046_v24, %v4045_v23  ;;  %v1333_v31 = vld [vmem:[#allocation2 + $0x168] sm:$0xff]  ;;  %v1332_v34 = vld [vmem:[#allocation2 + $0x160] sm:$0xff]  ;;  %v1335_v42 = vld [vmem:[#allocation2 + $0x178] sm:$0xff] }
 0x1ad   : > { %10417 = vmatprep.subr.bf16.mxu1 %v11509_v43  ;;  %v1394_v37 = vpack.c.bf16 %v1333_v31, %v1332_v34  ;;  %v4052_v38 = vld [vmem:[#allocation2 + $0x185] sm:$0xff]  ;;  %v4051_v40 = vld [vmem:[#allocation2 + $0x17d] sm:$0xff]  ;;  %v4070_v34 = vld [vmem:[#allocation2 + $0x215] sm:$0xff] }
 0x1ae   : > { %10154 = vmatpush3.bf16.msra.mxu0 %v11511_v32  ;;  %v1330_v32 = vld [vmem:[#allocation2 + $0x150] sm:$0xff]  ;;  %v4068_v24 = vld [vmem:[#allocation2 + $0x205] sm:$0xff] }
 0x1af   : > { %10239 = vmatprep.subr.bf16.mxu0 %v11968_v41 }
 0x1b0   : > { %10072 = vmatmul.mubr.msk.bf16.gmra.mrb[96].mxu0 %vm1195_vm1, %v1375_v50  ;;  %10418 = vmatpush3.bf16.msra.mxu1 %v11509_v43  ;;  %v11975_v43 = vld [vmem:[%s12995_s3 + $0x60] sm:$0xff]   ;;  %v1385_v50 = vpack.c.bf16 %v1315_v45, %v1314_v48  ;;  %v1334_v45 = vld [vmem:[#allocation2 + $0x170] sm:$0xff] }
 0x1b1   : > { %10075 = vmatprep.mubr.msk.bf16.mxu0 %vm1195_vm1, %v1376_v54  ;;  %10503 = vmatprep.subr.bf16.mxu1 %v11975_v43  ;;  %v1386_v54 = vpack.c.bf16 %v1317_v47, %v1316_v51  ;;  %v1395_v47 = vpack.c.bf16 %v1335_v42, %v1334_v45  ;;  %v1336_v48 = vld [vmem:[#allocation2 + $0x180] sm:$0xff]  ;;  %v4054_v51 = vld [vmem:[#allocation2 + $0x195] sm:$0xff] }
 0x1b2   : > { %v1354_v42 = vld [vmem:[#allocation2 + $0x210] sm:$0xff]  ;;  %v1356_v45 = vld [vmem:[#allocation2 + $0x220] sm:$0xff] }
 0x1b3   : > { %10336 = vmatmul.mubr.msk.bf16.gmra.mrb[8].mxu1 %vm1195_vm1, %v4094_v56  ;;  %v4104_v56 = vpack.c.bf16 %v4034_v53, %v4033_v52  ;;  %v4056_v53 = vld [vmem:[#allocation2 + $0x1a5] sm:$0xff] }
 0x1b4   : > { %10339 = vmatprep.mubr.msk.bf16.mxu1 %vm1195_vm1, %v4095_v58  ;;  %v4105_v58 = vpack.c.bf16 %v4036_v55, %v4035_v57  ;;  %v4055_v55 = vld [vmem:[#allocation2 + $0x19d] sm:$0xff] }
 0x1b5   : > { %v1339_v57 = vld [vmem:[#allocation2 + $0x198] sm:$0xff] }
 0x1b8   : > { %10076 = vmatmul.mubr.msk.bf16.gmra.mrb[100].mxu0 %vm1195_vm1, %v1377_v62  ;;  %v1387_v62 = vpack.c.bf16 %v1319_v59, %v1318_v61  ;;  %v1338_v59 = vld [vmem:[#allocation2 + $0x190] sm:$0xff]  ;;  %v1340_v61 = vld [vmem:[#allocation2 + $0x1a0] sm:$0xff] }
 0x1b9   : > { %10079 = vmatprep.mubr.msk.bf16.mxu0 %vm1195_vm1, %v1378_v1  ;;  %v1388_v1 = vpack.c.bf16 %v1321_v60, %v1320_v63  ;;  %v1397_v60 = vpack.c.bf16 %v1339_v57, %v1338_v59  ;;  %v4058_v63 = vld [vmem:[#allocation2 + $0x1b5] sm:$0xff]  ;;  %v1360_v59 = vld [vmem:[#allocation2 + $0x240] sm:$0xff] }
 0x1ba   : > { %v1358_v57 = vld [vmem:[#allocation2 + $0x230] sm:$0xff] }
 0x1bb   : > { %10340 = vmatmul.mubr.msk.bf16.gmra.mrb[12].mxu1 %vm1195_vm1, %v4096_v3  ;;  %v4106_v3 = vpack.c.bf16 %v4038_v0, %v4037_v49  ;;  %v4060_v0 = vld [vmem:[#allocation2 + $0x1c5] sm:$0xff] }
 0x1bc   : > { %10343 = vmatprep.mubr.msk.bf16.mxu1 %vm1195_vm1, %v4097_v5  ;;  %v4107_v5 = vpack.c.bf16 %v4040_v2, %v4039_v4  ;;  %v4059_v2 = vld [vmem:[#allocation2 + $0x1bd] sm:$0xff] }
 0x1bd   : > { %v1343_v4 = vld [vmem:[#allocation2 + $0x1b8] sm:$0xff] }
 0x1c0   : > { %10080 = vmatmul.mubr.msk.bf16.gmra.mrb[104].mxu0 %vm1195_vm1, %v1379_v9  ;;  %v1389_v9 = vpack.c.bf16 %v1323_v6, %v1322_v8  ;;  %v1342_v6 = vld [vmem:[#allocation2 + $0x1b0] sm:$0xff]  ;;  %v1344_v8 = vld [vmem:[#allocation2 + $0x1c0] sm:$0xff] }
 0x1c1   : > { %10083 = vmatprep.mubr.msk.bf16.mxu0 %vm1195_vm1, %v1380_v13  ;;  %v1390_v13 = vpack.c.bf16 %v1325_v7, %v1324_v10  ;;  %v1399_v7 = vpack.c.bf16 %v1343_v4, %v1342_v6  ;;  %v4062_v10 = vld [vmem:[#allocation2 + $0x1d5] sm:$0xff]  ;;  %v1364_v6 = vld [vmem:[#allocation2 + $0x260] sm:$0xff] }
 0x1c2   : > { %v1362_v4 = vld [vmem:[#allocation2 + $0x250] sm:$0xff] }
 0x1c3   : > { %10344 = vmatmul.mubr.msk.bf16.gmra.mrb[16].mxu1 %vm1195_vm1, %v4098_v15  ;;  %v4108_v15 = vpack.c.bf16 %v4042_v12, %v4041_v11  ;;  %v4064_v12 = vld [vmem:[#allocation2 + $0x1e5] sm:$0xff] }
 0x1c4   : > { %10347 = vmatprep.mubr.msk.bf16.mxu1 %vm1195_vm1, %v4099_v17  ;;  %v4109_v17 = vpack.c.bf16 %v4044_v14, %v4043_v16  ;;  %v4063_v14 = vld [vmem:[#allocation2 + $0x1dd] sm:$0xff] }
 0x1c5   : > { %v1347_v16 = vld [vmem:[#allocation2 + $0x1d8] sm:$0xff] }
 0x1c8   : > { %10084 = vmatmul.mubr.msk.bf16.gmra.mrb[108].mxu0 %vm1195_vm1, %v1381_v21  ;;  %v1391_v21 = vpack.c.bf16 %v1327_v18, %v1326_v20  ;;  %v1346_v18 = vld [vmem:[#allocation2 + $0x1d0] sm:$0xff]  ;;  %v1348_v20 = vld [vmem:[#allocation2 + $0x1e0] sm:$0xff] }
 0x1c9   : > { %10087 = vmatprep.mubr.msk.bf16.mxu0 %vm1195_vm1, %v1382_v25  ;;  %v1392_v25 = vpack.c.bf16 %v1329_v19, %v1328_v22  ;;  %v1401_v19 = vpack.c.bf16 %v1347_v16, %v1346_v18  ;;  %v4066_v22 = vld [vmem:[#allocation2 + $0x1f5] sm:$0xff]  ;;  %v1368_v18 = vld [vmem:[#allocation2 + $0x280] sm:$0xff] }
 0x1ca   : > { %v1366_v16 = vld [vmem:[#allocation2 + $0x270] sm:$0xff] }
 0x1cb   : > { %10348 = vmatmul.mubr.msk.bf16.gmra.mrb[20].mxu1 %vm1195_vm1, %v4100_v28  ;;  %v4047_v28 = vld [vmem:[#allocation2 + $0x15d] sm:$0xff] }
 0x1cc   : > { %10351 = vmatprep.mubr.msk.bf16.mxu1 %vm1195_vm1, %v4101_v30  ;;  %v4111_v29 = vpack.c.bf16 %v4048_v26, %v4047_v28  ;;  %v1331_v30 = vld [vmem:[#allocation2 + $0x158] sm:$0xff] }
 0x1cd   : > { %v1393_v33 = vpack.c.bf16 %v1331_v30, %v1330_v32  ;;  %v4067_v26 = vld [vmem:[#allocation2 + $0x1fd] sm:$0xff]  ;;  %v1350_v30 = vld [vmem:[#allocation2 + $0x1f0] sm:$0xff] }
 0x1ce   : > { %v1351_v28 = vld [vmem:[#allocation2 + $0x1f8] sm:$0xff]  ;;  %v1352_v32 = vld [vmem:[#allocation2 + $0x200] sm:$0xff] }
 0x1cf   : > { %v1403_v31 = vpack.c.bf16 %v1351_v28, %v1350_v30  ;;  %v2564_v28 = vld [vmem:[#allocation2 + $0xa] sm:$0xff] }
 0x1d0   : > { %10088 = vmatmul.mubr.msk.bf16.gmra.mrb[112].mxu0 %vm1195_vm1, %v1383_v35  ;;  %v4049_v35 = vld [vmem:[#allocation2 + $0x16d] sm:$0xff] }
 0x1d1   : > { %10091 = vmatprep.mubr.msk.bf16.mxu0 %vm1195_vm1, %v1384_v39  ;;  %v4112_v39 = vpack.c.bf16 %v4050_v36, %v4049_v35  ;;  %v4072_v36 = vld [vmem:[#allocation2 + $0x225] sm:$0xff] }
 0x1d3   : > { %10352 = vmatmul.mubr.msk.bf16.gmra.mrb[24].mxu1 %vm1195_vm1, %v4102_v46  ;;  %v4113_v46 = vpack.c.bf16 %v4052_v38, %v4051_v40  ;;  %v4071_v38 = vld [vmem:[#allocation2 + $0x21d] sm:$0xff] }
 0x1d4   : > { %10355 = vmatprep.mubr.msk.bf16.mxu1 %vm1195_vm1, %v4103_v44  ;;  %v1337_v44 = vld [vmem:[#allocation2 + $0x188] sm:$0xff]  ;;  %v1355_v40 = vld [vmem:[#allocation2 + $0x218] sm:$0xff] }
 0x1d5   : > { %v1396_v52 = vpack.c.bf16 %v1337_v44, %v1336_v48  ;;  %v1405_v44 = vpack.c.bf16 %v1355_v40, %v1354_v42  ;;  %v4074_v48 = vld [vmem:[#allocation2 + $0x235] sm:$0xff]  ;;  %v2568_v40 = vld [vmem:[#allocation2 + $0x2a] sm:$0xff] }
 0x1d8   : > { %10092 = vmatmul.mubr.msk.bf16.gmra.mrb[116].mxu0 %vm1195_vm1, %v1385_v50  ;;  %v4053_v50 = vld [vmem:[#allocation2 + $0x18d] sm:$0xff] }
 0x1d9   : > { %10095 = vmatprep.mubr.msk.bf16.mxu0 %vm1195_vm1, %v1386_v54  ;;  %v4114_v54 = vpack.c.bf16 %v4054_v51, %v4053_v50  ;;  %v4076_v51 = vld [vmem:[#allocation2 + $0x245] sm:$0xff] }
 0x1db   : > { %10356 = vmatmul.mubr.msk.bf16.gmra.mrb[28].mxu1 %vm1195_vm1, %v4104_v56  ;;  %v4115_v56 = vpack.c.bf16 %v4056_v53, %v4055_v55  ;;  %v4075_v53 = vld [vmem:[#allocation2 + $0x23d] sm:$0xff] }
 0x1dc   : > { %10359 = vmatprep.mubr.msk.bf16.mxu1 %vm1195_vm1, %v4105_v58  ;;  %v1341_v58 = vld [vmem:[#allocation2 + $0x1a8] sm:$0xff]  ;;  %v1359_v55 = vld [vmem:[#allocation2 + $0x238] sm:$0xff] }
 0x1dd   : > { %v1398_v49 = vpack.c.bf16 %v1341_v58, %v1340_v61  ;;  %v1407_v58 = vpack.c.bf16 %v1359_v55, %v1358_v57  ;;  %v4078_v61 = vld [vmem:[#allocation2 + $0x255] sm:$0xff]  ;;  %v2572_v57 = vld [vmem:[#allocation2 + $0x4a] sm:$0xff] }
 0x1de   : > { %v2570_v55 = vld [vmem:[#allocation2 + $0x3a] sm:$0xff] }
 0x1e0   : > { %10096 = vmatmul.mubr.msk.bf16.gmra.mrb[120].mxu0 %vm1195_vm1, %v1387_v62  ;;  %v4057_v62 = vld [vmem:[#allocation2 + $0x1ad] sm:$0xff] }
 0x1e1   : > { %10099 = vmatprep.mubr.msk.bf16.mxu0 %vm1195_vm1, %v1388_v1  ;;  %v4116_v1 = vpack.c.bf16 %v4058_v63, %v4057_v62  ;;  %v4080_v63 = vld [vmem:[#allocation2 + $0x265] sm:$0xff] }
 0x1e3   : > { %10360 = vmatmul.mubr.msk.bf16.gmra.mrb[32].mxu1 %vm1195_vm1, %v4106_v3  ;;  %v4117_v3 = vpack.c.bf16 %v4060_v0, %v4059_v2  ;;  %v4079_v0 = vld [vmem:[#allocation2 + $0x25d] sm:$0xff] }
 0x1e4   : > { %10363 = vmatprep.mubr.msk.bf16.mxu1 %vm1195_vm1, %v4107_v5  ;;  %v1345_v5 = vld [vmem:[#allocation2 + $0x1c8] sm:$0xff]  ;;  %v1363_v2 = vld [vmem:[#allocation2 + $0x258] sm:$0xff] }
 0x1e5   : > { %v1400_v11 = vpack.c.bf16 %v1345_v5, %v1344_v8  ;;  %v1409_v5 = vpack.c.bf16 %v1363_v2, %v1362_v4  ;;  %v4082_v8 = vld [vmem:[#allocation2 + $0x275] sm:$0xff]  ;;  %v2576_v2 = vld [vmem:[#allocation2 + $0x6a] sm:$0xff] }
 0x1e8   : > { %10100 = vmatmul.mubr.msk.bf16.gmra.mrb[124].mxu0 %vm1195_vm1, %v1389_v9  ;;  %v4061_v9 = vld [vmem:[#allocation2 + $0x1cd] sm:$0xff] }
 0x1e9   : > { %10103 = vmatprep.mubr.msk.bf16.mxu0 %vm1195_vm1, %v1390_v13  ;;  %v4118_v13 = vpack.c.bf16 %v4062_v10, %v4061_v9  ;;  %v4084_v10 = vld [vmem:[#allocation2 + $0x285] sm:$0xff] }
 0x1eb   : > { %10364 = vmatmul.mubr.msk.bf16.gmra.mrb[36].mxu1 %vm1195_vm1, %v4108_v15  ;;  %v4119_v15 = vpack.c.bf16 %v4064_v12, %v4063_v14  ;;  %v4083_v12 = vld [vmem:[#allocation2 + $0x27d] sm:$0xff] }
 0x1ec   : > { %10367 = vmatprep.mubr.msk.bf16.mxu1 %vm1195_vm1, %v4109_v17  ;;  %v1349_v17 = vld [vmem:[#allocation2 + $0x1e8] sm:$0xff]  ;;  %v1367_v14 = vld [vmem:[#allocation2 + $0x278] sm:$0xff] }
 0x1ed   : > { %v1402_v23 = vpack.c.bf16 %v1349_v17, %v1348_v20  ;;  %v1411_v17 = vpack.c.bf16 %v1367_v14, %v1366_v16  ;;  %v4086_v20 = vld [vmem:[#allocation2 + $0x295] sm:$0xff]  ;;  %v2580_v14 = vld [vmem:[#allocation2 + $0x8a] sm:$0xff] }
 0x1f0   : > { %10104 = vmatmul.mubr.msk.bf16.gmra.mrb[128].mxu0 %vm1195_vm1, %v1391_v21  ;;  %v4065_v21 = vld [vmem:[#allocation2 + $0x1ed] sm:$0xff] }
 0x1f1   : > { %10107 = vmatprep.mubr.msk.bf16.mxu0 %vm1195_vm1, %v1392_v25  ;;  %v4120_v25 = vpack.c.bf16 %v4066_v22, %v4065_v21  ;;  %v4088_v22 = vld [vmem:[#allocation2 + $0x2a5] sm:$0xff] }
 0x1f3   : > { %10368 = vmatmul.mubr.msk.bf16.gmra.mrb[40].mxu1 %vm1195_vm1, %v4110_v27  ;;  %v4121_v27 = vpack.c.bf16 %v4068_v24, %v4067_v26  ;;  %v4087_v24 = vld [vmem:[#allocation2 + $0x29d] sm:$0xff] }
 0x1f4   : > { %10371 = vmatprep.mubr.msk.bf16.mxu1 %vm1195_vm1, %v4111_v29  ;;  %v1353_v29 = vld [vmem:[#allocation2 + $0x208] sm:$0xff]  ;;  %v1371_v26 = vld [vmem:[#allocation2 + $0x298] sm:$0xff] }
 0x1f5   : > { %v1404_v35 = vpack.c.bf16 %v1353_v29, %v1352_v32  ;;  %v1370_v29 = vld [vmem:[#allocation2 + $0x290] sm:$0xff] }
 0x1f6   : > { %v1413_v30 = vpack.c.bf16 %v1371_v26, %v1370_v29  ;;  %v4090_v32 = vld [vmem:[#allocation2 + $0x2b5] sm:$0xff]  ;;  %v2584_v26 = vld [vmem:[#allocation2 + $0xaa] sm:$0xff] }
 0x1f7   : > { %v4747_v29 = vld [vmem:[#allocation2 + $0xae] sm:$0xff] }
 0x1f8   : > { %10108 = vmatmul.mubr.msk.bf16.gmra.mrb[132].mxu0 %vm1195_vm1, %v1393_v33  ;;  %v4069_v33 = vld [vmem:[#allocation2 + $0x20d] sm:$0xff] }
 0x1f9   : > { %10111 = vmatprep.mubr.msk.bf16.mxu0 %vm1195_vm1, %v1394_v37  ;;  %v4122_v37 = vpack.c.bf16 %v4070_v34, %v4069_v33  ;;  %v4730_v34 = vld [vmem:[#allocation2 + $0x26] sm:$0xff] }
 0x1fb   : > { %10372 = vmatmul.mubr.msk.bf16.gmra.mrb[44].mxu1 %vm1195_vm1, %v4112_v39  ;;  %v4123_v39 = vpack.c.bf16 %v4072_v36, %v4071_v38  ;;  %v4729_v36 = vld [vmem:[#allocation2 + $0x1e] sm:$0xff] }
 0x1fc   : > { %10375 = vmatprep.mubr.msk.bf16.mxu1 %vm1195_vm1, %v4113_v46  ;;  %v1357_v46 = vld [vmem:[#allocation2 + $0x228] sm:$0xff]  ;;  %v2566_v38 = vld [vmem:[#allocation2 + $0x1a] sm:$0xff] }
 0x1fd   : > { %v1406_v50 = vpack.c.bf16 %v1357_v46, %v1356_v45  ;;  %v2565_v46 = vld [vmem:[#allocation2 + $0x12] sm:$0xff] }
 0x1fe   : > { %v2648_v42 = vpack.c.bf16 %v2566_v38, %v2565_v46  ;;  %v4732_v45 = vld [vmem:[#allocation2 + $0x36] sm:$0xff]  ;;  %v2588_v38 = vld [vmem:[#allocation2 + $0xca] sm:$0xff] }
 0x1ff   : > { %v4751_v46 = vld [vmem:[#allocation2 + $0xce] sm:$0xff] }
 0x200   : > { %10112 = vmatmul.mubr.msk.bf16.gmra.mrb[136].mxu0 %vm1195_vm1, %v1395_v47  ;;  %v4073_v47 = vld [vmem:[#allocation2 + $0x22d] sm:$0xff] }
 0x201   : > { %10115 = vmatprep.mubr.msk.bf16.mxu0 %vm1195_vm1, %v1396_v52  ;;  %v4124_v52 = vpack.c.bf16 %v4074_v48, %v4073_v47  ;;  %v4734_v48 = vld [vmem:[#allocation2 + $0x46] sm:$0xff] }
 0x203   : > { %10376 = vmatmul.mubr.msk.bf16.gmra.mrb[48].mxu1 %vm1195_vm1, %v4114_v54  ;;  %v4125_v54 = vpack.c.bf16 %v4076_v51, %v4075_v53  ;;  %v4733_v51 = vld [vmem:[#allocation2 + $0x3e] sm:$0xff] }
 0x204   : > { %10379 = vmatprep.mubr.msk.bf16.mxu1 %vm1195_vm1, %v4115_v56  ;;  %v1361_v56 = vld [vmem:[#allocation2 + $0x248] sm:$0xff]  ;;  %v4815_v53 = vpack.c.bf16 %v4734_v48, %v4733_v51  ;;  %v4753_v48 = vld [vmem:[#allocation2 + $0xde] sm:$0xff] }
 0x205   : > { %v1408_v62 = vpack.c.bf16 %v1361_v56, %v1360_v59  ;;  %v2571_v56 = vld [vmem:[#allocation2 + $0x42] sm:$0xff] }
 0x208   : > { %10116 = vmatmul.mubr.msk.bf16.gmra.mrb[140].mxu0 %vm1195_vm1, %v1397_v60  ;;  %v4077_v60 = vld [vmem:[#allocation2 + $0x24d] sm:$0xff] }
 0x209   : > { %10119 = vmatprep.mubr.msk.bf16.mxu0 %vm1195_vm1, %v1398_v49  ;;  %v4126_v49 = vpack.c.bf16 %v4078_v61, %v4077_v60  ;;  %v4736_v60 = vld [vmem:[#allocation2 + $0x56] sm:$0xff]  ;;  %v2651_v61 = vpack.c.bf16 %v2572_v57, %v2571_v56  ;;  %v4755_v57 = vld [vmem:[#allocation2 + $0xee] sm:$0xff] }
 0x20b   : > { %10380 = vmatmul.mubr.msk.bf16.gmra.mrb[52].mxu1 %vm1195_vm1, %v4116_v1  ;;  %v4127_v1 = vpack.c.bf16 %v4080_v63, %v4079_v0  ;;  %v2574_v0 = vld [vmem:[#allocation2 + $0x5a] sm:$0xff] }
 0x20c   : > { %10383 = vmatprep.mubr.msk.bf16.mxu1 %vm1195_vm1, %v4117_v3  ;;  %v1365_v3 = vld [vmem:[#allocation2 + $0x268] sm:$0xff] }
 0x20d   : > { %v1410_v9 = vpack.c.bf16 %v1365_v3, %v1364_v6  ;;  %v2573_v3 = vld [vmem:[#allocation2 + $0x52] sm:$0xff] }
 0x20e   : > { %v2652_v4 = vpack.c.bf16 %v2574_v0, %v2573_v3  ;;  %v4740_v6 = vld [vmem:[#allocation2 + $0x76] sm:$0xff] }
 0x20f   : > { %v2593_v0 = vld [vmem:[#allocation2 + $0xf2] sm:$0xff] }
 0x210   : > { %10120 = vmatmul.mubr.msk.bf16.gmra.mrb[144].mxu0 %vm1195_vm1, %v1399_v7  ;;  %v4081_v7 = vld [vmem:[#allocation2 + $0x26d] sm:$0xff]  ;;  %v4760_v3 = vld [vmem:[#allocation2 + $0x116] sm:$0xff] }
 0x211   : > { %10123 = vmatprep.mubr.msk.bf16.mxu0 %vm1195_vm1, %v1400_v11  ;;  %v4128_v11 = vpack.c.bf16 %v4082_v8, %v4081_v7  ;;  %v4742_v8 = vld [vmem:[#allocation2 + $0x86] sm:$0xff] }
 0x213   : > { %10384 = vmatmul.mubr.msk.bf16.gmra.mrb[56].mxu1 %vm1195_vm1, %v4118_v13  ;;  %v4129_v13 = vpack.c.bf16 %v4084_v10, %v4083_v12  ;;  %v4741_v10 = vld [vmem:[#allocation2 + $0x7e] sm:$0xff] }
 0x214   : > { %10387 = vmatprep.mubr.msk.bf16.mxu1 %vm1195_vm1, %v4119_v15  ;;  %v1369_v15 = vld [vmem:[#allocation2 + $0x288] sm:$0xff]  ;;  %v2578_v12 = vld [vmem:[#allocation2 + $0x7a] sm:$0xff] }
 0x215   : > { %v1412_v21 = vpack.c.bf16 %v1369_v15, %v1368_v18  ;;  %v2577_v15 = vld [vmem:[#allocation2 + $0x72] sm:$0xff] }
 0x216   : > { %v2654_v16 = vpack.c.bf16 %v2578_v12, %v2577_v15  ;;  %v4744_v18 = vld [vmem:[#allocation2 + $0x96] sm:$0xff] }
 0x217   : > { %v2597_v12 = vld [vmem:[#allocation2 + $0x112] sm:$0xff] }
 0x218   : > { %10124 = vmatmul.mubr.msk.bf16.gmra.mrb[148].mxu0 %vm1195_vm1, %v1401_v19  ;;  %v4085_v19 = vld [vmem:[#allocation2 + $0x28d] sm:$0xff]  ;;  %v4764_v15 = vld [vmem:[#allocation2 + $0x136] sm:$0xff] }
 0x219   : > { %10127 = vmatprep.mubr.msk.bf16.mxu0 %vm1195_vm1, %v1402_v23  ;;  %v4130_v23 = vpack.c.bf16 %v4086_v20, %v4085_v19  ;;  %v4746_v20 = vld [vmem:[#allocation2 + $0xa6] sm:$0xff] }
 0x21b   : > { %10388 = vmatmul.mubr.msk.bf16.gmra.mrb[60].mxu1 %vm1195_vm1, %v4120_v25  ;;  %v4131_v25 = vpack.c.bf16 %v4088_v22, %v4087_v24  ;;  %v4745_v22 = vld [vmem:[#allocation2 + $0x9e] sm:$0xff] }
 0x21c   : > { %10391 = vmatprep.mubr.msk.bf16.mxu1 %vm1195_vm1, %v4121_v27  ;;  %v2563_v27 = vld [vmem:[#allocation2 + $0x2] sm:$0xff]  ;;  %v2582_v24 = vld [vmem:[#allocation2 + $0x9a] sm:$0xff] }
 0x21d   : > { %v2647_v33 = vpack.c.bf16 %v2564_v28, %v2563_v27  ;;  %v2581_v27 = vld [vmem:[#allocation2 + $0x92] sm:$0xff] }
 0x21e   : > { %v2656_v28 = vpack.c.bf16 %v2582_v24, %v2581_v27  ;;  %v2601_v24 = vld [vmem:[#allocation2 + $0x132] sm:$0xff] }
 0x21f   : > { %v4768_v27 = vld [vmem:[#allocation2 + $0x156] sm:$0xff] }
 0x220   : > { %10128 = vmatmul.mubr.msk.bf16.gmra.mrb[152].mxu0 %vm1195_vm1, %v1403_v31  ;;  %v4089_v31 = vld [vmem:[#allocation2 + $0x2ad] sm:$0xff] }
 0x221   : > { %10131 = vmatprep.mubr.msk.bf16.mxu0 %vm1195_vm1, %v1404_v35  ;;  %v4132_v35 = vpack.c.bf16 %v4090_v32, %v4089_v31  ;;  %v4750_v32 = vld [vmem:[#allocation2 + $0xc6] sm:$0xff] }
 0x223   : > { %10392 = vmatmul.mubr.msk.bf16.gmra.mrb[64].mxu1 %vm1195_vm1, %v4122_v37  ;;  %v4813_v37 = vpack.c.bf16 %v4730_v34, %v4729_v36  ;;  %v4749_v34 = vld [vmem:[#allocation2 + $0xbe] sm:$0xff] }
 0x224   : > { %10395 = vmatprep.mubr.msk.bf16.mxu1 %vm1195_vm1, %v4123_v39  ;;  %v2567_v39 = vld [vmem:[#allocation2 + $0x22] sm:$0xff]  ;;  %v2586_v36 = vld [vmem:[#allocation2 + $0xba] sm:$0xff] }
 0x225   : > { %v2649_v47 = vpack.c.bf16 %v2568_v40, %v2567_v39  ;;  %v2585_v39 = vld [vmem:[#allocation2 + $0xb2] sm:$0xff] }
 0x226   : > { %v2658_v40 = vpack.c.bf16 %v2586_v36, %v2585_v39  ;;  %v2605_v36 = vld [vmem:[#allocation2 + $0x152] sm:$0xff] }
 0x227   : > { %v4772_v39 = vld [vmem:[#allocation2 + $0x176] sm:$0xff] }
 0x228   : > { %10132 = vmatmul.mubr.msk.bf16.gmra.mrb[156].mxu0 %vm1195_vm1, %v1405_v44  ;;  %v4731_v44 = vld [vmem:[#allocation2 + $0x2e] sm:$0xff] }
 0x229   : > { %10135 = vmatprep.mubr.msk.bf16.mxu0 %vm1195_vm1, %v1406_v50  ;;  %v4814_v50 = vpack.c.bf16 %v4732_v45, %v4731_v44  ;;  %v4754_v45 = vld [vmem:[#allocation2 + $0xe6] sm:$0xff] }
 0x22a   : > { %v4825_v51 = vpack.c.bf16 %v4754_v45, %v4753_v48  ;;  %v2611_v48 = vld [vmem:[#allocation2 + $0x182] sm:$0xff] }
 0x22b   : > { %10396 = vmatmul.mubr.msk.bf16.gmra.mrb[68].mxu1 %vm1195_vm1, %v4124_v52  ;;  %v11513_v52 = vld [vmem:[%s12995_s3 + $0x68] sm:$0xff]  }
 0x22c   : > { %10399 = vmatprep.mubr.msk.bf16.mxu1 %vm1195_vm1, %v4125_v54  ;;  %v11520_v54 = vld [vmem:[%s12995_s3 + $0x38] sm:$0xff]  }
 0x230   : > { %10136 = vmatmul.mubr.msk.bf16.gmra.mrb[160].mxu0 %vm1195_vm1, %v1407_v58  ;;  %v2569_v58 = vld [vmem:[#allocation2 + $0x32] sm:$0xff] }
 0x231   : > { %10139 = vmatprep.mubr.msk.bf16.mxu0 %vm1195_vm1, %v1408_v62  ;;  %v2650_v59 = vpack.c.bf16 %v2570_v55, %v2569_v58  ;;  %v4738_v62 = vld [vmem:[#allocation2 + $0x66] sm:$0xff]  ;;  %v2589_v55 = vld [vmem:[#allocation2 + $0xd2] sm:$0xff] }
 0x232   : > { %v4756_v58 = vld [vmem:[#allocation2 + $0xf6] sm:$0xff] }
 0x233   : > { %10400 = vmatmul.mubr.msk.bf16.gmra.mrb[72].mxu1 %vm1195_vm1, %v4126_v49  ;;  %v4737_v49 = vld [vmem:[#allocation2 + $0x5e] sm:$0xff] }
 0x234   : > { %10403 = vmatprep.mubr.msk.bf16.mxu1 %vm1195_vm1, %v4127_v1  ;;  %v2575_v1 = vld [vmem:[#allocation2 + $0x62] sm:$0xff] }
 0x235   : > { %v2653_v7 = vpack.c.bf16 %v2576_v2, %v2575_v1  ;;  %v4759_v2 = vld [vmem:[#allocation2 + $0x10e] sm:$0xff] }
 0x238   : > { %10140 = vmatmul.mubr.msk.bf16.gmra.mrb[164].mxu0 %vm1195_vm1, %v1409_v5  ;;  %v4739_v5 = vld [vmem:[#allocation2 + $0x6e] sm:$0xff] }
 0x239   : > { %10143 = vmatprep.mubr.msk.bf16.mxu0 %vm1195_vm1, %v1410_v9  ;;  %v4818_v9 = vpack.c.bf16 %v4740_v6, %v4739_v5  ;;  %v4762_v5 = vld [vmem:[#allocation2 + $0x126] sm:$0xff]  ;;  %v4828_v6 = vpack.c.bf16 %v4760_v3, %v4759_v2 }
 0x23a   : > { %v4782_v2 = vld [vmem:[#allocation2 + $0x1c6] sm:$0xff] }
 0x23b   : > { %10404 = vmatmul.mubr.msk.bf16.gmra.mrb[76].mxu1 %vm1195_vm1, %v4128_v11  ;;  %v4819_v11 = vpack.c.bf16 %v4742_v8, %v4741_v10  ;;  %v2599_v10 = vld [vmem:[#allocation2 + $0x122] sm:$0xff] }
 0x23c   : > { %10407 = vmatprep.mubr.msk.bf16.mxu1 %vm1195_vm1, %v4129_v13  ;;  %v2579_v13 = vld [vmem:[#allocation2 + $0x82] sm:$0xff] }
 0x23d   : > { %v2655_v19 = vpack.c.bf16 %v2580_v14, %v2579_v13  ;;  %v4763_v14 = vld [vmem:[#allocation2 + $0x12e] sm:$0xff] }
 0x240   : > { %10144 = vmatmul.mubr.msk.bf16.gmra.mrb[168].mxu0 %vm1195_vm1, %v1411_v17  ;;  %v4743_v17 = vld [vmem:[#allocation2 + $0x8e] sm:$0xff] }
 0x241   : > { %10147 = vmatprep.mubr.msk.bf16.mxu0 %vm1195_vm1, %v1412_v21  ;;  %v4820_v21 = vpack.c.bf16 %v4744_v18, %v4743_v17  ;;  %v4766_v17 = vld [vmem:[#allocation2 + $0x146] sm:$0xff]  ;;  %v4830_v18 = vpack.c.bf16 %v4764_v15, %v4763_v14 }
 0x242   : > { %v4786_v14 = vld [vmem:[#allocation2 + $0x1e6] sm:$0xff] }
 0x243   : > { %10408 = vmatmul.mubr.msk.bf16.gmra.mrb[80].mxu1 %vm1195_vm1, %v4130_v23  ;;  %v4821_v23 = vpack.c.bf16 %v4746_v20, %v4745_v22  ;;  %v2603_v22 = vld [vmem:[#allocation2 + $0x142] sm:$0xff] }
 0x244   : > { %10411 = vmatprep.mubr.msk.bf16.mxu1 %vm1195_vm1, %v4131_v25  ;;  %v2583_v25 = vld [vmem:[#allocation2 + $0xa2] sm:$0xff] }
 0x245   : > { %v2657_v31 = vpack.c.bf16 %v2584_v26, %v2583_v25  ;;  %v4767_v26 = vld [vmem:[#allocation2 + $0x14e] sm:$0xff] }
 0x248   : > { %10148 = vmatmul.mubr.msk.bf16.gmra.mrb[172].mxu0 %vm1195_vm1, %v1413_v30  ;;  %v4748_v30 = vld [vmem:[#allocation2 + $0xb6] sm:$0xff] }
 0x249   : > { %10155 = vmatprep.mubr.msk.bf16.mxu0 %vm1195_vm1, %v2647_v33  ;;  %v4822_v33 = vpack.c.bf16 %v4748_v30, %v4747_v29  ;;  %v4770_v29 = vld [vmem:[#allocation2 + $0x166] sm:$0xff]  ;;  %v4832_v30 = vpack.c.bf16 %v4768_v27, %v4767_v26 }
 0x24a   : > { %v4790_v26 = vld [vmem:[#allocation2 + $0x206] sm:$0xff] }
 0x24b   : > { %10412 = vmatmul.mubr.msk.bf16.gmra.mrb[0].mxu1 %vm1195_vm1, %v4132_v35  ;;  %v4823_v35 = vpack.c.bf16 %v4750_v32, %v4749_v34  ;;  %v2607_v34 = vld [vmem:[#allocation2 + $0x162] sm:$0xff] }
 0x24c   : > { %10419 = vmatprep.mubr.msk.bf16.mxu1 %vm1195_vm1, %v4813_v37  ;;  %v2587_v37 = vld [vmem:[#allocation2 + $0xc2] sm:$0xff] }
 0x24d   : > { %v2659_v44 = vpack.c.bf16 %v2588_v38, %v2587_v37  ;;  %v4771_v38 = vld [vmem:[#allocation2 + $0x16e] sm:$0xff] }
 0x250   : > { %10156 = vmatmul.mubr.msk.bf16.vlgmr.msra.gmra.mrb[92].mxu0 %vm1195_vm1, %v2648_v42  ;;  %v4752_v42 = vld [vmem:[#allocation2 + $0xd6] sm:$0xff] }
 0x251   : > { %10159 = vmatprep.mubr.msk.bf16.mxu0 %vm1195_vm1, %v2649_v47  ;;  %10240 = vmatpush3.bf16.msra.mxu0 %v11968_v41  ;;  %v4735_v41 = vld [vmem:[#allocation2 + $0x4e] sm:$0xff]  ;;  %v4824_v47 = vpack.c.bf16 %v4752_v42, %v4751_v46  ;;  %v4774_v46 = vld [vmem:[#allocation2 + $0x186] sm:$0xff]  ;;  %v4834_v42 = vpack.c.bf16 %v4772_v39, %v4771_v38 }
 0x252   : > { %10241 = vmatprep.subr.bf16.mxu0 %v11520_v54  ;;  %v4816_v63 = vpack.c.bf16 %v4736_v60, %v4735_v41  ;;  %v4758_v41 = vld [vmem:[#allocation2 + $0x106] sm:$0xff]  ;;  %v4826_v60 = vpack.c.bf16 %v4756_v58, %v4755_v57 }
 0x253   : > { %10420 = vmatmul.mubr.msk.bf16.vlgmr.msra.gmra.mrb[4].mxu1 %vm1195_vm1, %v4814_v50  ;;  %v12073_v50 = vld [vmem:[%s12995_s3 + $0x70] sm:$0xff]   ;;  %v4778_v57 = vld [vmem:[#allocation2 + $0x1a6] sm:$0xff] }
 0x254   : > { %10504 = vmatpush3.bf16.msra.mxu1 %v11975_v43  ;;  %10423 = vmatprep.mubr.msk.bf16.mxu1 %vm1195_vm1, %v4815_v53  ;;  %v4817_v43 = vpack.c.bf16 %v4738_v62, %v4737_v49  ;;  %v2591_v53 = vld [vmem:[#allocation2 + $0xe2] sm:$0xff] }
 0x255   : > { %10505 = vmatprep.subr.bf16.mxu1 %v11513_v52  ;;  %10242 = vmatpush3.bf16.msra.mxu0 %v11520_v54  ;;  %v2592_v54 = vld [vmem:[#allocation2 + $0xea] sm:$0xff]  ;;  %v2595_v49 = vld [vmem:[#allocation2 + $0x102] sm:$0xff] }
 0x256   : > { %v4794_v38 = vld [vmem:[#allocation2 + $0x226] sm:$0xff] }
 0x258   : > { %10160 = vmatmul.mubr.msk.bf16.gmra.mrb[96].mxu0 %vm1195_vm1, %v2650_v59  ;;  %10506 = vmatpush3.bf16.msra.mxu1 %v11513_v52  ;;  %v2590_v52 = vld [vmem:[#allocation2 + $0xda] sm:$0xff]  ;;  %v2661_v59 = vpack.c.bf16 %v2592_v54, %v2591_v53  ;;  %v4775_v54 = vld [vmem:[#allocation2 + $0x18e] sm:$0xff] }
 0x259   : > { %10163 = vmatprep.mubr.msk.bf16.mxu0 %vm1195_vm1, %v2651_v61  ;;  %10591 = vmatprep.subr.bf16.mxu1 %v12073_v50  ;;  %v2660_v56 = vpack.c.bf16 %v2590_v52, %v2589_v55  ;;  %v4757_v61 = vld [vmem:[#allocation2 + $0xfe] sm:$0xff]  ;;  %v2609_v52 = vld [vmem:[#allocation2 + $0x172] sm:$0xff] }
 0x25a   : > { %v4827_v62 = vpack.c.bf16 %v4758_v41, %v4757_v61  ;;  %v4776_v55 = vld [vmem:[#allocation2 + $0x196] sm:$0xff]  ;;  %v2615_v61 = vld [vmem:[#allocation2 + $0x1a2] sm:$0xff] }
 0x25b   : > { %10424 = vmatmul.mubr.msk.bf16.gmra.mrb[8].mxu1 %vm1195_vm1, %v4816_v63  ;;  %v2594_v63 = vld [vmem:[#allocation2 + $0xfa] sm:$0xff]  ;;  %v4836_v58 = vpack.c.bf16 %v4776_v55, %v4775_v54  ;;  %v4798_v54 = vld [vmem:[#allocation2 + $0x246] sm:$0xff] }
 0x25c   : > { %10427 = vmatprep.mubr.msk.bf16.mxu1 %vm1195_vm1, %v4817_v43  ;;  %v2596_v43 = vld [vmem:[#allocation2 + $0x10a] sm:$0xff]  ;;  %v2662_v1 = vpack.c.bf16 %v2594_v63, %v2593_v0  ;;  %v2613_v63 = vld [vmem:[#allocation2 + $0x192] sm:$0xff] }
 0x25d   : > { %v4780_v0 = vld [vmem:[#allocation2 + $0x1b6] sm:$0xff] }
 0x260   : > { %10164 = vmatmul.mubr.msk.bf16.gmra.mrb[100].mxu0 %vm1195_vm1, %v2652_v4  ;;  %v2663_v4 = vpack.c.bf16 %v2596_v43, %v2595_v49  ;;  %v4779_v43 = vld [vmem:[#allocation2 + $0x1ae] sm:$0xff] }
 0x261   : > { %10167 = vmatprep.mubr.msk.bf16.mxu0 %vm1195_vm1, %v2653_v7  ;;  %v4761_v7 = vld [vmem:[#allocation2 + $0x11e] sm:$0xff]  ;;  %v4838_v3 = vpack.c.bf16 %v4780_v0, %v4779_v43  ;;  %v4802_v43 = vld [vmem:[#allocation2 + $0x266] sm:$0xff] }
 0x262   : > { %v4829_v8 = vpack.c.bf16 %v4762_v5, %v4761_v7  ;;  %v2619_v7 = vld [vmem:[#allocation2 + $0x1c2] sm:$0xff] }
 0x263   : > { %10428 = vmatmul.mubr.msk.bf16.gmra.mrb[12].mxu1 %vm1195_vm1, %v4818_v9  ;;  %v2598_v9 = vld [vmem:[#allocation2 + $0x11a] sm:$0xff] }
 0x264   : > { %10431 = vmatprep.mubr.msk.bf16.mxu1 %vm1195_vm1, %v4819_v11  ;;  %v2600_v11 = vld [vmem:[#allocation2 + $0x12a] sm:$0xff]  ;;  %v2664_v13 = vpack.c.bf16 %v2598_v9, %v2597_v12  ;;  %v2617_v9 = vld [vmem:[#allocation2 + $0x1b2] sm:$0xff] }
 0x265   : > { %v4784_v12 = vld [vmem:[#allocation2 + $0x1d6] sm:$0xff] }
 0x268   : > { %10168 = vmatmul.mubr.msk.bf16.gmra.mrb[104].mxu0 %vm1195_vm1, %v2654_v16  ;;  %v2665_v16 = vpack.c.bf16 %v2600_v11, %v2599_v10  ;;  %v4783_v11 = vld [vmem:[#allocation2 + $0x1ce] sm:$0xff] }
 0x269   : > { %10171 = vmatprep.mubr.msk.bf16.mxu0 %vm1195_vm1, %v2655_v19  ;;  %v4765_v19 = vld [vmem:[#allocation2 + $0x13e] sm:$0xff]  ;;  %v4840_v15 = vpack.c.bf16 %v4784_v12, %v4783_v11  ;;  %v4806_v11 = vld [vmem:[#allocation2 + $0x286] sm:$0xff] }
 0x26a   : > { %v4831_v20 = vpack.c.bf16 %v4766_v17, %v4765_v19  ;;  %v2623_v19 = vld [vmem:[#allocation2 + $0x1e2] sm:$0xff] }
 0x26b   : > { %10432 = vmatmul.mubr.msk.bf16.gmra.mrb[16].mxu1 %vm1195_vm1, %v4820_v21  ;;  %v2602_v21 = vld [vmem:[#allocation2 + $0x13a] sm:$0xff] }
 0x26c   : > { %10435 = vmatprep.mubr.msk.bf16.mxu1 %vm1195_vm1, %v4821_v23  ;;  %v2604_v23 = vld [vmem:[#allocation2 + $0x14a] sm:$0xff]  ;;  %v2666_v25 = vpack.c.bf16 %v2602_v21, %v2601_v24  ;;  %v2621_v21 = vld [vmem:[#allocation2 + $0x1d2] sm:$0xff] }
 0x26d   : > { %v4788_v24 = vld [vmem:[#allocation2 + $0x1f6] sm:$0xff] }
 0x270   : > { %10172 = vmatmul.mubr.msk.bf16.gmra.mrb[108].mxu0 %vm1195_vm1, %v2656_v28  ;;  %v2667_v28 = vpack.c.bf16 %v2604_v23, %v2603_v22  ;;  %v4787_v23 = vld [vmem:[#allocation2 + $0x1ee] sm:$0xff] }
 0x271   : > { %10175 = vmatprep.mubr.msk.bf16.mxu0 %vm1195_vm1, %v2657_v31  ;;  %v4769_v31 = vld [vmem:[#allocation2 + $0x15e] sm:$0xff]  ;;  %v4842_v27 = vpack.c.bf16 %v4788_v24, %v4787_v23  ;;  %v4810_v23 = vld [vmem:[#allocation2 + $0x2a6] sm:$0xff] }
 0x272   : > { %v4833_v32 = vpack.c.bf16 %v4770_v29, %v4769_v31  ;;  %v2627_v31 = vld [vmem:[#allocation2 + $0x202] sm:$0xff] }
 0x273   : > { %10436 = vmatmul.mubr.msk.bf16.gmra.mrb[20].mxu1 %vm1195_vm1, %v4822_v33  ;;  %v2606_v33 = vld [vmem:[#allocation2 + $0x15a] sm:$0xff] }
 0x274   : > { %10439 = vmatprep.mubr.msk.bf16.mxu1 %vm1195_vm1, %v4823_v35  ;;  %v2608_v35 = vld [vmem:[#allocation2 + $0x16a] sm:$0xff]  ;;  %v2668_v37 = vpack.c.bf16 %v2606_v33, %v2605_v36  ;;  %v2625_v33 = vld [vmem:[#allocation2 + $0x1f2] sm:$0xff] }
 0x275   : > { %v4792_v36 = vld [vmem:[#allocation2 + $0x216] sm:$0xff] }
 0x278   : > { %10176 = vmatmul.mubr.msk.bf16.gmra.mrb[112].mxu0 %vm1195_vm1, %v2658_v40  ;;  %v2669_v40 = vpack.c.bf16 %v2608_v35, %v2607_v34  ;;  %v4791_v35 = vld [vmem:[#allocation2 + $0x20e] sm:$0xff] }
 0x279   : > { %10179 = vmatprep.mubr.msk.bf16.mxu0 %vm1195_vm1, %v2659_v44  ;;  %v4773_v44 = vld [vmem:[#allocation2 + $0x17e] sm:$0xff]  ;;  %v4844_v39 = vpack.c.bf16 %v4792_v36, %v4791_v35 }
 0x27a   : > { %v4835_v45 = vpack.c.bf16 %v4774_v46, %v4773_v44  ;;  %v2631_v44 = vld [vmem:[#allocation2 + $0x222] sm:$0xff] }
 0x27b   : > { %10440 = vmatmul.mubr.msk.bf16.gmra.mrb[24].mxu1 %vm1195_vm1, %v4824_v47  ;;  %v2610_v47 = vld [vmem:[#allocation2 + $0x17a] sm:$0xff] }
 0x27c   : > { %10443 = vmatprep.mubr.msk.bf16.mxu1 %vm1195_vm1, %v4825_v51  ;;  %v2612_v51 = vld [vmem:[#allocation2 + $0x18a] sm:$0xff]  ;;  %v2670_v53 = vpack.c.bf16 %v2610_v47, %v2609_v52  ;;  %v2629_v47 = vld [vmem:[#allocation2 + $0x212] sm:$0xff]  ;;  %v5452_v35 = vld [vmem:[#allocation2 + $0x40] sm:$0xff] }
 0x27d   : > { %v4796_v52 = vld [vmem:[#allocation2 + $0x236] sm:$0xff] }
 0x280   : > { %10180 = vmatmul.mubr.msk.bf16.gmra.mrb[116].mxu0 %vm1195_vm1, %v2660_v56  ;;  %v2671_v56 = vpack.c.bf16 %v2612_v51, %v2611_v48  ;;  %v4795_v51 = vld [vmem:[#allocation2 + $0x22e] sm:$0xff] }
 0x281   : > { %10183 = vmatprep.mubr.msk.bf16.mxu0 %vm1195_vm1, %v2661_v59  ;;  %v4777_v59 = vld [vmem:[#allocation2 + $0x19e] sm:$0xff]  ;;  %v4846_v55 = vpack.c.bf16 %v4796_v52, %v4795_v51  ;;  %v5454_v51 = vld [vmem:[#allocation2 + $0x50] sm:$0xff] }
 0x282   : > { %v4837_v41 = vpack.c.bf16 %v4778_v57, %v4777_v59  ;;  %v2635_v59 = vld [vmem:[#allocation2 + $0x242] sm:$0xff] }
 0x283   : > { %10444 = vmatmul.mubr.msk.bf16.gmra.mrb[28].mxu1 %vm1195_vm1, %v4826_v60  ;;  %v2614_v60 = vld [vmem:[#allocation2 + $0x19a] sm:$0xff] }
 0x284   : > { %10447 = vmatprep.mubr.msk.bf16.mxu1 %vm1195_vm1, %v4827_v62  ;;  %v2616_v62 = vld [vmem:[#allocation2 + $0x1aa] sm:$0xff]  ;;  %v2672_v49 = vpack.c.bf16 %v2614_v60, %v2613_v63  ;;  %v2633_v60 = vld [vmem:[#allocation2 + $0x232] sm:$0xff] }
 0x285   : > { %v4800_v63 = vld [vmem:[#allocation2 + $0x256] sm:$0xff] }
 0x288   : > { %10184 = vmatmul.mubr.msk.bf16.gmra.mrb[120].mxu0 %vm1195_vm1, %v2662_v1  ;;  %v2673_v1 = vpack.c.bf16 %v2616_v62, %v2615_v61  ;;  %v4799_v62 = vld [vmem:[#allocation2 + $0x24e] sm:$0xff] }
 0x289   : > { %10187 = vmatprep.mubr.msk.bf16.mxu0 %vm1195_vm1, %v2663_v4  ;;  %v4781_v4 = vld [vmem:[#allocation2 + $0x1be] sm:$0xff]  ;;  %v4848_v0 = vpack.c.bf16 %v4800_v63, %v4799_v62  ;;  %v5458_v63 = vld [vmem:[#allocation2 + $0x70] sm:$0xff] }
 0x28a   : > { %v4839_v5 = vpack.c.bf16 %v4782_v2, %v4781_v4  ;;  %v2639_v4 = vld [vmem:[#allocation2 + $0x262] sm:$0xff] }
 0x28b   : > { %10448 = vmatmul.mubr.msk.bf16.gmra.mrb[32].mxu1 %vm1195_vm1, %v4828_v6  ;;  %v2618_v6 = vld [vmem:[#allocation2 + $0x1ba] sm:$0xff] }
 0x28c   : > { %10451 = vmatprep.mubr.msk.bf16.mxu1 %vm1195_vm1, %v4829_v8  ;;  %v2620_v8 = vld [vmem:[#allocation2 + $0x1ca] sm:$0xff]  ;;  %v2674_v10 = vpack.c.bf16 %v2618_v6, %v2617_v9  ;;  %v2637_v6 = vld [vmem:[#allocation2 + $0x252] sm:$0xff]  ;;  %v5460_v62 = vld [vmem:[#allocation2 + $0x80] sm:$0xff] }
 0x28d   : > { %v4804_v9 = vld [vmem:[#allocation2 + $0x276] sm:$0xff] }
 0x290   : > { %10188 = vmatmul.mubr.msk.bf16.gmra.mrb[124].mxu0 %vm1195_vm1, %v2664_v13  ;;  %v2675_v13 = vpack.c.bf16 %v2620_v8, %v2619_v7  ;;  %v4803_v8 = vld [vmem:[#allocation2 + $0x26e] sm:$0xff] }
 0x291   : > { %10191 = vmatprep.mubr.msk.bf16.mxu0 %vm1195_vm1, %v2665_v16  ;;  %v4785_v16 = vld [vmem:[#allocation2 + $0x1de] sm:$0xff]  ;;  %v4850_v12 = vpack.c.bf16 %v4804_v9, %v4803_v8  ;;  %v5462_v8 = vld [vmem:[#allocation2 + $0x90] sm:$0xff] }
 0x292   : > { %v4841_v17 = vpack.c.bf16 %v4786_v14, %v4785_v16  ;;  %v2643_v16 = vld [vmem:[#allocation2 + $0x282] sm:$0xff] }
 0x293   : > { %10452 = vmatmul.mubr.msk.bf16.gmra.mrb[36].mxu1 %vm1195_vm1, %v4830_v18  ;;  %v2622_v18 = vld [vmem:[#allocation2 + $0x1da] sm:$0xff] }
 0x294   : > { %10455 = vmatprep.mubr.msk.bf16.mxu1 %vm1195_vm1, %v4831_v20  ;;  %v2624_v20 = vld [vmem:[#allocation2 + $0x1ea] sm:$0xff]  ;;  %v2676_v22 = vpack.c.bf16 %v2622_v18, %v2621_v21  ;;  %v2641_v18 = vld [vmem:[#allocation2 + $0x272] sm:$0xff] }
 0x295   : > { %v4808_v21 = vld [vmem:[#allocation2 + $0x296] sm:$0xff] }
 0x298   : > { %10192 = vmatmul.mubr.msk.bf16.gmra.mrb[128].mxu0 %vm1195_vm1, %v2666_v25  ;;  %v2677_v25 = vpack.c.bf16 %v2624_v20, %v2623_v19  ;;  %v4807_v20 = vld [vmem:[#allocation2 + $0x28e] sm:$0xff] }
 0x299   : > { %10195 = vmatprep.mubr.msk.bf16.mxu0 %vm1195_vm1, %v2667_v28  ;;  %v4789_v28 = vld [vmem:[#allocation2 + $0x1fe] sm:$0xff]  ;;  %v4852_v24 = vpack.c.bf16 %v4808_v21, %v4807_v20  ;;  %v5466_v20 = vld [vmem:[#allocation2 + $0xb0] sm:$0xff] }
 0x29a   : > { %v4843_v29 = vpack.c.bf16 %v4790_v26, %v4789_v28  ;;  %v3286_v28 = vld [vmem:[#allocation2 + $0x24] sm:$0xff] }
 0x29b   : > { %10456 = vmatmul.mubr.msk.bf16.gmra.mrb[40].mxu1 %vm1195_vm1, %v4832_v30  ;;  %v2626_v30 = vld [vmem:[#allocation2 + $0x1fa] sm:$0xff] }
 0x29c   : > { %10459 = vmatprep.mubr.msk.bf16.mxu1 %vm1195_vm1, %v4833_v32  ;;  %v2628_v32 = vld [vmem:[#allocation2 + $0x20a] sm:$0xff]  ;;  %v2678_v34 = vpack.c.bf16 %v2626_v30, %v2625_v33  ;;  %v4812_v33 = vld [vmem:[#allocation2 + $0x2b6] sm:$0xff] }
 0x2a0   : > { %10196 = vmatmul.mubr.msk.bf16.gmra.mrb[132].mxu0 %vm1195_vm1, %v2668_v37  ;;  %v2679_v37 = vpack.c.bf16 %v2628_v32, %v2627_v31  ;;  %v3285_v31 = vld [vmem:[#allocation2 + $0x1c] sm:$0xff]  ;;  %v4811_v32 = vld [vmem:[#allocation2 + $0x2ae] sm:$0xff] }
 0x2a1   : > { %10199 = vmatprep.mubr.msk.bf16.mxu0 %vm1195_vm1, %v2669_v40  ;;  %v4793_v40 = vld [vmem:[#allocation2 + $0x21e] sm:$0xff]  ;;  %v4854_v36 = vpack.c.bf16 %v4812_v33, %v4811_v32  ;;  %v5470_v32 = vld [vmem:[#allocation2 + $0xd0] sm:$0xff] }
 0x2a2   : > { %v4845_v46 = vpack.c.bf16 %v4794_v38, %v4793_v40  ;;  %v3288_v40 = vld [vmem:[#allocation2 + $0x34] sm:$0xff] }
 0x2a3   : > { %10460 = vmatmul.mubr.msk.bf16.gmra.mrb[44].mxu1 %vm1195_vm1, %v4834_v42  ;;  %v2630_v42 = vld [vmem:[#allocation2 + $0x21a] sm:$0xff] }
 0x2a4   : > { %10463 = vmatprep.mubr.msk.bf16.mxu1 %vm1195_vm1, %v4835_v45  ;;  %v2632_v45 = vld [vmem:[#allocation2 + $0x22a] sm:$0xff]  ;;  %v2680_v48 = vpack.c.bf16 %v2630_v42, %v2629_v47 }
 0x2a8   : > { %10200 = vmatmul.mubr.msk.bf16.gmra.mrb[136].mxu0 %vm1195_vm1, %v2670_v53  ;;  %v2681_v53 = vpack.c.bf16 %v2632_v45, %v2631_v44  ;;  %v3289_v44 = vld [vmem:[#allocation2 + $0x3c] sm:$0xff]  ;;  %v5453_v45 = vld [vmem:[#allocation2 + $0x48] sm:$0xff] }
 0x2a9   : > { %10203 = vmatprep.mubr.msk.bf16.mxu0 %vm1195_vm1, %v2671_v56  ;;  %v4797_v56 = vld [vmem:[#allocation2 + $0x23e] sm:$0xff]  ;;  %v5536_v52 = vpack.c.bf16 %v5454_v51, %v5453_v45 }
 0x2aa   : > { %v4847_v57 = vpack.c.bf16 %v4798_v54, %v4797_v56  ;;  %v11515_v54 = vld [vmem:[%s12995_s3 + $0x78] sm:$0xff]   ;;  %v3291_v56 = vld [vmem:[#allocation2 + $0x4c] sm:$0xff]  ;;  %v5476_v45 = vld [vmem:[#allocation2 + $0x100] sm:$0xff] }
 0x2ab   : > { %10464 = vmatmul.mubr.msk.bf16.gmra.mrb[48].mxu1 %vm1195_vm1, %v4836_v58  ;;  %v2634_v58 = vld [vmem:[#allocation2 + $0x23a] sm:$0xff] }
 0x2ac   : > { %10467 = vmatprep.mubr.msk.bf16.mxu1 %vm1195_vm1, %v4837_v41  ;;  %v2636_v41 = vld [vmem:[#allocation2 + $0x24a] sm:$0xff]  ;;  %v2682_v61 = vpack.c.bf16 %v2634_v58, %v2633_v60  ;;  %v5475_v51 = vld [vmem:[#allocation2 + $0xf8] sm:$0xff] }
 0x2ad   : > { %v3294_v58 = vld [vmem:[#allocation2 + $0x64] sm:$0xff] }
 0x2ae   : > { %v5457_v60 = vld [vmem:[#allocation2 + $0x68] sm:$0xff] }
 0x2b0   : > { %10204 = vmatmul.mubr.msk.bf16.gmra.mrb[140].mxu0 %vm1195_vm1, %v2672_v49  ;;  %v2683_v49 = vpack.c.bf16 %v2636_v41, %v2635_v59  ;;  %v3293_v41 = vld [vmem:[#allocation2 + $0x5c] sm:$0xff] }
 0x2b1   : > { %10207 = vmatprep.mubr.msk.bf16.mxu0 %vm1195_vm1, %v2673_v1  ;;  %v4801_v1 = vld [vmem:[#allocation2 + $0x25e] sm:$0xff] }
 0x2b2   : > { %v4849_v2 = vpack.c.bf16 %v4802_v43, %v4801_v1  ;;  %v5459_v43 = vld [vmem:[#allocation2 + $0x78] sm:$0xff] }
 0x2b3   : > { %10468 = vmatmul.mubr.msk.bf16.gmra.mrb[52].mxu1 %vm1195_vm1, %v4838_v3  ;;  %v2638_v3 = vld [vmem:[#allocation2 + $0x25a] sm:$0xff] }
 0x2b4   : > { %10471 = vmatprep.mubr.msk.bf16.mxu1 %vm1195_vm1, %v4839_v5  ;;  %v2640_v5 = vld [vmem:[#allocation2 + $0x26a] sm:$0xff]  ;;  %v2684_v7 = vpack.c.bf16 %v2638_v3, %v2637_v6  ;;  %v3296_v1 = vld [vmem:[#allocation2 + $0x74] sm:$0xff] }
 0x2b8   : > { %10208 = vmatmul.mubr.msk.bf16.gmra.mrb[144].mxu0 %vm1195_vm1, %v2674_v10  ;;  %v2685_v10 = vpack.c.bf16 %v2640_v5, %v2639_v4  ;;  %v3297_v4 = vld [vmem:[#allocation2 + $0x7c] sm:$0xff]  ;;  %v5461_v5 = vld [vmem:[#allocation2 + $0x88] sm:$0xff] }
 0x2b9   : > { %10211 = vmatprep.mubr.msk.bf16.mxu0 %vm1195_vm1, %v2675_v13  ;;  %v4805_v13 = vld [vmem:[#allocation2 + $0x27e] sm:$0xff]  ;;  %v5540_v9 = vpack.c.bf16 %v5462_v8, %v5461_v5  ;;  %v5482_v5 = vld [vmem:[#allocation2 + $0x130] sm:$0xff] }
 0x2ba   : > { %v4851_v14 = vpack.c.bf16 %v4806_v11, %v4805_v13  ;;  %v3300_v13 = vld [vmem:[#allocation2 + $0x94] sm:$0xff] }
 0x2bb   : > { %10472 = vmatmul.mubr.msk.bf16.gmra.mrb[56].mxu1 %vm1195_vm1, %v4840_v15  ;;  %v2642_v15 = vld [vmem:[#allocation2 + $0x27a] sm:$0xff] }
 0x2bc   : > { %10475 = vmatprep.mubr.msk.bf16.mxu1 %vm1195_vm1, %v4841_v17  ;;  %v2644_v17 = vld [vmem:[#allocation2 + $0x28a] sm:$0xff]  ;;  %v2686_v19 = vpack.c.bf16 %v2642_v15, %v2641_v18 }
 0x2c0   : > { %10212 = vmatmul.mubr.msk.bf16.gmra.mrb[148].mxu0 %vm1195_vm1, %v2676_v22  ;;  %v2687_v22 = vpack.c.bf16 %v2644_v17, %v2643_v16  ;;  %v3301_v16 = vld [vmem:[#allocation2 + $0x9c] sm:$0xff]  ;;  %v5465_v17 = vld [vmem:[#allocation2 + $0xa8] sm:$0xff] }
 0x2c1   : > { %10215 = vmatprep.mubr.msk.bf16.mxu0 %vm1195_vm1, %v2677_v25  ;;  %v4809_v25 = vld [vmem:[#allocation2 + $0x29e] sm:$0xff]  ;;  %v5542_v21 = vpack.c.bf16 %v5466_v20, %v5465_v17  ;;  %v5486_v17 = vld [vmem:[#allocation2 + $0x150] sm:$0xff] }
 0x2c2   : > { %v4853_v26 = vpack.c.bf16 %v4810_v23, %v4809_v25  ;;  %v3304_v25 = vld [vmem:[#allocation2 + $0xb4] sm:$0xff] }
 0x2c3   : > { %10476 = vmatmul.mubr.msk.bf16.gmra.mrb[60].mxu1 %vm1195_vm1, %v4842_v27  ;;  %v2646_v27 = vld [vmem:[#allocation2 + $0x29a] sm:$0xff] }
 0x2c4   : > { %10479 = vmatprep.mubr.msk.bf16.mxu1 %vm1195_vm1, %v4843_v29  ;;  %v2645_v29 = vld [vmem:[#allocation2 + $0x292] sm:$0xff] }
 0x2c5   : > { %v2688_v30 = vpack.c.bf16 %v2646_v27, %v2645_v29  ;;  %v5469_v29 = vld [vmem:[#allocation2 + $0xc8] sm:$0xff] }
 0x2c6   : > { %v5544_v33 = vpack.c.bf16 %v5470_v32, %v5469_v29  ;;  %v5490_v29 = vld [vmem:[#allocation2 + $0x170] sm:$0xff] }
 0x2c8   : > { %10216 = vmatmul.mubr.msk.bf16.gmra.mrb[152].mxu0 %vm1195_vm1, %v2678_v34  ;;  %v3369_v34 = vpack.c.bf16 %v3286_v28, %v3285_v31  ;;  %v3305_v28 = vld [vmem:[#allocation2 + $0xbc] sm:$0xff] }
 0x2c9   : > { %10219 = vmatprep.mubr.msk.bf16.mxu0 %vm1195_vm1, %v2679_v37  ;;  %v5451_v37 = vld [vmem:[#allocation2 + $0x38] sm:$0xff]  ;;  %v5472_v31 = vld [vmem:[#allocation2 + $0xe0] sm:$0xff] }
 0x2ca   : > { %v5535_v38 = vpack.c.bf16 %v5452_v35, %v5451_v37  ;;  %v3308_v37 = vld [vmem:[#allocation2 + $0xd4] sm:$0xff] }
 0x2cb   : > { %10480 = vmatmul.mubr.msk.bf16.gmra.mrb[64].mxu1 %vm1195_vm1, %v4844_v39  ;;  %v3287_v39 = vld [vmem:[#allocation2 + $0x2c] sm:$0xff] }
 0x2cc   : > { %10483 = vmatprep.mubr.msk.bf16.mxu1 %vm1195_vm1, %v4845_v46  ;;  %v3290_v46 = vld [vmem:[#allocation2 + $0x44] sm:$0xff]  ;;  %v3370_v42 = vpack.c.bf16 %v3288_v40, %v3287_v39 }
 0x2cd   : > { %v3371_v47 = vpack.c.bf16 %v3290_v46, %v3289_v44  ;;  %v12165_v39 = vld [vmem:[%s12995_s3 + $0x80] sm:$0xff]  }
 0x2ce   : > { %v3309_v46 = vld [vmem:[#allocation2 + $0xdc] sm:$0xff] }
 0x2d0   : > { %10220 = vmatmul.mubr.msk.bf16.gmra.mrb[156].mxu0 %vm1195_vm1, %v2680_v48  ;;  %v5456_v48 = vld [vmem:[#allocation2 + $0x60] sm:$0xff] }
 0x2d1   : > { %10223 = vmatprep.mubr.msk.bf16.mxu0 %vm1195_vm1, %v2681_v53  ;;  %v5455_v53 = vld [vmem:[#allocation2 + $0x58] sm:$0xff] }
 0x2d3   : > { %10484 = vmatmul.mubr.msk.bf16.gmra.mrb[68].mxu1 %vm1195_vm1, %v4846_v55  ;;  %v5537_v55 = vpack.c.bf16 %v5456_v48, %v5455_v53  ;;  %v3311_v53 = vld [vmem:[#allocation2 + $0xec] sm:$0xff] }
 0x2d4   : > { %10487 = vmatprep.mubr.msk.bf16.mxu1 %vm1195_vm1, %v4847_v57  ;;  %v3292_v57 = vld [vmem:[#allocation2 + $0x54] sm:$0xff] }
 0x2d5   : > { %v3372_v59 = vpack.c.bf16 %v3292_v57, %v3291_v56  ;;  %v3313_v57 = vld [vmem:[#allocation2 + $0xfc] sm:$0xff] }
 0x2d8   : > { %10224 = vmatmul.mubr.msk.bf16.gmra.mrb[160].mxu0 %vm1195_vm1, %v2682_v61  ;;  %v3373_v61 = vpack.c.bf16 %v3294_v58, %v3293_v41  ;;  %v5477_v58 = vld [vmem:[#allocation2 + $0x108] sm:$0xff]  ;;  %v5480_v41 = vld [vmem:[#allocation2 + $0x120] sm:$0xff] }
 0x2d9   : > { %10227 = vmatprep.mubr.msk.bf16.mxu0 %vm1195_vm1, %v2683_v49  ;;  %v5538_v49 = vpack.c.bf16 %v5458_v63, %v5457_v60  ;;  %v5478_v60 = vld [vmem:[#allocation2 + $0x110] sm:$0xff] }
 0x2db   : > { %10488 = vmatmul.mubr.msk.bf16.gmra.mrb[72].mxu1 %vm1195_vm1, %v4848_v0  ;;  %v5539_v0 = vpack.c.bf16 %v5460_v62, %v5459_v43  ;;  %v5479_v62 = vld [vmem:[#allocation2 + $0x118] sm:$0xff] }
 0x2dc   : > { %10491 = vmatprep.mubr.msk.bf16.mxu1 %vm1195_vm1, %v4849_v2  ;;  %v3298_v2 = vld [vmem:[#allocation2 + $0x84] sm:$0xff]  ;;  %v5549_v63 = vpack.c.bf16 %v5480_v41, %v5479_v62  ;;  %v3316_v43 = vld [vmem:[#allocation2 + $0x114] sm:$0xff] }
 0x2dd   : > { %v3375_v6 = vpack.c.bf16 %v3298_v2, %v3297_v4  ;;  %v5481_v2 = vld [vmem:[#allocation2 + $0x128] sm:$0xff]  ;;  %v5484_v4 = vld [vmem:[#allocation2 + $0x140] sm:$0xff]  ;;  %v5499_v41 = vld [vmem:[#allocation2 + $0x1b8] sm:$0xff] }
 0x2de   : > { %v3336_v62 = vld [vmem:[#allocation2 + $0x1b4] sm:$0xff] }
 0x2e0   : > { %10228 = vmatmul.mubr.msk.bf16.gmra.mrb[164].mxu0 %vm1195_vm1, %v2684_v7  ;;  %v5464_v7 = vld [vmem:[#allocation2 + $0xa0] sm:$0xff] }
 0x2e1   : > { %10231 = vmatprep.mubr.msk.bf16.mxu0 %vm1195_vm1, %v2685_v10  ;;  %v5463_v10 = vld [vmem:[#allocation2 + $0x98] sm:$0xff] }
 0x2e2   : > { %v5541_v11 = vpack.c.bf16 %v5464_v7, %v5463_v10  ;;  %v5483_v7 = vld [vmem:[#allocation2 + $0x138] sm:$0xff] }
 0x2e3   : > { %10492 = vmatmul.mubr.msk.bf16.gmra.mrb[76].mxu1 %vm1195_vm1, %v4850_v12  ;;  %v3299_v12 = vld [vmem:[#allocation2 + $0x8c] sm:$0xff]  ;;  %v5551_v8 = vpack.c.bf16 %v5484_v4, %v5483_v7  ;;  %v3320_v10 = vld [vmem:[#allocation2 + $0x134] sm:$0xff] }
 0x2e4   : > { %10495 = vmatprep.mubr.msk.bf16.mxu1 %vm1195_vm1, %v4851_v14  ;;  %v3302_v14 = vld [vmem:[#allocation2 + $0xa4] sm:$0xff]  ;;  %v3376_v15 = vpack.c.bf16 %v3300_v13, %v3299_v12  ;;  %v3321_v13 = vld [vmem:[#allocation2 + $0x13c] sm:$0xff]  ;;  %v3340_v7 = vld [vmem:[#allocation2 + $0x1d4] sm:$0xff] }
 0x2e5   : > { %v3377_v18 = vpack.c.bf16 %v3302_v14, %v3301_v16  ;;  %v5485_v14 = vld [vmem:[#allocation2 + $0x148] sm:$0xff]  ;;  %v5488_v16 = vld [vmem:[#allocation2 + $0x160] sm:$0xff]  ;;  %v5503_v4 = vld [vmem:[#allocation2 + $0x1d8] sm:$0xff] }
 0x2e8   : > { %10232 = vmatmul.mubr.msk.bf16.gmra.mrb[168].mxu0 %vm1195_vm1, %v2686_v19  ;;  %v5468_v19 = vld [vmem:[#allocation2 + $0xc0] sm:$0xff] }
 0x2e9   : > { %10235 = vmatprep.mubr.msk.bf16.mxu0 %vm1195_vm1, %v2687_v22  ;;  %v5467_v22 = vld [vmem:[#allocation2 + $0xb8] sm:$0xff] }
 0x2ea   : > { %v5543_v23 = vpack.c.bf16 %v5468_v19, %v5467_v22  ;;  %v5487_v19 = vld [vmem:[#allocation2 + $0x158] sm:$0xff] }
 0x2eb   : > { %10496 = vmatmul.mubr.msk.bf16.gmra.mrb[80].mxu1 %vm1195_vm1, %v4852_v24  ;;  %v3303_v24 = vld [vmem:[#allocation2 + $0xac] sm:$0xff]  ;;  %v5553_v20 = vpack.c.bf16 %v5488_v16, %v5487_v19  ;;  %v3324_v22 = vld [vmem:[#allocation2 + $0x154] sm:$0xff] }
 0x2ec   : > { %10499 = vmatprep.mubr.msk.bf16.mxu1 %vm1195_vm1, %v4853_v26  ;;  %v3306_v26 = vld [vmem:[#allocation2 + $0xc4] sm:$0xff]  ;;  %v3378_v27 = vpack.c.bf16 %v3304_v25, %v3303_v24  ;;  %v3325_v25 = vld [vmem:[#allocation2 + $0x15c] sm:$0xff]  ;;  %v3344_v19 = vld [vmem:[#allocation2 + $0x1f4] sm:$0xff] }
 0x2ed   : > { %v5507_v16 = vld [vmem:[#allocation2 + $0x1f8] sm:$0xff] }
 0x2f0   : > { %10236 = vmatmul.mubr.msk.bf16.gmra.mrb[172].mxu0 %vm1195_vm1, %v2688_v30  ;;  %v3379_v30 = vpack.c.bf16 %v3306_v26, %v3305_v28  ;;  %v5489_v26 = vld [vmem:[#allocation2 + $0x168] sm:$0xff]  ;;  %v5492_v28 = vld [vmem:[#allocation2 + $0x180] sm:$0xff] }
 0x2f1   : > { %10243 = vmatprep.mubr.msk.bf16.mxu0 %vm1195_vm1, %v3369_v34  ;;  %v5471_v34 = vld [vmem:[#allocation2 + $0xd8] sm:$0xff] }
 0x2f2   : > { %v5545_v35 = vpack.c.bf16 %v5472_v31, %v5471_v34  ;;  %v5491_v31 = vld [vmem:[#allocation2 + $0x178] sm:$0xff] }
 0x2f3   : > { %10500 = vmatmul.mubr.msk.bf16.gmra.mrb[0].mxu1 %vm1195_vm1, %v4854_v36  ;;  %v3307_v36 = vld [vmem:[#allocation2 + $0xcc] sm:$0xff]  ;;  %v5555_v32 = vpack.c.bf16 %v5492_v28, %v5491_v31  ;;  %v3328_v34 = vld [vmem:[#allocation2 + $0x174] sm:$0xff] }
 0x2f4   : > { %10507 = vmatprep.mubr.msk.bf16.mxu1 %vm1195_vm1, %v5535_v38  ;;  %v3310_v38 = vld [vmem:[#allocation2 + $0xe4] sm:$0xff]  ;;  %v3380_v40 = vpack.c.bf16 %v3308_v37, %v3307_v36  ;;  %v3329_v37 = vld [vmem:[#allocation2 + $0x17c] sm:$0xff]  ;;  %v3348_v31 = vld [vmem:[#allocation2 + $0x214] sm:$0xff] }
 0x2f5   : > { %v3381_v44 = vpack.c.bf16 %v3310_v38, %v3309_v46  ;;  %v5493_v38 = vld [vmem:[#allocation2 + $0x188] sm:$0xff]  ;;  %v5496_v46 = vld [vmem:[#allocation2 + $0x1a0] sm:$0xff]  ;;  %v5511_v28 = vld [vmem:[#allocation2 + $0x218] sm:$0xff] }
 0x2f8   : > { %10244 = vmatmul.mubr.msk.bf16.vlgmr.msra.gmra.mrb[92].mxu0 %vm1195_vm1, %v3370_v42  ;;  %v5473_v42 = vld [vmem:[#allocation2 + $0xe8] sm:$0xff] }
 0x2f9   : > { %10247 = vmatprep.mubr.msk.bf16.mxu0 %vm1195_vm1, %v3371_v47  ;;  %v5474_v47 = vld [vmem:[#allocation2 + $0xf0] sm:$0xff] }
 0x2fa   : > { %v5546_v48 = vpack.c.bf16 %v5474_v47, %v5473_v42  ;;  %v5494_v42 = vld [vmem:[#allocation2 + $0x190] sm:$0xff] }
 0x2fb   : > { %10508 = vmatmul.mubr.msk.bf16.vlgmr.msra.gmra.mrb[4].mxu1 %vm1195_vm1, %v5536_v52  ;;  %v5547_v52 = vpack.c.bf16 %v5476_v45, %v5475_v51  ;;  %v5495_v45 = vld [vmem:[#allocation2 + $0x198] sm:$0xff] }
 0x2fc   : > { %10592 = vmatpush3.bf16.msra.mxu1 %v12073_v50  ;;  %10511 = vmatprep.mubr.msk.bf16.mxu1 %vm1195_vm1, %v5537_v55  ;;  %v3295_v50 = vld [vmem:[#allocation2 + $0x6c] sm:$0xff]  ;;  %v3314_v55 = vld [vmem:[#allocation2 + $0x104] sm:$0xff]  ;;  %v5557_v47 = vpack.c.bf16 %v5496_v46, %v5495_v45  ;;  %v3332_v51 = vld [vmem:[#allocation2 + $0x194] sm:$0xff] }
 0x2fd   : > { %10593 = vmatprep.subr.bf16.mxu1 %v11515_v54  ;;  %v3374_v3 = vpack.c.bf16 %v3296_v1, %v3295_v50  ;;  %v3317_v1 = vld [vmem:[#allocation2 + $0x11c] sm:$0xff]  ;;  %v3352_v45 = vld [vmem:[#allocation2 + $0x234] sm:$0xff] }
 0x2fe   : > { %v5515_v46 = vld [vmem:[#allocation2 + $0x238] sm:$0xff] }
 0x300   : > { %10248 = vmatmul.mubr.msk.bf16.gmra.mrb[96].mxu0 %vm1195_vm1, %v3372_v59  ;;  %10594 = vmatpush3.bf16.msra.mxu1 %v11515_v54  ;;  %v3312_v54 = vld [vmem:[#allocation2 + $0xf4] sm:$0xff]  ;;  %v3383_v59 = vpack.c.bf16 %v3314_v55, %v3313_v57  ;;  %v5497_v55 = vld [vmem:[#allocation2 + $0x1a8] sm:$0xff]  ;;  %v5500_v57 = vld [vmem:[#allocation2 + $0x1c0] sm:$0xff] }
 0x301   : > { %10251 = vmatprep.mubr.msk.bf16.mxu0 %vm1195_vm1, %v3373_v61  ;;  %10679 = vmatprep.subr.bf16.mxu1 %v12165_v39  ;;  %v3382_v56 = vpack.c.bf16 %v3312_v54, %v3311_v53  ;;  %v5548_v61 = vpack.c.bf16 %v5478_v60, %v5477_v58  ;;  %v3333_v54 = vld [vmem:[#allocation2 + $0x19c] sm:$0xff]  ;;  %v5498_v58 = vld [vmem:[#allocation2 + $0x1b0] sm:$0xff]  ;;  %v5559_v60 = vpack.c.bf16 %v5500_v57, %v5499_v41 }
 0x302   : > { %v5519_v57 = vld [vmem:[#allocation2 + $0x258] sm:$0xff] }
 0x303   : > { %10512 = vmatmul.mubr.msk.bf16.gmra.mrb[8].mxu1 %vm1195_vm1, %v5538_v49  ;;  %v3315_v49 = vld [vmem:[#allocation2 + $0x10c] sm:$0xff]  ;;  %v3356_v41 = vld [vmem:[#allocation2 + $0x254] sm:$0xff] }
 0x304   : > { %10515 = vmatprep.mubr.msk.bf16.mxu1 %vm1195_vm1, %v5539_v0  ;;  %v3318_v0 = vld [vmem:[#allocation2 + $0x124] sm:$0xff]  ;;  %v3384_v50 = vpack.c.bf16 %v3316_v43, %v3315_v49  ;;  %v3337_v43 = vld [vmem:[#allocation2 + $0x1bc] sm:$0xff] }
 0x308   : > { %10252 = vmatmul.mubr.msk.bf16.gmra.mrb[100].mxu0 %vm1195_vm1, %v3374_v3  ;;  %v3385_v3 = vpack.c.bf16 %v3318_v0, %v3317_v1  ;;  %v5501_v0 = vld [vmem:[#allocation2 + $0x1c8] sm:$0xff]  ;;  %v5504_v1 = vld [vmem:[#allocation2 + $0x1e0] sm:$0xff] }
 0x309   : > { %10255 = vmatprep.mubr.msk.bf16.mxu0 %vm1195_vm1, %v3375_v6  ;;  %v5550_v6 = vpack.c.bf16 %v5482_v5, %v5481_v2  ;;  %v5502_v2 = vld [vmem:[#allocation2 + $0x1d0] sm:$0xff]  ;;  %v5561_v5 = vpack.c.bf16 %v5504_v1, %v5503_v4  ;;  %v5523_v1 = vld [vmem:[#allocation2 + $0x278] sm:$0xff] }
 0x30a   : > { %v3360_v4 = vld [vmem:[#allocation2 + $0x274] sm:$0xff] }
 0x30b   : > { %10516 = vmatmul.mubr.msk.bf16.gmra.mrb[12].mxu1 %vm1195_vm1, %v5540_v9  ;;  %v3319_v9 = vld [vmem:[#allocation2 + $0x12c] sm:$0xff] }
 0x30c   : > { %10519 = vmatprep.mubr.msk.bf16.mxu1 %vm1195_vm1, %v5541_v11  ;;  %v3322_v11 = vld [vmem:[#allocation2 + $0x144] sm:$0xff]  ;;  %v3386_v12 = vpack.c.bf16 %v3320_v10, %v3319_v9  ;;  %v3341_v10 = vld [vmem:[#allocation2 + $0x1dc] sm:$0xff] }
 0x310   : > { %10256 = vmatmul.mubr.msk.bf16.gmra.mrb[104].mxu0 %vm1195_vm1, %v3376_v15  ;;  %v3387_v15 = vpack.c.bf16 %v3322_v11, %v3321_v13  ;;  %v5505_v11 = vld [vmem:[#allocation2 + $0x1e8] sm:$0xff]  ;;  %v5508_v13 = vld [vmem:[#allocation2 + $0x200] sm:$0xff] }
 0x311   : > { %10259 = vmatprep.mubr.msk.bf16.mxu0 %vm1195_vm1, %v3377_v18  ;;  %v5552_v18 = vpack.c.bf16 %v5486_v17, %v5485_v14  ;;  %v5506_v14 = vld [vmem:[#allocation2 + $0x1f0] sm:$0xff]  ;;  %v5563_v17 = vpack.c.bf16 %v5508_v13, %v5507_v16  ;;  %v5527_v13 = vld [vmem:[#allocation2 + $0x298] sm:$0xff] }
 0x312   : > { %v3364_v16 = vld [vmem:[#allocation2 + $0x294] sm:$0xff] }
 0x313   : > { %10520 = vmatmul.mubr.msk.bf16.gmra.mrb[16].mxu1 %vm1195_vm1, %v5542_v21  ;;  %v3323_v21 = vld [vmem:[#allocation2 + $0x14c] sm:$0xff] }
 0x314   : > { %10523 = vmatprep.mubr.msk.bf16.mxu1 %vm1195_vm1, %v5543_v23  ;;  %v3326_v23 = vld [vmem:[#allocation2 + $0x164] sm:$0xff]  ;;  %v3388_v24 = vpack.c.bf16 %v3324_v22, %v3323_v21  ;;  %v3345_v22 = vld [vmem:[#allocation2 + $0x1fc] sm:$0xff] }
 0x318   : > { %10260 = vmatmul.mubr.msk.bf16.gmra.mrb[108].mxu0 %vm1195_vm1, %v3378_v27  ;;  %v3389_v27 = vpack.c.bf16 %v3326_v23, %v3325_v25  ;;  %v5509_v23 = vld [vmem:[#allocation2 + $0x208] sm:$0xff]  ;;  %v5512_v25 = vld [vmem:[#allocation2 + $0x220] sm:$0xff] }
 0x319   : > { %10263 = vmatprep.mubr.msk.bf16.mxu0 %vm1195_vm1, %v3379_v30  ;;  %v5554_v30 = vpack.c.bf16 %v5490_v29, %v5489_v26  ;;  %v5510_v26 = vld [vmem:[#allocation2 + $0x210] sm:$0xff]  ;;  %v5565_v29 = vpack.c.bf16 %v5512_v25, %v5511_v28  ;;  %v6173_v28 = vld [vmem:[#allocation2 + $0x39] sm:$0xff] }
 0x31a   : > { %v5534_v25 = vld [vmem:[#allocation2 + $0x2d0] sm:$0xff] }
 0x31b   : > { %10524 = vmatmul.mubr.msk.bf16.gmra.mrb[20].mxu1 %vm1195_vm1, %v5544_v33  ;;  %v3327_v33 = vld [vmem:[#allocation2 + $0x16c] sm:$0xff] }
 0x31c   : > { %10527 = vmatprep.mubr.msk.bf16.mxu1 %vm1195_vm1, %v5545_v35  ;;  %v3330_v35 = vld [vmem:[#allocation2 + $0x184] sm:$0xff]  ;;  %v3390_v36 = vpack.c.bf16 %v3328_v34, %v3327_v33  ;;  %v3349_v34 = vld [vmem:[#allocation2 + $0x21c] sm:$0xff] }
 0x320   : > { %10264 = vmatmul.mubr.msk.bf16.gmra.mrb[112].mxu0 %vm1195_vm1, %v3380_v40  ;;  %v3391_v40 = vpack.c.bf16 %v3330_v35, %v3329_v37  ;;  %v5513_v35 = vld [vmem:[#allocation2 + $0x228] sm:$0xff]  ;;  %v5516_v37 = vld [vmem:[#allocation2 + $0x240] sm:$0xff] }
 0x321   : > { %10267 = vmatprep.mubr.msk.bf16.mxu0 %vm1195_vm1, %v3381_v44  ;;  %v5556_v44 = vpack.c.bf16 %v5494_v42, %v5493_v38  ;;  %v5514_v38 = vld [vmem:[#allocation2 + $0x230] sm:$0xff]  ;;  %v5567_v42 = vpack.c.bf16 %v5516_v37, %v5515_v46 }
 0x322   : > { %v6179_v37 = vld [vmem:[#allocation2 + $0x69] sm:$0xff] }
 0x323   : > { %10528 = vmatmul.mubr.msk.bf16.gmra.mrb[24].mxu1 %vm1195_vm1, %v5546_v48  ;;  %v3331_v48 = vld [vmem:[#allocation2 + $0x18c] sm:$0xff] }
 0x324   : > { %10531 = vmatprep.mubr.msk.bf16.mxu1 %vm1195_vm1, %v5547_v52  ;;  %v3334_v52 = vld [vmem:[#allocation2 + $0x1a4] sm:$0xff]  ;;  %v3392_v53 = vpack.c.bf16 %v3332_v51, %v3331_v48  ;;  %v3353_v51 = vld [vmem:[#allocation2 + $0x23c] sm:$0xff] }
 0x328   : > { %10268 = vmatmul.mubr.msk.bf16.gmra.mrb[116].mxu0 %vm1195_vm1, %v3382_v56  ;;  %v3393_v56 = vpack.c.bf16 %v3334_v52, %v3333_v54  ;;  %v5517_v52 = vld [vmem:[#allocation2 + $0x248] sm:$0xff]  ;;  %v5520_v54 = vld [vmem:[#allocation2 + $0x260] sm:$0xff] }
 0x329   : > { %10271 = vmatprep.mubr.msk.bf16.mxu0 %vm1195_vm1, %v3383_v59  ;;  %v5558_v59 = vpack.c.bf16 %v5498_v58, %v5497_v55  ;;  %v5518_v55 = vld [vmem:[#allocation2 + $0x250] sm:$0xff]  ;;  %v5569_v58 = vpack.c.bf16 %v5520_v54, %v5519_v57  ;;  %v6189_v57 = vld [vmem:[#allocation2 + $0xb9] sm:$0xff] }
 0x32a   : > { %v6188_v54 = vld [vmem:[#allocation2 + $0xb1] sm:$0xff] }
 0x32b   : > { %10532 = vmatmul.mubr.msk.bf16.gmra.mrb[28].mxu1 %vm1195_vm1, %v5548_v61  ;;  %v3335_v61 = vld [vmem:[#allocation2 + $0x1ac] sm:$0xff] }
 0x32c   : > { %10535 = vmatprep.mubr.msk.bf16.mxu1 %vm1195_vm1, %v5549_v63  ;;  %v3338_v63 = vld [vmem:[#allocation2 + $0x1c4] sm:$0xff]  ;;  %v3394_v49 = vpack.c.bf16 %v3336_v62, %v3335_v61  ;;  %v3357_v62 = vld [vmem:[#allocation2 + $0x25c] sm:$0xff] }
 0x330   : > { %10272 = vmatmul.mubr.msk.bf16.gmra.mrb[120].mxu0 %vm1195_vm1, %v3384_v50  ;;  %v3395_v50 = vpack.c.bf16 %v3338_v63, %v3337_v43  ;;  %v5521_v63 = vld [vmem:[#allocation2 + $0x268] sm:$0xff]  ;;  %v5524_v43 = vld [vmem:[#allocation2 + $0x280] sm:$0xff] }
 0x331   : > { %10275 = vmatprep.mubr.msk.bf16.mxu0 %vm1195_vm1, %v3385_v3  ;;  %v5560_v3 = vpack.c.bf16 %v5502_v2, %v5501_v0  ;;  %v5522_v0 = vld [vmem:[#allocation2 + $0x270] sm:$0xff]  ;;  %v5571_v2 = vpack.c.bf16 %v5524_v43, %v5523_v1 }
 0x332   : > { %v6195_v1 = vld [vmem:[#allocation2 + $0xe9] sm:$0xff] }
 0x333   : > { %10536 = vmatmul.mubr.msk.bf16.gmra.mrb[32].mxu1 %vm1195_vm1, %v5550_v6  ;;  %v3339_v6 = vld [vmem:[#allocation2 + $0x1cc] sm:$0xff] }
 0x334   : > { %10539 = vmatprep.mubr.msk.bf16.mxu1 %vm1195_vm1, %v5551_v8  ;;  %v3342_v8 = vld [vmem:[#allocation2 + $0x1e4] sm:$0xff]  ;;  %v3396_v9 = vpack.c.bf16 %v3340_v7, %v3339_v6  ;;  %v3361_v7 = vld [vmem:[#allocation2 + $0x27c] sm:$0xff] }
 0x338   : > { %10276 = vmatmul.mubr.msk.bf16.gmra.mrb[124].mxu0 %vm1195_vm1, %v3386_v12  ;;  %v3397_v12 = vpack.c.bf16 %v3342_v8, %v3341_v10  ;;  %v5525_v8 = vld [vmem:[#allocation2 + $0x288] sm:$0xff]  ;;  %v5528_v10 = vld [vmem:[#allocation2 + $0x2a0] sm:$0xff] }
 0x339   : > { %10279 = vmatprep.mubr.msk.bf16.mxu0 %vm1195_vm1, %v3387_v15  ;;  %v5562_v15 = vpack.c.bf16 %v5506_v14, %v5505_v11  ;;  %v5526_v11 = vld [vmem:[#allocation2 + $0x290] sm:$0xff]  ;;  %v5573_v14 = vpack.c.bf16 %v5528_v10, %v5527_v13  ;;  %v6202_v13 = vld [vmem:[#allocation2 + $0x121] sm:$0xff] }
 0x33b   : > { %10540 = vmatmul.mubr.msk.bf16.gmra.mrb[36].mxu1 %vm1195_vm1, %v5552_v18  ;;  %v3343_v18 = vld [vmem:[#allocation2 + $0x1ec] sm:$0xff] }
 0x33c   : > { %10543 = vmatprep.mubr.msk.bf16.mxu1 %vm1195_vm1, %v5553_v20  ;;  %v3346_v20 = vld [vmem:[#allocation2 + $0x204] sm:$0xff]  ;;  %v3398_v21 = vpack.c.bf16 %v3344_v19, %v3343_v18 }
 0x33d   : > { %v5529_v18 = vld [vmem:[#allocation2 + $0x2a8] sm:$0xff]  ;;  %v5532_v19 = vld [vmem:[#allocation2 + $0x2c0] sm:$0xff] }
 0x340   : > { %10280 = vmatmul.mubr.msk.bf16.gmra.mrb[128].mxu0 %vm1195_vm1, %v3388_v24  ;;  %v3399_v24 = vpack.c.bf16 %v3346_v20, %v3345_v22  ;;  %v5530_v20 = vld [vmem:[#allocation2 + $0x2b0] sm:$0xff]  ;;  %v5531_v22 = vld [vmem:[#allocation2 + $0x2b8] sm:$0xff] }
 0x341   : > { %10283 = vmatprep.mubr.msk.bf16.mxu0 %vm1195_vm1, %v3389_v27  ;;  %v5564_v27 = vpack.c.bf16 %v5510_v26, %v5509_v23  ;;  %v5575_v23 = vpack.c.bf16 %v5532_v19, %v5531_v22  ;;  %v6174_v26 = vld [vmem:[#allocation2 + $0x41] sm:$0xff]  ;;  %v6204_v22 = vld [vmem:[#allocation2 + $0x131] sm:$0xff] }
 0x343   : > { %10544 = vmatmul.mubr.msk.bf16.gmra.mrb[40].mxu1 %vm1195_vm1, %v5554_v30  ;;  %v3347_v30 = vld [vmem:[#allocation2 + $0x20c] sm:$0xff] }
 0x344   : > { %10547 = vmatprep.mubr.msk.bf16.mxu1 %vm1195_vm1, %v5555_v32  ;;  %v3350_v32 = vld [vmem:[#allocation2 + $0x224] sm:$0xff]  ;;  %v3400_v33 = vpack.c.bf16 %v3348_v31, %v3347_v30  ;;  %v6176_v31 = vld [vmem:[#allocation2 + $0x51] sm:$0xff] }
 0x345   : > { %v6175_v30 = vld [vmem:[#allocation2 + $0x49] sm:$0xff] }
 0x348   : > { %10284 = vmatmul.mubr.msk.bf16.gmra.mrb[132].mxu0 %vm1195_vm1, %v3390_v36  ;;  %v3401_v36 = vpack.c.bf16 %v3350_v32, %v3349_v34  ;;  %v6178_v32 = vld [vmem:[#allocation2 + $0x61] sm:$0xff]  ;;  %v6177_v34 = vld [vmem:[#allocation2 + $0x59] sm:$0xff] }
 0x349   : > { %10287 = vmatprep.mubr.msk.bf16.mxu0 %vm1195_vm1, %v3391_v40  ;;  %v5566_v40 = vpack.c.bf16 %v5514_v38, %v5513_v35  ;;  %v11517_v35 = vld [vmem:[%s12995_s3 + $0x88] sm:$0xff]   ;;  %v6180_v38 = vld [vmem:[#allocation2 + $0x71] sm:$0xff] }
 0x34a   : > { %v6260_v46 = vpack.c.bf16 %v6180_v38, %v6179_v37 }
 0x34b   : > { %10548 = vmatmul.mubr.msk.bf16.gmra.mrb[44].mxu1 %vm1195_vm1, %v5556_v44  ;;  %v3351_v44 = vld [vmem:[#allocation2 + $0x22c] sm:$0xff] }
 0x34c   : > { %10551 = vmatprep.mubr.msk.bf16.mxu1 %vm1195_vm1, %v5557_v47  ;;  %v3354_v47 = vld [vmem:[#allocation2 + $0x244] sm:$0xff]  ;;  %v3402_v48 = vpack.c.bf16 %v3352_v45, %v3351_v44 }
 0x34d   : > { %v6183_v45 = vld [vmem:[#allocation2 + $0x89] sm:$0xff] }
 0x350   : > { %10288 = vmatmul.mubr.msk.bf16.gmra.mrb[136].mxu0 %vm1195_vm1, %v3392_v53  ;;  %v3403_v53 = vpack.c.bf16 %v3354_v47, %v3353_v51  ;;  %v6184_v47 = vld [vmem:[#allocation2 + $0x91] sm:$0xff] }
 0x351   : > { %10291 = vmatprep.mubr.msk.bf16.mxu0 %vm1195_vm1, %v3393_v56  ;;  %v5568_v56 = vpack.c.bf16 %v5518_v55, %v5517_v52  ;;  %v6262_v51 = vpack.c.bf16 %v6184_v47, %v6183_v45  ;;  %v6185_v52 = vld [vmem:[#allocation2 + $0x99] sm:$0xff]  ;;  %v6190_v55 = vld [vmem:[#allocation2 + $0xc1] sm:$0xff] }
 0x352   : > { %v6214_v45 = vld [vmem:[#allocation2 + $0x181] sm:$0xff] }
 0x353   : > { %10552 = vmatmul.mubr.msk.bf16.gmra.mrb[48].mxu1 %vm1195_vm1, %v5558_v59  ;;  %v3355_v59 = vld [vmem:[#allocation2 + $0x24c] sm:$0xff] }
 0x354   : > { %10555 = vmatprep.mubr.msk.bf16.mxu1 %vm1195_vm1, %v5559_v60  ;;  %v3358_v60 = vld [vmem:[#allocation2 + $0x264] sm:$0xff]  ;;  %v3404_v61 = vpack.c.bf16 %v3356_v41, %v3355_v59  ;;  %v6192_v41 = vld [vmem:[#allocation2 + $0xd1] sm:$0xff] }
 0x355   : > { %v6191_v59 = vld [vmem:[#allocation2 + $0xc9] sm:$0xff] }
 0x358   : > { %10292 = vmatmul.mubr.msk.bf16.gmra.mrb[140].mxu0 %vm1195_vm1, %v3394_v49  ;;  %v3405_v49 = vpack.c.bf16 %v3358_v60, %v3357_v62  ;;  %v6194_v60 = vld [vmem:[#allocation2 + $0xe1] sm:$0xff]  ;;  %v6193_v62 = vld [vmem:[#allocation2 + $0xd9] sm:$0xff] }
 0x359   : > { %10295 = vmatprep.mubr.msk.bf16.mxu0 %vm1195_vm1, %v3395_v50  ;;  %v5570_v50 = vpack.c.bf16 %v5522_v0, %v5521_v63  ;;  %v6267_v63 = vpack.c.bf16 %v6194_v60, %v6193_v62 }
 0x35b   : > { %10556 = vmatmul.mubr.msk.bf16.gmra.mrb[52].mxu1 %vm1195_vm1, %v5560_v3  ;;  %v3359_v3 = vld [vmem:[#allocation2 + $0x26c] sm:$0xff] }
 0x35c   : > { %10559 = vmatprep.mubr.msk.bf16.mxu1 %vm1195_vm1, %v5561_v5  ;;  %v3362_v5 = vld [vmem:[#allocation2 + $0x284] sm:$0xff]  ;;  %v3406_v6 = vpack.c.bf16 %v3360_v4, %v3359_v3 }
 0x35d   : > { %v6198_v3 = vld [vmem:[#allocation2 + $0x101] sm:$0xff] }
 0x360   : > { %10296 = vmatmul.mubr.msk.bf16.gmra.mrb[144].mxu0 %vm1195_vm1, %v3396_v9  ;;  %v3407_v9 = vpack.c.bf16 %v3362_v5, %v3361_v7  ;;  %v6197_v5 = vld [vmem:[#allocation2 + $0xf9] sm:$0xff] }
 0x361   : > { %10299 = vmatprep.mubr.msk.bf16.mxu0 %vm1195_vm1, %v3397_v12  ;;  %v5572_v12 = vpack.c.bf16 %v5526_v11, %v5525_v8  ;;  %v6199_v11 = vld [vmem:[#allocation2 + $0x109] sm:$0xff] }
 0x363   : > { %10560 = vmatmul.mubr.msk.bf16.gmra.mrb[56].mxu1 %vm1195_vm1, %v5562_v15  ;;  %v3363_v15 = vld [vmem:[#allocation2 + $0x28c] sm:$0xff] }
 0x364   : > { %10563 = vmatprep.mubr.msk.bf16.mxu1 %vm1195_vm1, %v5563_v17  ;;  %v3408_v17 = vpack.c.bf16 %v3364_v16, %v3363_v15  ;;  %v6201_v15 = vld [vmem:[#allocation2 + $0x119] sm:$0xff] }
 0x365   : > { %v6271_v16 = vpack.c.bf16 %v6202_v13, %v6201_v15  ;;  %v6223_v15 = vld [vmem:[#allocation2 + $0x1c9] sm:$0xff] }
 0x368   : > { %10300 = vmatmul.mubr.msk.bf16.gmra.mrb[148].mxu0 %vm1195_vm1, %v3398_v21  ;;  %v5574_v21 = vpack.c.bf16 %v5530_v20, %v5529_v18 }
 0x369   : > { %10303 = vmatprep.mubr.msk.bf16.mxu0 %vm1195_vm1, %v3399_v24  ;;  %v5533_v24 = vld [vmem:[#allocation2 + $0x2c8] sm:$0xff] }
 0x36b   : > { %10564 = vmatmul.mubr.msk.bf16.gmra.mrb[60].mxu1 %vm1195_vm1, %v5564_v27  ;;  %v5576_v27 = vpack.c.bf16 %v5534_v25, %v5533_v24  ;;  %v6205_v25 = vld [vmem:[#allocation2 + $0x139] sm:$0xff] }
 0x36c   : > { %10567 = vmatprep.mubr.msk.bf16.mxu1 %vm1195_vm1, %v5565_v29  ;;  %v6257_v29 = vpack.c.bf16 %v6174_v26, %v6173_v28 }
 0x370   : > { %10304 = vmatmul.mubr.msk.bf16.gmra.mrb[152].mxu0 %vm1195_vm1, %v3400_v33  ;;  %v6258_v33 = vpack.c.bf16 %v6176_v31, %v6175_v30  ;;  %v6207_v31 = vld [vmem:[#allocation2 + $0x149] sm:$0xff] }
 0x371   : > { %10307 = vmatprep.mubr.msk.bf16.mxu0 %vm1195_vm1, %v3401_v36  ;;  %v6259_v36 = vpack.c.bf16 %v6178_v32, %v6177_v34  ;;  %v6208_v32 = vld [vmem:[#allocation2 + $0x151] sm:$0xff] }
 0x372   : > { %v6274_v34 = vpack.c.bf16 %v6208_v32, %v6207_v31 }
 0x373   : > { %10568 = vmatmul.mubr.msk.bf16.gmra.mrb[64].mxu1 %vm1195_vm1, %v5566_v40  ;;  %v6182_v40 = vld [vmem:[#allocation2 + $0x81] sm:$0xff] }
 0x374   : > { %10571 = vmatprep.mubr.msk.bf16.mxu1 %vm1195_vm1, %v5567_v42  ;;  %v6181_v42 = vld [vmem:[#allocation2 + $0x79] sm:$0xff] }
 0x375   : > { %v6261_v44 = vpack.c.bf16 %v6182_v40, %v6181_v42  ;;  %v6211_v42 = vld [vmem:[#allocation2 + $0x169] sm:$0xff] }
 0x378   : > { %10308 = vmatmul.mubr.msk.bf16.gmra.mrb[156].mxu0 %vm1195_vm1, %v3402_v48  ;;  %v6186_v48 = vld [vmem:[#allocation2 + $0xa1] sm:$0xff] }
 0x379   : > { %10311 = vmatprep.mubr.msk.bf16.mxu0 %vm1195_vm1, %v3403_v53  ;;  %v6187_v53 = vld [vmem:[#allocation2 + $0xa9] sm:$0xff] }
 0x37b   : > { %10572 = vmatmul.mubr.msk.bf16.gmra.mrb[68].mxu1 %vm1195_vm1, %v5568_v56  ;;  %v6264_v56 = vpack.c.bf16 %v6188_v54, %v6187_v53 }
 0x37c   : > { %10575 = vmatprep.mubr.msk.bf16.mxu1 %vm1195_vm1, %v5569_v58  ;;  %v6265_v58 = vpack.c.bf16 %v6190_v55, %v6189_v57  ;;  %v6215_v55 = vld [vmem:[#allocation2 + $0x189] sm:$0xff]  ;;  %v6218_v57 = vld [vmem:[#allocation2 + $0x1a1] sm:$0xff] }
 0x380   : > { %10312 = vmatmul.mubr.msk.bf16.gmra.mrb[160].mxu0 %vm1195_vm1, %v3404_v61  ;;  %v6266_v61 = vpack.c.bf16 %v6192_v41, %v6191_v59  ;;  %v6217_v59 = vld [vmem:[#allocation2 + $0x199] sm:$0xff] }
 0x381   : > { %10315 = vmatprep.mubr.msk.bf16.mxu0 %vm1195_vm1, %v3405_v49  ;;  %v6279_v41 = vpack.c.bf16 %v6218_v57, %v6217_v59  ;;  %v6234_v57 = vld [vmem:[#allocation2 + $0x221] sm:$0xff]  ;;  %v6233_v59 = vld [vmem:[#allocation2 + $0x219] sm:$0xff] }
 0x383   : > { %10576 = vmatmul.mubr.msk.bf16.gmra.mrb[72].mxu1 %vm1195_vm1, %v5570_v50 }
 0x384   : > { %10579 = vmatprep.mubr.msk.bf16.mxu1 %vm1195_vm1, %v5571_v2  ;;  %v6196_v2 = vld [vmem:[#allocation2 + $0xf1] sm:$0xff] }
 0x385   : > { %v6268_v4 = vpack.c.bf16 %v6196_v2, %v6195_v1  ;;  %v6219_v1 = vld [vmem:[#allocation2 + $0x1a9] sm:$0xff]  ;;  %v6220_v2 = vld [vmem:[#allocation2 + $0x1b1] sm:$0xff] }
 0x388   : > { %10316 = vmatmul.mubr.msk.bf16.gmra.mrb[164].mxu0 %vm1195_vm1, %v3406_v6  ;;  %v6269_v6 = vpack.c.bf16 %v6198_v3, %v6197_v5  ;;  %v6222_v3 = vld [vmem:[#allocation2 + $0x1c1] sm:$0xff]  ;;  %v6221_v5 = vld [vmem:[#allocation2 + $0x1b9] sm:$0xff] }
 0x389   : > { %10319 = vmatprep.mubr.msk.bf16.mxu0 %vm1195_vm1, %v3407_v9 }
 0x38b   : > { %10580 = vmatmul.mubr.msk.bf16.gmra.mrb[76].mxu1 %vm1195_vm1, %v5572_v12  ;;  %v6200_v12 = vld [vmem:[#allocation2 + $0x111] sm:$0xff] }
 0x38c   : > { %10583 = vmatprep.mubr.msk.bf16.mxu1 %vm1195_vm1, %v5573_v14  ;;  %v6270_v14 = vpack.c.bf16 %v6200_v12, %v6199_v11 }
 0x390   : > { %10320 = vmatmul.mubr.msk.bf16.gmra.mrb[168].mxu0 %vm1195_vm1, %v3408_v17 }
 0x393   : > { %10584 = vmatmul.mubr.msk.bf16.gmra.mrb[80].mxu1 %vm1195_vm1, %v5574_v21  ;;  %v6203_v21 = vld [vmem:[#allocation2 + $0x129] sm:$0xff] }
 0x394   : > { %10587 = vmatprep.mubr.msk.bf16.mxu1 %vm1195_vm1, %v5575_v23  ;;  %v6206_v23 = vld [vmem:[#allocation2 + $0x141] sm:$0xff]  ;;  %v6272_v24 = vpack.c.bf16 %v6204_v22, %v6203_v21 }
 0x395   : > { %v6273_v26 = vpack.c.bf16 %v6206_v23, %v6205_v25  ;;  %v6226_v21 = vld [vmem:[#allocation2 + $0x1e1] sm:$0xff]  ;;  %v6225_v23 = vld [vmem:[#allocation2 + $0x1d9] sm:$0xff] }
 0x39b   : > { %10588 = vmatmul.mubr.msk.bf16.gmra.mrb[0].mxu1 %vm1195_vm1, %v5576_v27 }
 0x39c   : > { %10595 = vmatprep.mubr.msk.bf16.mxu1 %vm1195_vm1, %v6257_v29 }
 0x3a3   : > { %10596 = vmatmul.mubr.msk.bf16.vlgmr.msra.gmra.mrb[4].mxu1 %vm1195_vm1, %v6258_v33  ;;  %v6210_v33 = vld [vmem:[#allocation2 + $0x161] sm:$0xff] }
 0x3a4   : > { %10680 = vmatpush3.bf16.msra.mxu1 %v12165_v39  ;;  %10599 = vmatprep.mubr.msk.bf16.mxu1 %vm1195_vm1, %v6259_v36  ;;  %v6263_v39 = vpack.c.bf16 %v6186_v48, %v6185_v52  ;;  %v6213_v48 = vld [vmem:[#allocation2 + $0x179] sm:$0xff] }
 0x3a5   : > { %10681 = vmatprep.subr.bf16.mxu1 %v11517_v35 }
 0x3a8   : > { %10682 = vmatpush3.bf16.msra.mxu1 %v11517_v35  ;;  %v6209_v35 = vld [vmem:[#allocation2 + $0x159] sm:$0xff] }
 0x3a9   : > { %v6275_v36 = vpack.c.bf16 %v6210_v33, %v6209_v35  ;;  %v6227_v33 = vld [vmem:[#allocation2 + $0x1e9] sm:$0xff]  ;;  %v6230_v35 = vld [vmem:[#allocation2 + $0x201] sm:$0xff] }
 0x3ab   : > { %10600 = vmatmul.mubr.msk.bf16.gmra.mrb[8].mxu1 %vm1195_vm1, %v6260_v46 }
 0x3ac   : > { %10603 = vmatprep.mubr.msk.bf16.mxu1 %vm1195_vm1, %v6261_v44  ;;  %v6212_v44 = vld [vmem:[#allocation2 + $0x171] sm:$0xff] }
 0x3ad   : > { %v6276_v47 = vpack.c.bf16 %v6212_v44, %v6211_v42  ;;  %v6229_v42 = vld [vmem:[#allocation2 + $0x1f9] sm:$0xff] }
 0x3ae   : > { %v6285_v44 = vpack.c.bf16 %v6230_v35, %v6229_v42  ;;  %v6239_v35 = vld [vmem:[#allocation2 + $0x249] sm:$0xff]  ;;  %v6242_v42 = vld [vmem:[#allocation2 + $0x261] sm:$0xff] }
 0x3b3   : > { %10604 = vmatmul.mubr.msk.bf16.gmra.mrb[12].mxu1 %vm1195_vm1, %v6262_v51  ;;  %v6277_v51 = vpack.c.bf16 %v6214_v45, %v6213_v48 }
 0x3b4   : > { %10607 = vmatprep.mubr.msk.bf16.mxu1 %vm1195_vm1, %v6263_v39 }
 0x3bb   : > { %10608 = vmatmul.mubr.msk.bf16.gmra.mrb[16].mxu1 %vm1195_vm1, %v6264_v56  ;;  %v6216_v56 = vld [vmem:[#allocation2 + $0x191] sm:$0xff] }
 0x3bc   : > { %10611 = vmatprep.mubr.msk.bf16.mxu1 %vm1195_vm1, %v6265_v58  ;;  %v6278_v58 = vpack.c.bf16 %v6216_v56, %v6215_v55  ;;  %v6231_v55 = vld [vmem:[#allocation2 + $0x209] sm:$0xff]  ;;  %v6232_v56 = vld [vmem:[#allocation2 + $0x211] sm:$0xff] }
 0x3c3   : > { %v12241_v49 = vpop.f32.mrb[172].mxu0  ;;  %10612 = vmatmul.mubr.msk.bf16.gmra.mrb[20].mxu1 %vm1195_vm1, %v6266_v61 }
 0x3c4   : > { %12998 = vst [vmem:[#allocation6_spill] sm:$0xff] %v12241_v49  ;;  %v12244_v43 = vpop.f32.mrb[173].mxu0  ;;  %10615 = vmatprep.mubr.msk.bf16.mxu1 %vm1195_vm1, %v6267_v63  ;;  %v6252_v49 = vld [vmem:[#allocation2 + $0x2b1] sm:$0xff] }
 0x3c5   : > { %12999 = vst [vmem:[#allocation7_spill] sm:$0xff] %v12244_v43  ;;  %v12247_v0 = vpop.f32.mrb[174].mxu0  ;;  %v6249_v43 = vld [vmem:[#allocation2 + $0x299] sm:$0xff] }
 0x3c6   : > { %13000 = vst [vmem:[#allocation8_spill] sm:$0xff] %v12247_v0  ;;  %v12249_v50 = vpop.f32.mrb[175].mxu0 }
 0x3c7   : > { %13001 = vst [vmem:[#allocation9_spill] sm:$0xff] %v12249_v50  ;;  %v6250_v50 = vld [vmem:[#allocation2 + $0x2a1] sm:$0xff] }
 0x3cb   : > { %v12251_v7 = vpop.f32.mrb[92].mxu0  ;;  %10616 = vmatmul.mubr.msk.bf16.gmra.mrb[24].mxu1 %vm1195_vm1, %v6268_v4  ;;  %v6280_v4 = vpack.c.bf16 %v6220_v2, %v6219_v1 }
 0x3cc   : > { %v12254_v8 = vpop.f32.mrb[93].mxu0  ;;  %10619 = vmatprep.mubr.msk.bf16.mxu1 %vm1195_vm1, %v6269_v6  ;;  %v6281_v6 = vpack.c.bf16 %v6222_v3, %v6221_v5  ;;  %v6235_v5 = vld [vmem:[#allocation2 + $0x229] sm:$0xff] }
 0x3cd   : > { %v12257_v9 = vpop.f32.mrb[94].mxu0 }
 0x3ce   : > { %v12259_v10 = vpop.f32.mrb[95].mxu0 }
 0x3d3   : > { %v12261_v17 = vpop.f32.mrb[96].mxu0  ;;  %10620 = vmatmul.mubr.msk.bf16.gmra.mrb[28].mxu1 %vm1195_vm1, %v6270_v14 }
 0x3d4   : > { %v12264_v18 = vpop.f32.mrb[97].mxu0  ;;  %10623 = vmatprep.mubr.msk.bf16.mxu1 %vm1195_vm1, %v6271_v16  ;;  %v6224_v16 = vld [vmem:[#allocation2 + $0x1d1] sm:$0xff] }
 0x3d5   : > { %v12267_v19 = vpop.f32.mrb[98].mxu0  ;;  %v6282_v22 = vpack.c.bf16 %v6224_v16, %v6223_v15  ;;  %v6238_v15 = vld [vmem:[#allocation2 + $0x241] sm:$0xff] }
 0x3d6   : > { %v12269_v20 = vpop.f32.mrb[99].mxu0 }
 0x3db   : > { %v12271_v27 = vpop.f32.mrb[100].mxu0  ;;  %10624 = vmatmul.mubr.msk.bf16.gmra.mrb[32].mxu1 %vm1195_vm1, %v6272_v24  ;;  %v6283_v24 = vpack.c.bf16 %v6226_v21, %v6225_v23  ;;  %v6237_v21 = vld [vmem:[#allocation2 + $0x239] sm:$0xff] }
 0x3dc   : > { %v12274_v28 = vpop.f32.mrb[101].mxu0  ;;  %10627 = vmatprep.mubr.msk.bf16.mxu1 %vm1195_vm1, %v6273_v26 }
 0x3dd   : > { %v12277_v29 = vpop.f32.mrb[102].mxu0 }
 0x3de   : > { %v12279_v30 = vpop.f32.mrb[103].mxu0 }
 0x3e3   : > { %v12281_v37 = vpop.f32.mrb[104].mxu0  ;;  %10628 = vmatmul.mubr.msk.bf16.gmra.mrb[36].mxu1 %vm1195_vm1, %v6274_v34  ;;  %v6228_v34 = vld [vmem:[#allocation2 + $0x1f1] sm:$0xff] }
 0x3e4   : > { %v12284_v38 = vpop.f32.mrb[105].mxu0  ;;  %10631 = vmatprep.mubr.msk.bf16.mxu1 %vm1195_vm1, %v6275_v36  ;;  %v6284_v36 = vpack.c.bf16 %v6228_v34, %v6227_v33 }
 0x3e5   : > { %v12287_v40 = vpop.f32.mrb[106].mxu0 }
 0x3e6   : > { %v12289_v46 = vpop.f32.mrb[107].mxu0 }
 0x3eb   : > { %v12291_v52 = vpop.f32.mrb[108].mxu0  ;;  %10632 = vmatmul.mubr.msk.bf16.gmra.mrb[40].mxu1 %vm1195_vm1, %v6276_v47 }
 0x3ec   : > { %v12294_v39 = vpop.f32.mrb[109].mxu0  ;;  %10635 = vmatprep.mubr.msk.bf16.mxu1 %vm1195_vm1, %v6277_v51 }
 0x3ed   : > { %v12297_v53 = vpop.f32.mrb[110].mxu0 }
 0x3ee   : > { %v12299_v54 = vpop.f32.mrb[111].mxu0 }
 0x3f3   : > { %v12301_v60 = vpop.f32.mrb[112].mxu0  ;;  %10636 = vmatmul.mubr.msk.bf16.gmra.mrb[44].mxu1 %vm1195_vm1, %v6278_v58  ;;  %v6286_v58 = vpack.c.bf16 %v6232_v56, %v6231_v55  ;;  %v6241_v55 = vld [vmem:[#allocation2 + $0x259] sm:$0xff] }
 0x3f4   : > { %v12304_v61 = vpop.f32.mrb[113].mxu0  ;;  %10639 = vmatprep.mubr.msk.bf16.mxu1 %vm1195_vm1, %v6279_v41  ;;  %v6287_v41 = vpack.c.bf16 %v6234_v57, %v6233_v59  ;;  %v6291_v56 = vpack.c.bf16 %v6242_v42, %v6241_v55  ;;  %v6247_v55 = vld [vmem:[#allocation2 + $0x289] sm:$0xff] }
 0x3f5   : > { %v12307_v62 = vpop.f32.mrb[114].mxu0 }
 0x3f6   : > { %v12309_v63 = vpop.f32.mrb[115].mxu0 }
 0x3fb   : > { %v12311_v11 = vpop.f32.mrb[116].mxu0  ;;  %10640 = vmatmul.mubr.msk.bf16.gmra.mrb[48].mxu1 %vm1195_vm1, %v6280_v4 }
 0x3fc   : > { %v12314_v12 = vpop.f32.mrb[117].mxu0  ;;  %10643 = vmatprep.mubr.msk.bf16.mxu1 %vm1195_vm1, %v6281_v6  ;;  %v6236_v6 = vld [vmem:[#allocation2 + $0x231] sm:$0xff] }
 0x3fd   : > { %v12317_v13 = vpop.f32.mrb[118].mxu0  ;;  %v6288_v16 = vpack.c.bf16 %v6236_v6, %v6235_v5  ;;  %v6243_v5 = vld [vmem:[#allocation2 + $0x269] sm:$0xff]  ;;  %v6244_v6 = vld [vmem:[#allocation2 + $0x271] sm:$0xff] }
 0x3fe   : > { %v12319_v14 = vpop.f32.mrb[119].mxu0 }
 0x403   : > { %v12321_v25 = vpop.f32.mrb[120].mxu0  ;;  %10644 = vmatmul.mubr.msk.bf16.gmra.mrb[52].mxu1 %vm1195_vm1, %v6282_v22  ;;  %v6289_v22 = vpack.c.bf16 %v6238_v15, %v6237_v21  ;;  %v6246_v15 = vld [vmem:[#allocation2 + $0x281] sm:$0xff]  ;;  %v6245_v21 = vld [vmem:[#allocation2 + $0x279] sm:$0xff] }
 0x404   : > { %v12324_v26 = vpop.f32.mrb[121].mxu0  ;;  %10647 = vmatprep.mubr.msk.bf16.mxu1 %vm1195_vm1, %v6283_v24 }
 0x405   : > { %v12327_v31 = vpop.f32.mrb[122].mxu0 }
 0x406   : > { %v12329_v32 = vpop.f32.mrb[123].mxu0 }
 0x40b   : > { %v12331_v45 = vpop.f32.mrb[124].mxu0  ;;  %10648 = vmatmul.mubr.msk.bf16.gmra.mrb[56].mxu1 %vm1195_vm1, %v6284_v36  ;;  %v6240_v36 = vld [vmem:[#allocation2 + $0x251] sm:$0xff] }
 0x40c   : > { %v12334_v47 = vpop.f32.mrb[125].mxu0  ;;  %10651 = vmatprep.mubr.msk.bf16.mxu1 %vm1195_vm1, %v6285_v44  ;;  %v6290_v44 = vpack.c.bf16 %v6240_v36, %v6239_v35 }
 0x40d   : > { %v12337_v48 = vpop.f32.mrb[126].mxu0 }
 0x40e   : > { %v12339_v51 = vpop.f32.mrb[127].mxu0 }
 0x413   : > { %v12341_v1 = vpop.f32.mrb[128].mxu0  ;;  %10652 = vmatmul.mubr.msk.bf16.gmra.mrb[60].mxu1 %vm1195_vm1, %v6286_v58 }
 0x414   : > { %v12344_v2 = vpop.f32.mrb[129].mxu0  ;;  %10655 = vmatprep.mubr.msk.bf16.mxu1 %vm1195_vm1, %v6287_v41 }
 0x415   : > { %v12347_v3 = vpop.f32.mrb[130].mxu0 }
 0x416   : > { %v12349_v4 = vpop.f32.mrb[131].mxu0 }
 0x41b   : > { %v12351_v23 = vpop.f32.mrb[132].mxu0  ;;  %10656 = vmatmul.mubr.msk.bf16.gmra.mrb[64].mxu1 %vm1195_vm1, %v6288_v16  ;;  %v6292_v16 = vpack.c.bf16 %v6244_v6, %v6243_v5  ;;  %v6295_v5 = vpack.c.bf16 %v6250_v50, %v6249_v43 }
 0x41c   : > { %v12354_v24 = vpop.f32.mrb[133].mxu0  ;;  %10659 = vmatprep.mubr.msk.bf16.mxu1 %vm1195_vm1, %v6289_v22  ;;  %v6293_v22 = vpack.c.bf16 %v6246_v15, %v6245_v21 }
 0x41d   : > { %v12357_v33 = vpop.f32.mrb[134].mxu0 }
 0x41e   : > { %v12359_v34 = vpop.f32.mrb[135].mxu0 }
 0x423   : > { %v12361_v57 = vpop.f32.mrb[136].mxu0  ;;  %10660 = vmatmul.mubr.msk.bf16.gmra.mrb[68].mxu1 %vm1195_vm1, %v6290_v44 }
 0x424   : > { %v12364_v58 = vpop.f32.mrb[137].mxu0  ;;  %10663 = vmatprep.mubr.msk.bf16.mxu1 %vm1195_vm1, %v6291_v56  ;;  %v6248_v56 = vld [vmem:[#allocation2 + $0x291] sm:$0xff] }
 0x425   : > { %v12367_v59 = vpop.f32.mrb[138].mxu0  ;;  %v6294_v0 = vpack.c.bf16 %v6248_v56, %v6247_v55 }
 0x426   : > { %v12369_v41 = vpop.f32.mrb[139].mxu0 }
 0x42b   : > { %v12371_v35 = vpop.f32.mrb[140].mxu0  ;;  %10664 = vmatmul.mubr.msk.bf16.gmra.mrb[72].mxu1 %vm1195_vm1, %v6292_v16 }
 0x42c   : > { %v12374_v36 = vpop.f32.mrb[141].mxu0  ;;  %10667 = vmatprep.mubr.msk.bf16.mxu1 %vm1195_vm1, %v6293_v22  ;;  %v6251_v22 = vld [vmem:[#allocation2 + $0x2a9] sm:$0xff] }
 0x42d   : > { %13002 = vst [vmem:[#allocation10_spill] sm:$0xff] %v12374_v36  ;;  %v12377_v42 = vpop.f32.mrb[142].mxu0  ;;  %v6253_v36 = vld [vmem:[#allocation2 + $0x2b9] sm:$0xff] }
 0x42e   : > { %13003 = vst [vmem:[#allocation11_spill] sm:$0xff] %v12377_v42  ;;  %v12379_v44 = vpop.f32.mrb[143].mxu0  ;;  %v6296_v42 = vpack.c.bf16 %v6252_v49, %v6251_v22 }
 0x42f   : > { %13004 = vst [vmem:[#allocation12_spill] sm:$0xff] %v12379_v44  ;;  %v6254_v44 = vld [vmem:[#allocation2 + $0x2c1] sm:$0xff] }
 0x430   : > { %v6297_v55 = vpack.c.bf16 %v6254_v44, %v6253_v36 }
 0x433   : > { %v12381_v6 = vpop.f32.mrb[144].mxu0  ;;  %10668 = vmatmul.mubr.msk.bf16.gmra.mrb[76].mxu1 %vm1195_vm1, %v6294_v0 }
 0x434   : > { %13005 = vst [vmem:[#allocation13_spill] sm:$0xff] %v12381_v6  ;;  %v12384_v15 = vpop.f32.mrb[145].mxu0  ;;  %10671 = vmatprep.mubr.msk.bf16.mxu1 %vm1195_vm1, %v6295_v5  ;;  %v6255_v5 = vld [vmem:[#allocation2 + $0x2c9] sm:$0xff]  ;;  %v6895_v6 = vld [vmem:[#allocation2 + $0x3a] sm:$0xff] }
 0x435   : > { %13006 = vst [vmem:[#allocation14_spill] sm:$0xff] %v12384_v15  ;;  %v12387_v16 = vpop.f32.mrb[146].mxu0 }
 0x436   : > { %13007 = vst [vmem:[#allocation15_spill] sm:$0xff] %v12387_v16  ;;  %v12389_v21 = vpop.f32.mrb[147].mxu0  ;;  %v6896_v16 = vld [vmem:[#allocation2 + $0x42] sm:$0xff] }
 0x437   : > { %13008 = vst [vmem:[#allocation16_spill] sm:$0xff] %v12389_v21  ;;  %v6256_v21 = vld [vmem:[#allocation2 + $0x2d1] sm:$0xff]  ;;  %v6979_v49 = vpack.c.bf16 %v6896_v16, %v6895_v6 }
 0x438   : > { %v6298_v15 = vpack.c.bf16 %v6256_v21, %v6255_v5 }
 0x43b   : > { %v12391_v56 = vpop.f32.mrb[148].mxu0  ;;  %10672 = vmatmul.mubr.msk.bf16.gmra.mrb[80].mxu1 %vm1195_vm1, %v6296_v42 }
 0x43c   : > { %13009 = vst [vmem:[#allocation17_spill] sm:$0xff] %v12391_v56  ;;  %v12394_v43 = vpop.f32.mrb[149].mxu0  ;;  %10675 = vmatprep.mubr.msk.bf16.mxu1 %vm1195_vm1, %v6297_v55  ;;  %v6897_v55 = vld [vmem:[#allocation2 + $0x4a] sm:$0xff]  ;;  %v6899_v56 = vld [vmem:[#allocation2 + $0x5a] sm:$0xff] }
 0x43d   : > { %13010 = vst [vmem:[#allocation18_spill] sm:$0xff] %v12394_v43  ;;  %v12397_v0 = vpop.f32.mrb[150].mxu0 }
 0x43e   : > { %13011 = vst [vmem:[#allocation19_spill] sm:$0xff] %v12397_v0  ;;  %v12399_v50 = vpop.f32.mrb[151].mxu0  ;;  %v6900_v0 = vld [vmem:[#allocation2 + $0x62] sm:$0xff] }
 0x43f   : > { %13012 = vst [vmem:[#allocation20_spill] sm:$0xff] %v12399_v50  ;;  %v6898_v50 = vld [vmem:[#allocation2 + $0x52] sm:$0xff]  ;;  %v6981_v21 = vpack.c.bf16 %v6900_v0, %v6899_v56 }
 0x440   : > { %v6980_v43 = vpack.c.bf16 %v6898_v50, %v6897_v55 }
 0x443   : > { %v12401_v22 = vpop.f32.mrb[152].mxu0  ;;  %10676 = vmatmul.mubr.msk.bf16.gmra.mrb[0].mxu1 %vm1195_vm1, %v6298_v15 }
 0x444   : > { %13013 = vst [vmem:[#allocation21_spill] sm:$0xff] %v12401_v22  ;;  %v12404_v36 = vpop.f32.mrb[153].mxu0  ;;  %10683 = vmatprep.mubr.msk.bf16.mxu1 %vm1195_vm1, %v6979_v49  ;;  %v6901_v49 = vld [vmem:[#allocation2 + $0x6a] sm:$0xff]  ;;  %v6903_v22 = vld [vmem:[#allocation2 + $0x7a] sm:$0xff] }
 0x445   : > { %13014 = vst [vmem:[#allocation22_spill] sm:$0xff] %v12404_v36  ;;  %v12407_v42 = vpop.f32.mrb[154].mxu0 }
 0x446   : > { %13015 = vst [vmem:[#allocation23_spill] sm:$0xff] %v12407_v42  ;;  %v12409_v44 = vpop.f32.mrb[155].mxu0  ;;  %v6904_v42 = vld [vmem:[#allocation2 + $0x82] sm:$0xff] }
 0x447   : > { %13016 = vst [vmem:[#allocation24_spill] sm:$0xff] %v12409_v44  ;;  %v6902_v44 = vld [vmem:[#allocation2 + $0x72] sm:$0xff]  ;;  %v6983_v50 = vpack.c.bf16 %v6904_v42, %v6903_v22 }
 0x448   : > { %v6982_v36 = vpack.c.bf16 %v6902_v44, %v6901_v49 }
 0x44b   : > { %v12411_v5 = vpop.f32.mrb[156].mxu0  ;;  %10684 = vmatmul.mubr.msk.bf16.vlgmr.msra.gmra.mrb[4].mxu1 %vm1195_vm1, %v6980_v43 }
 0x44c   : > { %13017 = vst [vmem:[#allocation25_spill] sm:$0xff] %v12411_v5  ;;  %v12414_v6 = vpop.f32.mrb[157].mxu0  ;;  %10687 = vmatprep.mubr.msk.bf16.mxu1 %vm1195_vm1, %v6981_v21  ;;  %v6905_v21 = vld [vmem:[#allocation2 + $0x8a] sm:$0xff]  ;;  %v6907_v5 = vld [vmem:[#allocation2 + $0x9a] sm:$0xff] }
 0x44d   : > { %13018 = vst [vmem:[#allocation26_spill] sm:$0xff] %v12414_v6  ;;  %v12417_v15 = vpop.f32.mrb[158].mxu0 }
 0x44e   : > { %13019 = vst [vmem:[#allocation27_spill] sm:$0xff] %v12417_v15  ;;  %v12419_v16 = vpop.f32.mrb[159].mxu0  ;;  %v6908_v15 = vld [vmem:[#allocation2 + $0xa2] sm:$0xff] }
 0x44f   : > { %13020 = vst [vmem:[#allocation28_spill] sm:$0xff] %v12419_v16  ;;  %v6906_v16 = vld [vmem:[#allocation2 + $0x92] sm:$0xff]  ;;  %v6985_v44 = vpack.c.bf16 %v6908_v15, %v6907_v5 }
 0x450   : > { %v6984_v6 = vpack.c.bf16 %v6906_v16, %v6905_v21 }
 0x453   : > { %v12421_v55 = vpop.f32.mrb[160].mxu0  ;;  %10688 = vmatmul.mubr.msk.bf16.gmra.mrb[8].mxu1 %vm1195_vm1, %v6982_v36 }
 0x454   : > { %13021 = vst [vmem:[#allocation29_spill] sm:$0xff] %v12421_v55  ;;  %v12424_v56 = vpop.f32.mrb[161].mxu0  ;;  %10691 = vmatprep.mubr.msk.bf16.mxu1 %vm1195_vm1, %v6983_v50  ;;  %v6909_v50 = vld [vmem:[#allocation2 + $0xaa] sm:$0xff]  ;;  %v6911_v55 = vld [vmem:[#allocation2 + $0xba] sm:$0xff] }
 0x455   : > { %13022 = vst [vmem:[#allocation30_spill] sm:$0xff] %v12424_v56  ;;  %v12427_v43 = vpop.f32.mrb[162].mxu0 }
 0x456   : > { %13023 = vst [vmem:[#allocation31_spill] sm:$0xff] %v12427_v43  ;;  %v12429_v0 = vpop.f32.mrb[163].mxu0  ;;  %v6912_v43 = vld [vmem:[#allocation2 + $0xc2] sm:$0xff] }
 0x457   : > { %13024 = vst [vmem:[#allocation32_spill] sm:$0xff] %v12429_v0  ;;  %v6910_v0 = vld [vmem:[#allocation2 + $0xb2] sm:$0xff]  ;;  %v6987_v16 = vpack.c.bf16 %v6912_v43, %v6911_v55  ;;  %v6917_v55 = vld [vmem:[#allocation2 + $0xea] sm:$0xff]  ;;  %v6920_v43 = vld [vmem:[#allocation2 + $0x102] sm:$0xff] }
 0x458   : > { %v6986_v56 = vpack.c.bf16 %v6910_v0, %v6909_v50 }
 0x45b   : > { %v12431_v49 = vpop.f32.mrb[164].mxu0  ;;  %10692 = vmatmul.mubr.msk.bf16.gmra.mrb[12].mxu1 %vm1195_vm1, %v6984_v6 }
 0x45c   : > { %13025 = vst [vmem:[#allocation33_spill] sm:$0xff] %v12431_v49  ;;  %v12434_v22 = vpop.f32.mrb[165].mxu0  ;;  %10695 = vmatprep.mubr.msk.bf16.mxu1 %vm1195_vm1, %v6985_v44  ;;  %v6913_v44 = vld [vmem:[#allocation2 + $0xca] sm:$0xff]  ;;  %v6915_v49 = vld [vmem:[#allocation2 + $0xda] sm:$0xff] }
 0x45d   : > { %13026 = vst [vmem:[#allocation34_spill] sm:$0xff] %v12434_v22  ;;  %v12437_v36 = vpop.f32.mrb[166].mxu0 }
 0x45e   : > { %13027 = vst [vmem:[#allocation35_spill] sm:$0xff] %v12437_v36  ;;  %v12439_v42 = vpop.f32.mrb[167].mxu0  ;;  %v6916_v36 = vld [vmem:[#allocation2 + $0xe2] sm:$0xff] }
 0x45f   : > { %13028 = vst [vmem:[#allocation36_spill] sm:$0xff] %v12439_v42  ;;  %v6914_v42 = vld [vmem:[#allocation2 + $0xd2] sm:$0xff]  ;;  %v6989_v0 = vpack.c.bf16 %v6916_v36, %v6915_v49 }
 0x460   : > { %v6988_v22 = vpack.c.bf16 %v6914_v42, %v6913_v44  ;;  %v6923_v44 = vld [vmem:[#allocation2 + $0x11a] sm:$0xff]  ;;  %v6926_v36 = vld [vmem:[#allocation2 + $0x132] sm:$0xff] }
 0x463   : > { %v12441_v21 = vpop.f32.mrb[168].mxu0  ;;  %10696 = vmatmul.mubr.msk.bf16.gmra.mrb[16].mxu1 %vm1195_vm1, %v6986_v56  ;;  %v6918_v56 = vld [vmem:[#allocation2 + $0xf2] sm:$0xff] }
 0x464   : > { %13029 = vst [vmem:[#allocation37_spill] sm:$0xff] %v12441_v21  ;;  %v12444_v5 = vpop.f32.mrb[169].mxu0  ;;  %10699 = vmatprep.mubr.msk.bf16.mxu1 %vm1195_vm1, %v6987_v16  ;;  %v6990_v50 = vpack.c.bf16 %v6918_v56, %v6917_v55  ;;  %v6924_v21 = vld [vmem:[#allocation2 + $0x122] sm:$0xff]  ;;  %v6927_v56 = vld [vmem:[#allocation2 + $0x13a] sm:$0xff] }
 0x465   : > { %13030 = vst [vmem:[#allocation38_spill] sm:$0xff] %v12444_v5  ;;  %v12447_v6 = vpop.f32.mrb[170].mxu0  ;;  %v6919_v5 = vld [vmem:[#allocation2 + $0xfa] sm:$0xff]  ;;  %v6993_v49 = vpack.c.bf16 %v6924_v21, %v6923_v44  ;;  %v6934_v44 = vld [vmem:[#allocation2 + $0x172] sm:$0xff] }
 0x466   : > { %13031 = vst [vmem:[#allocation39_spill] sm:$0xff] %v12447_v6  ;;  %v12449_v15 = vpop.f32.mrb[171].mxu0  ;;  %v6991_v16 = vpack.c.bf16 %v6920_v43, %v6919_v5  ;;  %v6922_v6 = vld [vmem:[#allocation2 + $0x112] sm:$0xff]  ;;  %v6929_v43 = vld [vmem:[#allocation2 + $0x14a] sm:$0xff] }
 0x467   : > { %13032 = vst [vmem:[#allocation40_spill] sm:$0xff] %v12449_v15  ;;  %v6921_v15 = vld [vmem:[#allocation2 + $0x10a] sm:$0xff] }
 0x468   : > { %v6992_v42 = vpack.c.bf16 %v6922_v6, %v6921_v15  ;;  %v6931_v15 = vld [vmem:[#allocation2 + $0x15a] sm:$0xff] }
 0x46b   : > { %10700 = vmatmul.mubr.msk.bf16.gmra.mrb[20].mxu1 %vm1195_vm1, %v6988_v22  ;;  %v6925_v22 = vld [vmem:[#allocation2 + $0x12a] sm:$0xff] }
 0x46c   : > { %10703 = vmatprep.mubr.msk.bf16.mxu1 %vm1195_vm1, %v6989_v0  ;;  %v6928_v0 = vld [vmem:[#allocation2 + $0x142] sm:$0xff]  ;;  %v6994_v55 = vpack.c.bf16 %v6926_v36, %v6925_v22  ;;  %v6935_v36 = vld [vmem:[#allocation2 + $0x17a] sm:$0xff] }
 0x46d   : > { %v6995_v5 = vpack.c.bf16 %v6928_v0, %v6927_v56  ;;  %v6938_v56 = vld [vmem:[#allocation2 + $0x192] sm:$0xff] }
 0x473   : > { %10704 = vmatmul.mubr.msk.bf16.gmra.mrb[24].mxu1 %vm1195_vm1, %v6990_v50  ;;  %v6930_v50 = vld [vmem:[#allocation2 + $0x152] sm:$0xff] }
 0x474   : > { %10707 = vmatprep.mubr.msk.bf16.mxu1 %vm1195_vm1, %v6991_v16  ;;  %v6932_v16 = vld [vmem:[#allocation2 + $0x162] sm:$0xff]  ;;  %v6996_v6 = vpack.c.bf16 %v6930_v50, %v6929_v43  ;;  %v6939_v50 = vld [vmem:[#allocation2 + $0x19a] sm:$0xff] }
 0x475   : > { %v6997_v21 = vpack.c.bf16 %v6932_v16, %v6931_v15  ;;  %v6942_v15 = vld [vmem:[#allocation2 + $0x1b2] sm:$0xff] }
 0x47b   : > { %10708 = vmatmul.mubr.msk.bf16.gmra.mrb[28].mxu1 %vm1195_vm1, %v6992_v42  ;;  %v6933_v42 = vld [vmem:[#allocation2 + $0x16a] sm:$0xff] }
 0x47c   : > { %10711 = vmatprep.mubr.msk.bf16.mxu1 %vm1195_vm1, %v6993_v49  ;;  %v6936_v49 = vld [vmem:[#allocation2 + $0x182] sm:$0xff]  ;;  %v6998_v22 = vpack.c.bf16 %v6934_v44, %v6933_v42  ;;  %v6943_v44 = vld [vmem:[#allocation2 + $0x1ba] sm:$0xff] }
 0x47d   : > { %v6999_v0 = vpack.c.bf16 %v6936_v49, %v6935_v36  ;;  %v6946_v36 = vld [vmem:[#allocation2 + $0x1d2] sm:$0xff] }
 0x483   : > { %10712 = vmatmul.mubr.msk.bf16.gmra.mrb[32].mxu1 %vm1195_vm1, %v6994_v55  ;;  %v6937_v55 = vld [vmem:[#allocation2 + $0x18a] sm:$0xff] }
 0x484   : > { %10715 = vmatprep.mubr.msk.bf16.mxu1 %vm1195_vm1, %v6995_v5  ;;  %v6940_v5 = vld [vmem:[#allocation2 + $0x1a2] sm:$0xff]  ;;  %v7000_v43 = vpack.c.bf16 %v6938_v56, %v6937_v55  ;;  %v6947_v56 = vld [vmem:[#allocation2 + $0x1da] sm:$0xff] }
 0x485   : > { %v7001_v16 = vpack.c.bf16 %v6940_v5, %v6939_v50  ;;  %v6950_v50 = vld [vmem:[#allocation2 + $0x1f2] sm:$0xff] }
 0x48b   : > { %10716 = vmatmul.mubr.msk.bf16.gmra.mrb[36].mxu1 %vm1195_vm1, %v6996_v6  ;;  %v6941_v6 = vld [vmem:[#allocation2 + $0x1aa] sm:$0xff] }
 0x48c   : > { %10719 = vmatprep.mubr.msk.bf16.mxu1 %vm1195_vm1, %v6997_v21  ;;  %v6944_v21 = vld [vmem:[#allocation2 + $0x1c2] sm:$0xff]  ;;  %v7002_v42 = vpack.c.bf16 %v6942_v15, %v6941_v6  ;;  %v6951_v15 = vld [vmem:[#allocation2 + $0x1fa] sm:$0xff] }
 0x48d   : > { %v7003_v49 = vpack.c.bf16 %v6944_v21, %v6943_v44  ;;  %v6954_v44 = vld [vmem:[#allocation2 + $0x212] sm:$0xff] }
 0x493   : > { %10720 = vmatmul.mubr.msk.bf16.gmra.mrb[40].mxu1 %vm1195_vm1, %v6998_v22  ;;  %v6945_v22 = vld [vmem:[#allocation2 + $0x1ca] sm:$0xff] }
 0x494   : > { %10723 = vmatprep.mubr.msk.bf16.mxu1 %vm1195_vm1, %v6999_v0  ;;  %v6948_v0 = vld [vmem:[#allocation2 + $0x1e2] sm:$0xff]  ;;  %v7004_v55 = vpack.c.bf16 %v6946_v36, %v6945_v22  ;;  %v6955_v36 = vld [vmem:[#allocation2 + $0x21a] sm:$0xff] }
 0x495   : > { %v7005_v5 = vpack.c.bf16 %v6948_v0, %v6947_v56  ;;  %v6958_v56 = vld [vmem:[#allocation2 + $0x232] sm:$0xff] }
 0x49b   : > { %10724 = vmatmul.mubr.msk.bf16.gmra.mrb[44].mxu1 %vm1195_vm1, %v7000_v43  ;;  %v6949_v43 = vld [vmem:[#allocation2 + $0x1ea] sm:$0xff] }
 0x49c   : > { %10727 = vmatprep.mubr.msk.bf16.mxu1 %vm1195_vm1, %v7001_v16  ;;  %v6952_v16 = vld [vmem:[#allocation2 + $0x202] sm:$0xff]  ;;  %v7006_v6 = vpack.c.bf16 %v6950_v50, %v6949_v43  ;;  %v6959_v50 = vld [vmem:[#allocation2 + $0x23a] sm:$0xff] }
 0x49d   : > { %v7007_v21 = vpack.c.bf16 %v6952_v16, %v6951_v15  ;;  %v6962_v15 = vld [vmem:[#allocation2 + $0x252] sm:$0xff] }
 0x4a3   : > { %10728 = vmatmul.mubr.msk.bf16.gmra.mrb[48].mxu1 %vm1195_vm1, %v7002_v42  ;;  %v6953_v42 = vld [vmem:[#allocation2 + $0x20a] sm:$0xff] }
 0x4a4   : > { %10731 = vmatprep.mubr.msk.bf16.mxu1 %vm1195_vm1, %v7003_v49  ;;  %v6956_v49 = vld [vmem:[#allocation2 + $0x222] sm:$0xff]  ;;  %v7008_v22 = vpack.c.bf16 %v6954_v44, %v6953_v42  ;;  %v6963_v44 = vld [vmem:[#allocation2 + $0x25a] sm:$0xff] }
 0x4a5   : > { %v7009_v0 = vpack.c.bf16 %v6956_v49, %v6955_v36  ;;  %v6966_v36 = vld [vmem:[#allocation2 + $0x272] sm:$0xff] }
 0x4ab   : > { %10732 = vmatmul.mubr.msk.bf16.gmra.mrb[52].mxu1 %vm1195_vm1, %v7004_v55  ;;  %v6957_v55 = vld [vmem:[#allocation2 + $0x22a] sm:$0xff] }
 0x4ac   : > { %10735 = vmatprep.mubr.msk.bf16.mxu1 %vm1195_vm1, %v7005_v5  ;;  %v6960_v5 = vld [vmem:[#allocation2 + $0x242] sm:$0xff]  ;;  %v7010_v43 = vpack.c.bf16 %v6958_v56, %v6957_v55  ;;  %v6967_v56 = vld [vmem:[#allocation2 + $0x27a] sm:$0xff] }
 0x4ad   : > { %v7011_v16 = vpack.c.bf16 %v6960_v5, %v6959_v50  ;;  %v6970_v50 = vld [vmem:[#allocation2 + $0x292] sm:$0xff] }
 0x4b3   : > { %10736 = vmatmul.mubr.msk.bf16.gmra.mrb[56].mxu1 %vm1195_vm1, %v7006_v6  ;;  %v6961_v6 = vld [vmem:[#allocation2 + $0x24a] sm:$0xff] }
 0x4b4   : > { %10739 = vmatprep.mubr.msk.bf16.mxu1 %vm1195_vm1, %v7007_v21  ;;  %v6964_v21 = vld [vmem:[#allocation2 + $0x262] sm:$0xff]  ;;  %v7012_v42 = vpack.c.bf16 %v6962_v15, %v6961_v6  ;;  %v6971_v15 = vld [vmem:[#allocation2 + $0x29a] sm:$0xff] }
 0x4b5   : > { %v7013_v49 = vpack.c.bf16 %v6964_v21, %v6963_v44  ;;  %v6974_v44 = vld [vmem:[#allocation2 + $0x2b2] sm:$0xff] }
 0x4bb   : > { %10740 = vmatmul.mubr.msk.bf16.gmra.mrb[60].mxu1 %vm1195_vm1, %v7008_v22  ;;  %v6965_v22 = vld [vmem:[#allocation2 + $0x26a] sm:$0xff] }
 0x4bc   : > { %10743 = vmatprep.mubr.msk.bf16.mxu1 %vm1195_vm1, %v7009_v0  ;;  %v6968_v0 = vld [vmem:[#allocation2 + $0x282] sm:$0xff]  ;;  %v7014_v55 = vpack.c.bf16 %v6966_v36, %v6965_v22  ;;  %v6975_v36 = vld [vmem:[#allocation2 + $0x2ba] sm:$0xff] }
 0x4bd   : > { %v7015_v5 = vpack.c.bf16 %v6968_v0, %v6967_v56  ;;  %v6978_v56 = vld [vmem:[#allocation2 + $0x2d2] sm:$0xff] }
 0x4c3   : > { %10744 = vmatmul.mubr.msk.bf16.gmra.mrb[64].mxu1 %vm1195_vm1, %v7010_v43  ;;  %v6969_v43 = vld [vmem:[#allocation2 + $0x28a] sm:$0xff] }
 0x4c4   : > { %10747 = vmatprep.mubr.msk.bf16.mxu1 %vm1195_vm1, %v7011_v16  ;;  %v6972_v16 = vld [vmem:[#allocation2 + $0x2a2] sm:$0xff]  ;;  %v7016_v6 = vpack.c.bf16 %v6970_v50, %v6969_v43  ;;  %v12487_v50 = vld [vmem:[%s12996_s4] ss:$0 sm:$0xff] }
 0x4c5   : > { %v7017_v21 = vpack.c.bf16 %v6972_v16, %v6971_v15 }
 0x4cb   : > { %10748 = vmatmul.mubr.msk.bf16.gmra.mrb[68].mxu1 %vm1195_vm1, %v7012_v42  ;;  %v6973_v42 = vld [vmem:[#allocation2 + $0x2aa] sm:$0xff] }
 0x4cc   : > { %10751 = vmatprep.mubr.msk.bf16.mxu1 %vm1195_vm1, %v7013_v49  ;;  %v6976_v49 = vld [vmem:[#allocation2 + $0x2c2] sm:$0xff]  ;;  %v7018_v22 = vpack.c.bf16 %v6974_v44, %v6973_v42 }
 0x4cd   : > { %v7019_v0 = vpack.c.bf16 %v6976_v49, %v6975_v36 }
 0x4d3   : > { %10752 = vmatmul.mubr.msk.bf16.gmra.mrb[72].mxu1 %vm1195_vm1, %v7014_v55  ;;  %v6977_v55 = vld [vmem:[#allocation2 + $0x2ca] sm:$0xff] }
 0x4d4   : > { %10755 = vmatprep.mubr.msk.bf16.mxu1 %vm1195_vm1, %v7015_v5  ;;  %v7020_v5 = vpack.c.bf16 %v6978_v56, %v6977_v55 }
 0x4db   : > { %10756 = vmatmul.mubr.msk.bf16.gmra.mrb[76].mxu1 %vm1195_vm1, %v7016_v6 }
 0x4dc   : > { %10759 = vmatprep.mubr.msk.bf16.mxu1 %vm1195_vm1, %v7017_v21 }
 0x4e3   : > { %10760 = vmatmul.mubr.msk.bf16.gmra.mrb[80].mxu1 %vm1195_vm1, %v7018_v22 }
 0x4e4   : > { %10763 = vmatprep.mubr.msk.bf16.mxu1 %vm1195_vm1, %v7019_v0 }
 0x4eb   : > { %10764 = vmatmul.mubr.msk.bf16.gmra.mrb[0].mxu1 %vm1195_vm1, %v7020_v5 }
 0x51e   : > { %v10685_v43 = vpop.f32.mrb[4].mxu1 }
 0x51f   : > { %v10771_v16 = vadd.f32 %v10685_v43, %v12251_v7  ;;  %v7198_v6 = vpop.f32.mrb[5].mxu1 }
 0x520   : > { %v10772_v15 = vadd.f32 %v7198_v6, %v12254_v8  ;;  %v10686_v21 = vpop.f32.mrb[6].mxu1 }
 0x521   : > { %v7626_v42 = vadd.f32 %v10771_v16, %v12487_v50  ;;  %v10773_v44 = vadd.f32 %v10686_v21, %v12257_v9  ;;  %v7201_v49 = vpop.f32.mrb[7].mxu1 }
 0x522   : > { %v7624_v22 = vadd.f32 %v10772_v15, %v12487_v50  ;;  %v10774_v36 = vadd.f32 %v7201_v49, %v12259_v10 }
 0x523   : > { %v7710_v0 = vmax.f32 %v7626_v42, 0.0  ;;  %v7627_v55 = vadd.f32 %v10773_v44, %v12487_v50 }
 0x524   : > { %v7708_v56 = vmax.f32 %v7624_v22, 0.0  ;;  %v7625_v7 = vadd.f32 %v10774_v36, %v12487_v50 }
 0x525   : > { %7795 = vst.msk [vmem:[#allocation3 + $0x10] sm:$0xff] %vm7792_vm2, %v7710_v0  ;;  %v7711_v8 = vmax.f32 %v7627_v55, 0.0 }
 0x526   : > { %7793 = vst.msk [vmem:[#allocation3] sm:$0xff] %vm7792_vm2, %v7708_v56  ;;  %v7709_v5 = vmax.f32 %v7625_v7, 0.0  ;;  %v10689_v43 = vpop.f32.mrb[8].mxu1 }
 0x527   : > { %7796 = vst.msk [vmem:[#allocation3 + $0x18] sm:$0xff] %vm7792_vm2, %v7711_v8  ;;  %v10775_v9 = vadd.f32 %v10689_v43, %v12261_v17  ;;  %v7214_v16 = vpop.f32.mrb[9].mxu1 }
 0x528   : > { %7794 = vst.msk [vmem:[#allocation3 + $0x8] sm:$0xff] %vm7792_vm2, %v7709_v5  ;;  %v10776_v10 = vadd.f32 %v7214_v16, %v12264_v18  ;;  %v10690_v6 = vpop.f32.mrb[10].mxu1 }
 0x529   : > { %v7630_v15 = vadd.f32 %v10775_v9, %v12487_v50  ;;  %v10777_v21 = vadd.f32 %v10690_v6, %v12267_v19  ;;  %v7217_v42 = vpop.f32.mrb[11].mxu1 }
 0x52a   : > { %v7628_v44 = vadd.f32 %v10776_v10, %v12487_v50  ;;  %v10778_v49 = vadd.f32 %v7217_v42, %v12269_v20 }
 0x52b   : > { %v7714_v22 = vmax.f32 %v7630_v15, 0.0  ;;  %v7631_v36 = vadd.f32 %v10777_v21, %v12487_v50 }
 0x52c   : > { %v7712_v0 = vmax.f32 %v7628_v44, 0.0  ;;  %v7629_v17 = vadd.f32 %v10778_v49, %v12487_v50  ;;  %v7879_v49 = vld [vmem:[#allocation3 + $0x10] sm:$0xff] }
 0x52d   : > { %7799 = vst.msk [vmem:[#allocation3 + $0x30] sm:$0xff] %vm7792_vm2, %v7714_v22  ;;  %v7715_v55 = vmax.f32 %v7631_v36, 0.0  ;;  %v7877_v42 = vld [vmem:[#allocation3] sm:$0xff] }
 0x52e   : > { %7797 = vst.msk [vmem:[#allocation3 + $0x20] sm:$0xff] %vm7792_vm2, %v7712_v0  ;;  %v7713_v18 = vmax.f32 %v7629_v17, 0.0  ;;  %v10693_v56 = vpop.f32.mrb[12].mxu1 }
 0x52f   : > { %7800 = vst.msk [vmem:[#allocation3 + $0x38] sm:$0xff] %vm7792_vm2, %v7715_v55  ;;  %v10779_v19 = vadd.f32 %v10693_v56, %v12271_v27  ;;  %v7230_v7 = vpop.f32.mrb[13].mxu1  ;;  %v7878_v0 = vld [vmem:[#allocation3 + $0x8] sm:$0xff] }
 0x530   : > { %7798 = vst.msk [vmem:[#allocation3 + $0x28] sm:$0xff] %vm7792_vm2, %v7713_v18  ;;  %v10780_v20 = vadd.f32 %v7230_v7, %v12274_v28  ;;  %v10694_v8 = vpop.f32.mrb[14].mxu1 }
 0x531   : > { %v7634_v5 = vadd.f32 %v10779_v19, %v12487_v50  ;;  %v10781_v43 = vadd.f32 %v10694_v8, %v12277_v29  ;;  %v7233_v9 = vpop.f32.mrb[15].mxu1 }
 0x532   : > { %v7632_v16 = vadd.f32 %v10780_v20, %v12487_v50  ;;  %v10782_v10 = vadd.f32 %v7233_v9, %v12279_v30 }
 0x533   : > { %v7718_v6 = vmax.f32 %v7634_v5, 0.0  ;;  %v7635_v15 = vadd.f32 %v10781_v43, %v12487_v50 }
 0x534   : > { %v7716_v27 = vmax.f32 %v7632_v16, 0.0  ;;  %v7633_v21 = vadd.f32 %v10782_v10, %v12487_v50 }
 0x535   : > { %v7881_v44 = vld [vmem:[#allocation3 + $0x1c] sm:$0xff]  ;;  %7803 = vst.msk [vmem:[#allocation3 + $0x50] sm:$0xff] %vm7792_vm2, %v7718_v6  ;;  %v7719_v28 = vmax.f32 %v7635_v15, 0.0 }
 0x536   : > { %v7885_v22 = vmax.f32 %v7877_v42, %v7881_v44  ;;  %7801 = vst.msk [vmem:[#allocation3 + $0x40] sm:$0xff] %vm7792_vm2, %v7716_v27  ;;  %v7717_v29 = vmax.f32 %v7633_v21, 0.0  ;;  %v10697_v36 = vpop.f32.mrb[16].mxu1 }
 0x537   : > { %v7882_v30 = vld [vmem:[#allocation3 + $0x24] sm:$0xff]  ;;  %v7883_v17 = vld [vmem:[#allocation3 + $0x2c] sm:$0xff]  ;;  %7804 = vst.msk [vmem:[#allocation3 + $0x58] sm:$0xff] %vm7792_vm2, %v7719_v28  ;;  %v10783_v55 = vadd.f32 %v10697_v36, %v12281_v37  ;;  %v7246_v18 = vpop.f32.mrb[17].mxu1 }
 0x538   : > { %7889 = vst.msk [vmem:[#allocation4] sm:$0xff] %vm7792_vm2, %v7885_v22  ;;  %v7886_v56 = vmax.f32 %v7878_v0, %v7882_v30  ;;  %v7887_v19 = vmax.f32 %v7879_v49, %v7883_v17  ;;  %7802 = vst.msk [vmem:[#allocation3 + $0x48] sm:$0xff] %vm7792_vm2, %v7717_v29  ;;  %v10784_v7 = vadd.f32 %v7246_v18, %v12284_v38  ;;  %v10698_v20 = vpop.f32.mrb[18].mxu1 }
 0x539   : > { %v7638_v8 = vadd.f32 %v10783_v55, %v12487_v50  ;;  %v10785_v5 = vadd.f32 %v10698_v20, %v12287_v40  ;;  %v7249_v43 = vpop.f32.mrb[19].mxu1  ;;  %v7894_v40 = vld [vmem:[#allocation3 + $0x38] sm:$0xff] }
 0x53a   : > { %7890 = vst.msk [vmem:[#allocation4 + $0x8] sm:$0xff] %vm7792_vm2, %v7886_v56  ;;  %7891 = vst.msk [vmem:[#allocation4 + $0x10] sm:$0xff] %vm7792_vm2, %v7887_v19  ;;  %v7636_v37 = vadd.f32 %v10784_v7, %v12487_v50  ;;  %v10786_v9 = vadd.f32 %v7249_v43, %v12289_v46 }
 0x53b   : > { %v7722_v16 = vmax.f32 %v7638_v8, 0.0  ;;  %v7639_v10 = vadd.f32 %v10785_v5, %v12487_v50 }
 0x53c   : > { %v7720_v6 = vmax.f32 %v7636_v37, 0.0  ;;  %v7637_v38 = vadd.f32 %v10786_v9, %v12487_v50 }
 0x53d   : > { %7807 = vst.msk [vmem:[#allocation3 + $0x70] sm:$0xff] %vm7792_vm2, %v7722_v16  ;;  %v7723_v15 = vmax.f32 %v7639_v10, 0.0 }
 0x53e   : > { %v7898_v27 = vld [vmem:[#allocation3 + $0x54] sm:$0xff]  ;;  %7805 = vst.msk [vmem:[#allocation3 + $0x60] sm:$0xff] %vm7792_vm2, %v7720_v6  ;;  %v7721_v21 = vmax.f32 %v7637_v38, 0.0  ;;  %v10701_v42 = vpop.f32.mrb[20].mxu1 }
 0x53f   : > { %v8081_v44 = vld [vmem:[#allocation4] sm:$0x1]  ;;  %v8093_v28 = vld [vmem:[#allocation4 + $0x1] sm:$0x1]  ;;  %v8130_v49 = vld [vmem:[#allocation4 + $0x2] sm:$0x1]  ;;  %v7902_v46 = vmax.f32 %v7894_v40, %v7898_v27  ;;  %v10787_v22 = vadd.f32 %v10701_v42, %v12291_v52 }
 0x540   : > { %7808 = vst.msk [vmem:[#allocation3 + $0x78] sm:$0xff] %vm7792_vm2, %v7723_v15  ;;  %v8105_v29 = vmax.f32 %v8081_v44, %v8093_v28  ;;  %v8142_v36 = vld [vmem:[#allocation4 + $0x3] sm:$0x1]  ;;  %v8178_v0 = vld [vmem:[#allocation4 + $0x4] sm:$0x1]  ;;  %7806 = vst.msk [vmem:[#allocation3 + $0x68] sm:$0xff] %vm7792_vm2, %v7721_v21 }
 0x541   : > { %v8190_v30 = vld [vmem:[#allocation4 + $0x5] sm:$0x1]  ;;  %v8154_v17 = vmax.f32 %v8130_v49, %v8142_v36  ;;  %v8226_v18 = vld [vmem:[#allocation4 + $0x6] sm:$0x1]  ;;  %v8238_v56 = vld [vmem:[#allocation4 + $0x7] sm:$0x1]  ;;  %v7642_v10 = vadd.f32 %v10787_v22, %v12487_v50 }
 0x542   : > { %v8202_v55 = vmax.f32 %v8178_v0, %v8190_v30  ;;  %v8274_v19 = vld [vmem:[#allocation4 + $0x8] sm:$0x1]  ;;  %7907 = vst.msk [vmem:[#allocation4 + $0x20] sm:$0xff] %vm7792_vm2, %v7902_v46  ;;  %v8250_v7 = vmax.f32 %v8226_v18, %v8238_v56  ;;  %v8286_v20 = vld [vmem:[#allocation4 + $0x9] sm:$0x1]  ;;  %v7895_v30 = vld [vmem:[#allocation3 + $0x40] sm:$0xff] }
 0x543   : > { %8118 = vst.msk [vmem:[#allocation5] sm:$0x1] %vm8117_vm4, %v8105_v29  ;;  %v8322_v8 = vld [vmem:[#allocation4 + $0xa] sm:$0x1]  ;;  %v8334_v5 = vld [vmem:[#allocation4 + $0xb] sm:$0x1]  ;;  %v8298_v52 = vmax.f32 %v8274_v19, %v8286_v20 }
 0x544   : > { %8166 = vst.msk [vmem:[#allocation5 + $0x1] sm:$0x1] %vm8117_vm4, %v8154_v17  ;;  %8214 = vst.msk [vmem:[#allocation5 + $0x2] sm:$0x1] %vm8117_vm4, %v8202_v55  ;;  %v8346_v43 = vmax.f32 %v8322_v8, %v8334_v5  ;;  %v8370_v37 = vld [vmem:[#allocation4 + $0xc] sm:$0x1] }
 0x545   : > { %v8382_v9 = vld [vmem:[#allocation4 + $0xd] sm:$0x1]  ;;  %v8418_v16 = vld [vmem:[#allocation4 + $0xe] sm:$0x1]  ;;  %8262 = vst.msk [vmem:[#allocation5 + $0x3] sm:$0x1] %vm8117_vm4, %v8250_v7 }
 0x546   : > { %v8394_v6 = vmax.f32 %v8370_v37, %v8382_v9  ;;  %v8430_v38 = vld [vmem:[#allocation4 + $0xf] sm:$0x1]  ;;  %v8466_v15 = vld [vmem:[#allocation4 + $0x10] sm:$0x1]  ;;  %v8478_v40 = vld [vmem:[#allocation4 + $0x11] sm:$0x1] }
 0x547   : > { %8310 = vst.msk [vmem:[#allocation5 + $0x4] sm:$0x1] %vm8117_vm4, %v8298_v52  ;;  %8358 = vst.msk [vmem:[#allocation5 + $0x5] sm:$0x1] %vm8117_vm4, %v8346_v43  ;;  %v8442_v27 = vmax.f32 %v8418_v16, %v8430_v38  ;;  %v8490_v21 = vmax.f32 %v8466_v15, %v8478_v40  ;;  %v8514_v42 = vld [vmem:[#allocation4 + $0x12] sm:$0x1] }
 0x548   : > { %v8526_v44 = vld [vmem:[#allocation4 + $0x13] sm:$0x1]  ;;  %v8562_v28 = vld [vmem:[#allocation4 + $0x14] sm:$0x1]  ;;  %8406 = vst.msk [vmem:[#allocation5 + $0x6] sm:$0x1] %vm8117_vm4, %v8394_v6 }
 0x549   : > { %v8538_v49 = vmax.f32 %v8514_v42, %v8526_v44  ;;  %v8574_v46 = vld [vmem:[#allocation4 + $0x15] sm:$0x1]  ;;  %v8610_v22 = vld [vmem:[#allocation4 + $0x16] sm:$0x1]  ;;  %v8622_v29 = vld [vmem:[#allocation4 + $0x17] sm:$0x1] }
 0x54a   : > { %8454 = vst.msk [vmem:[#allocation5 + $0x7] sm:$0x1] %vm8117_vm4, %v8442_v27  ;;  %8502 = vst.msk [vmem:[#allocation5 + $0x8] sm:$0x1] %vm8117_vm4, %v8490_v21  ;;  %v8586_v36 = vmax.f32 %v8562_v28, %v8574_v46  ;;  %v8634_v0 = vmax.f32 %v8610_v22, %v8622_v29  ;;  %v7899_v17 = vld [vmem:[#allocation3 + $0x5c] sm:$0xff]  ;;  %v7726_v55 = vmax.f32 %v7642_v10, 0.0 }
 0x54b   : > { %v7262_v18 = vpop.f32.mrb[21].mxu1  ;;  %8550 = vst.msk [vmem:[#allocation5 + $0x9] sm:$0x1] %vm8117_vm4, %v8538_v49  ;;  %v8082_v56 = vld [vmem:[#allocation4 + $0x20] sm:$0x1]  ;;  %v7903_v20 = vmax.f32 %v7895_v30, %v7899_v17  ;;  %v7896_v40 = vld [vmem:[#allocation3 + $0x48] sm:$0xff] }
 0x54c   : > { %v8094_v19 = vld [vmem:[#allocation4 + $0x21] sm:$0x1]  ;;  %v8131_v7 = vld [vmem:[#allocation4 + $0x22] sm:$0x1]  ;;  %v10788_v8 = vadd.f32 %v7262_v18, %v12294_v39  ;;  %8598 = vst.msk [vmem:[#allocation5 + $0xa] sm:$0x1] %vm8117_vm4, %v8586_v36 }
 0x54d   : > { %8646 = vst.msk [vmem:[#allocation5 + $0xb] sm:$0x1] %vm8117_vm4, %v8634_v0  ;;  %v8106_v5 = vmax.f32 %v8082_v56, %v8094_v19  ;;  %v8143_v52 = vld [vmem:[#allocation4 + $0x23] sm:$0x1]  ;;  %v8179_v43 = vld [vmem:[#allocation4 + $0x24] sm:$0x1] }
 0x54e   : > { %v8191_v37 = vld [vmem:[#allocation4 + $0x25] sm:$0x1]  ;;  %7811 = vst.msk [vmem:[#allocation3 + $0x90] sm:$0xff] %vm7792_vm2, %v7726_v55  ;;  %v8155_v9 = vmax.f32 %v8131_v7, %v8143_v52  ;;  %v8227_v10 = vld [vmem:[#allocation4 + $0x26] sm:$0x1]  ;;  %7908 = vst.msk [vmem:[#allocation4 + $0x28] sm:$0xff] %vm7792_vm2, %v7903_v20  ;;  %v7640_v38 = vadd.f32 %v10788_v8, %v12487_v50 }
 0x54f   : > { %v8203_v16 = vmax.f32 %v8179_v43, %v8191_v37  ;;  %v8239_v6 = vld [vmem:[#allocation4 + $0x27] sm:$0x1]  ;;  %v10702_v39 = vpop.f32.mrb[22].mxu1  ;;  %8119 = vst.msk [vmem:[#allocation5 + $0x10] sm:$0x1] %vm8117_vm4, %v8106_v5 }
 0x550   : > { %v8251_v15 = vmax.f32 %v8227_v10, %v8239_v6  ;;  %v7900_v27 = vld [vmem:[#allocation3 + $0x64] sm:$0xff]  ;;  %v10789_v21 = vadd.f32 %v10702_v39, %v12297_v53  ;;  %v7265_v42 = vpop.f32.mrb[23].mxu1  ;;  %8167 = vst.msk [vmem:[#allocation5 + $0x11] sm:$0x1] %vm8117_vm4, %v8155_v9  ;;  %v7724_v28 = vmax.f32 %v7640_v38, 0.0 }
 0x551   : > { %8215 = vst.msk [vmem:[#allocation5 + $0x12] sm:$0x1] %vm8117_vm4, %v8203_v16  ;;  %v7904_v44 = vmax.f32 %v7896_v40, %v7900_v27  ;;  %v10790_v49 = vadd.f32 %v7265_v42, %v12299_v54  ;;  %v10705_v46 = vpop.f32.mrb[24].mxu1  ;;  %v8658_v53 = vld [vmem:[#allocation5] sm:$0xff] }
 0x552   : > { %8263 = vst.msk [vmem:[#allocation5 + $0x13] sm:$0x1] %vm8117_vm4, %v8251_v15  ;;  %v7643_v22 = vadd.f32 %v10789_v21, %v12487_v50  ;;  %v10791_v29 = vadd.f32 %v10705_v46, %v12301_v60  ;;  %v7278_v36 = vpop.f32.mrb[25].mxu1  ;;  %v9414_v17 = vpack.c.bf16 %v8658_v53, %v8658_v53 }
 0x553   : > { %7909 = vst.msk [vmem:[#allocation4 + $0x30] sm:$0xff] %vm7792_vm2, %v7904_v44  ;;  %7809 = vst.msk [vmem:[#allocation3 + $0x80] sm:$0xff] %vm7792_vm2, %v7724_v28  ;;  %v7641_v54 = vadd.f32 %v10790_v49, %v12487_v50  ;;  %v10792_v0 = vadd.f32 %v7278_v36, %v12304_v61  ;;  %v10706_v30 = vpop.f32.mrb[26].mxu1 }
 0x554   : > { %v7727_v55 = vmax.f32 %v7643_v22, 0.0  ;;  %v7646_v60 = vadd.f32 %v10791_v29, %v12487_v50  ;;  %v10793_v18 = vadd.f32 %v10706_v30, %v12307_v62  ;;  %v7281_v56 = vpop.f32.mrb[27].mxu1  ;;  %v8659_v19 = vld [vmem:[#allocation5 + $0x8] sm:$0xf]  ;;  %8778 = vst.msk [vmem:[%s12571_s28] sm:$0xf] %vm7892_vm3, %v9414_v17 }
 0x555   : > { %v7725_v7 = vmax.f32 %v7641_v54, 0.0  ;;  %v7644_v20 = vadd.f32 %v10792_v0, %v12487_v50  ;;  %v10794_v8 = vadd.f32 %v7281_v56, %v12309_v63  ;;  %v10709_v5 = vpop.f32.mrb[28].mxu1  ;;  %v9415_v52 = vpack.c.bf16 %v8659_v19, %v8659_v19  ;;  %v8275_v61 = vld [vmem:[#allocation4 + $0x28] sm:$0x1]  ;;  %v8287_v43 = vld [vmem:[#allocation4 + $0x29] sm:$0x1] }
 0x556   : > { %v8323_v37 = vld [vmem:[#allocation4 + $0x2a] sm:$0x1]  ;;  %7812 = vst.msk [vmem:[#allocation3 + $0x98] sm:$0xff] %vm7792_vm2, %v7727_v55  ;;  %v7647_v62 = vadd.f32 %v10793_v18, %v12487_v50  ;;  %v10795_v9 = vadd.f32 %v10709_v5, %v12311_v11  ;;  %v8299_v16 = vmax.f32 %v8275_v61, %v8287_v43  ;;  %v8335_v10 = vld [vmem:[#allocation4 + $0x2b] sm:$0x1]  ;;  %v7730_v21 = vmax.f32 %v7646_v60, 0.0 }
 0x557   : > { %v8371_v6 = vld [vmem:[#allocation4 + $0x2c] sm:$0x1]  ;;  %v8383_v38 = vld [vmem:[#allocation4 + $0x2d] sm:$0x1]  ;;  %7810 = vst.msk [vmem:[#allocation3 + $0x88] sm:$0xff] %vm7792_vm2, %v7725_v7  ;;  %v7645_v63 = vadd.f32 %v10794_v8, %v12487_v50  ;;  %v8347_v39 = vmax.f32 %v8323_v37, %v8335_v10  ;;  %v7728_v42 = vmax.f32 %v7644_v20, 0.0 }
 0x558   : > { %8780 = vst.msk [vmem:[%s12571_s28 + $0x4] sm:$0x3] %vm8779_vm5, %v9415_v52  ;;  %v8395_v15 = vmax.f32 %v8371_v6, %v8383_v38  ;;  %v8419_v40 = vld [vmem:[#allocation4 + $0x2e] sm:$0x1]  ;;  %v8431_v27 = vld [vmem:[#allocation4 + $0x2f] sm:$0x1]  ;;  %v7650_v49 = vadd.f32 %v10795_v9, %v12487_v50 }
 0x559   : > { %8311 = vst.msk [vmem:[#allocation5 + $0x14] sm:$0x1] %vm8117_vm4, %v8299_v16  ;;  %v8443_v44 = vmax.f32 %v8419_v40, %v8431_v27  ;;  %v7731_v11 = vmax.f32 %v7647_v62, 0.0  ;;  %v7729_v28 = vmax.f32 %v7645_v63, 0.0  ;;  %v7294_v46 = vpop.f32.mrb[29].mxu1  ;;  %v7912_v20 = vld [vmem:[#allocation3 + $0x78] sm:$0xff] }
 0x55a   : > { %8359 = vst.msk [vmem:[#allocation5 + $0x15] sm:$0x1] %vm8117_vm4, %v8347_v39  ;;  %8407 = vst.msk [vmem:[#allocation5 + $0x16] sm:$0x1] %vm8117_vm4, %v8395_v15  ;;  %v8467_v22 = vld [vmem:[#allocation4 + $0x30] sm:$0x1]  ;;  %v10796_v53 = vadd.f32 %v7294_v46, %v12314_v12 }
 0x55b   : > { %v8479_v29 = vld [vmem:[#allocation4 + $0x31] sm:$0x1]  ;;  %v8515_v36 = vld [vmem:[#allocation4 + $0x32] sm:$0x1]  ;;  %7815 = vst.msk [vmem:[#allocation3 + $0xb0] sm:$0xff] %vm7792_vm2, %v7730_v21  ;;  %7813 = vst.msk [vmem:[#allocation3 + $0xa0] sm:$0xff] %vm7792_vm2, %v7728_v42 }
 0x55c   : > { %8455 = vst.msk [vmem:[#allocation5 + $0x17] sm:$0x1] %vm8117_vm4, %v8443_v44  ;;  %v8491_v54 = vmax.f32 %v8467_v22, %v8479_v29  ;;  %v8527_v0 = vld [vmem:[#allocation4 + $0x33] sm:$0x1]  ;;  %v8563_v30 = vld [vmem:[#allocation4 + $0x34] sm:$0x1]  ;;  %v7648_v7 = vadd.f32 %v10796_v53, %v12487_v50 }
 0x55d   : > { %v8575_v17 = vld [vmem:[#allocation4 + $0x35] sm:$0x1]  ;;  %7816 = vst.msk [vmem:[#allocation3 + $0xb8] sm:$0xff] %vm7792_vm2, %v7731_v11  ;;  %7814 = vst.msk [vmem:[#allocation3 + $0xa8] sm:$0xff] %vm7792_vm2, %v7729_v28  ;;  %v8539_v55 = vmax.f32 %v8515_v36, %v8527_v0  ;;  %v8611_v18 = vld [vmem:[#allocation4 + $0x36] sm:$0x1] }
 0x55e   : > { %v8587_v60 = vmax.f32 %v8563_v30, %v8575_v17  ;;  %v8623_v56 = vld [vmem:[#allocation4 + $0x37] sm:$0x1]  ;;  %v7734_v19 = vmax.f32 %v7650_v49, 0.0  ;;  %8503 = vst.msk [vmem:[#allocation5 + $0x18] sm:$0x1] %vm8117_vm4, %v8491_v54  ;;  %v10710_v5 = vpop.f32.mrb[30].mxu1 }
 0x55f   : > { %v8635_v12 = vmax.f32 %v8611_v18, %v8623_v56  ;;  %v7916_v8 = vld [vmem:[#allocation3 + $0x94] sm:$0xff]  ;;  %8551 = vst.msk [vmem:[#allocation5 + $0x19] sm:$0x1] %vm8117_vm4, %v8539_v55  ;;  %v7915_v43 = vld [vmem:[#allocation3 + $0x8c] sm:$0xff]  ;;  %v7732_v37 = vmax.f32 %v7648_v7, 0.0  ;;  %v10797_v62 = vadd.f32 %v10710_v5, %v12317_v13  ;;  %v7297_v9 = vpop.f32.mrb[31].mxu1 }
 0x560   : > { %v7911_v52 = vld [vmem:[#allocation3 + $0x70] sm:$0xff]  ;;  %8599 = vst.msk [vmem:[#allocation5 + $0x1a] sm:$0x1] %vm8117_vm4, %v8587_v60  ;;  %v7920_v61 = vmax.f32 %v7912_v20, %v7916_v8  ;;  %v10798_v10 = vadd.f32 %v7297_v9, %v12319_v14  ;;  %v10713_v6 = vpop.f32.mrb[32].mxu1  ;;  %v7913_v38 = vld [vmem:[#allocation3 + $0x80] sm:$0xff] }
 0x561   : > { %7819 = vst.msk [vmem:[#allocation3 + $0xd0] sm:$0xff] %vm7792_vm2, %v7734_v19  ;;  %v7919_v16 = vmax.f32 %v7911_v52, %v7915_v43  ;;  %7817 = vst.msk [vmem:[#allocation3 + $0xc0] sm:$0xff] %vm7792_vm2, %v7732_v37  ;;  %v7651_v63 = vadd.f32 %v10797_v62, %v12487_v50  ;;  %v10799_v39 = vadd.f32 %v10713_v6, %v12321_v25  ;;  %v7310_v15 = vpop.f32.mrb[33].mxu1 }
 0x562   : > { %8647 = vst.msk [vmem:[#allocation5 + $0x1b] sm:$0x1] %vm8117_vm4, %v8635_v12  ;;  %v7917_v13 = vld [vmem:[#allocation3 + $0x9c] sm:$0xff]  ;;  %v7649_v40 = vadd.f32 %v10798_v10, %v12487_v50  ;;  %v10800_v27 = vadd.f32 %v7310_v15, %v12324_v26  ;;  %v10714_v21 = vpop.f32.mrb[34].mxu1 }
 0x563   : > { %7925 = vst.msk [vmem:[#allocation4 + $0x48] sm:$0xff] %vm7792_vm2, %v7920_v61  ;;  %7924 = vst.msk [vmem:[#allocation4 + $0x40] sm:$0xff] %vm7792_vm2, %v7919_v16  ;;  %v8660_v14 = vld [vmem:[#allocation5 + $0x10] sm:$0xff]  ;;  %v7921_v42 = vmax.f32 %v7913_v38, %v7917_v13  ;;  %v7735_v44 = vmax.f32 %v7651_v63, 0.0  ;;  %v7654_v11 = vadd.f32 %v10799_v39, %v12487_v50  ;;  %v7313_v28 = vpop.f32.mrb[35].mxu1  ;;  %v10801_v22 = vadd.f32 %v10714_v21, %v12327_v31 }
 0x564   : > { %v9416_v49 = vpack.c.bf16 %v8660_v14, %v8660_v14  ;;  %v7733_v46 = vmax.f32 %v7649_v40, 0.0  ;;  %v7652_v25 = vadd.f32 %v10800_v27, %v12487_v50  ;;  %v10717_v29 = vpop.f32.mrb[36].mxu1  ;;  %v10802_v36 = vadd.f32 %v7313_v28, %v12329_v32 }
 0x565   : > { %7926 = vst.msk [vmem:[#allocation4 + $0x50] sm:$0xff] %vm7792_vm2, %v7921_v42  ;;  %7820 = vst.msk [vmem:[#allocation3 + $0xd8] sm:$0xff] %vm7792_vm2, %v7735_v44  ;;  %v7738_v26 = vmax.f32 %v7654_v11, 0.0  ;;  %v10803_v53 = vadd.f32 %v10717_v29, %v12331_v45  ;;  %v7326_v54 = vpop.f32.mrb[37].mxu1  ;;  %v7655_v63 = vadd.f32 %v10801_v22, %v12487_v50  ;;  %v7929_v22 = vld [vmem:[#allocation3 + $0xb0] sm:$0xff] }
 0x566   : > { %8781 = vst.msk [vmem:[%s12571_s28 + $0x8] sm:$0xf] %vm7892_vm3, %v9416_v49  ;;  %v7736_v0 = vmax.f32 %v7652_v25, 0.0  ;;  %v10804_v30 = vadd.f32 %v7326_v54, %v12334_v47  ;;  %v10718_v31 = vpop.f32.mrb[38].mxu1  ;;  %v7653_v27 = vadd.f32 %v10802_v36, %v12487_v50  ;;  %v7930_v49 = vld [vmem:[#allocation3 + $0xb8] sm:$0xff] }
 0x567   : > { %7818 = vst.msk [vmem:[#allocation3 + $0xc8] sm:$0xff] %vm7792_vm2, %v7733_v46  ;;  %7823 = vst.msk [vmem:[#allocation3 + $0xf0] sm:$0xff] %vm7792_vm2, %v7738_v26  ;;  %v10805_v55 = vadd.f32 %v10718_v31, %v12337_v48  ;;  %v7329_v60 = vpop.f32.mrb[39].mxu1  ;;  %v7658_v21 = vadd.f32 %v10803_v53, %v12487_v50 }
 0x568   : > { %7821 = vst.msk [vmem:[#allocation3 + $0xe0] sm:$0xff] %vm7792_vm2, %v7736_v0  ;;  %v10806_v19 = vadd.f32 %v7329_v60, %v12339_v51  ;;  %v7656_v46 = vadd.f32 %v10804_v30, %v12487_v50  ;;  %v7739_v60 = vmax.f32 %v7655_v63, 0.0  ;;  %v7928_v30 = vld [vmem:[#allocation3 + $0xa8] sm:$0xff] }
 0x569   : > { %v8661_v17 = vld [vmem:[#allocation5 + $0x18] sm:$0xf]  ;;  %v7659_v25 = vadd.f32 %v10805_v55, %v12487_v50 }
 0x56a   : > { %v9417_v18 = vpack.c.bf16 %v8661_v17, %v8661_v17  ;;  %v8276_v32 = vld [vmem:[#allocation4 + $0x48] sm:$0x1]  ;;  %v8288_v56 = vld [vmem:[#allocation4 + $0x49] sm:$0x1]  ;;  %v8324_v45 = vld [vmem:[#allocation4 + $0x4a] sm:$0x1]  ;;  %v7657_v54 = vadd.f32 %v10806_v19, %v12487_v50 }
 0x56b   : > { %v8300_v7 = vmax.f32 %v8276_v32, %v8288_v56  ;;  %v8336_v20 = vld [vmem:[#allocation4 + $0x4b] sm:$0x1]  ;;  %v8372_v12 = vld [vmem:[#allocation4 + $0x4c] sm:$0x1]  ;;  %v8384_v47 = vld [vmem:[#allocation4 + $0x4d] sm:$0x1] }
 0x56c   : > { %8782 = vst.msk [vmem:[%s12571_s28 + $0xc] sm:$0x3] %vm8779_vm5, %v9417_v18  ;;  %v8348_v8 = vmax.f32 %v8324_v45, %v8336_v20  ;;  %v8396_v5 = vmax.f32 %v8372_v12, %v8384_v47  ;;  %v8420_v52 = vld [vmem:[#allocation4 + $0x4e] sm:$0x1]  ;;  %v8432_v61 = vld [vmem:[#allocation4 + $0x4f] sm:$0x1] }
 0x56d   : > { %v8083_v48 = vld [vmem:[#allocation4 + $0x40] sm:$0x1]  ;;  %8312 = vst.msk [vmem:[#allocation5 + $0x24] sm:$0x1] %vm8117_vm4, %v8300_v7  ;;  %v8444_v43 = vmax.f32 %v8420_v52, %v8432_v61  ;;  %v8095_v37 = vld [vmem:[#allocation4 + $0x41] sm:$0x1] }
 0x56e   : > { %v8132_v62 = vld [vmem:[#allocation4 + $0x42] sm:$0x1]  ;;  %v8144_v9 = vld [vmem:[#allocation4 + $0x43] sm:$0x1]  ;;  %8360 = vst.msk [vmem:[#allocation5 + $0x25] sm:$0x1] %vm8117_vm4, %v8348_v8  ;;  %v8107_v51 = vmax.f32 %v8083_v48, %v8095_v37 }
 0x56f   : > { %8408 = vst.msk [vmem:[#allocation5 + $0x26] sm:$0x1] %vm8117_vm4, %v8396_v5  ;;  %v8156_v16 = vmax.f32 %v8132_v62, %v8144_v9  ;;  %v8180_v10 = vld [vmem:[#allocation4 + $0x44] sm:$0x1]  ;;  %v8192_v6 = vld [vmem:[#allocation4 + $0x45] sm:$0x1] }
 0x570   : > { %v8228_v38 = vld [vmem:[#allocation4 + $0x46] sm:$0x1]  ;;  %8456 = vst.msk [vmem:[#allocation5 + $0x27] sm:$0x1] %vm8117_vm4, %v8444_v43  ;;  %v8204_v39 = vmax.f32 %v8180_v10, %v8192_v6  ;;  %v8240_v15 = vld [vmem:[#allocation4 + $0x47] sm:$0x1] }
 0x571   : > { %v8468_v13 = vld [vmem:[#allocation4 + $0x50] sm:$0x1]  ;;  %v8480_v40 = vld [vmem:[#allocation4 + $0x51] sm:$0x1]  ;;  %8120 = vst.msk [vmem:[#allocation5 + $0x20] sm:$0x1] %vm8117_vm4, %v8107_v51  ;;  %v8252_v14 = vmax.f32 %v8228_v38, %v8240_v15 }
 0x572   : > { %8168 = vst.msk [vmem:[#allocation5 + $0x21] sm:$0x1] %vm8117_vm4, %v8156_v16  ;;  %v8492_v42 = vmax.f32 %v8468_v13, %v8480_v40  ;;  %v8516_v44 = vld [vmem:[#allocation4 + $0x52] sm:$0x1]  ;;  %v8528_v11 = vld [vmem:[#allocation4 + $0x53] sm:$0x1] }
 0x573   : > { %v8564_v28 = vld [vmem:[#allocation4 + $0x54] sm:$0x1]  ;;  %8216 = vst.msk [vmem:[#allocation5 + $0x22] sm:$0x1] %vm8117_vm4, %v8204_v39  ;;  %v8540_v29 = vmax.f32 %v8516_v44, %v8528_v11  ;;  %v8576_v26 = vld [vmem:[#allocation4 + $0x55] sm:$0x1] }
 0x574   : > { %v8612_v36 = vld [vmem:[#allocation4 + $0x56] sm:$0x1]  ;;  %v8624_v53 = vld [vmem:[#allocation4 + $0x57] sm:$0x1]  ;;  %8264 = vst.msk [vmem:[#allocation5 + $0x23] sm:$0x1] %vm8117_vm4, %v8252_v14  ;;  %v8588_v0 = vmax.f32 %v8564_v28, %v8576_v26 }
 0x575   : > { %8504 = vst.msk [vmem:[#allocation5 + $0x28] sm:$0x1] %vm8117_vm4, %v8492_v42  ;;  %v8636_v31 = vmax.f32 %v8612_v36, %v8624_v53  ;;  %v7934_v17 = vld [vmem:[#allocation3 + $0xd4] sm:$0xff]  ;;  %8552 = vst.msk [vmem:[#allocation5 + $0x29] sm:$0x1] %vm8117_vm4, %v8540_v29  ;;  %v7932_v18 = vld [vmem:[#allocation3 + $0xc4] sm:$0xff] }
 0x576   : > { %v7938_v55 = vmax.f32 %v7930_v49, %v7934_v17  ;;  %v7933_v32 = vld [vmem:[#allocation3 + $0xcc] sm:$0xff]  ;;  %v7737_v56 = vmax.f32 %v7653_v27, 0.0  ;;  %v7742_v45 = vmax.f32 %v7658_v21, 0.0  ;;  %v10721_v7 = vpop.f32.mrb[40].mxu1  ;;  %8600 = vst.msk [vmem:[#allocation5 + $0x2a] sm:$0x1] %vm8117_vm4, %v8588_v0  ;;  %v7936_v19 = vmax.f32 %v7928_v30, %v7932_v18 }
 0x577   : > { %8648 = vst.msk [vmem:[#allocation5 + $0x2b] sm:$0x1] %vm8117_vm4, %v8636_v31  ;;  %v7937_v20 = vmax.f32 %v7929_v22, %v7933_v32  ;;  %v7740_v12 = vmax.f32 %v7656_v46, 0.0  ;;  %v7743_v47 = vmax.f32 %v7659_v25, 0.0  ;;  %v7342_v8 = vpop.f32.mrb[41].mxu1  ;;  %v7741_v5 = vmax.f32 %v7657_v54, 0.0 }
 0x578   : > { %7824 = vst.msk [vmem:[#allocation3 + $0xf8] sm:$0xff] %vm7792_vm2, %v7739_v60  ;;  %7943 = vst.msk [vmem:[#allocation4 + $0x70] sm:$0xff] %vm7792_vm2, %v7938_v55  ;;  %v10807_v52 = vadd.f32 %v10721_v7, %v12341_v1  ;;  %v10808_v61 = vadd.f32 %v7342_v8, %v12344_v2  ;;  %v10722_v48 = vpop.f32.mrb[42].mxu1 }
 0x579   : > { %7822 = vst.msk [vmem:[#allocation3 + $0xe8] sm:$0xff] %vm7792_vm2, %v7737_v56  ;;  %7827 = vst.msk [vmem:[#allocation3 + $0x110] sm:$0xff] %vm7792_vm2, %v7742_v45  ;;  %v10809_v43 = vadd.f32 %v10722_v48, %v12347_v3  ;;  %v7345_v37 = vpop.f32.mrb[43].mxu1 }
 0x57a   : > { %7941 = vst.msk [vmem:[#allocation4 + $0x60] sm:$0xff] %vm7792_vm2, %v7936_v19  ;;  %7942 = vst.msk [vmem:[#allocation4 + $0x68] sm:$0xff] %vm7792_vm2, %v7937_v20  ;;  %v7662_v62 = vadd.f32 %v10807_v52, %v12487_v50  ;;  %v7660_v1 = vadd.f32 %v10808_v61, %v12487_v50  ;;  %v10810_v2 = vadd.f32 %v7345_v37, %v12349_v4  ;;  %v10725_v9 = vpop.f32.mrb[44].mxu1 }
 0x57b   : > { %7825 = vst.msk [vmem:[#allocation3 + $0x100] sm:$0xff] %vm7792_vm2, %v7740_v12  ;;  %7828 = vst.msk [vmem:[#allocation3 + $0x118] sm:$0xff] %vm7792_vm2, %v7743_v47  ;;  %v7663_v51 = vadd.f32 %v10809_v43, %v12487_v50  ;;  %v10811_v16 = vadd.f32 %v10725_v9, %v12351_v23  ;;  %v7358_v10 = vpop.f32.mrb[45].mxu1  ;;  %v8662_v6 = vld [vmem:[#allocation5 + $0x20] sm:$0xff] }
 0x57c   : > { %7826 = vst.msk [vmem:[#allocation3 + $0x108] sm:$0xff] %vm7792_vm2, %v7741_v5  ;;  %v7746_v38 = vmax.f32 %v7662_v62, 0.0  ;;  %v7744_v63 = vmax.f32 %v7660_v1, 0.0  ;;  %v7661_v3 = vadd.f32 %v10810_v2, %v12487_v50  ;;  %v10812_v39 = vadd.f32 %v7358_v10, %v12354_v24  ;;  %v10726_v15 = vpop.f32.mrb[46].mxu1  ;;  %v7947_v1 = vld [vmem:[#allocation3 + $0xf0] sm:$0xff]  ;;  %v7945_v9 = vld [vmem:[#allocation3 + $0xe0] sm:$0xff] }
 0x57d   : > { %v9418_v13 = vpack.c.bf16 %v8662_v6, %v8662_v6  ;;  %v7747_v40 = vmax.f32 %v7663_v51, 0.0  ;;  %v10813_v27 = vadd.f32 %v10726_v15, %v12357_v33  ;;  %v7361_v4 = vpop.f32.mrb[47].mxu1  ;;  %v7666_v18 = vadd.f32 %v10811_v16, %v12487_v50 }
 0x57e   : > { %v8663_v21 = vld [vmem:[#allocation5 + $0x28] sm:$0xf]  ;;  %7831 = vst.msk [vmem:[#allocation3 + $0x130] sm:$0xff] %vm7792_vm2, %v7746_v38  ;;  %7829 = vst.msk [vmem:[#allocation3 + $0x120] sm:$0xff] %vm7792_vm2, %v7744_v63  ;;  %v7745_v23 = vmax.f32 %v7661_v3, 0.0  ;;  %v10814_v14 = vadd.f32 %v7361_v4, %v12359_v34  ;;  %v7664_v32 = vadd.f32 %v10812_v39, %v12487_v50 }
 0x57f   : > { %8783 = vst.msk [vmem:[%s12571_s28 + $0x10] sm:$0xf] %vm7892_vm3, %v9418_v13  ;;  %v9419_v42 = vpack.c.bf16 %v8663_v21, %v8663_v21  ;;  %v8469_v44 = vld [vmem:[#allocation4 + $0x70] sm:$0x1]  ;;  %v8481_v24 = vld [vmem:[#allocation4 + $0x71] sm:$0x1]  ;;  %v7667_v20 = vadd.f32 %v10813_v27, %v12487_v50 }
 0x580   : > { %v8517_v11 = vld [vmem:[#allocation4 + $0x72] sm:$0x1]  ;;  %7832 = vst.msk [vmem:[#allocation3 + $0x138] sm:$0xff] %vm7792_vm2, %v7747_v40  ;;  %v8493_v28 = vmax.f32 %v8469_v44, %v8481_v24  ;;  %v8529_v33 = vld [vmem:[#allocation4 + $0x73] sm:$0x1]  ;;  %7830 = vst.msk [vmem:[#allocation3 + $0x128] sm:$0xff] %vm7792_vm2, %v7745_v23  ;;  %v7665_v12 = vadd.f32 %v10814_v14, %v12487_v50 }
 0x581   : > { %v8565_v49 = vld [vmem:[#allocation4 + $0x74] sm:$0x1]  ;;  %v8577_v46 = vld [vmem:[#allocation4 + $0x75] sm:$0x1]  ;;  %8784 = vst.msk [vmem:[%s12571_s28 + $0x14] sm:$0x3] %vm8779_vm5, %v9419_v42  ;;  %v8541_v25 = vmax.f32 %v8517_v11, %v8529_v33 }
 0x582   : > { %v8589_v22 = vmax.f32 %v8565_v49, %v8577_v46  ;;  %v8613_v29 = vld [vmem:[#allocation4 + $0x76] sm:$0x1]  ;;  %v8625_v34 = vld [vmem:[#allocation4 + $0x77] sm:$0x1]  ;;  %v8084_v26 = vld [vmem:[#allocation4 + $0x60] sm:$0x1] }
 0x583   : > { %8505 = vst.msk [vmem:[#allocation5 + $0x38] sm:$0x1] %vm8117_vm4, %v8493_v28  ;;  %v8637_v36 = vmax.f32 %v8613_v29, %v8625_v34  ;;  %v8096_v53 = vld [vmem:[#allocation4 + $0x61] sm:$0x1]  ;;  %v8133_v54 = vld [vmem:[#allocation4 + $0x62] sm:$0x1] }
 0x584   : > { %v8145_v0 = vld [vmem:[#allocation4 + $0x63] sm:$0x1]  ;;  %8553 = vst.msk [vmem:[#allocation5 + $0x39] sm:$0x1] %vm8117_vm4, %v8541_v25  ;;  %8601 = vst.msk [vmem:[#allocation5 + $0x3a] sm:$0x1] %vm8117_vm4, %v8589_v22  ;;  %v8108_v31 = vmax.f32 %v8084_v26, %v8096_v53 }
 0x585   : > { %v8157_v17 = vmax.f32 %v8133_v54, %v8145_v0  ;;  %v8181_v60 = vld [vmem:[#allocation4 + $0x64] sm:$0x1]  ;;  %v8193_v30 = vld [vmem:[#allocation4 + $0x65] sm:$0x1]  ;;  %v8229_v55 = vld [vmem:[#allocation4 + $0x66] sm:$0x1] }
 0x586   : > { %8649 = vst.msk [vmem:[#allocation5 + $0x3b] sm:$0x1] %vm8117_vm4, %v8637_v36  ;;  %v8205_v56 = vmax.f32 %v8181_v60, %v8193_v30  ;;  %v8241_v45 = vld [vmem:[#allocation4 + $0x67] sm:$0x1]  ;;  %v8277_v7 = vld [vmem:[#allocation4 + $0x68] sm:$0x1] }
 0x587   : > { %v8289_v19 = vld [vmem:[#allocation4 + $0x69] sm:$0x1]  ;;  %8121 = vst.msk [vmem:[#allocation5 + $0x30] sm:$0x1] %vm8117_vm4, %v8108_v31  ;;  %8169 = vst.msk [vmem:[#allocation5 + $0x31] sm:$0x1] %vm8117_vm4, %v8157_v17  ;;  %v8253_v47 = vmax.f32 %v8229_v55, %v8241_v45 }
 0x588   : > { %v8301_v8 = vmax.f32 %v8277_v7, %v8289_v19  ;;  %v8325_v5 = vld [vmem:[#allocation4 + $0x6a] sm:$0x1]  ;;  %v8337_v52 = vld [vmem:[#allocation4 + $0x6b] sm:$0x1]  ;;  %v8373_v61 = vld [vmem:[#allocation4 + $0x6c] sm:$0x1] }
 0x589   : > { %8217 = vst.msk [vmem:[#allocation5 + $0x32] sm:$0x1] %vm8117_vm4, %v8205_v56  ;;  %v8349_v48 = vmax.f32 %v8325_v5, %v8337_v52  ;;  %v8385_v43 = vld [vmem:[#allocation4 + $0x6d] sm:$0x1]  ;;  %v8421_v37 = vld [vmem:[#allocation4 + $0x6e] sm:$0x1] }
 0x58a   : > { %v8433_v62 = vld [vmem:[#allocation4 + $0x6f] sm:$0x1]  ;;  %8265 = vst.msk [vmem:[#allocation5 + $0x33] sm:$0x1] %vm8117_vm4, %v8253_v47  ;;  %8313 = vst.msk [vmem:[#allocation5 + $0x34] sm:$0x1] %vm8117_vm4, %v8301_v8  ;;  %v8397_v50 = vmax.f32 %v8373_v61, %v8385_v43 }
 0x58b   : > { %v8445_v2 = vmax.f32 %v8421_v37, %v8433_v62  ;;  %v7949_v51 = vld [vmem:[#allocation3 + $0xfc] sm:$0xff]  ;;  %v7750_v16 = vmax.f32 %v7666_v18, 0.0  ;;  %v7748_v10 = vmax.f32 %v7664_v32, 0.0  ;;  %8361 = vst.msk [vmem:[#allocation5 + $0x35] sm:$0x1] %vm8117_vm4, %v8349_v48  ;;  %v7946_v6 = vld [vmem:[#allocation3 + $0xe8] sm:$0xff] }
 0x58c   : > { %v7953_v38 = vmax.f32 %v7945_v9, %v7949_v51  ;;  %v7950_v63 = vld [vmem:[#allocation3 + $0x104] sm:$0xff]  ;;  %v7951_v3 = vld [vmem:[#allocation3 + $0x10c] sm:$0xff]  ;;  %v7751_v39 = vmax.f32 %v7667_v20, 0.0  ;;  %v7749_v15 = vmax.f32 %v7665_v12, 0.0  ;;  %v10729_v13 = vpop.f32.mrb[48].mxu1  ;;  %v7962_v40 = vld [vmem:[#allocation3 + $0x118] sm:$0xff] }
 0x58d   : > { %8409 = vst.msk [vmem:[#allocation5 + $0x36] sm:$0x1] %vm8117_vm4, %v8397_v50  ;;  %8457 = vst.msk [vmem:[#allocation5 + $0x37] sm:$0x1] %vm8117_vm4, %v8445_v2  ;;  %v7954_v27 = vmax.f32 %v7946_v6, %v7950_v63  ;;  %v7955_v4 = vmax.f32 %v7947_v1, %v7951_v3  ;;  %v7966_v21 = vld [vmem:[#allocation3 + $0x134] sm:$0xff]  ;;  %v10815_v23 = vadd.f32 %v10729_v13, %v12361_v57  ;;  %v7374_v14 = vpop.f32.mrb[49].mxu1 }
 0x58e   : > { %7835 = vst.msk [vmem:[#allocation3 + $0x150] sm:$0xff] %vm7792_vm2, %v7750_v16  ;;  %7833 = vst.msk [vmem:[#allocation3 + $0x140] sm:$0xff] %vm7792_vm2, %v7748_v10  ;;  %v7970_v42 = vmax.f32 %v7962_v40, %v7966_v21  ;;  %v10816_v44 = vadd.f32 %v7374_v14, %v12364_v58  ;;  %v10730_v24 = vpop.f32.mrb[50].mxu1  ;;  %v8665_v11 = vld [vmem:[#allocation5 + $0x38] sm:$0xf]  ;;  %v13033_v54 = vld [vmem:[#allocation10_spill] sm:$0xff] }
 0x58f   : > { %7958 = vst.msk [vmem:[#allocation4 + $0x80] sm:$0xff] %vm7792_vm2, %v7953_v38  ;;  %7836 = vst.msk [vmem:[#allocation3 + $0x158] sm:$0xff] %vm7792_vm2, %v7751_v39  ;;  %v12707_v57 = vld [vmem:[%s12996_s4] ss:$0 sm:$0xff]  ;;  %v10817_v33 = vadd.f32 %v10730_v24, %v12367_v59  ;;  %v7377_v49 = vpop.f32.mrb[51].mxu1  ;;  %v9421_v46 = vpack.c.bf16 %v8665_v11, %v8665_v11  ;;  %v13034_v17 = vld [vmem:[#allocation11_spill] sm:$0xff] }
 0x590   : > { %7834 = vst.msk [vmem:[#allocation3 + $0x148] sm:$0xff] %vm7792_vm2, %v7749_v15  ;;  %7959 = vst.msk [vmem:[#allocation4 + $0x88] sm:$0xff] %vm7792_vm2, %v7954_v27  ;;  %v7670_v28 = vadd.f32 %v12707_v57, %v10815_v23  ;;  %v7668_v58 = vadd.f32 %v12707_v57, %v10816_v44  ;;  %v10818_v25 = vadd.f32 %v7377_v49, %v12369_v41  ;;  %v10733_v22 = vpop.f32.mrb[52].mxu1  ;;  %v13035_v56 = vld [vmem:[#allocation12_spill] sm:$0xff] }
 0x591   : > { %7960 = vst.msk [vmem:[#allocation4 + $0x90] sm:$0xff] %vm7792_vm2, %v7955_v4  ;;  %7975 = vst.msk [vmem:[#allocation4 + $0xa0] sm:$0xff] %vm7792_vm2, %v7970_v42  ;;  %v7671_v34 = vadd.f32 %v12707_v57, %v10817_v33  ;;  %v12716_v26 = vadd.f32 %v10733_v22, %v12371_v35  ;;  %v7390_v36 = vpop.f32.mrb[53].mxu1  ;;  %v7963_v35 = vld [vmem:[#allocation3 + $0x120] sm:$0xff] }
 0x592   : > { %v7754_v29 = vmax.f32 %v7670_v28, 0.0  ;;  %8786 = vst.msk [vmem:[%s12571_s28 + $0x1c] sm:$0x3] %vm8779_vm5, %v9421_v46  ;;  %v7752_v53 = vmax.f32 %v7668_v58, 0.0  ;;  %v7669_v59 = vadd.f32 %v12707_v57, %v10818_v25  ;;  %v12722_v0 = vadd.f32 %v7390_v36, %v13033_v54  ;;  %v10734_v31 = vpop.f32.mrb[54].mxu1 }
 0x593   : > { %v7755_v41 = vmax.f32 %v7671_v34, 0.0  ;;  %v12726_v60 = vadd.f32 %v10734_v31, %v13034_v17  ;;  %v7393_v30 = vpop.f32.mrb[55].mxu1  ;;  %v7674_v34 = vadd.f32 %v12707_v57, %v12716_v26 }
 0x594   : > { %7839 = vst.msk [vmem:[#allocation3 + $0x170] sm:$0xff] %vm7792_vm2, %v7754_v29  ;;  %v8664_v55 = vld [vmem:[#allocation5 + $0x30] sm:$0xff]  ;;  %7837 = vst.msk [vmem:[#allocation3 + $0x160] sm:$0xff] %vm7792_vm2, %v7752_v53  ;;  %v7753_v32 = vmax.f32 %v7669_v59, 0.0  ;;  %v12730_v45 = vadd.f32 %v7393_v30, %v13035_v56  ;;  %v7672_v36 = vadd.f32 %v12707_v57, %v12722_v0 }
 0x595   : > { %v7967_v18 = vld [vmem:[#allocation3 + $0x13c] sm:$0xff]  ;;  %v9420_v7 = vpack.c.bf16 %v8664_v55, %v8664_v55  ;;  %7840 = vst.msk [vmem:[#allocation3 + $0x178] sm:$0xff] %vm7792_vm2, %v7755_v41  ;;  %v7675_v17 = vadd.f32 %v12707_v57, %v12726_v60  ;;  %v7964_v60 = vld [vmem:[#allocation3 + $0x128] sm:$0xff] }
 0x596   : > { %v8085_v19 = vld [vmem:[#allocation4 + $0x80] sm:$0x1]  ;;  %v8097_v20 = vld [vmem:[#allocation4 + $0x81] sm:$0x1]  ;;  %v8134_v12 = vld [vmem:[#allocation4 + $0x82] sm:$0x1]  ;;  %v7971_v47 = vmax.f32 %v7963_v35, %v7967_v18  ;;  %v7673_v30 = vadd.f32 %v12707_v57, %v12730_v45 }
 0x597   : > { %v8109_v8 = vmax.f32 %v8085_v19, %v8097_v20  ;;  %v8146_v5 = vld [vmem:[#allocation4 + $0x83] sm:$0x1]  ;;  %v8182_v52 = vld [vmem:[#allocation4 + $0x84] sm:$0x1]  ;;  %v8194_v61 = vld [vmem:[#allocation4 + $0x85] sm:$0x1] }
 0x598   : > { %7838 = vst.msk [vmem:[#allocation3 + $0x168] sm:$0xff] %vm7792_vm2, %v7753_v32  ;;  %v8158_v48 = vmax.f32 %v8134_v12, %v8146_v5  ;;  %v8206_v43 = vmax.f32 %v8182_v52, %v8194_v61  ;;  %v8230_v37 = vld [vmem:[#allocation4 + $0x86] sm:$0x1]  ;;  %v8242_v62 = vld [vmem:[#allocation4 + $0x87] sm:$0x1]  ;;  %7976 = vst.msk [vmem:[#allocation4 + $0xa8] sm:$0xff] %vm7792_vm2, %v7971_v47 }
 0x599   : > { %8785 = vst.msk [vmem:[%s12571_s28 + $0x18] sm:$0xf] %vm7892_vm3, %v9420_v7  ;;  %v8278_v1 = vld [vmem:[#allocation4 + $0x88] sm:$0x1]  ;;  %v8254_v50 = vmax.f32 %v8230_v37, %v8242_v62  ;;  %v8290_v2 = vld [vmem:[#allocation4 + $0x89] sm:$0x1] }
 0x59a   : > { %8122 = vst.msk [vmem:[#allocation5 + $0x40] sm:$0x1] %vm8117_vm4, %v8109_v8  ;;  %v8326_v9 = vld [vmem:[#allocation4 + $0x8a] sm:$0x1]  ;;  %v8338_v51 = vld [vmem:[#allocation4 + $0x8b] sm:$0x1]  ;;  %v8302_v16 = vmax.f32 %v8278_v1, %v8290_v2 }
 0x59b   : > { %8170 = vst.msk [vmem:[#allocation5 + $0x41] sm:$0x1] %vm8117_vm4, %v8158_v48  ;;  %8218 = vst.msk [vmem:[#allocation5 + $0x42] sm:$0x1] %vm8117_vm4, %v8206_v43  ;;  %v8350_v10 = vmax.f32 %v8326_v9, %v8338_v51  ;;  %v8374_v6 = vld [vmem:[#allocation4 + $0x8c] sm:$0x1] }
 0x59c   : > { %v8386_v38 = vld [vmem:[#allocation4 + $0x8d] sm:$0x1]  ;;  %v8422_v63 = vld [vmem:[#allocation4 + $0x8e] sm:$0x1]  ;;  %8266 = vst.msk [vmem:[#allocation5 + $0x43] sm:$0x1] %vm8117_vm4, %v8254_v50 }
 0x59d   : > { %v8398_v3 = vmax.f32 %v8374_v6, %v8386_v38  ;;  %v8434_v39 = vld [vmem:[#allocation4 + $0x8f] sm:$0x1]  ;;  %v8470_v15 = vld [vmem:[#allocation4 + $0x90] sm:$0x1]  ;;  %v8482_v13 = vld [vmem:[#allocation4 + $0x91] sm:$0x1] }
 0x59e   : > { %8314 = vst.msk [vmem:[#allocation5 + $0x44] sm:$0x1] %vm8117_vm4, %v8302_v16  ;;  %8362 = vst.msk [vmem:[#allocation5 + $0x45] sm:$0x1] %vm8117_vm4, %v8350_v10  ;;  %v8446_v40 = vmax.f32 %v8422_v63, %v8434_v39  ;;  %v8494_v27 = vmax.f32 %v8470_v15, %v8482_v13  ;;  %v8518_v4 = vld [vmem:[#allocation4 + $0x92] sm:$0x1] }
 0x59f   : > { %v8530_v21 = vld [vmem:[#allocation4 + $0x93] sm:$0x1]  ;;  %v8566_v23 = vld [vmem:[#allocation4 + $0x94] sm:$0x1]  ;;  %8410 = vst.msk [vmem:[#allocation5 + $0x46] sm:$0x1] %vm8117_vm4, %v8398_v3 }
 0x5a0   : > { %v8542_v14 = vmax.f32 %v8518_v4, %v8530_v21  ;;  %v8578_v42 = vld [vmem:[#allocation4 + $0x95] sm:$0x1]  ;;  %v8614_v44 = vld [vmem:[#allocation4 + $0x96] sm:$0x1]  ;;  %v8626_v24 = vld [vmem:[#allocation4 + $0x97] sm:$0x1] }
 0x5a1   : > { %8458 = vst.msk [vmem:[#allocation5 + $0x47] sm:$0x1] %vm8117_vm4, %v8446_v40  ;;  %8506 = vst.msk [vmem:[#allocation5 + $0x48] sm:$0x1] %vm8117_vm4, %v8494_v27  ;;  %v8590_v11 = vmax.f32 %v8566_v23, %v8578_v42  ;;  %v8638_v28 = vmax.f32 %v8614_v44, %v8626_v24  ;;  %v8086_v33 = vld [vmem:[#allocation4 + $0xa0] sm:$0x1] }
 0x5a2   : > { %v8098_v49 = vld [vmem:[#allocation4 + $0xa1] sm:$0x1]  ;;  %v8135_v46 = vld [vmem:[#allocation4 + $0xa2] sm:$0x1]  ;;  %8554 = vst.msk [vmem:[#allocation5 + $0x49] sm:$0x1] %vm8117_vm4, %v8542_v14 }
 0x5a3   : > { %v8110_v58 = vmax.f32 %v8086_v33, %v8098_v49  ;;  %v8147_v25 = vld [vmem:[#allocation4 + $0xa3] sm:$0x1]  ;;  %v8183_v22 = vld [vmem:[#allocation4 + $0xa4] sm:$0x1]  ;;  %v8195_v29 = vld [vmem:[#allocation4 + $0xa5] sm:$0x1] }
 0x5a4   : > { %8602 = vst.msk [vmem:[#allocation5 + $0x4a] sm:$0x1] %vm8117_vm4, %v8590_v11  ;;  %8650 = vst.msk [vmem:[#allocation5 + $0x4b] sm:$0x1] %vm8117_vm4, %v8638_v28  ;;  %v8159_v53 = vmax.f32 %v8135_v46, %v8147_v25  ;;  %v8207_v59 = vmax.f32 %v8183_v22, %v8195_v29  ;;  %v8231_v54 = vld [vmem:[#allocation4 + $0xa6] sm:$0x1] }
 0x5a5   : > { %v8243_v31 = vld [vmem:[#allocation4 + $0xa7] sm:$0x1]  ;;  %v8279_v41 = vld [vmem:[#allocation4 + $0xa8] sm:$0x1]  ;;  %8123 = vst.msk [vmem:[#allocation5 + $0x50] sm:$0x1] %vm8117_vm4, %v8110_v58 }
 0x5a6   : > { %v8255_v26 = vmax.f32 %v8231_v54, %v8243_v31  ;;  %v8291_v55 = vld [vmem:[#allocation4 + $0xa9] sm:$0x1]  ;;  %v8327_v0 = vld [vmem:[#allocation4 + $0xaa] sm:$0x1]  ;;  %v8339_v35 = vld [vmem:[#allocation4 + $0xab] sm:$0x1] }
 0x5a7   : > { %8171 = vst.msk [vmem:[#allocation5 + $0x51] sm:$0x1] %vm8117_vm4, %v8159_v53  ;;  %8219 = vst.msk [vmem:[#allocation5 + $0x52] sm:$0x1] %vm8117_vm4, %v8207_v59  ;;  %v8303_v18 = vmax.f32 %v8279_v41, %v8291_v55  ;;  %v8351_v32 = vmax.f32 %v8327_v0, %v8339_v35  ;;  %v8375_v56 = vld [vmem:[#allocation4 + $0xac] sm:$0x1] }
 0x5a8   : > { %v8387_v7 = vld [vmem:[#allocation4 + $0xad] sm:$0x1]  ;;  %v8423_v19 = vld [vmem:[#allocation4 + $0xae] sm:$0x1]  ;;  %8267 = vst.msk [vmem:[#allocation5 + $0x53] sm:$0x1] %vm8117_vm4, %v8255_v26 }
 0x5a9   : > { %v8399_v20 = vmax.f32 %v8375_v56, %v8387_v7  ;;  %v8435_v45 = vld [vmem:[#allocation4 + $0xaf] sm:$0x1]  ;;  %v7968_v12 = vld [vmem:[#allocation3 + $0x144] sm:$0xff]  ;;  %v7758_v47 = vmax.f32 %v7674_v34, 0.0  ;;  %v7756_v8 = vmax.f32 %v7672_v36, 0.0  ;;  %v7980_v52 = vld [vmem:[#allocation3 + $0x158] sm:$0xff] }
 0x5aa   : > { %8315 = vst.msk [vmem:[#allocation5 + $0x54] sm:$0x1] %vm8117_vm4, %v8303_v18  ;;  %8363 = vst.msk [vmem:[#allocation5 + $0x55] sm:$0x1] %vm8117_vm4, %v8351_v32  ;;  %v8447_v5 = vmax.f32 %v8423_v19, %v8435_v45  ;;  %v7972_v61 = vmax.f32 %v7964_v60, %v7968_v12  ;;  %v7984_v48 = vld [vmem:[#allocation3 + $0x174] sm:$0xff]  ;;  %v7759_v43 = vmax.f32 %v7675_v17, 0.0 }
 0x5ab   : > { %v7757_v37 = vmax.f32 %v7673_v30, 0.0  ;;  %v8666_v62 = vld [vmem:[#allocation5 + $0x40] sm:$0xff]  ;;  %v7979_v1 = vld [vmem:[#allocation3 + $0x150] sm:$0xff]  ;;  %8411 = vst.msk [vmem:[#allocation5 + $0x56] sm:$0x1] %vm8117_vm4, %v8399_v20  ;;  %v7988_v50 = vmax.f32 %v7980_v52, %v7984_v48  ;;  %v10737_v9 = vpop.f32.mrb[56].mxu1 }
 0x5ac   : > { %v7983_v2 = vld [vmem:[#allocation3 + $0x16c] sm:$0xff]  ;;  %7843 = vst.msk [vmem:[#allocation3 + $0x190] sm:$0xff] %vm7792_vm2, %v7758_v47  ;;  %7841 = vst.msk [vmem:[#allocation3 + $0x180] sm:$0xff] %vm7792_vm2, %v7756_v8  ;;  %v9422_v51 = vpack.c.bf16 %v8666_v62, %v8666_v62  ;;  %v13036_v10 = vld [vmem:[#allocation13_spill] sm:$0xff]  ;;  %v7406_v38 = vpop.f32.mrb[57].mxu1 }
 0x5ad   : > { %8459 = vst.msk [vmem:[#allocation5 + $0x57] sm:$0x1] %vm8117_vm4, %v8447_v5  ;;  %v7987_v16 = vmax.f32 %v7979_v1, %v7983_v2  ;;  %v10823_v6 = vadd.f32 %v10737_v9, %v13036_v10  ;;  %v8667_v63 = vld [vmem:[#allocation5 + $0x48] sm:$0xf]  ;;  %v13037_v3 = vld [vmem:[#allocation14_spill] sm:$0xff]  ;;  %v10738_v15 = vpop.f32.mrb[58].mxu1 }
 0x5ae   : > { %7977 = vst.msk [vmem:[#allocation4 + $0xb0] sm:$0xff] %vm7792_vm2, %v7972_v61  ;;  %7844 = vst.msk [vmem:[#allocation3 + $0x198] sm:$0xff] %vm7792_vm2, %v7759_v43  ;;  %v10824_v39 = vadd.f32 %v7406_v38, %v13037_v3  ;;  %v9423_v13 = vpack.c.bf16 %v8667_v63, %v8667_v63  ;;  %v13038_v27 = vld [vmem:[#allocation15_spill] sm:$0xff]  ;;  %v7409_v21 = vpop.f32.mrb[59].mxu1  ;;  %v13039_v14 = vld [vmem:[#allocation16_spill] sm:$0xff] }
 0x5af   : > { %7842 = vst.msk [vmem:[#allocation3 + $0x188] sm:$0xff] %vm7792_vm2, %v7757_v37  ;;  %7993 = vst.msk [vmem:[#allocation4 + $0xc8] sm:$0xff] %vm7792_vm2, %v7988_v50  ;;  %v7678_v40 = vadd.f32 %v12707_v57, %v10823_v6  ;;  %v10825_v4 = vadd.f32 %v10738_v15, %v13038_v27  ;;  %v10826_v42 = vadd.f32 %v7409_v21, %v13039_v14  ;;  %v10741_v44 = vpop.f32.mrb[60].mxu1  ;;  %v13040_v28 = vld [vmem:[#allocation17_spill] sm:$0xff]  ;;  %v13041_v25 = vld [vmem:[#allocation18_spill] sm:$0xff] }
 0x5b0   : > { %8787 = vst.msk [vmem:[%s12571_s28 + $0x20] sm:$0xf] %vm7892_vm3, %v9422_v51  ;;  %v7676_v23 = vadd.f32 %v12707_v57, %v10824_v39  ;;  %v10827_v33 = vadd.f32 %v10741_v44, %v13040_v28  ;;  %v7422_v49 = vpop.f32.mrb[61].mxu1  ;;  %v7981_v34 = vld [vmem:[#allocation3 + $0x160] sm:$0xff]  ;;  %v13042_v59 = vld [vmem:[#allocation19_spill] sm:$0xff]  ;;  %v13043_v7 = vld [vmem:[#allocation20_spill] sm:$0xff] }
 0x5b1   : > { %7992 = vst.msk [vmem:[#allocation4 + $0xc0] sm:$0xff] %vm7792_vm2, %v7987_v16  ;;  %v7762_v24 = vmax.f32 %v7678_v40, 0.0  ;;  %v7679_v11 = vadd.f32 %v12707_v57, %v10825_v4  ;;  %v7677_v58 = vadd.f32 %v12707_v57, %v10826_v42  ;;  %v10828_v22 = vadd.f32 %v7422_v49, %v13041_v25  ;;  %v10742_v29 = vpop.f32.mrb[62].mxu1 }
 0x5b2   : > { %8788 = vst.msk [vmem:[%s12571_s28 + $0x24] sm:$0x3] %vm8779_vm5, %v9423_v13  ;;  %v7760_v46 = vmax.f32 %v7676_v23, 0.0  ;;  %v10829_v54 = vadd.f32 %v10742_v29, %v13042_v59  ;;  %v7425_v31 = vpop.f32.mrb[63].mxu1  ;;  %v7682_v1 = vadd.f32 %v12707_v57, %v10827_v33 }
 0x5b3   : > { %v7985_v36 = vld [vmem:[#allocation3 + $0x17c] sm:$0xff]  ;;  %7847 = vst.msk [vmem:[#allocation3 + $0x1b0] sm:$0xff] %vm7792_vm2, %v7762_v24  ;;  %v7763_v53 = vmax.f32 %v7679_v11, 0.0  ;;  %v7761_v55 = vmax.f32 %v7677_v58, 0.0  ;;  %v10830_v19 = vadd.f32 %v7425_v31, %v13043_v7  ;;  %v7680_v50 = vadd.f32 %v12707_v57, %v10828_v22  ;;  %v7997_v29 = vld [vmem:[#allocation3 + $0x190] sm:$0xff] }
 0x5b4   : > { %v8668_v41 = vld [vmem:[#allocation5 + $0x50] sm:$0xff]  ;;  %v7989_v26 = vmax.f32 %v7981_v34, %v7985_v36  ;;  %7845 = vst.msk [vmem:[#allocation3 + $0x1a0] sm:$0xff] %vm7792_vm2, %v7760_v46  ;;  %v7766_v23 = vmax.f32 %v7682_v1, 0.0  ;;  %v7683_v42 = vadd.f32 %v12707_v57, %v10829_v54 }
 0x5b5   : > { %v8471_v17 = vld [vmem:[#allocation4 + $0xb0] sm:$0x1]  ;;  %v8483_v30 = vld [vmem:[#allocation4 + $0xb1] sm:$0x1]  ;;  %v9424_v0 = vpack.c.bf16 %v8668_v41, %v8668_v41  ;;  %v8519_v18 = vld [vmem:[#allocation4 + $0xb2] sm:$0x1]  ;;  %v7681_v33 = vadd.f32 %v12707_v57, %v10830_v19 }
 0x5b6   : > { %v8495_v35 = vmax.f32 %v8471_v17, %v8483_v30  ;;  %v8531_v32 = vld [vmem:[#allocation4 + $0xb3] sm:$0x1]  ;;  %v8567_v56 = vld [vmem:[#allocation4 + $0xb4] sm:$0x1]  ;;  %7848 = vst.msk [vmem:[#allocation3 + $0x1b8] sm:$0xff] %vm7792_vm2, %v7763_v53  ;;  %7994 = vst.msk [vmem:[#allocation4 + $0xd0] sm:$0xff] %vm7792_vm2, %v7989_v26 }
 0x5b7   : > { %v8543_v60 = vmax.f32 %v8519_v18, %v8531_v32  ;;  %v8579_v20 = vld [vmem:[#allocation4 + $0xb5] sm:$0x1]  ;;  %v8615_v45 = vld [vmem:[#allocation4 + $0xb6] sm:$0x1]  ;;  %v8627_v12 = vld [vmem:[#allocation4 + $0xb7] sm:$0x1] }
 0x5b8   : > { %7846 = vst.msk [vmem:[#allocation3 + $0x1a8] sm:$0xff] %vm7792_vm2, %v7761_v55  ;;  %v8591_v47 = vmax.f32 %v8567_v56, %v8579_v20  ;;  %v8639_v8 = vmax.f32 %v8615_v45, %v8627_v12  ;;  %v8280_v5 = vld [vmem:[#allocation4 + $0xc8] sm:$0x1]  ;;  %v8292_v52 = vld [vmem:[#allocation4 + $0xc9] sm:$0x1]  ;;  %v7764_v14 = vmax.f32 %v7680_v50, 0.0 }
 0x5b9   : > { %8789 = vst.msk [vmem:[%s12571_s28 + $0x28] sm:$0xf] %vm7892_vm3, %v9424_v0  ;;  %v8328_v61 = vld [vmem:[#allocation4 + $0xca] sm:$0x1]  ;;  %v8304_v48 = vmax.f32 %v8280_v5, %v8292_v52  ;;  %v8340_v43 = vld [vmem:[#allocation4 + $0xcb] sm:$0x1] }
 0x5ba   : > { %8507 = vst.msk [vmem:[#allocation5 + $0x58] sm:$0x1] %vm8117_vm4, %v8495_v35  ;;  %8555 = vst.msk [vmem:[#allocation5 + $0x59] sm:$0x1] %vm8117_vm4, %v8543_v60  ;;  %v8376_v37 = vld [vmem:[#allocation4 + $0xcc] sm:$0x1]  ;;  %v8352_v2 = vmax.f32 %v8328_v61, %v8340_v43 }
 0x5bb   : > { %v8388_v62 = vld [vmem:[#allocation4 + $0xcd] sm:$0x1]  ;;  %8603 = vst.msk [vmem:[#allocation5 + $0x5a] sm:$0x1] %vm8117_vm4, %v8591_v47  ;;  %8651 = vst.msk [vmem:[#allocation5 + $0x5b] sm:$0x1] %vm8117_vm4, %v8639_v8 }
 0x5bc   : > { %v8400_v9 = vmax.f32 %v8376_v37, %v8388_v62  ;;  %v8424_v51 = vld [vmem:[#allocation4 + $0xce] sm:$0x1]  ;;  %v8436_v16 = vld [vmem:[#allocation4 + $0xcf] sm:$0x1]  ;;  %v8087_v10 = vld [vmem:[#allocation4 + $0xc0] sm:$0x1] }
 0x5bd   : > { %8316 = vst.msk [vmem:[#allocation5 + $0x64] sm:$0x1] %vm8117_vm4, %v8304_v48  ;;  %v8448_v6 = vmax.f32 %v8424_v51, %v8436_v16  ;;  %v8099_v38 = vld [vmem:[#allocation4 + $0xc1] sm:$0x1]  ;;  %v8136_v63 = vld [vmem:[#allocation4 + $0xc2] sm:$0x1] }
 0x5be   : > { %v8148_v3 = vld [vmem:[#allocation4 + $0xc3] sm:$0x1]  ;;  %8364 = vst.msk [vmem:[#allocation5 + $0x65] sm:$0x1] %vm8117_vm4, %v8352_v2  ;;  %8412 = vst.msk [vmem:[#allocation5 + $0x66] sm:$0x1] %vm8117_vm4, %v8400_v9  ;;  %v8111_v39 = vmax.f32 %v8087_v10, %v8099_v38 }
 0x5bf   : > { %v8160_v15 = vmax.f32 %v8136_v63, %v8148_v3  ;;  %v8184_v13 = vld [vmem:[#allocation4 + $0xc4] sm:$0x1]  ;;  %v8196_v40 = vld [vmem:[#allocation4 + $0xc5] sm:$0x1]  ;;  %v8232_v27 = vld [vmem:[#allocation4 + $0xc6] sm:$0x1] }
 0x5c0   : > { %8460 = vst.msk [vmem:[#allocation5 + $0x67] sm:$0x1] %vm8117_vm4, %v8448_v6  ;;  %v8208_v4 = vmax.f32 %v8184_v13, %v8196_v40  ;;  %v8244_v21 = vld [vmem:[#allocation4 + $0xc7] sm:$0x1]  ;;  %8124 = vst.msk [vmem:[#allocation5 + $0x60] sm:$0x1] %vm8117_vm4, %v8111_v39 }
 0x5c1   : > { %8172 = vst.msk [vmem:[#allocation5 + $0x61] sm:$0x1] %vm8117_vm4, %v8160_v15  ;;  %v8256_v44 = vmax.f32 %v8232_v27, %v8244_v21  ;;  %v8472_v24 = vld [vmem:[#allocation4 + $0xd0] sm:$0x1]  ;;  %v8484_v11 = vld [vmem:[#allocation4 + $0xd1] sm:$0x1] }
 0x5c2   : > { %v8520_v28 = vld [vmem:[#allocation4 + $0xd2] sm:$0x1]  ;;  %8220 = vst.msk [vmem:[#allocation5 + $0x62] sm:$0x1] %vm8117_vm4, %v8208_v4  ;;  %v8496_v49 = vmax.f32 %v8472_v24, %v8484_v11  ;;  %v8532_v46 = vld [vmem:[#allocation4 + $0xd3] sm:$0x1] }
 0x5c3   : > { %v8568_v58 = vld [vmem:[#allocation4 + $0xd4] sm:$0x1]  ;;  %v8580_v25 = vld [vmem:[#allocation4 + $0xd5] sm:$0x1]  ;;  %v7998_v22 = vld [vmem:[#allocation3 + $0x198] sm:$0xff]  ;;  %7851 = vst.msk [vmem:[#allocation3 + $0x1d0] sm:$0xff] %vm7792_vm2, %v7766_v23  ;;  %v8544_v34 = vmax.f32 %v8520_v28, %v8532_v46 }
 0x5c4   : > { %7849 = vst.msk [vmem:[#allocation3 + $0x1c0] sm:$0xff] %vm7792_vm2, %v7764_v14  ;;  %v8592_v36 = vmax.f32 %v8568_v58, %v8580_v25  ;;  %v8616_v53 = vld [vmem:[#allocation4 + $0xd6] sm:$0x1]  ;;  %v8628_v59 = vld [vmem:[#allocation4 + $0xd7] sm:$0x1]  ;;  %v7767_v17 = vmax.f32 %v7683_v42, 0.0 }
 0x5c5   : > { %8268 = vst.msk [vmem:[#allocation5 + $0x63] sm:$0x1] %vm8117_vm4, %v8256_v44  ;;  %v8669_v54 = vld [vmem:[#allocation5 + $0x58] sm:$0xf]  ;;  %8508 = vst.msk [vmem:[#allocation5 + $0x68] sm:$0x1] %vm8117_vm4, %v8496_v49  ;;  %v8640_v31 = vmax.f32 %v8616_v53, %v8628_v59 }
 0x5c6   : > { %v8002_v41 = vld [vmem:[#allocation3 + $0x1b4] sm:$0xff]  ;;  %v9425_v30 = vpack.c.bf16 %v8669_v54, %v8669_v54  ;;  %8556 = vst.msk [vmem:[#allocation5 + $0x69] sm:$0x1] %vm8117_vm4, %v8544_v34  ;;  %8604 = vst.msk [vmem:[#allocation5 + $0x6a] sm:$0x1] %vm8117_vm4, %v8592_v36  ;;  %v7996_v26 = vld [vmem:[#allocation3 + $0x188] sm:$0xff] }
 0x5c7   : > { %v8006_v55 = vmax.f32 %v7998_v22, %v8002_v41  ;;  %v8000_v0 = vld [vmem:[#allocation3 + $0x1a4] sm:$0xff]  ;;  %v8001_v35 = vld [vmem:[#allocation3 + $0x1ac] sm:$0xff]  ;;  %v7765_v18 = vmax.f32 %v7681_v33, 0.0  ;;  %v10745_v32 = vpop.f32.mrb[64].mxu1  ;;  %8652 = vst.msk [vmem:[#allocation5 + $0x6b] sm:$0x1] %vm8117_vm4, %v8640_v31 }
 0x5c8   : > { %v8004_v56 = vmax.f32 %v7996_v26, %v8000_v0  ;;  %v8005_v7 = vmax.f32 %v7997_v29, %v8001_v35  ;;  %7852 = vst.msk [vmem:[#allocation3 + $0x1d8] sm:$0xff] %vm7792_vm2, %v7767_v17  ;;  %v13044_v19 = vld [vmem:[#allocation21_spill] sm:$0xff]  ;;  %v7438_v20 = vpop.f32.mrb[65].mxu1  ;;  %v13045_v45 = vld [vmem:[#allocation22_spill] sm:$0xff]  ;;  %v13046_v5 = vld [vmem:[#allocation23_spill] sm:$0xff] }
 0x5c9   : > { %v10831_v60 = vadd.f32 %v10745_v32, %v13044_v19  ;;  %8790 = vst.msk [vmem:[%s12571_s28 + $0x2c] sm:$0x3] %vm8779_vm5, %v9425_v30  ;;  %v10832_v12 = vadd.f32 %v7438_v20, %v13045_v45  ;;  %v10746_v47 = vpop.f32.mrb[66].mxu1  ;;  %v13047_v43 = vld [vmem:[#allocation24_spill] sm:$0xff]  ;;  %v13048_v9 = vld [vmem:[#allocation25_spill] sm:$0xff]  ;;  %v13049_v63 = vld [vmem:[#allocation26_spill] sm:$0xff] }
 0x5ca   : > { %8011 = vst.msk [vmem:[#allocation4 + $0xf0] sm:$0xff] %vm7792_vm2, %v8006_v55  ;;  %7850 = vst.msk [vmem:[#allocation3 + $0x1c8] sm:$0xff] %vm7792_vm2, %v7765_v18  ;;  %v10833_v52 = vadd.f32 %v10746_v47, %v13046_v5  ;;  %v7441_v61 = vpop.f32.mrb[67].mxu1  ;;  %v13050_v13 = vld [vmem:[#allocation27_spill] sm:$0xff]  ;;  %v13051_v23 = vld [vmem:[#allocation28_spill] sm:$0xff] }
 0x5cb   : > { %8009 = vst.msk [vmem:[#allocation4 + $0xe0] sm:$0xff] %vm7792_vm2, %v8004_v56  ;;  %8010 = vst.msk [vmem:[#allocation4 + $0xe8] sm:$0xff] %vm7792_vm2, %v8005_v7  ;;  %v7686_v8 = vadd.f32 %v12707_v57, %v10831_v60  ;;  %v7684_v48 = vadd.f32 %v12707_v57, %v10832_v12  ;;  %v10834_v37 = vadd.f32 %v7441_v61, %v13047_v43  ;;  %v10749_v62 = vpop.f32.mrb[68].mxu1  ;;  %v13052_v33 = vld [vmem:[#allocation29_spill] sm:$0xff] }
 0x5cc   : > { %v8670_v1 = vld [vmem:[#allocation5 + $0x60] sm:$0xff]  ;;  %v7687_v2 = vadd.f32 %v12707_v57, %v10833_v52  ;;  %v10835_v51 = vadd.f32 %v10749_v62, %v13048_v9  ;;  %v7454_v16 = vpop.f32.mrb[69].mxu1 }
 0x5cd   : > { %v7770_v50 = vmax.f32 %v7686_v8, 0.0  ;;  %v9426_v10 = vpack.c.bf16 %v8670_v1, %v8670_v1  ;;  %v7768_v6 = vmax.f32 %v7684_v48, 0.0  ;;  %v7685_v38 = vadd.f32 %v12707_v57, %v10834_v37  ;;  %v10750_v39 = vpop.f32.mrb[70].mxu1  ;;  %v8015_v1 = vld [vmem:[#allocation3 + $0x1d0] sm:$0xff]  ;;  %v8013_v9 = vld [vmem:[#allocation3 + $0x1c0] sm:$0xff] }
 0x5ce   : > { %v10836_v3 = vadd.f32 %v7454_v16, %v13049_v63  ;;  %v7771_v15 = vmax.f32 %v7687_v2, 0.0  ;;  %v10837_v40 = vadd.f32 %v10750_v39, %v13050_v13  ;;  %v7457_v27 = vpop.f32.mrb[71].mxu1  ;;  %v8671_v4 = vld [vmem:[#allocation5 + $0x68] sm:$0xf]  ;;  %v7690_v18 = vadd.f32 %v12707_v57, %v10835_v51 }
 0x5cf   : > { %7855 = vst.msk [vmem:[#allocation3 + $0x1f0] sm:$0xff] %vm7792_vm2, %v7770_v50  ;;  %7853 = vst.msk [vmem:[#allocation3 + $0x1e0] sm:$0xff] %vm7792_vm2, %v7768_v6  ;;  %v7769_v21 = vmax.f32 %v7685_v38, 0.0  ;;  %v10838_v14 = vadd.f32 %v7457_v27, %v13051_v23  ;;  %v10753_v42 = vpop.f32.mrb[72].mxu1  ;;  %v9427_v44 = vpack.c.bf16 %v8671_v4, %v8671_v4 }
 0x5d0   : > { %8791 = vst.msk [vmem:[%s12571_s28 + $0x30] sm:$0xf] %vm7892_vm3, %v9426_v10  ;;  %v10839_v49 = vadd.f32 %v10753_v42, %v13052_v33  ;;  %v7688_v32 = vadd.f32 %v12707_v57, %v10836_v3  ;;  %v7691_v20 = vadd.f32 %v12707_v57, %v10837_v40  ;;  %v7774_v16 = vmax.f32 %v7690_v18, 0.0  ;;  %v7470_v13 = vpop.f32.mrb[73].mxu1  ;;  %v13054_v42 = vld [vmem:[#allocation31_spill] sm:$0xff]  ;;  %v13055_v33 = vld [vmem:[#allocation32_spill] sm:$0xff] }
 0x5d1   : > { %v8473_v24 = vld [vmem:[#allocation4 + $0xf0] sm:$0x1]  ;;  %v8485_v11 = vld [vmem:[#allocation4 + $0xf1] sm:$0x1]  ;;  %v8521_v28 = vld [vmem:[#allocation4 + $0xf2] sm:$0x1]  ;;  %v7689_v45 = vadd.f32 %v12707_v57, %v10838_v14 }
 0x5d2   : > { %7856 = vst.msk [vmem:[#allocation3 + $0x1f8] sm:$0xff] %vm7792_vm2, %v7771_v15  ;;  %v8497_v46 = vmax.f32 %v8473_v24, %v8485_v11  ;;  %v8533_v58 = vld [vmem:[#allocation4 + $0xf3] sm:$0x1]  ;;  %v8569_v25 = vld [vmem:[#allocation4 + $0xf4] sm:$0x1]  ;;  %7854 = vst.msk [vmem:[#allocation3 + $0x1e8] sm:$0xff] %vm7792_vm2, %v7769_v21  ;;  %v7694_v61 = vadd.f32 %v12707_v57, %v10839_v49 }
 0x5d3   : > { %v8581_v22 = vld [vmem:[#allocation4 + $0xf5] sm:$0x1]  ;;  %8792 = vst.msk [vmem:[%s12571_s28 + $0x34] sm:$0x3] %vm8779_vm5, %v9427_v44  ;;  %v8545_v29 = vmax.f32 %v8521_v28, %v8533_v58  ;;  %v8617_v36 = vld [vmem:[#allocation4 + $0xf6] sm:$0x1] }
 0x5d4   : > { %v8593_v34 = vmax.f32 %v8569_v25, %v8581_v22  ;;  %v8629_v53 = vld [vmem:[#allocation4 + $0xf7] sm:$0x1]  ;;  %v8088_v59 = vld [vmem:[#allocation4 + $0xe0] sm:$0x1]  ;;  %8509 = vst.msk [vmem:[#allocation5 + $0x78] sm:$0x1] %vm8117_vm4, %v8497_v46 }
 0x5d5   : > { %v8641_v54 = vmax.f32 %v8617_v36, %v8629_v53  ;;  %v8100_v31 = vld [vmem:[#allocation4 + $0xe1] sm:$0x1]  ;;  %v8137_v41 = vld [vmem:[#allocation4 + $0xe2] sm:$0x1]  ;;  %v8149_v17 = vld [vmem:[#allocation4 + $0xe3] sm:$0x1] }
 0x5d6   : > { %8557 = vst.msk [vmem:[#allocation5 + $0x79] sm:$0x1] %vm8117_vm4, %v8545_v29  ;;  %8605 = vst.msk [vmem:[#allocation5 + $0x7a] sm:$0x1] %vm8117_vm4, %v8593_v34  ;;  %v8112_v30 = vmax.f32 %v8088_v59, %v8100_v31  ;;  %v8161_v26 = vmax.f32 %v8137_v41, %v8149_v17  ;;  %v8185_v55 = vld [vmem:[#allocation4 + $0xe4] sm:$0x1] }
 0x5d7   : > { %v8197_v0 = vld [vmem:[#allocation4 + $0xe5] sm:$0x1]  ;;  %v8233_v35 = vld [vmem:[#allocation4 + $0xe6] sm:$0x1]  ;;  %8653 = vst.msk [vmem:[#allocation5 + $0x7b] sm:$0x1] %vm8117_vm4, %v8641_v54 }
 0x5d8   : > { %v8209_v56 = vmax.f32 %v8185_v55, %v8197_v0  ;;  %v8245_v7 = vld [vmem:[#allocation4 + $0xe7] sm:$0x1]  ;;  %v8281_v19 = vld [vmem:[#allocation4 + $0xe8] sm:$0x1]  ;;  %v8293_v60 = vld [vmem:[#allocation4 + $0xe9] sm:$0x1] }
 0x5d9   : > { %8125 = vst.msk [vmem:[#allocation5 + $0x70] sm:$0x1] %vm8117_vm4, %v8112_v30  ;;  %8173 = vst.msk [vmem:[#allocation5 + $0x71] sm:$0x1] %vm8117_vm4, %v8161_v26  ;;  %v8257_v12 = vmax.f32 %v8233_v35, %v8245_v7  ;;  %v8305_v47 = vmax.f32 %v8281_v19, %v8293_v60  ;;  %v8329_v8 = vld [vmem:[#allocation4 + $0xea] sm:$0x1] }
 0x5da   : > { %v8341_v5 = vld [vmem:[#allocation4 + $0xeb] sm:$0x1]  ;;  %v8377_v52 = vld [vmem:[#allocation4 + $0xec] sm:$0x1]  ;;  %8221 = vst.msk [vmem:[#allocation5 + $0x72] sm:$0x1] %vm8117_vm4, %v8209_v56 }
 0x5db   : > { %v8353_v48 = vmax.f32 %v8329_v8, %v8341_v5  ;;  %v8389_v43 = vld [vmem:[#allocation4 + $0xed] sm:$0x1]  ;;  %v8425_v37 = vld [vmem:[#allocation4 + $0xee] sm:$0x1]  ;;  %v8437_v62 = vld [vmem:[#allocation4 + $0xef] sm:$0x1] }
 0x5dc   : > { %8269 = vst.msk [vmem:[#allocation5 + $0x73] sm:$0x1] %vm8117_vm4, %v8257_v12  ;;  %8317 = vst.msk [vmem:[#allocation5 + $0x74] sm:$0x1] %vm8117_vm4, %v8305_v47  ;;  %v8401_v50 = vmax.f32 %v8377_v52, %v8389_v43  ;;  %v8449_v2 = vmax.f32 %v8425_v37, %v8437_v62  ;;  %v8017_v51 = vld [vmem:[#allocation3 + $0x1dc] sm:$0xff]  ;;  %v7772_v10 = vmax.f32 %v7688_v32, 0.0 }
 0x5dd   : > { %8365 = vst.msk [vmem:[#allocation5 + $0x75] sm:$0x1] %vm8117_vm4, %v8353_v48  ;;  %v8014_v6 = vld [vmem:[#allocation3 + $0x1c8] sm:$0xff]  ;;  %v8021_v38 = vmax.f32 %v8013_v9, %v8017_v51  ;;  %v7775_v39 = vmax.f32 %v7691_v20, 0.0  ;;  %v7773_v15 = vmax.f32 %v7689_v45, 0.0  ;;  %v7778_v4 = vmax.f32 %v7694_v61, 0.0 }
 0x5de   : > { %v8018_v63 = vld [vmem:[#allocation3 + $0x1e4] sm:$0xff]  ;;  %v8019_v3 = vld [vmem:[#allocation3 + $0x1ec] sm:$0xff]  ;;  %8413 = vst.msk [vmem:[#allocation5 + $0x76] sm:$0x1] %vm8117_vm4, %v8401_v50  ;;  %8461 = vst.msk [vmem:[#allocation5 + $0x77] sm:$0x1] %vm8117_vm4, %v8449_v2 }
 0x5df   : > { %v8022_v40 = vmax.f32 %v8014_v6, %v8018_v63  ;;  %v8023_v27 = vmax.f32 %v8015_v1, %v8019_v3  ;;  %7859 = vst.msk [vmem:[#allocation3 + $0x210] sm:$0xff] %vm7792_vm2, %v7774_v16  ;;  %7857 = vst.msk [vmem:[#allocation3 + $0x200] sm:$0xff] %vm7792_vm2, %v7772_v10  ;;  %v13053_v21 = vld [vmem:[#allocation30_spill] sm:$0xff]  ;;  %v10754_v14 = vpop.f32.mrb[74].mxu1  ;;  %v8673_v11 = vld [vmem:[#allocation5 + $0x78] sm:$0xf] }
 0x5e0   : > { %v10840_v23 = vadd.f32 %v7470_v13, %v13053_v21  ;;  %8026 = vst.msk [vmem:[#allocation4 + $0x100] sm:$0xff] %vm7792_vm2, %v8021_v38  ;;  %7860 = vst.msk [vmem:[#allocation3 + $0x218] sm:$0xff] %vm7792_vm2, %v7775_v39  ;;  %v10841_v44 = vadd.f32 %v10754_v14, %v13054_v42  ;;  %v7473_v24 = vpop.f32.mrb[75].mxu1  ;;  %v9429_v58 = vpack.c.bf16 %v8673_v11, %v8673_v11  ;;  %v13056_v22 = vld [vmem:[#allocation33_spill] sm:$0xff]  ;;  %v13057_v59 = vld [vmem:[#allocation34_spill] sm:$0xff] }
 0x5e1   : > { %7858 = vst.msk [vmem:[#allocation3 + $0x208] sm:$0xff] %vm7792_vm2, %v7773_v15  ;;  %8027 = vst.msk [vmem:[#allocation4 + $0x108] sm:$0xff] %vm7792_vm2, %v8022_v40  ;;  %v10842_v49 = vadd.f32 %v7473_v24, %v13055_v33  ;;  %v10757_v46 = vpop.f32.mrb[76].mxu1  ;;  %v13058_v30 = vld [vmem:[#allocation35_spill] sm:$0xff]  ;;  %v13059_v35 = vld [vmem:[#allocation36_spill] sm:$0xff] }
 0x5e2   : > { %8028 = vst.msk [vmem:[#allocation4 + $0x110] sm:$0xff] %vm7792_vm2, %v8023_v27  ;;  %7863 = vst.msk [vmem:[#allocation3 + $0x230] sm:$0xff] %vm7792_vm2, %v7778_v4  ;;  %v7692_v28 = vadd.f32 %v12707_v57, %v10840_v23  ;;  %v7695_v25 = vadd.f32 %v12707_v57, %v10841_v44  ;;  %v10843_v29 = vadd.f32 %v10757_v46, %v13056_v22  ;;  %v7486_v34 = vpop.f32.mrb[77].mxu1  ;;  %v13060_v19 = vld [vmem:[#allocation37_spill] sm:$0xff]  ;;  %v13061_v5 = vld [vmem:[#allocation38_spill] sm:$0xff] }
 0x5e3   : > { %v7693_v53 = vadd.f32 %v12707_v57, %v10842_v49  ;;  %v10844_v54 = vadd.f32 %v7486_v34, %v13057_v59  ;;  %v10758_v31 = vpop.f32.mrb[78].mxu1  ;;  %8794 = vst.msk [vmem:[%s12571_s28 + $0x3c] sm:$0x3] %vm8779_vm5, %v9429_v58 }
 0x5e4   : > { %v7776_v36 = vmax.f32 %v7692_v28, 0.0  ;;  %v7779_v41 = vmax.f32 %v7695_v25, 0.0  ;;  %v7698_v17 = vadd.f32 %v12707_v57, %v10843_v29  ;;  %v10845_v26 = vadd.f32 %v10758_v31, %v13058_v30  ;;  %v7489_v55 = vpop.f32.mrb[79].mxu1  ;;  %v8030_v29 = vld [vmem:[#allocation3 + $0x1f8] sm:$0xff] }
 0x5e5   : > { %v7777_v0 = vmax.f32 %v7693_v53, 0.0  ;;  %v10846_v18 = vadd.f32 %v7489_v55, %v13059_v35  ;;  %v10761_v32 = vpop.f32.mrb[80].mxu1  ;;  %v8672_v56 = vld [vmem:[#allocation5 + $0x70] sm:$0xff]  ;;  %v7696_v13 = vadd.f32 %v12707_v57, %v10844_v54 }
 0x5e6   : > { %7861 = vst.msk [vmem:[#allocation3 + $0x220] sm:$0xff] %vm7792_vm2, %v7776_v36  ;;  %7864 = vst.msk [vmem:[#allocation3 + $0x238] sm:$0xff] %vm7792_vm2, %v7779_v41  ;;  %v7782_v7 = vmax.f32 %v7698_v17, 0.0  ;;  %v10847_v60 = vadd.f32 %v10761_v32, %v13060_v19  ;;  %v7502_v20 = vpop.f32.mrb[81].mxu1  ;;  %v9428_v45 = vpack.c.bf16 %v8672_v56, %v8672_v56  ;;  %v7699_v40 = vadd.f32 %v12707_v57, %v10845_v26  ;;  %v8031_v36 = vld [vmem:[#allocation3 + $0x200] sm:$0xff]  ;;  %v13062_v56 = vld [vmem:[#allocation39_spill] sm:$0xff] }
 0x5e7   : > { %v8089_v12 = vld [vmem:[#allocation4 + $0x100] sm:$0x1]  ;;  %v8101_v47 = vld [vmem:[#allocation4 + $0x101] sm:$0x1]  ;;  %v8138_v8 = vld [vmem:[#allocation4 + $0x102] sm:$0x1]  ;;  %v10848_v52 = vadd.f32 %v7502_v20, %v13061_v5  ;;  %v7697_v14 = vadd.f32 %v12707_v57, %v10846_v18 }
 0x5e8   : > { %7862 = vst.msk [vmem:[#allocation3 + $0x228] sm:$0xff] %vm7792_vm2, %v7777_v0  ;;  %v8113_v61 = vmax.f32 %v8089_v12, %v8101_v47  ;;  %v8150_v48 = vld [vmem:[#allocation4 + $0x103] sm:$0x1]  ;;  %v8186_v43 = vld [vmem:[#allocation4 + $0x104] sm:$0x1]  ;;  %7867 = vst.msk [vmem:[#allocation3 + $0x250] sm:$0xff] %vm7792_vm2, %v7782_v7  ;;  %v7702_v42 = vadd.f32 %v12707_v57, %v10847_v60 }
 0x5e9   : > { %v8198_v37 = vld [vmem:[#allocation4 + $0x105] sm:$0x1]  ;;  %8793 = vst.msk [vmem:[%s12571_s28 + $0x38] sm:$0xf] %vm7892_vm3, %v9428_v45  ;;  %v8162_v62 = vmax.f32 %v8138_v8, %v8150_v48  ;;  %v8234_v50 = vld [vmem:[#allocation4 + $0x106] sm:$0x1]  ;;  %v7700_v44 = vadd.f32 %v12707_v57, %v10848_v52 }
 0x5ea   : > { %v8210_v1 = vmax.f32 %v8186_v43, %v8198_v37  ;;  %v8246_v2 = vld [vmem:[#allocation4 + $0x107] sm:$0x1]  ;;  %v8282_v9 = vld [vmem:[#allocation4 + $0x108] sm:$0x1]  ;;  %8126 = vst.msk [vmem:[#allocation5 + $0x80] sm:$0x1] %vm8117_vm4, %v8113_v61 }
 0x5eb   : > { %v8258_v51 = vmax.f32 %v8234_v50, %v8246_v2  ;;  %v8294_v16 = vld [vmem:[#allocation4 + $0x109] sm:$0x1]  ;;  %v8330_v10 = vld [vmem:[#allocation4 + $0x10a] sm:$0x1]  ;;  %v8342_v6 = vld [vmem:[#allocation4 + $0x10b] sm:$0x1] }
 0x5ec   : > { %8174 = vst.msk [vmem:[#allocation5 + $0x81] sm:$0x1] %vm8117_vm4, %v8162_v62  ;;  %8222 = vst.msk [vmem:[#allocation5 + $0x82] sm:$0x1] %vm8117_vm4, %v8210_v1  ;;  %v8306_v38 = vmax.f32 %v8282_v9, %v8294_v16  ;;  %v8354_v63 = vmax.f32 %v8330_v10, %v8342_v6  ;;  %v8378_v3 = vld [vmem:[#allocation4 + $0x10c] sm:$0x1] }
 0x5ed   : > { %v8390_v39 = vld [vmem:[#allocation4 + $0x10d] sm:$0x1]  ;;  %v8426_v15 = vld [vmem:[#allocation4 + $0x10e] sm:$0x1]  ;;  %8270 = vst.msk [vmem:[#allocation5 + $0x83] sm:$0x1] %vm8117_vm4, %v8258_v51 }
 0x5ee   : > { %v8402_v27 = vmax.f32 %v8378_v3, %v8390_v39  ;;  %v8438_v4 = vld [vmem:[#allocation4 + $0x10f] sm:$0x1]  ;;  %v8474_v21 = vld [vmem:[#allocation4 + $0x110] sm:$0x1]  ;;  %v8486_v23 = vld [vmem:[#allocation4 + $0x111] sm:$0x1] }
 0x5ef   : > { %8318 = vst.msk [vmem:[#allocation5 + $0x84] sm:$0x1] %vm8117_vm4, %v8306_v38  ;;  %8366 = vst.msk [vmem:[#allocation5 + $0x85] sm:$0x1] %vm8117_vm4, %v8354_v63  ;;  %v8450_v24 = vmax.f32 %v8426_v15, %v8438_v4  ;;  %v8498_v11 = vmax.f32 %v8474_v21, %v8486_v23  ;;  %v8522_v28 = vld [vmem:[#allocation4 + $0x112] sm:$0x1] }
 0x5f0   : > { %v8534_v33 = vld [vmem:[#allocation4 + $0x113] sm:$0x1]  ;;  %v8570_v49 = vld [vmem:[#allocation4 + $0x114] sm:$0x1]  ;;  %8414 = vst.msk [vmem:[#allocation5 + $0x86] sm:$0x1] %vm8117_vm4, %v8402_v27 }
 0x5f1   : > { %v8546_v46 = vmax.f32 %v8522_v28, %v8534_v33  ;;  %v8582_v58 = vld [vmem:[#allocation4 + $0x115] sm:$0x1]  ;;  %v8618_v25 = vld [vmem:[#allocation4 + $0x116] sm:$0x1]  ;;  %v8630_v22 = vld [vmem:[#allocation4 + $0x117] sm:$0x1] }
 0x5f2   : > { %8462 = vst.msk [vmem:[#allocation5 + $0x87] sm:$0x1] %vm8117_vm4, %v8450_v24  ;;  %8510 = vst.msk [vmem:[#allocation5 + $0x88] sm:$0x1] %vm8117_vm4, %v8498_v11  ;;  %v8594_v57 = vmax.f32 %v8570_v49, %v8582_v58  ;;  %v8642_v34 = vmax.f32 %v8618_v25, %v8630_v22  ;;  %v8034_v53 = vld [vmem:[#allocation3 + $0x214] sm:$0xff]  ;;  %v7780_v59 = vmax.f32 %v7696_v13, 0.0 }
 0x5f3   : > { %v7783_v54 = vmax.f32 %v7699_v40, 0.0  ;;  %v10762_v31 = vpop.f32.mrb[82].mxu1  ;;  %8558 = vst.msk [vmem:[#allocation5 + $0x89] sm:$0x1] %vm8117_vm4, %v8546_v46  ;;  %v8038_v41 = vmax.f32 %v8030_v29, %v8034_v53  ;;  %v8032_v17 = vld [vmem:[#allocation3 + $0x208] sm:$0xff]  ;;  %v8035_v30 = vld [vmem:[#allocation3 + $0x21c] sm:$0xff] }
 0x5f4   : > { %v8036_v26 = vld [vmem:[#allocation3 + $0x224] sm:$0xff]  ;;  %v7781_v55 = vmax.f32 %v7697_v14, 0.0  ;;  %v7786_v0 = vmax.f32 %v7702_v42, 0.0  ;;  %v7784_v35 = vmax.f32 %v7700_v44, 0.0  ;;  %8606 = vst.msk [vmem:[#allocation5 + $0x8a] sm:$0x1] %vm8117_vm4, %v8594_v57  ;;  %v8039_v18 = vmax.f32 %v8031_v36, %v8035_v30 }
 0x5f5   : > { %8654 = vst.msk [vmem:[#allocation5 + $0x8b] sm:$0x1] %vm8117_vm4, %v8642_v34  ;;  %v8040_v32 = vmax.f32 %v8032_v17, %v8036_v26  ;;  %v10849_v7 = vadd.f32 %v10762_v31, %v13062_v56  ;;  %v7505_v19 = vpop.f32.mrb[83].mxu1  ;;  %v13063_v60 = vld [vmem:[#allocation40_spill] sm:$0xff]  ;;  %v11522_v12 = vld [vmem:[%s12996_s4] ss:$0 sm:$0xff] }
 0x5f6   : > { %7865 = vst.msk [vmem:[#allocation3 + $0x240] sm:$0xff] %vm7792_vm2, %v7780_v59  ;;  %7868 = vst.msk [vmem:[#allocation3 + $0x258] sm:$0xff] %vm7792_vm2, %v7783_v54  ;;  %v10850_v20 = vadd.f32 %v7505_v19, %v13063_v60  ;;  %v10765_v45 = vpop.f32.mrb[0].mxu1  ;;  %v13064_v8 = vld [vmem:[#allocation6_spill] sm:$0xff]  ;;  %v13065_v48 = vld [vmem:[#allocation7_spill] sm:$0xff] }
 0x5f7   : > { %8043 = vst.msk [vmem:[#allocation4 + $0x120] sm:$0xff] %vm7792_vm2, %v8038_v41  ;;  %7866 = vst.msk [vmem:[#allocation3 + $0x248] sm:$0xff] %vm7792_vm2, %v7781_v55  ;;  %v7703_v47 = vadd.f32 %v11522_v12, %v10849_v7  ;;  %v10851_v5 = vadd.f32 %v10765_v45, %v13064_v8  ;;  %v7518_v52 = vpop.f32.mrb[1].mxu1  ;;  %v13066_v50 = vld [vmem:[#allocation8_spill] sm:$0xff]  ;;  %v13067_v6 = vld [vmem:[#allocation9_spill] sm:$0xff] }
 0x5f8   : > { %7871 = vst.msk [vmem:[#allocation3 + $0x270] sm:$0xff] %vm7792_vm2, %v7786_v0  ;;  %7869 = vst.msk [vmem:[#allocation3 + $0x260] sm:$0xff] %vm7792_vm2, %v7784_v35  ;;  %v7701_v61 = vadd.f32 %v11522_v12, %v10850_v20  ;;  %v10852_v43 = vadd.f32 %v7518_v52, %v13065_v48  ;;  %v10766_v37 = vpop.f32.mrb[2].mxu1  ;;  %v8048_v15 = vld [vmem:[#allocation3 + $0x238] sm:$0xff]  ;;  %v8047_v45 = vld [vmem:[#allocation3 + $0x230] sm:$0xff] }
 0x5f9   : > { %8044 = vst.msk [vmem:[#allocation4 + $0x128] sm:$0xff] %vm7792_vm2, %v8039_v18  ;;  %8045 = vst.msk [vmem:[#allocation4 + $0x130] sm:$0xff] %vm7792_vm2, %v8040_v32  ;;  %v7787_v62 = vmax.f32 %v7703_v47, 0.0  ;;  %v7706_v1 = vadd.f32 %v11522_v12, %v10851_v5  ;;  %v10853_v2 = vadd.f32 %v10766_v37, %v13066_v50  ;;  %v7521_v9 = vpop.f32.mrb[3].mxu1  ;;  %v8674_v51 = vld [vmem:[#allocation5 + $0x80] sm:$0xff] }
 0x5fa   : > { %v7785_v16 = vmax.f32 %v7701_v61, 0.0  ;;  %v7704_v10 = vadd.f32 %v11522_v12, %v10852_v43  ;;  %v10854_v38 = vadd.f32 %v7521_v9, %v13067_v6  ;;  %v9430_v63 = vpack.c.bf16 %v8674_v51, %v8674_v51 }
 0x5fb   : > { %7872 = vst.msk [vmem:[#allocation3 + $0x278] sm:$0xff] %vm7792_vm2, %v7787_v62  ;;  %v7790_v3 = vmax.f32 %v7706_v1, 0.0  ;;  %v7707_v31 = vadd.f32 %v11522_v12, %v10853_v2 }
 0x5fc   : > { %v8675_v39 = vld [vmem:[#allocation5 + $0x88] sm:$0xf]  ;;  %7870 = vst.msk [vmem:[#allocation3 + $0x268] sm:$0xff] %vm7792_vm2, %v7785_v16  ;;  %v7788_v40 = vmax.f32 %v7704_v10, 0.0  ;;  %v7705_v41 = vadd.f32 %v11522_v12, %v10854_v38 }
 0x5fd   : > { %v8052_v13 = vld [vmem:[#allocation3 + $0x254] sm:$0xff]  ;;  %v9431_v27 = vpack.c.bf16 %v8675_v39, %v8675_v39  ;;  %8795 = vst.msk [vmem:[%s12571_s28 + $0x40] sm:$0xf] %vm7892_vm3, %v9430_v63  ;;  %v7791_v5 = vmax.f32 %v7707_v31, 0.0  ;;  %v8049_v61 = vld [vmem:[#allocation3 + $0x240] sm:$0xff] }
 0x5fe   : > { %v8090_v4 = vld [vmem:[#allocation4 + $0x120] sm:$0x1]  ;;  %v8102_v21 = vld [vmem:[#allocation4 + $0x121] sm:$0x1]  ;;  %v8139_v23 = vld [vmem:[#allocation4 + $0x122] sm:$0x1]  ;;  %v8056_v14 = vmax.f32 %v8048_v15, %v8052_v13 }
 0x5ff   : > { %7875 = vst.msk [vmem:[#allocation3 + $0x290] sm:$0xff] %vm7792_vm2, %v7790_v3  ;;  %v8114_v42 = vmax.f32 %v8090_v4, %v8102_v21  ;;  %v8151_v44 = vld [vmem:[#allocation4 + $0x123] sm:$0x1]  ;;  %v8187_v24 = vld [vmem:[#allocation4 + $0x124] sm:$0x1]  ;;  %7873 = vst.msk [vmem:[#allocation3 + $0x280] sm:$0xff] %vm7792_vm2, %v7788_v40 }
 0x600   : > { %v8199_v11 = vld [vmem:[#allocation4 + $0x125] sm:$0x1]  ;;  %8796 = vst.msk [vmem:[%s12571_s28 + $0x44] sm:$0x3] %vm8779_vm5, %v9431_v27  ;;  %v8163_v28 = vmax.f32 %v8139_v23, %v8151_v44  ;;  %v8235_v49 = vld [vmem:[#allocation4 + $0x126] sm:$0x1] }
 0x601   : > { %v8211_v33 = vmax.f32 %v8187_v24, %v8199_v11  ;;  %v8247_v46 = vld [vmem:[#allocation4 + $0x127] sm:$0x1]  ;;  %v8283_v58 = vld [vmem:[#allocation4 + $0x128] sm:$0x1]  ;;  %8061 = vst.msk [vmem:[#allocation4 + $0x148] sm:$0xff] %vm7792_vm2, %v8056_v14  ;;  %v8051_v8 = vld [vmem:[#allocation3 + $0x24c] sm:$0xff] }
 0x602   : > { %8127 = vst.msk [vmem:[#allocation5 + $0x90] sm:$0x1] %vm8117_vm4, %v8114_v42  ;;  %v8259_v25 = vmax.f32 %v8235_v49, %v8247_v46  ;;  %v8295_v22 = vld [vmem:[#allocation4 + $0x129] sm:$0x1]  ;;  %v8331_v29 = vld [vmem:[#allocation4 + $0x12a] sm:$0x1]  ;;  %v8055_v62 = vmax.f32 %v8047_v45, %v8051_v8 }
 0x603   : > { %v8343_v57 = vld [vmem:[#allocation4 + $0x12b] sm:$0x1]  ;;  %8175 = vst.msk [vmem:[#allocation5 + $0x91] sm:$0x1] %vm8117_vm4, %v8163_v28  ;;  %8223 = vst.msk [vmem:[#allocation5 + $0x92] sm:$0x1] %vm8117_vm4, %v8211_v33  ;;  %v8307_v34 = vmax.f32 %v8283_v58, %v8295_v22 }
 0x604   : > { %v8355_v36 = vmax.f32 %v8331_v29, %v8343_v57  ;;  %v8379_v53 = vld [vmem:[#allocation4 + $0x12c] sm:$0x1]  ;;  %v8391_v59 = vld [vmem:[#allocation4 + $0x12d] sm:$0x1]  ;;  %v8427_v54 = vld [vmem:[#allocation4 + $0x12e] sm:$0x1] }
 0x605   : > { %8271 = vst.msk [vmem:[#allocation5 + $0x93] sm:$0x1] %vm8117_vm4, %v8259_v25  ;;  %v8403_v17 = vmax.f32 %v8379_v53, %v8391_v59  ;;  %v8439_v30 = vld [vmem:[#allocation4 + $0x12f] sm:$0x1]  ;;  %v8475_v26 = vld [vmem:[#allocation4 + $0x130] sm:$0x1] }
 0x606   : > { %v8487_v55 = vld [vmem:[#allocation4 + $0x131] sm:$0x1]  ;;  %8319 = vst.msk [vmem:[#allocation5 + $0x94] sm:$0x1] %vm8117_vm4, %v8307_v34  ;;  %8367 = vst.msk [vmem:[#allocation5 + $0x95] sm:$0x1] %vm8117_vm4, %v8355_v36  ;;  %v8451_v0 = vmax.f32 %v8427_v54, %v8439_v30 }
 0x607   : > { %v8499_v35 = vmax.f32 %v8475_v26, %v8487_v55  ;;  %v8523_v18 = vld [vmem:[#allocation4 + $0x132] sm:$0x1]  ;;  %v8535_v32 = vld [vmem:[#allocation4 + $0x133] sm:$0x1]  ;;  %v8571_v56 = vld [vmem:[#allocation4 + $0x134] sm:$0x1] }
 0x608   : > { %8415 = vst.msk [vmem:[#allocation5 + $0x96] sm:$0x1] %vm8117_vm4, %v8403_v17  ;;  %v8547_v7 = vmax.f32 %v8523_v18, %v8535_v32  ;;  %v8583_v19 = vld [vmem:[#allocation4 + $0x135] sm:$0x1]  ;;  %v8619_v60 = vld [vmem:[#allocation4 + $0x136] sm:$0x1] }
 0x609   : > { %v8631_v20 = vld [vmem:[#allocation4 + $0x137] sm:$0x1]  ;;  %8463 = vst.msk [vmem:[#allocation5 + $0x97] sm:$0x1] %vm8117_vm4, %v8451_v0  ;;  %8511 = vst.msk [vmem:[#allocation5 + $0x98] sm:$0x1] %vm8117_vm4, %v8499_v35  ;;  %v8595_v12 = vmax.f32 %v8571_v56, %v8583_v19 }
 0x60a   : > { %v8643_v47 = vmax.f32 %v8619_v60, %v8631_v20  ;;  %v7789_v52 = vmax.f32 %v7705_v41, 0.0  ;;  %8559 = vst.msk [vmem:[#allocation5 + $0x99] sm:$0x1] %vm8117_vm4, %v8547_v7  ;;  %v8284_v48 = vld [vmem:[#allocation4 + $0x148] sm:$0x1]  ;;  %v8053_v38 = vld [vmem:[#allocation3 + $0x25c] sm:$0xff] }
 0x60b   : > { %v8296_v43 = vld [vmem:[#allocation4 + $0x149] sm:$0x1]  ;;  %v8332_v37 = vld [vmem:[#allocation4 + $0x14a] sm:$0x1]  ;;  %8607 = vst.msk [vmem:[#allocation5 + $0x9a] sm:$0x1] %vm8117_vm4, %v8595_v12  ;;  %v8057_v3 = vmax.f32 %v8049_v61, %v8053_v38 }
 0x60c   : > { %8655 = vst.msk [vmem:[#allocation5 + $0x9b] sm:$0x1] %vm8117_vm4, %v8643_v47  ;;  %v8308_v1 = vmax.f32 %v8284_v48, %v8296_v43  ;;  %v8344_v50 = vld [vmem:[#allocation4 + $0x14b] sm:$0x1]  ;;  %v8380_v2 = vld [vmem:[#allocation4 + $0x14c] sm:$0x1] }
 0x60d   : > { %v8392_v9 = vld [vmem:[#allocation4 + $0x14d] sm:$0x1]  ;;  %7876 = vst.msk [vmem:[#allocation3 + $0x298] sm:$0xff] %vm7792_vm2, %v7791_v5  ;;  %7874 = vst.msk [vmem:[#allocation3 + $0x288] sm:$0xff] %vm7792_vm2, %v7789_v52  ;;  %v8356_v51 = vmax.f32 %v8332_v37, %v8344_v50  ;;  %v8428_v10 = vld [vmem:[#allocation4 + $0x14e] sm:$0x1] }
 0x60e   : > { %v8404_v16 = vmax.f32 %v8380_v2, %v8392_v9  ;;  %v8440_v6 = vld [vmem:[#allocation4 + $0x14f] sm:$0x1]  ;;  %8060 = vst.msk [vmem:[#allocation4 + $0x140] sm:$0xff] %vm7792_vm2, %v8055_v62  ;;  %8062 = vst.msk [vmem:[#allocation4 + $0x150] sm:$0xff] %vm7792_vm2, %v8057_v3  ;;  %v8066_v13 = vld [vmem:[#allocation3 + $0x278] sm:$0xff] }
 0x60f   : > { %8320 = vst.msk [vmem:[#allocation5 + $0xa4] sm:$0x1] %vm8117_vm4, %v8308_v1  ;;  %v8452_v63 = vmax.f32 %v8428_v10, %v8440_v6  ;;  %8368 = vst.msk [vmem:[#allocation5 + $0xa5] sm:$0x1] %vm8117_vm4, %v8356_v51  ;;  %v8064_v42 = vld [vmem:[#allocation3 + $0x268] sm:$0xff]  ;;  %v8065_v57 = vld [vmem:[#allocation3 + $0x270] sm:$0xff] }
 0x610   : > { %8416 = vst.msk [vmem:[#allocation5 + $0xa6] sm:$0x1] %vm8117_vm4, %v8404_v16  ;;  %v8676_v39 = vld [vmem:[#allocation5 + $0x90] sm:$0xff] }
 0x611   : > { %8464 = vst.msk [vmem:[#allocation5 + $0xa7] sm:$0x1] %vm8117_vm4, %v8452_v63  ;;  %v9432_v15 = vpack.c.bf16 %v8676_v39, %v8676_v39 }
 0x613   : > { %v8677_v40 = vld [vmem:[#allocation5 + $0x98] sm:$0xf]  ;;  %8797 = vst.msk [vmem:[%s12571_s28 + $0x48] sm:$0xf] %vm7892_vm3, %v9432_v15 }
 0x614   : > { %v8070_v27 = vld [vmem:[#allocation3 + $0x294] sm:$0xff]  ;;  %v9433_v4 = vpack.c.bf16 %v8677_v40, %v8677_v40  ;;  %v8068_v22 = vld [vmem:[#allocation3 + $0x284] sm:$0xff]  ;;  %v8069_v35 = vld [vmem:[#allocation3 + $0x28c] sm:$0xff] }
 0x615   : > { %v8091_v21 = vld [vmem:[#allocation4 + $0x140] sm:$0x1]  ;;  %v8103_v23 = vld [vmem:[#allocation4 + $0x141] sm:$0x1]  ;;  %v8140_v14 = vld [vmem:[#allocation4 + $0x142] sm:$0x1]  ;;  %v8074_v44 = vmax.f32 %v8066_v13, %v8070_v27  ;;  %v8072_v59 = vmax.f32 %v8064_v42, %v8068_v22  ;;  %v8073_v32 = vmax.f32 %v8065_v57, %v8069_v35 }
 0x616   : > { %v8115_v24 = vmax.f32 %v8091_v21, %v8103_v23  ;;  %v8152_v11 = vld [vmem:[#allocation4 + $0x143] sm:$0x1]  ;;  %v8188_v28 = vld [vmem:[#allocation4 + $0x144] sm:$0x1]  ;;  %v8200_v33 = vld [vmem:[#allocation4 + $0x145] sm:$0x1] }
 0x617   : > { %8798 = vst.msk [vmem:[%s12571_s28 + $0x4c] sm:$0x3] %vm8779_vm5, %v9433_v4  ;;  %v8164_v49 = vmax.f32 %v8140_v14, %v8152_v11  ;;  %v8212_v46 = vmax.f32 %v8188_v28, %v8200_v33  ;;  %v8236_v58 = vld [vmem:[#allocation4 + $0x146] sm:$0x1]  ;;  %v8248_v25 = vld [vmem:[#allocation4 + $0x147] sm:$0x1] }
 0x618   : > { %8079 = vst.msk [vmem:[#allocation4 + $0x170] sm:$0xff] %vm7792_vm2, %v8074_v44  ;;  %v8260_v29 = vmax.f32 %v8236_v58, %v8248_v25  ;;  %v8476_v34 = vld [vmem:[#allocation4 + $0x150] sm:$0x1]  ;;  %v8488_v36 = vld [vmem:[#allocation4 + $0x151] sm:$0x1]  ;;  %8077 = vst.msk [vmem:[#allocation4 + $0x160] sm:$0xff] %vm7792_vm2, %v8072_v59 }
 0x619   : > { %8128 = vst.msk [vmem:[#allocation5 + $0xa0] sm:$0x1] %vm8117_vm4, %v8115_v24  ;;  %v8524_v53 = vld [vmem:[#allocation4 + $0x152] sm:$0x1]  ;;  %8176 = vst.msk [vmem:[#allocation5 + $0xa1] sm:$0x1] %vm8117_vm4, %v8164_v49  ;;  %v8500_v54 = vmax.f32 %v8476_v34, %v8488_v36 }
 0x61a   : > { %8224 = vst.msk [vmem:[#allocation5 + $0xa2] sm:$0x1] %vm8117_vm4, %v8212_v46  ;;  %v8536_v31 = vld [vmem:[#allocation4 + $0x153] sm:$0x1]  ;;  %v8572_v41 = vld [vmem:[#allocation4 + $0x154] sm:$0x1] }
 0x61b   : > { %v8584_v17 = vld [vmem:[#allocation4 + $0x155] sm:$0x1]  ;;  %8272 = vst.msk [vmem:[#allocation5 + $0xa3] sm:$0x1] %vm8117_vm4, %v8260_v29  ;;  %v8548_v30 = vmax.f32 %v8524_v53, %v8536_v31  ;;  %v8620_v55 = vld [vmem:[#allocation4 + $0x156] sm:$0x1] }
 0x61c   : > { %v8596_v26 = vmax.f32 %v8572_v41, %v8584_v17  ;;  %v8632_v0 = vld [vmem:[#allocation4 + $0x157] sm:$0x1]  ;;  %8512 = vst.msk [vmem:[#allocation5 + $0xa8] sm:$0x1] %vm8117_vm4, %v8500_v54 }
 0x61d   : > { %v8644_v18 = vmax.f32 %v8620_v55, %v8632_v0  ;;  %8560 = vst.msk [vmem:[#allocation5 + $0xa9] sm:$0x1] %vm8117_vm4, %v8548_v30 }
 0x61e   : > { %8608 = vst.msk [vmem:[#allocation5 + $0xaa] sm:$0x1] %vm8117_vm4, %v8596_v26 }
 0x61f   : > { %8656 = vst.msk [vmem:[#allocation5 + $0xab] sm:$0x1] %vm8117_vm4, %v8644_v18  ;;  %v8477_v56 = vld [vmem:[#allocation4 + $0x170] sm:$0x1]  ;;  %v8489_v7 = vld [vmem:[#allocation4 + $0x171] sm:$0x1] }
 0x620   : > { %8078 = vst.msk [vmem:[#allocation4 + $0x168] sm:$0xff] %vm7792_vm2, %v8073_v32  ;;  %v8525_v19 = vld [vmem:[#allocation4 + $0x172] sm:$0x1]  ;;  %v8501_v60 = vmax.f32 %v8477_v56, %v8489_v7  ;;  %v8537_v20 = vld [vmem:[#allocation4 + $0x173] sm:$0x1] }
 0x621   : > { %v8573_v45 = vld [vmem:[#allocation4 + $0x174] sm:$0x1]  ;;  %v8585_v12 = vld [vmem:[#allocation4 + $0x175] sm:$0x1]  ;;  %v8549_v47 = vmax.f32 %v8525_v19, %v8537_v20  ;;  %v8621_v5 = vld [vmem:[#allocation4 + $0x176] sm:$0x1] }
 0x622   : > { %v8597_v8 = vmax.f32 %v8573_v45, %v8585_v12  ;;  %v8633_v52 = vld [vmem:[#allocation4 + $0x177] sm:$0x1]  ;;  %v8678_v61 = vld [vmem:[#allocation5 + $0xa0] sm:$0xff]  ;;  %8513 = vst.msk [vmem:[#allocation5 + $0xb8] sm:$0x1] %vm8117_vm4, %v8501_v60 }
 0x623   : > { %v8645_v48 = vmax.f32 %v8621_v5, %v8633_v52  ;;  %v8092_v43 = vld [vmem:[#allocation4 + $0x160] sm:$0x1]  ;;  %v8104_v37 = vld [vmem:[#allocation4 + $0x161] sm:$0x1]  ;;  %v9434_v62 = vpack.c.bf16 %v8678_v61, %v8678_v61  ;;  %8561 = vst.msk [vmem:[#allocation5 + $0xb9] sm:$0x1] %vm8117_vm4, %v8549_v47 }
 0x624   : > { %8609 = vst.msk [vmem:[#allocation5 + $0xba] sm:$0x1] %vm8117_vm4, %v8597_v8  ;;  %v8116_v1 = vmax.f32 %v8092_v43, %v8104_v37  ;;  %v8141_v50 = vld [vmem:[#allocation4 + $0x162] sm:$0x1]  ;;  %v8153_v2 = vld [vmem:[#allocation4 + $0x163] sm:$0x1] }
 0x625   : > { %v8189_v9 = vld [vmem:[#allocation4 + $0x164] sm:$0x1]  ;;  %8657 = vst.msk [vmem:[#allocation5 + $0xbb] sm:$0x1] %vm8117_vm4, %v8645_v48  ;;  %v8165_v51 = vmax.f32 %v8141_v50, %v8153_v2  ;;  %v8201_v16 = vld [vmem:[#allocation4 + $0x165] sm:$0x1] }
 0x626   : > { %v8237_v10 = vld [vmem:[#allocation4 + $0x166] sm:$0x1]  ;;  %v8249_v6 = vld [vmem:[#allocation4 + $0x167] sm:$0x1]  ;;  %8799 = vst.msk [vmem:[%s12571_s28 + $0x50] sm:$0xf] %vm7892_vm3, %v9434_v62  ;;  %v8213_v63 = vmax.f32 %v8189_v9, %v8201_v16 }
 0x627   : > { %v8679_v38 = vld [vmem:[#allocation5 + $0xa8] sm:$0xf]  ;;  %8129 = vst.msk [vmem:[#allocation5 + $0xb0] sm:$0x1] %vm8117_vm4, %v8116_v1  ;;  %v8261_v3 = vmax.f32 %v8237_v10, %v8249_v6  ;;  %8177 = vst.msk [vmem:[#allocation5 + $0xb1] sm:$0x1] %vm8117_vm4, %v8165_v51 }
 0x628   : > { %v8285_v39 = vld [vmem:[#allocation4 + $0x168] sm:$0x1]  ;;  %v8297_v15 = vld [vmem:[#allocation4 + $0x169] sm:$0x1]  ;;  %v9435_v13 = vpack.c.bf16 %v8679_v38, %v8679_v38  ;;  %v8333_v27 = vld [vmem:[#allocation4 + $0x16a] sm:$0x1] }
 0x629   : > { %v8309_v40 = vmax.f32 %v8285_v39, %v8297_v15  ;;  %v8345_v4 = vld [vmem:[#allocation4 + $0x16b] sm:$0x1]  ;;  %v8381_v21 = vld [vmem:[#allocation4 + $0x16c] sm:$0x1]  ;;  %8225 = vst.msk [vmem:[#allocation5 + $0xb2] sm:$0x1] %vm8117_vm4, %v8213_v63 }
 0x62a   : > { %8273 = vst.msk [vmem:[#allocation5 + $0xb3] sm:$0x1] %vm8117_vm4, %v8261_v3  ;;  %v8357_v23 = vmax.f32 %v8333_v27, %v8345_v4  ;;  %v8393_v14 = vld [vmem:[#allocation4 + $0x16d] sm:$0x1]  ;;  %v8429_v42 = vld [vmem:[#allocation4 + $0x16e] sm:$0x1] }
 0x62b   : > { %v8441_v44 = vld [vmem:[#allocation4 + $0x16f] sm:$0x1]  ;;  %8800 = vst.msk [vmem:[%s12571_s28 + $0x54] sm:$0x3] %vm8779_vm5, %v9435_v13  ;;  %v8405_v24 = vmax.f32 %v8381_v21, %v8393_v14 }
 0x62c   : > { %8321 = vst.msk [vmem:[#allocation5 + $0xb4] sm:$0x1] %vm8117_vm4, %v8309_v40  ;;  %v8453_v11 = vmax.f32 %v8429_v42, %v8441_v44  ;;  %8369 = vst.msk [vmem:[#allocation5 + $0xb5] sm:$0x1] %vm8117_vm4, %v8357_v23  ;;  %v8681_v28 = vld [vmem:[#allocation5 + $0xb8] sm:$0xf] }
 0x62d   : > { %8417 = vst.msk [vmem:[#allocation5 + $0xb6] sm:$0x1] %vm8117_vm4, %v8405_v24  ;;  %v9437_v33 = vpack.c.bf16 %v8681_v28, %v8681_v28 }
 0x62e   : > { %8465 = vst.msk [vmem:[#allocation5 + $0xb7] sm:$0x1] %vm8117_vm4, %v8453_v11 }
 0x62f   : > { %8802 = vst.msk [vmem:[%s12571_s28 + $0x5c] sm:$0x3] %vm8779_vm5, %v9437_v33 }
 0x635   : > { %v8680_v49 = vld [vmem:[#allocation5 + $0xb0] sm:$0xff] }
 0x636   : > { %v9436_v46 = vpack.c.bf16 %v8680_v49, %v8680_v49 }
 0x638   : > { %8801 = vst.msk [vmem:[%s12571_s28 + $0x58] sm:$0xf] %vm7892_vm3, %v9436_v46 }
 0x639 PF: > { %s15_s18 = sadd.s32 1, %s11529_s18  }
 0x63a   : > { %p12_p4 = scmp.ge.s32.totalorder %s15_s18, 4  }
 0x63c   :  { %14 = sbr.rel (!%p12_p4) target bundleno = 1 (0x1), region = 89 }

// kernel: net_forward.3
= control target key start
LH: loop header
LB: loop body
LE: loop exit
PB: predicated region body
PF: predicated region fallthrough
CT: control target
= control target key end

     0   :  { %vm8638_vm0 = vmmov 0   ;;  %vm6477_vm1 = vcmask 80896   ;;  %s10571_s1 = inlined_call_operand.vmem [shape: bf16[9216,128], index: 1, kind: input, shape index: {}]   ;;  %s10572_s0 = inlined_call_operand.vmem [shape: bf16[8,9216], index: 0, kind: input, shape index: {}]   ;;  %s10573_s2 = inlined_call_operand.vmem [shape: f32[1,128], index: 2, kind: input, shape index: {}]   ;;  %s10574_s3 = inlined_call_operand.vmem [shape: bf16[128,10], index: 3, kind: input, shape index: {}]   ;;  %s10575_s4 = inlined_call_operand.vmem [shape: f32[1,10], index: 4, kind: input, shape index: {}]   ;;  %s10576_s5 = inlined_call_operand.vmem [shape: f32[8,10], index: 5, kind: output, shape index: {}]  }
   0x1   :  { %v7977_v0 = vld [vmem:[%s10571_s1 + $0x40] sm:$0xff]   ;;  %v7981_v4 = vld [vmem:[%s10571_s1 + $0x48] sm:$0xff]   ;;  %v7985_v8 = vld [vmem:[%s10571_s1 + $0x50] sm:$0xff]  }
   0x2   :  { %v7978_v1 = vld [vmem:[%s10571_s1 + $0xc0] sm:$0xff]   ;;  %7154 = vmatprep.subr.bf16.mxu0 %v7977_v0  ;;  %v7982_v5 = vld [vmem:[%s10571_s1 + $0xc8] sm:$0xff]   ;;  %v7986_v9 = vld [vmem:[%s10571_s1 + $0xd0] sm:$0xff]  }
   0x3   :  { %v7979_v2 = vld [vmem:[%s10571_s1] sm:$0xff]   ;;  %7176 = vmatprep.subr.bf16.mxu1 %v7978_v1  ;;  %v7983_v6 = vld [vmem:[%s10571_s1 + $0x8] sm:$0xff]   ;;  %v7987_v10 = vld [vmem:[%s10571_s1 + $0x10] sm:$0xff]  }
   0x4   :  { %v7980_v3 = vld [vmem:[%s10571_s1 + $0x80] sm:$0xff]   ;;  %7155 = vmatpush3.bf16.msra.mxu0 %v7979_v2  ;;  %v7984_v7 = vld [vmem:[%s10571_s1 + $0x88] sm:$0xff]   ;;  %v7988_v11 = vld [vmem:[%s10571_s1 + $0x90] sm:$0xff]  }
   0x5   :  { %7177 = vmatpush3.bf16.msra.mxu1 %v7980_v3  ;;  %7156 = vmatprep.subr.bf16.mxu0 %v7981_v4  ;;  %v7989_v12 = vld [vmem:[%s10571_s1 + $0x58] sm:$0xff]   ;;  %v7993_v16 = vld [vmem:[%s10571_s1 + $0x60] sm:$0xff]   ;;  %v7997_v20 = vld [vmem:[%s10571_s1 + $0x68] sm:$0xff]  }
   0x6   :  { %7178 = vmatprep.subr.bf16.mxu1 %v7982_v5  ;;  %v7990_v13 = vld [vmem:[%s10571_s1 + $0xd8] sm:$0xff]   ;;  %v7994_v17 = vld [vmem:[%s10571_s1 + $0xe0] sm:$0xff]   ;;  %v7998_v21 = vld [vmem:[%s10571_s1 + $0xe8] sm:$0xff]  }
   0x7   :  { %v7991_v14 = vld [vmem:[%s10571_s1 + $0x18] sm:$0xff]   ;;  %v7995_v18 = vld [vmem:[%s10571_s1 + $0x20] sm:$0xff]   ;;  %v7999_v22 = vld [vmem:[%s10571_s1 + $0x28] sm:$0xff]  }
   0x8   :  { %7157 = vmatpush3.bf16.msra.mxu0 %v7983_v6  ;;  %v7992_v15 = vld [vmem:[%s10571_s1 + $0x98] sm:$0xff]   ;;  %v7996_v19 = vld [vmem:[%s10571_s1 + $0xa0] sm:$0xff]   ;;  %v8000_v23 = vld [vmem:[%s10571_s1 + $0xa8] sm:$0xff]  }
   0x9   :  { %7179 = vmatpush3.bf16.msra.mxu1 %v7984_v7  ;;  %7158 = vmatprep.subr.bf16.mxu0 %v7985_v8  ;;  %v8001_v24 = vld [vmem:[%s10571_s1 + $0x70] sm:$0xff]   ;;  %v8005_v28 = vld [vmem:[%s10571_s1 + $0x78] sm:$0xff]   ;;  %v21_v32 = vld [vmem:[%s10572_s0] sm:$0xff] }
   0xa   :  { %7180 = vmatprep.subr.bf16.mxu1 %v7986_v9  ;;  %v8002_v25 = vld [vmem:[%s10571_s1 + $0xf0] sm:$0xff]   ;;  %v8006_v29 = vld [vmem:[%s10571_s1 + $0xf8] sm:$0xff]   ;;  %v22_v33 = vld [vmem:[%s10572_s0 + $0x8] sm:$0xff]  ;;  %v6497_v34 = vcombine.low %v21_v32, %v21_v32  ;;  %v6498_v35 = vcombine.high %v21_v32, %v21_v32 }
   0xb   :  { %v8003_v26 = vld [vmem:[%s10571_s1 + $0x30] sm:$0xff]   ;;  %v8007_v30 = vld [vmem:[%s10571_s1 + $0x38] sm:$0xff]   ;;  %v6499_v36 = vcombine.low %v22_v33, %v22_v33  ;;  %v6500_v37 = vcombine.high %v22_v33, %v22_v33  ;;  %v8013_v38 = vld [vmem:[%s10571_s1 + $0x140] sm:$0xff]  }
   0xc   :  { %7159 = vmatpush3.bf16.msra.mxu0 %v7987_v10  ;;  %v8004_v27 = vld [vmem:[%s10571_s1 + $0xb0] sm:$0xff]   ;;  %v8008_v31 = vld [vmem:[%s10571_s1 + $0xb8] sm:$0xff]   ;;  %v8014_v39 = vld [vmem:[%s10571_s1 + $0x1c0] sm:$0xff]   ;;  %4956 = vmatprep.mubr.bf16.mxu0 %v6498_v35 }
   0xd   :  { %7181 = vmatpush3.bf16.msra.mxu1 %v7988_v11  ;;  %7160 = vmatprep.subr.bf16.mxu0 %v7989_v12  ;;  %v8015_v40 = vld [vmem:[%s10571_s1 + $0x100] sm:$0xff]   ;;  %v8017_v42 = vld [vmem:[%s10571_s1 + $0x148] sm:$0xff]   ;;  %v8021_v46 = vld [vmem:[%s10571_s1 + $0x150] sm:$0xff]  }
   0xe   :  { %7182 = vmatprep.subr.bf16.mxu1 %v7990_v13  ;;  %4996 = vmatprep.mubr.bf16.mxu1 %v6500_v37  ;;  %v8016_v41 = vld [vmem:[%s10571_s1 + $0x180] sm:$0xff]   ;;  %v8018_v43 = vld [vmem:[%s10571_s1 + $0x1c8] sm:$0xff]   ;;  %v8022_v47 = vld [vmem:[%s10571_s1 + $0x1d0] sm:$0xff]  }
   0xf   :  { %v8019_v44 = vld [vmem:[%s10571_s1 + $0x108] sm:$0xff]   ;;  %v8023_v48 = vld [vmem:[%s10571_s1 + $0x110] sm:$0xff]   ;;  %v8025_v50 = vld [vmem:[%s10571_s1 + $0x158] sm:$0xff]  }
  0x10   :  { %7161 = vmatpush3.bf16.msra.mxu0 %v7991_v14  ;;  %v8020_v45 = vld [vmem:[%s10571_s1 + $0x188] sm:$0xff]   ;;  %v8024_v49 = vld [vmem:[%s10571_s1 + $0x190] sm:$0xff]   ;;  %v8026_v51 = vld [vmem:[%s10571_s1 + $0x1d8] sm:$0xff]  }
  0x11   :  { %7183 = vmatpush3.bf16.msra.mxu1 %v7992_v15  ;;  %7162 = vmatprep.subr.bf16.mxu0 %v7993_v16  ;;  %v8027_v52 = vld [vmem:[%s10571_s1 + $0x118] sm:$0xff]   ;;  %v8029_v54 = vld [vmem:[%s10571_s1 + $0x160] sm:$0xff]   ;;  %v8033_v58 = vld [vmem:[%s10571_s1 + $0x168] sm:$0xff]  }
  0x12   :  { %7184 = vmatprep.subr.bf16.mxu1 %v7994_v17  ;;  %v8028_v53 = vld [vmem:[%s10571_s1 + $0x198] sm:$0xff]   ;;  %v8030_v55 = vld [vmem:[%s10571_s1 + $0x1e0] sm:$0xff]   ;;  %v8034_v59 = vld [vmem:[%s10571_s1 + $0x1e8] sm:$0xff]  }
  0x13   :  { %v8031_v56 = vld [vmem:[%s10571_s1 + $0x120] sm:$0xff]   ;;  %v8035_v60 = vld [vmem:[%s10571_s1 + $0x128] sm:$0xff]   ;;  %v8037_v62 = vld [vmem:[%s10571_s1 + $0x170] sm:$0xff]  }
  0x14   :  { %7163 = vmatpush3.bf16.msra.mxu0 %v7995_v18  ;;  %v8032_v57 = vld [vmem:[%s10571_s1 + $0x1a0] sm:$0xff]   ;;  %v8036_v61 = vld [vmem:[%s10571_s1 + $0x1a8] sm:$0xff]   ;;  %v8038_v63 = vld [vmem:[%s10571_s1 + $0x1f0] sm:$0xff]  }
  0x15   :  { %7185 = vmatpush3.bf16.msra.mxu1 %v7996_v19  ;;  %7164 = vmatprep.subr.bf16.mxu0 %v7997_v20  ;;  %v8039_v0 = vld [vmem:[%s10571_s1 + $0x130] sm:$0xff]   ;;  %v8041_v2 = vld [vmem:[%s10571_s1 + $0x178] sm:$0xff]   ;;  %v8049_v12 = vld [vmem:[%s10571_s1 + $0x240] sm:$0xff]  }
  0x16   :  { %7186 = vmatprep.subr.bf16.mxu1 %v7998_v21  ;;  %v8040_v1 = vld [vmem:[%s10571_s1 + $0x1b0] sm:$0xff]   ;;  %v8042_v3 = vld [vmem:[%s10571_s1 + $0x1f8] sm:$0xff]   ;;  %v8050_v13 = vld [vmem:[%s10571_s1 + $0x2c0] sm:$0xff]  }
  0x17   :  { %v8043_v4 = vld [vmem:[%s10571_s1 + $0x138] sm:$0xff]   ;;  %v23_v6 = vld [vmem:[%s10572_s0 + $0x10] sm:$0xff]  ;;  %v8051_v14 = vld [vmem:[%s10571_s1 + $0x200] sm:$0xff]  }
  0x18   :  { %7165 = vmatpush3.bf16.msra.mxu0 %v7999_v22  ;;  %v8044_v5 = vld [vmem:[%s10571_s1 + $0x1b8] sm:$0xff]   ;;  %v6501_v7 = vcombine.low %v23_v6, %v23_v6  ;;  %v6502_v8 = vcombine.high %v23_v6, %v23_v6  ;;  %v8052_v15 = vld [vmem:[%s10571_s1 + $0x280] sm:$0xff]   ;;  %v8053_v16 = vld [vmem:[%s10571_s1 + $0x248] sm:$0xff]  }
  0x19   :  { %7187 = vmatpush3.bf16.msra.mxu1 %v8000_v23  ;;  %7166 = vmatprep.subr.bf16.mxu0 %v8001_v24  ;;  %v24_v9 = vld [vmem:[%s10572_s0 + $0x18] sm:$0xff]  ;;  %v8054_v17 = vld [vmem:[%s10571_s1 + $0x2c8] sm:$0xff]   ;;  %v8057_v20 = vld [vmem:[%s10571_s1 + $0x250] sm:$0xff]  }
  0x1a   :  { %7188 = vmatprep.subr.bf16.mxu1 %v8002_v25  ;;  %v6503_v10 = vcombine.low %v24_v9, %v24_v9  ;;  %v6504_v11 = vcombine.high %v24_v9, %v24_v9  ;;  %v8055_v18 = vld [vmem:[%s10571_s1 + $0x208] sm:$0xff]   ;;  %v8058_v21 = vld [vmem:[%s10571_s1 + $0x2d0] sm:$0xff]   ;;  %v8061_v24 = vld [vmem:[%s10571_s1 + $0x258] sm:$0xff]  }
  0x1b   :  { %v8056_v19 = vld [vmem:[%s10571_s1 + $0x288] sm:$0xff]   ;;  %v8059_v22 = vld [vmem:[%s10571_s1 + $0x210] sm:$0xff]   ;;  %v8062_v25 = vld [vmem:[%s10571_s1 + $0x2d8] sm:$0xff]  }
  0x1c   :  { %7167 = vmatpush3.bf16.msra.mxu0 %v8003_v26  ;;  %v8060_v23 = vld [vmem:[%s10571_s1 + $0x290] sm:$0xff]   ;;  %v8063_v26 = vld [vmem:[%s10571_s1 + $0x218] sm:$0xff]   ;;  %v8069_v32 = vld [vmem:[%s10571_s1 + $0x268] sm:$0xff]  }
  0x1d   :  { %7189 = vmatpush3.bf16.msra.mxu1 %v8004_v27  ;;  %7168 = vmatprep.subr.bf16.mxu0 %v8005_v28  ;;  %v8064_v27 = vld [vmem:[%s10571_s1 + $0x298] sm:$0xff]   ;;  %v8065_v28 = vld [vmem:[%s10571_s1 + $0x260] sm:$0xff]   ;;  %v8070_v33 = vld [vmem:[%s10571_s1 + $0x2e8] sm:$0xff]  }
  0x1e   :  { %7190 = vmatprep.subr.bf16.mxu1 %v8006_v29  ;;  %v8066_v29 = vld [vmem:[%s10571_s1 + $0x2e0] sm:$0xff]   ;;  %v8072_v35 = vld [vmem:[%s10571_s1 + $0x2a8] sm:$0xff]   ;;  %v8074_v37 = vld [vmem:[%s10571_s1 + $0x2f0] sm:$0xff]  }
  0x1f   :  { %v8105_v6 = vld [vmem:[%s10571_s1 + $0x368] sm:$0xff]  }
  0x20   :  { %7169 = vmatpush3.bf16.msra.mxu0 %v8007_v30  ;;  %v8067_v30 = vld [vmem:[%s10571_s1 + $0x220] sm:$0xff]   ;;  %v8108_v9 = vld [vmem:[%s10571_s1 + $0x3a8] sm:$0xff]  }
  0x21   :  { %7191 = vmatpush3.bf16.msra.mxu1 %v8008_v31  ;;  %7198 = vmatprep.subr.bf16.mxu0 %v8013_v38  ;;  %v8068_v31 = vld [vmem:[%s10571_s1 + $0x2a0] sm:$0xff]   ;;  %v8075_v38 = vld [vmem:[%s10571_s1 + $0x230] sm:$0xff]  }
  0x22   :  { %7220 = vmatprep.subr.bf16.mxu1 %v8014_v39  ;;  %v8076_v39 = vld [vmem:[%s10571_s1 + $0x2b0] sm:$0xff]  }
  0x23   :  { %4957 = vmatmul.mubr.bf16.vlgmr.msra.gmra.mrb[0].mxu0 %v6497_v34  ;;  %v8071_v34 = vld [vmem:[%s10571_s1 + $0x228] sm:$0xff]  }
  0x24   :  { %4997 = vmatmul.mubr.bf16.vlgmr.msra.gmra.mrb[0].mxu1 %v6499_v36  ;;  %7199 = vmatpush3.bf16.msra.mxu0 %v8015_v40  ;;  %v8073_v36 = vld [vmem:[%s10571_s1 + $0x270] sm:$0xff]   ;;  %v8077_v40 = vld [vmem:[%s10571_s1 + $0x278] sm:$0xff]  }
  0x25   :  { %7221 = vmatpush3.bf16.msra.mxu1 %v8016_v41  ;;  %7200 = vmatprep.subr.bf16.mxu0 %v8017_v42  ;;  %v8078_v41 = vld [vmem:[%s10571_s1 + $0x2f8] sm:$0xff]  }
  0x26   :  { %7222 = vmatprep.subr.bf16.mxu1 %v8018_v43  ;;  %5036 = vmatprep.mubr.bf16.mxu0 %v6502_v8  ;;  %v8079_v42 = vld [vmem:[%s10571_s1 + $0x238] sm:$0xff]   ;;  %v8107_v8 = vld [vmem:[%s10571_s1 + $0x328] sm:$0xff]  }
  0x27   :  { %5076 = vmatprep.mubr.bf16.mxu1 %v6504_v11  ;;  %v8080_v43 = vld [vmem:[%s10571_s1 + $0x2b8] sm:$0xff]   ;;  %v8110_v11 = vld [vmem:[%s10571_s1 + $0x3f0] sm:$0xff]  }
  0x28   :  { %7201 = vmatpush3.bf16.msra.mxu0 %v8019_v44  ;;  %v25_v44 = vld [vmem:[%s10572_s0 + $0x20] sm:$0xff] }
  0x29   :  { %7223 = vmatpush3.bf16.msra.mxu1 %v8020_v45  ;;  %7202 = vmatprep.subr.bf16.mxu0 %v8021_v46  ;;  %v26_v45 = vld [vmem:[%s10572_s0 + $0x28] sm:$0xff]  ;;  %v6505_v46 = vcombine.low %v25_v44, %v25_v44 }
  0x2a   :  { %7224 = vmatprep.subr.bf16.mxu1 %v8022_v47  ;;  %v6506_v47 = vcombine.high %v25_v44, %v25_v44  ;;  %v8141_v44 = vld [vmem:[%s10571_s1 + $0x468] sm:$0xff]  }
  0x2c   :  { %7203 = vmatpush3.bf16.msra.mxu0 %v8023_v48  ;;  %v6507_v48 = vcombine.low %v26_v45, %v26_v45 }
  0x2d   :  { %7225 = vmatpush3.bf16.msra.mxu1 %v8024_v49  ;;  %7204 = vmatprep.subr.bf16.mxu0 %v8025_v50  ;;  %v6508_v49 = vcombine.high %v26_v45, %v26_v45  ;;  %v8085_v50 = vld [vmem:[%s10571_s1 + $0x340] sm:$0xff]   ;;  %v8142_v45 = vld [vmem:[%s10571_s1 + $0x4e8] sm:$0xff]  }
  0x2e   :  { %7226 = vmatprep.subr.bf16.mxu1 %v8026_v51  ;;  %v8086_v51 = vld [vmem:[%s10571_s1 + $0x3c0] sm:$0xff]  }
  0x30   :  { %7205 = vmatpush3.bf16.msra.mxu0 %v8027_v52  ;;  %v8087_v52 = vld [vmem:[%s10571_s1 + $0x300] sm:$0xff]  }
  0x31   :  { %7227 = vmatpush3.bf16.msra.mxu1 %v8028_v53  ;;  %7206 = vmatprep.subr.bf16.mxu0 %v8029_v54  ;;  %v8088_v53 = vld [vmem:[%s10571_s1 + $0x380] sm:$0xff]   ;;  %v8089_v54 = vld [vmem:[%s10571_s1 + $0x348] sm:$0xff]  }
  0x32   :  { %7228 = vmatprep.subr.bf16.mxu1 %v8030_v55  ;;  %v8090_v55 = vld [vmem:[%s10571_s1 + $0x3c8] sm:$0xff]  }
  0x34   :  { %7207 = vmatpush3.bf16.msra.mxu0 %v8031_v56  ;;  %v8091_v56 = vld [vmem:[%s10571_s1 + $0x308] sm:$0xff]  }
  0x35   :  { %7229 = vmatpush3.bf16.msra.mxu1 %v8032_v57  ;;  %7208 = vmatprep.subr.bf16.mxu0 %v8033_v58  ;;  %v8092_v57 = vld [vmem:[%s10571_s1 + $0x388] sm:$0xff]   ;;  %v8093_v58 = vld [vmem:[%s10571_s1 + $0x350] sm:$0xff]  }
  0x36   :  { %7230 = vmatprep.subr.bf16.mxu1 %v8034_v59  ;;  %v8094_v59 = vld [vmem:[%s10571_s1 + $0x3d0] sm:$0xff]  }
  0x38   :  { %7209 = vmatpush3.bf16.msra.mxu0 %v8035_v60  ;;  %v8095_v60 = vld [vmem:[%s10571_s1 + $0x310] sm:$0xff]  }
  0x39   :  { %7231 = vmatpush3.bf16.msra.mxu1 %v8036_v61  ;;  %7210 = vmatprep.subr.bf16.mxu0 %v8037_v62  ;;  %v8096_v61 = vld [vmem:[%s10571_s1 + $0x390] sm:$0xff]   ;;  %v8097_v62 = vld [vmem:[%s10571_s1 + $0x358] sm:$0xff]  }
  0x3a   :  { %7232 = vmatprep.subr.bf16.mxu1 %v8038_v63  ;;  %v8098_v63 = vld [vmem:[%s10571_s1 + $0x3d8] sm:$0xff]  }
  0x3c   :  { %7211 = vmatpush3.bf16.msra.mxu0 %v8039_v0  ;;  %v8099_v0 = vld [vmem:[%s10571_s1 + $0x318] sm:$0xff]  }
  0x3d   :  { %7233 = vmatpush3.bf16.msra.mxu1 %v8040_v1  ;;  %7212 = vmatprep.subr.bf16.mxu0 %v8041_v2  ;;  %v8100_v1 = vld [vmem:[%s10571_s1 + $0x398] sm:$0xff]   ;;  %v8101_v2 = vld [vmem:[%s10571_s1 + $0x360] sm:$0xff]  }
  0x3e   :  { %7234 = vmatprep.subr.bf16.mxu1 %v8042_v3  ;;  %v8102_v3 = vld [vmem:[%s10571_s1 + $0x3e0] sm:$0xff]  }
  0x40   :  { %7213 = vmatpush3.bf16.msra.mxu0 %v8043_v4  ;;  %v8103_v4 = vld [vmem:[%s10571_s1 + $0x320] sm:$0xff]  }
  0x41   :  { %7235 = vmatpush3.bf16.msra.mxu1 %v8044_v5  ;;  %7242 = vmatprep.subr.bf16.mxu0 %v8049_v12  ;;  %v8104_v5 = vld [vmem:[%s10571_s1 + $0x3a0] sm:$0xff]   ;;  %v8111_v12 = vld [vmem:[%s10571_s1 + $0x330] sm:$0xff]  }
  0x42   :  { %7264 = vmatprep.subr.bf16.mxu1 %v8050_v13  ;;  %v8112_v13 = vld [vmem:[%s10571_s1 + $0x3b0] sm:$0xff]  }
  0x43   :  { %5037 = vmatmul.mubr.bf16.vlgmr.msra.gmra.mrb[4].mxu0 %v6501_v7  ;;  %v8106_v7 = vld [vmem:[%s10571_s1 + $0x3e8] sm:$0xff]  }
  0x44   :  { %5077 = vmatmul.mubr.bf16.vlgmr.msra.gmra.mrb[4].mxu1 %v6503_v10  ;;  %7243 = vmatpush3.bf16.msra.mxu0 %v8051_v14  ;;  %v8109_v10 = vld [vmem:[%s10571_s1 + $0x370] sm:$0xff]   ;;  %v8113_v14 = vld [vmem:[%s10571_s1 + $0x378] sm:$0xff]  }
  0x45   :  { %7265 = vmatpush3.bf16.msra.mxu1 %v8052_v15  ;;  %7244 = vmatprep.subr.bf16.mxu0 %v8053_v16  ;;  %v8114_v15 = vld [vmem:[%s10571_s1 + $0x3f8] sm:$0xff]  }
  0x46   :  { %7266 = vmatprep.subr.bf16.mxu1 %v8054_v17  ;;  %5116 = vmatprep.mubr.bf16.mxu0 %v6506_v47  ;;  %v8115_v16 = vld [vmem:[%s10571_s1 + $0x338] sm:$0xff]   ;;  %v8144_v47 = vld [vmem:[%s10571_s1 + $0x4a8] sm:$0xff]  }
  0x47   :  { %5156 = vmatprep.mubr.bf16.mxu1 %v6508_v49  ;;  %v8116_v17 = vld [vmem:[%s10571_s1 + $0x3b8] sm:$0xff]   ;;  %v8146_v49 = vld [vmem:[%s10571_s1 + $0x4f0] sm:$0xff]  }
  0x48   :  { %7245 = vmatpush3.bf16.msra.mxu0 %v8055_v18  ;;  %v27_v18 = vld [vmem:[%s10572_s0 + $0x30] sm:$0xff] }
  0x49   :  { %7267 = vmatpush3.bf16.msra.mxu1 %v8056_v19  ;;  %7246 = vmatprep.subr.bf16.mxu0 %v8057_v20  ;;  %v28_v19 = vld [vmem:[%s10572_s0 + $0x38] sm:$0xff]  ;;  %v6509_v20 = vcombine.low %v27_v18, %v27_v18 }
  0x4a   :  { %7268 = vmatprep.subr.bf16.mxu1 %v8058_v21  ;;  %v6510_v21 = vcombine.high %v27_v18, %v27_v18  ;;  %v8177_v18 = vld [vmem:[%s10571_s1 + $0x568] sm:$0xff]  }
  0x4c   :  { %7247 = vmatpush3.bf16.msra.mxu0 %v8059_v22  ;;  %v6511_v22 = vcombine.low %v28_v19, %v28_v19 }
  0x4d   :  { %7269 = vmatpush3.bf16.msra.mxu1 %v8060_v23  ;;  %7248 = vmatprep.subr.bf16.mxu0 %v8061_v24  ;;  %v8121_v23 = vld [vmem:[%s10571_s1 + $0x440] sm:$0xff]   ;;  %v6512_v24 = vcombine.high %v28_v19, %v28_v19  ;;  %v8178_v19 = vld [vmem:[%s10571_s1 + $0x5e8] sm:$0xff]  }
  0x4e   :  { %7270 = vmatprep.subr.bf16.mxu1 %v8062_v25  ;;  %v8122_v25 = vld [vmem:[%s10571_s1 + $0x4c0] sm:$0xff]  }
  0x50   :  { %7249 = vmatpush3.bf16.msra.mxu0 %v8063_v26  ;;  %v8123_v26 = vld [vmem:[%s10571_s1 + $0x400] sm:$0xff]  }
  0x51   :  { %7271 = vmatpush3.bf16.msra.mxu1 %v8064_v27  ;;  %7250 = vmatprep.subr.bf16.mxu0 %v8065_v28  ;;  %v8124_v27 = vld [vmem:[%s10571_s1 + $0x480] sm:$0xff]   ;;  %v8125_v28 = vld [vmem:[%s10571_s1 + $0x448] sm:$0xff]  }
  0x52   :  { %7272 = vmatprep.subr.bf16.mxu1 %v8066_v29  ;;  %v8126_v29 = vld [vmem:[%s10571_s1 + $0x4c8] sm:$0xff]  }
  0x54   :  { %7251 = vmatpush3.bf16.msra.mxu0 %v8067_v30  ;;  %v8127_v30 = vld [vmem:[%s10571_s1 + $0x408] sm:$0xff]  }
  0x55   :  { %7273 = vmatpush3.bf16.msra.mxu1 %v8068_v31  ;;  %7252 = vmatprep.subr.bf16.mxu0 %v8069_v32  ;;  %v8128_v31 = vld [vmem:[%s10571_s1 + $0x488] sm:$0xff]   ;;  %v8129_v32 = vld [vmem:[%s10571_s1 + $0x450] sm:$0xff]  }
  0x56   :  { %7274 = vmatprep.subr.bf16.mxu1 %v8070_v33  ;;  %v8130_v33 = vld [vmem:[%s10571_s1 + $0x4d0] sm:$0xff]  }
  0x58   :  { %7253 = vmatpush3.bf16.msra.mxu0 %v8071_v34  ;;  %v8131_v34 = vld [vmem:[%s10571_s1 + $0x410] sm:$0xff]  }
  0x59   :  { %7275 = vmatpush3.bf16.msra.mxu1 %v8072_v35  ;;  %7254 = vmatprep.subr.bf16.mxu0 %v8073_v36  ;;  %v8132_v35 = vld [vmem:[%s10571_s1 + $0x490] sm:$0xff]   ;;  %v8133_v36 = vld [vmem:[%s10571_s1 + $0x458] sm:$0xff]  }
  0x5a   :  { %7276 = vmatprep.subr.bf16.mxu1 %v8074_v37  ;;  %v8134_v37 = vld [vmem:[%s10571_s1 + $0x4d8] sm:$0xff]  }
  0x5c   :  { %7255 = vmatpush3.bf16.msra.mxu0 %v8075_v38  ;;  %v8135_v38 = vld [vmem:[%s10571_s1 + $0x418] sm:$0xff]  }
  0x5d   :  { %7277 = vmatpush3.bf16.msra.mxu1 %v8076_v39  ;;  %7256 = vmatprep.subr.bf16.mxu0 %v8077_v40  ;;  %v8136_v39 = vld [vmem:[%s10571_s1 + $0x498] sm:$0xff]   ;;  %v8137_v40 = vld [vmem:[%s10571_s1 + $0x460] sm:$0xff]  }
  0x5e   :  { %7278 = vmatprep.subr.bf16.mxu1 %v8078_v41  ;;  %v8138_v41 = vld [vmem:[%s10571_s1 + $0x4e0] sm:$0xff]  }
  0x60   :  { %7257 = vmatpush3.bf16.msra.mxu0 %v8079_v42  ;;  %v8139_v42 = vld [vmem:[%s10571_s1 + $0x420] sm:$0xff]  }
  0x61   :  { %7279 = vmatpush3.bf16.msra.mxu1 %v8080_v43  ;;  %7286 = vmatprep.subr.bf16.mxu0 %v8085_v50  ;;  %v8140_v43 = vld [vmem:[%s10571_s1 + $0x4a0] sm:$0xff]   ;;  %v8147_v50 = vld [vmem:[%s10571_s1 + $0x430] sm:$0xff]  }
  0x62   :  { %7308 = vmatprep.subr.bf16.mxu1 %v8086_v51  ;;  %v8148_v51 = vld [vmem:[%s10571_s1 + $0x4b0] sm:$0xff]  }
  0x63   :  { %5117 = vmatmul.mubr.bf16.vlgmr.msra.gmra.mrb[8].mxu0 %v6505_v46  ;;  %v8143_v46 = vld [vmem:[%s10571_s1 + $0x428] sm:$0xff]  }
  0x64   :  { %5157 = vmatmul.mubr.bf16.vlgmr.msra.gmra.mrb[8].mxu1 %v6507_v48  ;;  %7287 = vmatpush3.bf16.msra.mxu0 %v8087_v52  ;;  %v8145_v48 = vld [vmem:[%s10571_s1 + $0x470] sm:$0xff]   ;;  %v8149_v52 = vld [vmem:[%s10571_s1 + $0x478] sm:$0xff]  }
  0x65   :  { %7309 = vmatpush3.bf16.msra.mxu1 %v8088_v53  ;;  %7288 = vmatprep.subr.bf16.mxu0 %v8089_v54  ;;  %v8150_v53 = vld [vmem:[%s10571_s1 + $0x4f8] sm:$0xff]  }
  0x66   :  { %7310 = vmatprep.subr.bf16.mxu1 %v8090_v55  ;;  %5196 = vmatprep.mubr.bf16.mxu0 %v6510_v21  ;;  %v8151_v54 = vld [vmem:[%s10571_s1 + $0x438] sm:$0xff]   ;;  %v8180_v21 = vld [vmem:[%s10571_s1 + $0x5a8] sm:$0xff]  }
  0x67   :  { %5236 = vmatprep.mubr.bf16.mxu1 %v6512_v24  ;;  %v8152_v55 = vld [vmem:[%s10571_s1 + $0x4b8] sm:$0xff]   ;;  %v8183_v24 = vld [vmem:[%s10571_s1 + $0x530] sm:$0xff]  }
  0x68   :  { %7289 = vmatpush3.bf16.msra.mxu0 %v8091_v56  ;;  %v29_v56 = vld [vmem:[%s10572_s0 + $0x40] sm:$0xff] }
  0x69   :  { %7311 = vmatpush3.bf16.msra.mxu1 %v8092_v57  ;;  %7290 = vmatprep.subr.bf16.mxu0 %v8093_v58  ;;  %v6513_v57 = vcombine.low %v29_v56, %v29_v56  ;;  %v6514_v58 = vcombine.high %v29_v56, %v29_v56  ;;  %v8213_v56 = vld [vmem:[%s10571_s1 + $0x668] sm:$0xff]  }
  0x6a   :  { %7312 = vmatprep.subr.bf16.mxu1 %v8094_v59  ;;  %v30_v59 = vld [vmem:[%s10572_s0 + $0x48] sm:$0xff] }
  0x6c   :  { %7291 = vmatpush3.bf16.msra.mxu0 %v8095_v60  ;;  %v6515_v60 = vcombine.low %v30_v59, %v30_v59 }
  0x6d   :  { %7313 = vmatpush3.bf16.msra.mxu1 %v8096_v61  ;;  %7292 = vmatprep.subr.bf16.mxu0 %v8097_v62  ;;  %v6516_v61 = vcombine.high %v30_v59, %v30_v59  ;;  %v8157_v62 = vld [vmem:[%s10571_s1 + $0x540] sm:$0xff]   ;;  %v8216_v59 = vld [vmem:[%s10571_s1 + $0x6a8] sm:$0xff]  }
  0x6e   :  { %7314 = vmatprep.subr.bf16.mxu1 %v8098_v63  ;;  %v8158_v63 = vld [vmem:[%s10571_s1 + $0x5c0] sm:$0xff]  }
  0x70   :  { %7293 = vmatpush3.bf16.msra.mxu0 %v8099_v0  ;;  %v8159_v0 = vld [vmem:[%s10571_s1 + $0x500] sm:$0xff]  }
  0x71   :  { %7315 = vmatpush3.bf16.msra.mxu1 %v8100_v1  ;;  %7294 = vmatprep.subr.bf16.mxu0 %v8101_v2  ;;  %v8160_v1 = vld [vmem:[%s10571_s1 + $0x580] sm:$0xff]   ;;  %v8161_v2 = vld [vmem:[%s10571_s1 + $0x548] sm:$0xff]  }
  0x72   :  { %7316 = vmatprep.subr.bf16.mxu1 %v8102_v3  ;;  %v8162_v3 = vld [vmem:[%s10571_s1 + $0x5c8] sm:$0xff]  }
  0x74   :  { %7295 = vmatpush3.bf16.msra.mxu0 %v8103_v4  ;;  %v8163_v4 = vld [vmem:[%s10571_s1 + $0x508] sm:$0xff]  }
  0x75   :  { %7317 = vmatpush3.bf16.msra.mxu1 %v8104_v5  ;;  %7296 = vmatprep.subr.bf16.mxu0 %v8105_v6  ;;  %v8164_v5 = vld [vmem:[%s10571_s1 + $0x588] sm:$0xff]   ;;  %v8165_v6 = vld [vmem:[%s10571_s1 + $0x550] sm:$0xff]  }
  0x76   :  { %7318 = vmatprep.subr.bf16.mxu1 %v8106_v7  ;;  %v8166_v7 = vld [vmem:[%s10571_s1 + $0x5d0] sm:$0xff]  }
  0x78   :  { %7297 = vmatpush3.bf16.msra.mxu0 %v8107_v8  ;;  %v8167_v8 = vld [vmem:[%s10571_s1 + $0x510] sm:$0xff]  }
  0x79   :  { %7319 = vmatpush3.bf16.msra.mxu1 %v8108_v9  ;;  %7298 = vmatprep.subr.bf16.mxu0 %v8109_v10  ;;  %v8168_v9 = vld [vmem:[%s10571_s1 + $0x590] sm:$0xff]   ;;  %v8169_v10 = vld [vmem:[%s10571_s1 + $0x558] sm:$0xff]  }
  0x7a   :  { %7320 = vmatprep.subr.bf16.mxu1 %v8110_v11  ;;  %v8170_v11 = vld [vmem:[%s10571_s1 + $0x5d8] sm:$0xff]  }
  0x7c   :  { %7299 = vmatpush3.bf16.msra.mxu0 %v8111_v12  ;;  %v8171_v12 = vld [vmem:[%s10571_s1 + $0x518] sm:$0xff]  }
  0x7d   :  { %7321 = vmatpush3.bf16.msra.mxu1 %v8112_v13  ;;  %7300 = vmatprep.subr.bf16.mxu0 %v8113_v14  ;;  %v8172_v13 = vld [vmem:[%s10571_s1 + $0x598] sm:$0xff]   ;;  %v8173_v14 = vld [vmem:[%s10571_s1 + $0x560] sm:$0xff]  }
  0x7e   :  { %7322 = vmatprep.subr.bf16.mxu1 %v8114_v15  ;;  %v8174_v15 = vld [vmem:[%s10571_s1 + $0x5e0] sm:$0xff]  }
  0x80   :  { %7301 = vmatpush3.bf16.msra.mxu0 %v8115_v16  ;;  %v8175_v16 = vld [vmem:[%s10571_s1 + $0x520] sm:$0xff]  }
  0x81   :  { %7323 = vmatpush3.bf16.msra.mxu1 %v8116_v17  ;;  %7330 = vmatprep.subr.bf16.mxu0 %v8121_v23  ;;  %v8176_v17 = vld [vmem:[%s10571_s1 + $0x5a0] sm:$0xff]   ;;  %v8182_v23 = vld [vmem:[%s10571_s1 + $0x5f0] sm:$0xff]  }
  0x82   :  { %7352 = vmatprep.subr.bf16.mxu1 %v8122_v25  ;;  %v8184_v25 = vld [vmem:[%s10571_s1 + $0x5b0] sm:$0xff]  }
  0x83   :  { %5197 = vmatmul.mubr.bf16.vlgmr.msra.gmra.mrb[12].mxu0 %v6509_v20  ;;  %v8179_v20 = vld [vmem:[%s10571_s1 + $0x528] sm:$0xff]  }
  0x84   :  { %5237 = vmatmul.mubr.bf16.vlgmr.msra.gmra.mrb[12].mxu1 %v6511_v22  ;;  %7331 = vmatpush3.bf16.msra.mxu0 %v8123_v26  ;;  %v8181_v22 = vld [vmem:[%s10571_s1 + $0x570] sm:$0xff]   ;;  %v8185_v26 = vld [vmem:[%s10571_s1 + $0x578] sm:$0xff]  }
  0x85   :  { %7353 = vmatpush3.bf16.msra.mxu1 %v8124_v27  ;;  %7332 = vmatprep.subr.bf16.mxu0 %v8125_v28  ;;  %v8186_v27 = vld [vmem:[%s10571_s1 + $0x5f8] sm:$0xff]  }
  0x86   :  { %7354 = vmatprep.subr.bf16.mxu1 %v8126_v29  ;;  %5276 = vmatprep.mubr.bf16.mxu0 %v6514_v58  ;;  %v8187_v28 = vld [vmem:[%s10571_s1 + $0x538] sm:$0xff]   ;;  %v8215_v58 = vld [vmem:[%s10571_s1 + $0x628] sm:$0xff]  }
  0x87   :  { %5316 = vmatprep.mubr.bf16.mxu1 %v6516_v61  ;;  %v8188_v29 = vld [vmem:[%s10571_s1 + $0x5b8] sm:$0xff]   ;;  %v8218_v61 = vld [vmem:[%s10571_s1 + $0x6f0] sm:$0xff]  }
  0x88   :  { %7333 = vmatpush3.bf16.msra.mxu0 %v8127_v30  ;;  %v31_v30 = vld [vmem:[%s10572_s0 + $0x50] sm:$0xff] }
  0x89   :  { %7355 = vmatpush3.bf16.msra.mxu1 %v8128_v31  ;;  %7334 = vmatprep.subr.bf16.mxu0 %v8129_v32  ;;  %v32_v31 = vld [vmem:[%s10572_s0 + $0x58] sm:$0xff]  ;;  %v6517_v32 = vcombine.low %v31_v30, %v31_v30 }
  0x8a   :  { %7356 = vmatprep.subr.bf16.mxu1 %v8130_v33  ;;  %v6518_v33 = vcombine.high %v31_v30, %v31_v30  ;;  %v8248_v30 = vld [vmem:[%s10571_s1 + $0x7a0] sm:$0xff]  }
  0x8c   :  { %7335 = vmatpush3.bf16.msra.mxu0 %v8131_v34  ;;  %v6519_v34 = vcombine.low %v32_v31, %v32_v31 }
  0x8d   :  { %7357 = vmatpush3.bf16.msra.mxu1 %v8132_v35  ;;  %7336 = vmatprep.subr.bf16.mxu0 %v8133_v36  ;;  %v6520_v35 = vcombine.high %v32_v31, %v32_v31  ;;  %v8193_v36 = vld [vmem:[%s10571_s1 + $0x640] sm:$0xff]  }
  0x8e   :  { %7358 = vmatprep.subr.bf16.mxu1 %v8134_v37  ;;  %v8194_v37 = vld [vmem:[%s10571_s1 + $0x6c0] sm:$0xff]  }
  0x90   :  { %7337 = vmatpush3.bf16.msra.mxu0 %v8135_v38  ;;  %v8195_v38 = vld [vmem:[%s10571_s1 + $0x600] sm:$0xff]  }
  0x91   :  { %7359 = vmatpush3.bf16.msra.mxu1 %v8136_v39  ;;  %7338 = vmatprep.subr.bf16.mxu0 %v8137_v40  ;;  %v8196_v39 = vld [vmem:[%s10571_s1 + $0x680] sm:$0xff]   ;;  %v8197_v40 = vld [vmem:[%s10571_s1 + $0x648] sm:$0xff]  }
  0x92   :  { %7360 = vmatprep.subr.bf16.mxu1 %v8138_v41  ;;  %v8198_v41 = vld [vmem:[%s10571_s1 + $0x6c8] sm:$0xff]  }
  0x94   :  { %7339 = vmatpush3.bf16.msra.mxu0 %v8139_v42  ;;  %v8199_v42 = vld [vmem:[%s10571_s1 + $0x608] sm:$0xff]  }
  0x95   :  { %7361 = vmatpush3.bf16.msra.mxu1 %v8140_v43  ;;  %7340 = vmatprep.subr.bf16.mxu0 %v8141_v44  ;;  %v8200_v43 = vld [vmem:[%s10571_s1 + $0x688] sm:$0xff]   ;;  %v8201_v44 = vld [vmem:[%s10571_s1 + $0x650] sm:$0xff]  }
  0x96   :  { %7362 = vmatprep.subr.bf16.mxu1 %v8142_v45  ;;  %v8202_v45 = vld [vmem:[%s10571_s1 + $0x6d0] sm:$0xff]  }
  0x98   :  { %7341 = vmatpush3.bf16.msra.mxu0 %v8143_v46  ;;  %v8203_v46 = vld [vmem:[%s10571_s1 + $0x610] sm:$0xff]  }
  0x99   :  { %7363 = vmatpush3.bf16.msra.mxu1 %v8144_v47  ;;  %7342 = vmatprep.subr.bf16.mxu0 %v8145_v48  ;;  %v8204_v47 = vld [vmem:[%s10571_s1 + $0x690] sm:$0xff]   ;;  %v8205_v48 = vld [vmem:[%s10571_s1 + $0x658] sm:$0xff]  }
  0x9a   :  { %7364 = vmatprep.subr.bf16.mxu1 %v8146_v49  ;;  %v8206_v49 = vld [vmem:[%s10571_s1 + $0x6d8] sm:$0xff]  }
  0x9c   :  { %7343 = vmatpush3.bf16.msra.mxu0 %v8147_v50  ;;  %v8207_v50 = vld [vmem:[%s10571_s1 + $0x618] sm:$0xff]  }
  0x9d   :  { %7365 = vmatpush3.bf16.msra.mxu1 %v8148_v51  ;;  %7344 = vmatprep.subr.bf16.mxu0 %v8149_v52  ;;  %v8208_v51 = vld [vmem:[%s10571_s1 + $0x698] sm:$0xff]   ;;  %v8209_v52 = vld [vmem:[%s10571_s1 + $0x660] sm:$0xff]  }
  0x9e   :  { %7366 = vmatprep.subr.bf16.mxu1 %v8150_v53  ;;  %v8210_v53 = vld [vmem:[%s10571_s1 + $0x6e0] sm:$0xff]  }
  0xa0   :  { %7345 = vmatpush3.bf16.msra.mxu0 %v8151_v54  ;;  %v8211_v54 = vld [vmem:[%s10571_s1 + $0x620] sm:$0xff]  }
  0xa1   :  { %7367 = vmatpush3.bf16.msra.mxu1 %v8152_v55  ;;  %7374 = vmatprep.subr.bf16.mxu0 %v8157_v62  ;;  %v8212_v55 = vld [vmem:[%s10571_s1 + $0x6a0] sm:$0xff]   ;;  %v8219_v62 = vld [vmem:[%s10571_s1 + $0x630] sm:$0xff]  }
  0xa2   :  { %7396 = vmatprep.subr.bf16.mxu1 %v8158_v63  ;;  %v8220_v63 = vld [vmem:[%s10571_s1 + $0x6b0] sm:$0xff]  }
  0xa3   :  { %5277 = vmatmul.mubr.bf16.vlgmr.msra.gmra.mrb[16].mxu0 %v6513_v57  ;;  %v8214_v57 = vld [vmem:[%s10571_s1 + $0x6e8] sm:$0xff]  }
  0xa4   :  { %5317 = vmatmul.mubr.bf16.vlgmr.msra.gmra.mrb[16].mxu1 %v6515_v60  ;;  %7375 = vmatpush3.bf16.msra.mxu0 %v8159_v0  ;;  %v8217_v60 = vld [vmem:[%s10571_s1 + $0x670] sm:$0xff]   ;;  %v8221_v0 = vld [vmem:[%s10571_s1 + $0x678] sm:$0xff]  }
  0xa5   :  { %7397 = vmatpush3.bf16.msra.mxu1 %v8160_v1  ;;  %7376 = vmatprep.subr.bf16.mxu0 %v8161_v2  ;;  %v8222_v1 = vld [vmem:[%s10571_s1 + $0x6f8] sm:$0xff]  }
  0xa6   :  { %7398 = vmatprep.subr.bf16.mxu1 %v8162_v3  ;;  %5356 = vmatprep.mubr.bf16.mxu0 %v6518_v33  ;;  %v8223_v2 = vld [vmem:[%s10571_s1 + $0x638] sm:$0xff]  }
  0xa7   :  { %5396 = vmatprep.mubr.bf16.mxu1 %v6520_v35  ;;  %v8224_v3 = vld [vmem:[%s10571_s1 + $0x6b8] sm:$0xff]  }
  0xa8   :  { %7377 = vmatpush3.bf16.msra.mxu0 %v8163_v4  ;;  %v33_v4 = vld [vmem:[%s10572_s0 + $0x60] sm:$0xff] }
  0xa9   :  { %7399 = vmatpush3.bf16.msra.mxu1 %v8164_v5  ;;  %7378 = vmatprep.subr.bf16.mxu0 %v8165_v6  ;;  %v34_v5 = vld [vmem:[%s10572_s0 + $0x68] sm:$0xff]  ;;  %v6521_v6 = vcombine.low %v33_v4, %v33_v4 }
  0xaa   :  { %7400 = vmatprep.subr.bf16.mxu1 %v8166_v7  ;;  %v6522_v7 = vcombine.high %v33_v4, %v33_v4  ;;  %v8272_v4 = vld [vmem:[%s10571_s1 + $0x888] sm:$0xff]  }
  0xac   :  { %7379 = vmatpush3.bf16.msra.mxu0 %v8167_v8  ;;  %v6523_v8 = vcombine.low %v34_v5, %v34_v5 }
  0xad   :  { %7401 = vmatpush3.bf16.msra.mxu1 %v8168_v9  ;;  %7380 = vmatprep.subr.bf16.mxu0 %v8169_v10  ;;  %v8229_v9 = vld [vmem:[%s10571_s1 + $0x740] sm:$0xff]   ;;  %v6524_v10 = vcombine.high %v34_v5, %v34_v5  ;;  %v8273_v5 = vld [vmem:[%s10571_s1 + $0x850] sm:$0xff]  }
  0xae   :  { %7402 = vmatprep.subr.bf16.mxu1 %v8170_v11  ;;  %v8230_v11 = vld [vmem:[%s10571_s1 + $0x7c0] sm:$0xff]  }
  0xb0   :  { %7381 = vmatpush3.bf16.msra.mxu0 %v8171_v12  ;;  %v8231_v12 = vld [vmem:[%s10571_s1 + $0x700] sm:$0xff]  }
  0xb1   :  { %7403 = vmatpush3.bf16.msra.mxu1 %v8172_v13  ;;  %7382 = vmatprep.subr.bf16.mxu0 %v8173_v14  ;;  %v8232_v13 = vld [vmem:[%s10571_s1 + $0x780] sm:$0xff]   ;;  %v8233_v14 = vld [vmem:[%s10571_s1 + $0x748] sm:$0xff]  }
  0xb2   :  { %7404 = vmatprep.subr.bf16.mxu1 %v8174_v15  ;;  %v8234_v15 = vld [vmem:[%s10571_s1 + $0x7c8] sm:$0xff]  }
  0xb4   :  { %7383 = vmatpush3.bf16.msra.mxu0 %v8175_v16  ;;  %v8235_v16 = vld [vmem:[%s10571_s1 + $0x708] sm:$0xff]  }
  0xb5   :  { %7405 = vmatpush3.bf16.msra.mxu1 %v8176_v17  ;;  %7384 = vmatprep.subr.bf16.mxu0 %v8177_v18  ;;  %v8236_v17 = vld [vmem:[%s10571_s1 + $0x788] sm:$0xff]   ;;  %v8237_v18 = vld [vmem:[%s10571_s1 + $0x750] sm:$0xff]  }
  0xb6   :  { %7406 = vmatprep.subr.bf16.mxu1 %v8178_v19  ;;  %v8238_v19 = vld [vmem:[%s10571_s1 + $0x7d0] sm:$0xff]  }
  0xb8   :  { %7385 = vmatpush3.bf16.msra.mxu0 %v8179_v20  ;;  %v8239_v20 = vld [vmem:[%s10571_s1 + $0x710] sm:$0xff]  }
  0xb9   :  { %7407 = vmatpush3.bf16.msra.mxu1 %v8180_v21  ;;  %7386 = vmatprep.subr.bf16.mxu0 %v8181_v22  ;;  %v8240_v21 = vld [vmem:[%s10571_s1 + $0x790] sm:$0xff]   ;;  %v8241_v22 = vld [vmem:[%s10571_s1 + $0x758] sm:$0xff]  }
  0xba   :  { %7408 = vmatprep.subr.bf16.mxu1 %v8182_v23  ;;  %v8242_v23 = vld [vmem:[%s10571_s1 + $0x7d8] sm:$0xff]  }
  0xbc   :  { %7387 = vmatpush3.bf16.msra.mxu0 %v8183_v24  ;;  %v8243_v24 = vld [vmem:[%s10571_s1 + $0x718] sm:$0xff]  }
  0xbd   :  { %7409 = vmatpush3.bf16.msra.mxu1 %v8184_v25  ;;  %7388 = vmatprep.subr.bf16.mxu0 %v8185_v26  ;;  %v8244_v25 = vld [vmem:[%s10571_s1 + $0x798] sm:$0xff]   ;;  %v8245_v26 = vld [vmem:[%s10571_s1 + $0x760] sm:$0xff]  }
  0xbe   :  { %7410 = vmatprep.subr.bf16.mxu1 %v8186_v27  ;;  %v8246_v27 = vld [vmem:[%s10571_s1 + $0x7e0] sm:$0xff]  }
  0xc0   :  { %7389 = vmatpush3.bf16.msra.mxu0 %v8187_v28  ;;  %v8247_v28 = vld [vmem:[%s10571_s1 + $0x720] sm:$0xff]  }
  0xc1   :  { %7411 = vmatpush3.bf16.msra.mxu1 %v8188_v29  ;;  %7418 = vmatprep.subr.bf16.mxu0 %v8193_v36 }
  0xc2   :  { %7440 = vmatprep.subr.bf16.mxu1 %v8194_v37  ;;  %v8249_v37 = vld [vmem:[%s10571_s1 + $0x768] sm:$0xff]  }
  0xc3   :  { %5357 = vmatmul.mubr.bf16.vlgmr.msra.gmra.mrb[20].mxu0 %v6517_v32  ;;  %v6496_v32 = vld [vmem:[%s10573_s2] ss:$0 sm:$0xff] }
  0xc4   :  { %5397 = vmatmul.mubr.bf16.vlgmr.msra.gmra.mrb[20].mxu1 %v6519_v34  ;;  %7419 = vmatpush3.bf16.msra.mxu0 %v8195_v38 }
  0xc5   :  { %7441 = vmatpush3.bf16.msra.mxu1 %v8196_v39  ;;  %7420 = vmatprep.subr.bf16.mxu0 %v8197_v40  ;;  %v8250_v39 = vld [vmem:[%s10571_s1 + $0x7e8] sm:$0xff]  }
  0xc6   :  { %7442 = vmatprep.subr.bf16.mxu1 %v8198_v41  ;;  %5436 = vmatprep.mubr.bf16.mxu0 %v6522_v7  ;;  %v8275_v7 = vld [vmem:[%s10571_s1 + $0x810] sm:$0xff]  }
  0xc7   :  { %5476 = vmatprep.mubr.bf16.mxu1 %v6524_v10  ;;  %v8278_v10 = vld [vmem:[%s10571_s1 + $0x8d8] sm:$0xff]  }
  0xc8   :  { %7421 = vmatpush3.bf16.msra.mxu0 %v8199_v42  ;;  %v8251_v42 = vld [vmem:[%s10571_s1 + $0x728] sm:$0xff]  }
  0xc9   :  { %7443 = vmatpush3.bf16.msra.mxu1 %v8200_v43  ;;  %7422 = vmatprep.subr.bf16.mxu0 %v8201_v44  ;;  %v8252_v44 = vld [vmem:[%s10571_s1 + $0x7a8] sm:$0xff]  }
  0xca   :  { %7444 = vmatprep.subr.bf16.mxu1 %v8202_v45 }
  0xcc   :  { %7423 = vmatpush3.bf16.msra.mxu0 %v8203_v46 }
  0xcd   :  { %7445 = vmatpush3.bf16.msra.mxu1 %v8204_v47  ;;  %7424 = vmatprep.subr.bf16.mxu0 %v8205_v48  ;;  %v8253_v47 = vld [vmem:[%s10571_s1 + $0x770] sm:$0xff]  }
  0xce   :  { %7446 = vmatprep.subr.bf16.mxu1 %v8206_v49  ;;  %v8254_v48 = vld [vmem:[%s10571_s1 + $0x7f0] sm:$0xff]  }
  0xcf   :  { %v8255_v49 = vld [vmem:[%s10571_s1 + $0x730] sm:$0xff]  }
  0xd0   :  { %7425 = vmatpush3.bf16.msra.mxu0 %v8207_v50  ;;  %v8256_v50 = vld [vmem:[%s10571_s1 + $0x7b0] sm:$0xff]  }
  0xd1   :  { %7447 = vmatpush3.bf16.msra.mxu1 %v8208_v51  ;;  %7426 = vmatprep.subr.bf16.mxu0 %v8209_v52  ;;  %v8257_v51 = vld [vmem:[%s10571_s1 + $0x778] sm:$0xff]  }
  0xd2   :  { %7448 = vmatprep.subr.bf16.mxu1 %v8210_v53  ;;  %v8258_v52 = vld [vmem:[%s10571_s1 + $0x7f8] sm:$0xff]  }
  0xd3   :  { %v8259_v53 = vld [vmem:[%s10571_s1 + $0x738] sm:$0xff]  }
  0xd4   :  { %7427 = vmatpush3.bf16.msra.mxu0 %v8211_v54  ;;  %v8260_v54 = vld [vmem:[%s10571_s1 + $0x7b8] sm:$0xff]  }
  0xd5   :  { %7449 = vmatpush3.bf16.msra.mxu1 %v8212_v55  ;;  %7428 = vmatprep.subr.bf16.mxu0 %v8213_v56  ;;  %v35_v55 = vld [vmem:[%s10572_s0 + $0x70] sm:$0xff]  ;;  %v36_v56 = vld [vmem:[%s10572_s0 + $0x78] sm:$0xff] }
  0xd6   :  { %7450 = vmatprep.subr.bf16.mxu1 %v8214_v57  ;;  %v6525_v57 = vcombine.low %v35_v55, %v35_v55 }
  0xd8   :  { %7429 = vmatpush3.bf16.msra.mxu0 %v8215_v58  ;;  %v6526_v58 = vcombine.high %v35_v55, %v35_v55  ;;  %v8309_v55 = vld [vmem:[%s10571_s1 + $0x950] sm:$0xff]  }
  0xd9   :  { %7451 = vmatpush3.bf16.msra.mxu1 %v8216_v59  ;;  %7430 = vmatprep.subr.bf16.mxu0 %v8217_v60  ;;  %v6527_v59 = vcombine.low %v36_v56, %v36_v56  ;;  %v6528_v60 = vcombine.high %v36_v56, %v36_v56  ;;  %v8310_v56 = vld [vmem:[%s10571_s1 + $0x9d0] sm:$0xff]  }
  0xda   :  { %7452 = vmatprep.subr.bf16.mxu1 %v8218_v61  ;;  %v8265_v61 = vld [vmem:[%s10571_s1 + $0x840] sm:$0xff]  }
  0xdc   :  { %7431 = vmatpush3.bf16.msra.mxu0 %v8219_v62  ;;  %v8266_v62 = vld [vmem:[%s10571_s1 + $0x8c0] sm:$0xff]  }
  0xdd   :  { %7453 = vmatpush3.bf16.msra.mxu1 %v8220_v63  ;;  %7432 = vmatprep.subr.bf16.mxu0 %v8221_v0  ;;  %v8267_v63 = vld [vmem:[%s10571_s1 + $0x800] sm:$0xff]  }
  0xde   :  { %7454 = vmatprep.subr.bf16.mxu1 %v8222_v1  ;;  %v8268_v0 = vld [vmem:[%s10571_s1 + $0x880] sm:$0xff]   ;;  %v8269_v1 = vld [vmem:[%s10571_s1 + $0x848] sm:$0xff]  }
  0xe0   :  { %7433 = vmatpush3.bf16.msra.mxu0 %v8223_v2  ;;  %v8270_v2 = vld [vmem:[%s10571_s1 + $0x8c8] sm:$0xff]  }
  0xe1   :  { %7455 = vmatpush3.bf16.msra.mxu1 %v8224_v3  ;;  %7462 = vmatprep.subr.bf16.mxu0 %v8229_v9  ;;  %v8271_v3 = vld [vmem:[%s10571_s1 + $0x808] sm:$0xff]   ;;  %v8277_v9 = vld [vmem:[%s10571_s1 + $0x858] sm:$0xff]  }
  0xe2   :  { %7484 = vmatprep.subr.bf16.mxu1 %v8230_v11  ;;  %v8279_v11 = vld [vmem:[%s10571_s1 + $0x818] sm:$0xff]  }
  0xe3   :  { %5437 = vmatmul.mubr.bf16.vlgmr.msra.gmra.mrb[24].mxu0 %v6521_v6  ;;  %v8274_v6 = vld [vmem:[%s10571_s1 + $0x8d0] sm:$0xff]  }
  0xe4   :  { %5477 = vmatmul.mubr.bf16.vlgmr.msra.gmra.mrb[24].mxu1 %v6523_v8  ;;  %7463 = vmatpush3.bf16.msra.mxu0 %v8231_v12  ;;  %v8276_v8 = vld [vmem:[%s10571_s1 + $0x890] sm:$0xff]   ;;  %v8280_v12 = vld [vmem:[%s10571_s1 + $0x898] sm:$0xff]  }
  0xe5   :  { %7485 = vmatpush3.bf16.msra.mxu1 %v8232_v13  ;;  %7464 = vmatprep.subr.bf16.mxu0 %v8233_v14  ;;  %v8281_v13 = vld [vmem:[%s10571_s1 + $0x860] sm:$0xff]  }
  0xe6   :  { %7486 = vmatprep.subr.bf16.mxu1 %v8234_v15  ;;  %5516 = vmatprep.mubr.bf16.mxu0 %v6526_v58  ;;  %v8282_v14 = vld [vmem:[%s10571_s1 + $0x8e0] sm:$0xff]   ;;  %v8312_v58 = vld [vmem:[%s10571_s1 + $0x990] sm:$0xff]  }
  0xe7   :  { %5556 = vmatprep.mubr.bf16.mxu1 %v6528_v60  ;;  %v8283_v15 = vld [vmem:[%s10571_s1 + $0x820] sm:$0xff]   ;;  %v8314_v60 = vld [vmem:[%s10571_s1 + $0x9d8] sm:$0xff]  }
  0xe8   :  { %7465 = vmatpush3.bf16.msra.mxu0 %v8235_v16 }
  0xe9   :  { %7487 = vmatpush3.bf16.msra.mxu1 %v8236_v17  ;;  %7466 = vmatprep.subr.bf16.mxu0 %v8237_v18  ;;  %v8284_v17 = vld [vmem:[%s10571_s1 + $0x8a0] sm:$0xff]  }
  0xea   :  { %7488 = vmatprep.subr.bf16.mxu1 %v8238_v19 }
  0xec   :  { %7467 = vmatpush3.bf16.msra.mxu0 %v8239_v20 }
  0xed   :  { %7489 = vmatpush3.bf16.msra.mxu1 %v8240_v21  ;;  %7468 = vmatprep.subr.bf16.mxu0 %v8241_v22 }
  0xee   :  { %7490 = vmatprep.subr.bf16.mxu1 %v8242_v23  ;;  %v8285_v23 = vld [vmem:[%s10571_s1 + $0x868] sm:$0xff]  }
  0xf0   :  { %7469 = vmatpush3.bf16.msra.mxu0 %v8243_v24 }
  0xf1   :  { %7491 = vmatpush3.bf16.msra.mxu1 %v8244_v25  ;;  %7470 = vmatprep.subr.bf16.mxu0 %v8245_v26  ;;  %v8286_v25 = vld [vmem:[%s10571_s1 + $0x8e8] sm:$0xff]  }
  0xf2   :  { %7492 = vmatprep.subr.bf16.mxu1 %v8246_v27 }
  0xf4   :  { %7471 = vmatpush3.bf16.msra.mxu0 %v8247_v28  ;;  %v8287_v28 = vld [vmem:[%s10571_s1 + $0x828] sm:$0xff]  }
  0xf5   :  { %7493 = vmatpush3.bf16.msra.mxu1 %v8248_v30  ;;  %7472 = vmatprep.subr.bf16.mxu0 %v8249_v37  ;;  %v8288_v30 = vld [vmem:[%s10571_s1 + $0x8a8] sm:$0xff]   ;;  %v8293_v37 = vld [vmem:[%s10571_s1 + $0x878] sm:$0xff]  }
  0xf6   :  { %v7170_v29 = vpop.f32.mrb[0].mxu0  ;;  %7494 = vmatprep.subr.bf16.mxu1 %v8250_v39  ;;  %v8295_v39 = vld [vmem:[%s10571_s1 + $0x838] sm:$0xff]  }
  0xf7   :  { %v7192_v31 = vpop.f32.mrb[0].mxu1  ;;  %v7171_v33 = vpop.f32.mrb[1].mxu0 }
  0xf8   :  { %v7193_v34 = vpop.f32.mrb[1].mxu1  ;;  %v7172_v35 = vadd.f32 %v7171_v33, %v7170_v29  ;;  %v7173_v38 = vpop.f32.mrb[2].mxu0  ;;  %7473 = vmatpush3.bf16.msra.mxu0 %v8251_v42  ;;  %v8289_v33 = vld [vmem:[%s10571_s1 + $0x870] sm:$0xff]   ;;  %v38_v42 = vld [vmem:[%s10572_s0 + $0x88] sm:$0xff] }
  0xf9   :  { %v7194_v36 = vadd.f32 %v7193_v34, %v7192_v31  ;;  %v7195_v40 = vpop.f32.mrb[2].mxu1  ;;  %v7174_v43 = vpop.f32.mrb[3].mxu0  ;;  %7495 = vmatpush3.bf16.msra.mxu1 %v8252_v44  ;;  %7474 = vmatprep.subr.bf16.mxu0 %v8253_v47  ;;  %v8290_v34 = vld [vmem:[%s10571_s1 + $0x8f0] sm:$0xff]   ;;  %v8294_v38 = vld [vmem:[%s10571_s1 + $0x8f8] sm:$0xff]   ;;  %v8301_v47 = vld [vmem:[%s10571_s1 + $0x940] sm:$0xff]  }
  0xfa   :  { %v4959_v41 = vadd.f32 %v7172_v35, %v6496_v32  ;;  %v7196_v45 = vpop.f32.mrb[3].mxu1  ;;  %7496 = vmatprep.subr.bf16.mxu1 %v8254_v48  ;;  %v8291_v35 = vld [vmem:[%s10571_s1 + $0x830] sm:$0xff]   ;;  %v8296_v40 = vld [vmem:[%s10571_s1 + $0x8b8] sm:$0xff]   ;;  %v8302_v48 = vld [vmem:[%s10571_s1 + $0x9c0] sm:$0xff]  }
  0xfb   :  { %v6531_v45 = vcombine.low %v38_v42, %v38_v42 }
  0xfc   :  { %v9458_v46 = vadd.f32 %v7194_v36, %v4959_v41  ;;  %7475 = vmatpush3.bf16.msra.mxu0 %v8255_v49  ;;  %v8292_v36 = vld [vmem:[%s10571_s1 + $0x8b0] sm:$0xff]   ;;  %v37_v41 = vld [vmem:[%s10572_s0 + $0x80] sm:$0xff] }
  0xfd   :  { %7497 = vmatpush3.bf16.msra.mxu1 %v8256_v50  ;;  %7476 = vmatprep.subr.bf16.mxu0 %v8257_v51  ;;  %v6529_v43 = vcombine.low %v37_v41, %v37_v41  ;;  %v6530_v44 = vcombine.high %v37_v41, %v37_v41  ;;  %v8303_v49 = vld [vmem:[%s10571_s1 + $0x900] sm:$0xff]   ;;  %v8305_v51 = vld [vmem:[%s10571_s1 + $0x948] sm:$0xff]   ;;  %v8345_v41 = vld [vmem:[%s10571_s1 + $0xa50] sm:$0xff]  }
  0xfe   :  { %7498 = vmatprep.subr.bf16.mxu1 %v8258_v52  ;;  %v8304_v50 = vld [vmem:[%s10571_s1 + $0x980] sm:$0xff]   ;;  %v8306_v52 = vld [vmem:[%s10571_s1 + $0x9c8] sm:$0xff]  }
 0x100   :  { %7477 = vmatpush3.bf16.msra.mxu0 %v8259_v53  ;;  %v8307_v53 = vld [vmem:[%s10571_s1 + $0x908] sm:$0xff]  }
 0x101   :  { %7499 = vmatpush3.bf16.msra.mxu1 %v8260_v54  ;;  %7506 = vmatprep.subr.bf16.mxu0 %v8265_v61  ;;  %v8308_v54 = vld [vmem:[%s10571_s1 + $0x988] sm:$0xff]   ;;  %v8315_v61 = vld [vmem:[%s10571_s1 + $0x918] sm:$0xff]  }
 0x102   :  { %7528 = vmatprep.subr.bf16.mxu1 %v8266_v62  ;;  %v8316_v62 = vld [vmem:[%s10571_s1 + $0x998] sm:$0xff]  }
 0x103   :  { %5517 = vmatmul.mubr.bf16.vlgmr.msra.gmra.mrb[28].mxu0 %v6525_v57  ;;  %v8311_v57 = vld [vmem:[%s10571_s1 + $0x910] sm:$0xff]  }
 0x104   :  { %5557 = vmatmul.mubr.bf16.vlgmr.msra.gmra.mrb[28].mxu1 %v6527_v59  ;;  %7507 = vmatpush3.bf16.msra.mxu0 %v8267_v63  ;;  %v8313_v59 = vld [vmem:[%s10571_s1 + $0x958] sm:$0xff]   ;;  %v8317_v63 = vld [vmem:[%s10571_s1 + $0x960] sm:$0xff]  }
 0x105   :  { %7529 = vmatpush3.bf16.msra.mxu1 %v8268_v0  ;;  %7508 = vmatprep.subr.bf16.mxu0 %v8269_v1  ;;  %v8318_v0 = vld [vmem:[%s10571_s1 + $0x9e0] sm:$0xff]  }
 0x106   :  { %7530 = vmatprep.subr.bf16.mxu1 %v8270_v2  ;;  %5596 = vmatprep.mubr.bf16.mxu0 %v6530_v44  ;;  %v8319_v2 = vld [vmem:[%s10571_s1 + $0x920] sm:$0xff]   ;;  %v8348_v44 = vld [vmem:[%s10571_s1 + $0xa90] sm:$0xff]  }
 0x108   :  { %7509 = vmatpush3.bf16.msra.mxu0 %v8271_v3 }
 0x109   :  { %7531 = vmatpush3.bf16.msra.mxu1 %v8272_v4  ;;  %7510 = vmatprep.subr.bf16.mxu0 %v8273_v5  ;;  %v8320_v4 = vld [vmem:[%s10571_s1 + $0x9a0] sm:$0xff]  }
 0x10a   :  { %7532 = vmatprep.subr.bf16.mxu1 %v8274_v6 }
 0x10c   :  { %7511 = vmatpush3.bf16.msra.mxu0 %v8275_v7 }
 0x10d   :  { %7533 = vmatpush3.bf16.msra.mxu1 %v8276_v8  ;;  %7512 = vmatprep.subr.bf16.mxu0 %v8277_v9  ;;  %v8321_v8 = vld [vmem:[%s10571_s1 + $0x968] sm:$0xff]  }
 0x10e   :  { %7534 = vmatprep.subr.bf16.mxu1 %v8278_v10  ;;  %v8322_v10 = vld [vmem:[%s10571_s1 + $0x9e8] sm:$0xff]  }
 0x110   :  { %7513 = vmatpush3.bf16.msra.mxu0 %v8279_v11 }
 0x111   :  { %7535 = vmatpush3.bf16.msra.mxu1 %v8280_v12  ;;  %7514 = vmatprep.subr.bf16.mxu0 %v8281_v13 }
 0x112   :  { %7536 = vmatprep.subr.bf16.mxu1 %v8282_v14  ;;  %v8323_v14 = vld [vmem:[%s10571_s1 + $0x928] sm:$0xff]  }
 0x114   :  { %7515 = vmatpush3.bf16.msra.mxu0 %v8283_v15  ;;  %v8324_v15 = vld [vmem:[%s10571_s1 + $0x9a8] sm:$0xff]  }
 0x115   :  { %7537 = vmatpush3.bf16.msra.mxu1 %v8284_v17  ;;  %7516 = vmatprep.subr.bf16.mxu0 %v8285_v23  ;;  %v8329_v23 = vld [vmem:[%s10571_s1 + $0x978] sm:$0xff]  }
 0x116   :  { %v7214_v16 = vpop.f32.mrb[4].mxu0  ;;  %7538 = vmatprep.subr.bf16.mxu1 %v8286_v25  ;;  %v8331_v25 = vld [vmem:[%s10571_s1 + $0x938] sm:$0xff]  }
 0x117   :  { %v7236_v18 = vpop.f32.mrb[4].mxu1  ;;  %v7215_v19 = vpop.f32.mrb[5].mxu0 }
 0x118   :  { %v7237_v20 = vpop.f32.mrb[5].mxu1  ;;  %v7216_v21 = vadd.f32 %v7215_v19, %v7214_v16  ;;  %v7217_v24 = vpop.f32.mrb[6].mxu0  ;;  %7517 = vmatpush3.bf16.msra.mxu0 %v8287_v28  ;;  %v8325_v19 = vld [vmem:[%s10571_s1 + $0x970] sm:$0xff]   ;;  %v40_v28 = vld [vmem:[%s10572_s0 + $0x98] sm:$0xff] }
 0x119   :  { %v7238_v22 = vadd.f32 %v7237_v20, %v7236_v18  ;;  %v7239_v26 = vpop.f32.mrb[6].mxu1  ;;  %v7218_v29 = vpop.f32.mrb[7].mxu0  ;;  %7539 = vmatpush3.bf16.msra.mxu1 %v8288_v30  ;;  %7518 = vmatprep.subr.bf16.mxu0 %v8289_v33  ;;  %v8326_v20 = vld [vmem:[%s10571_s1 + $0x9f0] sm:$0xff]   ;;  %v8330_v24 = vld [vmem:[%s10571_s1 + $0x9f8] sm:$0xff]   ;;  %v6536_v33 = vcombine.high %v40_v28, %v40_v28 }
 0x11a   :  { %v5039_v27 = vadd.f32 %v7216_v21, %v9458_v46  ;;  %v7240_v31 = vpop.f32.mrb[7].mxu1  ;;  %7540 = vmatprep.subr.bf16.mxu1 %v8290_v34  ;;  %v6532_v46 = vcombine.high %v38_v42, %v38_v42  ;;  %v8327_v21 = vld [vmem:[%s10571_s1 + $0x930] sm:$0xff]   ;;  %v8332_v26 = vld [vmem:[%s10571_s1 + $0x9b8] sm:$0xff]   ;;  %v8338_v34 = vld [vmem:[%s10571_s1 + $0xac0] sm:$0xff]  }
 0x11b   :  { %v6535_v31 = vcombine.low %v40_v28, %v40_v28  ;;  %v8346_v42 = vld [vmem:[%s10571_s1 + $0xad0] sm:$0xff]  }
 0x11c   :  { %v9563_v32 = vadd.f32 %v7238_v22, %v5039_v27  ;;  %7519 = vmatpush3.bf16.msra.mxu0 %v8291_v35  ;;  %5636 = vmatprep.mubr.bf16.mxu1 %v6532_v46  ;;  %v8328_v22 = vld [vmem:[%s10571_s1 + $0x9b0] sm:$0xff]   ;;  %v8339_v35 = vld [vmem:[%s10571_s1 + $0xa00] sm:$0xff]   ;;  %v8350_v46 = vld [vmem:[%s10571_s1 + $0xad8] sm:$0xff]  }
 0x11d   :  { %7541 = vmatpush3.bf16.msra.mxu1 %v8292_v36  ;;  %7520 = vmatprep.subr.bf16.mxu0 %v8293_v37  ;;  %v39_v27 = vld [vmem:[%s10572_s0 + $0x90] sm:$0xff]  ;;  %v8340_v36 = vld [vmem:[%s10571_s1 + $0xa80] sm:$0xff]   ;;  %v8341_v37 = vld [vmem:[%s10571_s1 + $0xa48] sm:$0xff]  }
 0x11e   :  { %7542 = vmatprep.subr.bf16.mxu1 %v8294_v38  ;;  %v6533_v29 = vcombine.low %v39_v27, %v39_v27  ;;  %v6534_v30 = vcombine.high %v39_v27, %v39_v27  ;;  %v8342_v38 = vld [vmem:[%s10571_s1 + $0xac8] sm:$0xff]   ;;  %v8381_v27 = vld [vmem:[%s10571_s1 + $0xb50] sm:$0xff]  }
 0x11f   :  { %v8382_v28 = vld [vmem:[%s10571_s1 + $0xbd0] sm:$0xff]  }
 0x120   :  { %7521 = vmatpush3.bf16.msra.mxu0 %v8295_v39  ;;  %v8343_v39 = vld [vmem:[%s10571_s1 + $0xa08] sm:$0xff]  }
 0x121   :  { %7543 = vmatpush3.bf16.msra.mxu1 %v8296_v40  ;;  %7550 = vmatprep.subr.bf16.mxu0 %v8301_v47  ;;  %v8344_v40 = vld [vmem:[%s10571_s1 + $0xa88] sm:$0xff]   ;;  %v8351_v47 = vld [vmem:[%s10571_s1 + $0xa18] sm:$0xff]  }
 0x122   :  { %7572 = vmatprep.subr.bf16.mxu1 %v8302_v48  ;;  %v8352_v48 = vld [vmem:[%s10571_s1 + $0xa98] sm:$0xff]  }
 0x123   :  { %5597 = vmatmul.mubr.bf16.vlgmr.msra.gmra.mrb[32].mxu0 %v6529_v43  ;;  %v8347_v43 = vld [vmem:[%s10571_s1 + $0xa10] sm:$0xff]  }
 0x124   :  { %5637 = vmatmul.mubr.bf16.vlgmr.msra.gmra.mrb[32].mxu1 %v6531_v45  ;;  %7551 = vmatpush3.bf16.msra.mxu0 %v8303_v49  ;;  %v8349_v45 = vld [vmem:[%s10571_s1 + $0xa58] sm:$0xff]   ;;  %v8353_v49 = vld [vmem:[%s10571_s1 + $0xa60] sm:$0xff]  }
 0x125   :  { %7573 = vmatpush3.bf16.msra.mxu1 %v8304_v50  ;;  %7552 = vmatprep.subr.bf16.mxu0 %v8305_v51  ;;  %v8354_v50 = vld [vmem:[%s10571_s1 + $0xae0] sm:$0xff]  }
 0x126   :  { %7574 = vmatprep.subr.bf16.mxu1 %v8306_v52  ;;  %5676 = vmatprep.mubr.bf16.mxu0 %v6534_v30  ;;  %v8355_v52 = vld [vmem:[%s10571_s1 + $0xa20] sm:$0xff]   ;;  %v8384_v30 = vld [vmem:[%s10571_s1 + $0xb90] sm:$0xff]  }
 0x127   :  { %5716 = vmatprep.mubr.bf16.mxu1 %v6536_v33  ;;  %v8387_v33 = vld [vmem:[%s10571_s1 + $0xb18] sm:$0xff]  }
 0x128   :  { %7553 = vmatpush3.bf16.msra.mxu0 %v8307_v53 }
 0x129   :  { %7575 = vmatpush3.bf16.msra.mxu1 %v8308_v54  ;;  %7554 = vmatprep.subr.bf16.mxu0 %v8309_v55  ;;  %v8356_v54 = vld [vmem:[%s10571_s1 + $0xaa0] sm:$0xff]  }
 0x12a   :  { %7576 = vmatprep.subr.bf16.mxu1 %v8310_v56 }
 0x12c   :  { %7555 = vmatpush3.bf16.msra.mxu0 %v8311_v57  ;;  %v8357_v57 = vld [vmem:[%s10571_s1 + $0xa68] sm:$0xff]  }
 0x12d   :  { %7577 = vmatpush3.bf16.msra.mxu1 %v8312_v58  ;;  %7556 = vmatprep.subr.bf16.mxu0 %v8313_v59 }
 0x12e   :  { %7578 = vmatprep.subr.bf16.mxu1 %v8314_v60  ;;  %v8358_v60 = vld [vmem:[%s10571_s1 + $0xae8] sm:$0xff]  }
 0x130   :  { %7557 = vmatpush3.bf16.msra.mxu0 %v8315_v61 }
 0x131   :  { %7579 = vmatpush3.bf16.msra.mxu1 %v8316_v62  ;;  %7558 = vmatprep.subr.bf16.mxu0 %v8317_v63  ;;  %v8359_v63 = vld [vmem:[%s10571_s1 + $0xa28] sm:$0xff]  }
 0x132   :  { %7580 = vmatprep.subr.bf16.mxu1 %v8318_v0 }
 0x134   :  { %7559 = vmatpush3.bf16.msra.mxu0 %v8319_v2 }
 0x135   :  { %7581 = vmatpush3.bf16.msra.mxu1 %v8320_v4  ;;  %7560 = vmatprep.subr.bf16.mxu0 %v8321_v8  ;;  %v8361_v4 = vld [vmem:[%s10571_s1 + $0xa70] sm:$0xff]  }
 0x136   :  { %v7258_v1 = vpop.f32.mrb[8].mxu0  ;;  %7582 = vmatprep.subr.bf16.mxu1 %v8322_v10  ;;  %v8364_v8 = vld [vmem:[%s10571_s1 + $0xab0] sm:$0xff]   ;;  %v8366_v10 = vld [vmem:[%s10571_s1 + $0xaf8] sm:$0xff]  }
 0x137   :  { %v7280_v3 = vpop.f32.mrb[8].mxu1  ;;  %v7259_v5 = vpop.f32.mrb[9].mxu0 }
 0x138   :  { %v7260_v6 = vadd.f32 %v7259_v5, %v7258_v1  ;;  %v7281_v7 = vpop.f32.mrb[9].mxu1  ;;  %v7261_v11 = vpop.f32.mrb[10].mxu0  ;;  %7561 = vmatpush3.bf16.msra.mxu0 %v8323_v14  ;;  %v8360_v1 = vld [vmem:[%s10571_s1 + $0xaa8] sm:$0xff]  }
 0x139   :  { %v7282_v9 = vadd.f32 %v7281_v7, %v7280_v3  ;;  %v7283_v13 = vpop.f32.mrb[10].mxu1  ;;  %v7262_v16 = vpop.f32.mrb[11].mxu0  ;;  %7583 = vmatpush3.bf16.msra.mxu1 %v8324_v15  ;;  %7562 = vmatprep.subr.bf16.mxu0 %v8325_v19  ;;  %v8363_v7 = vld [vmem:[%s10571_s1 + $0xa30] sm:$0xff]   ;;  %v8367_v11 = vld [vmem:[%s10571_s1 + $0xa38] sm:$0xff]   ;;  %v8373_v19 = vld [vmem:[%s10571_s1 + $0xb40] sm:$0xff]  }
 0x13a   :  { %v5119_v12 = vadd.f32 %v7260_v6, %v9563_v32  ;;  %v7284_v18 = vpop.f32.mrb[11].mxu1  ;;  %7584 = vmatprep.subr.bf16.mxu1 %v8326_v20  ;;  %v8337_v32 = vld [vmem:[%s10571_s1 + $0xa40] sm:$0xff]   ;;  %v8362_v6 = vld [vmem:[%s10571_s1 + $0xaf0] sm:$0xff]   ;;  %v42_v16 = vld [vmem:[%s10572_s0 + $0xa8] sm:$0xff] }
 0x13b   :  { %v41_v13 = vld [vmem:[%s10572_s0 + $0xa0] sm:$0xff]  ;;  %v6540_v18 = vcombine.high %v42_v16, %v42_v16 }
 0x13c   :  { %v9668_v17 = vadd.f32 %v7282_v9, %v5119_v12  ;;  %7563 = vmatpush3.bf16.msra.mxu0 %v8327_v21  ;;  %v8365_v9 = vld [vmem:[%s10571_s1 + $0xa78] sm:$0xff]   ;;  %v6537_v14 = vcombine.low %v41_v13, %v41_v13  ;;  %v6538_v15 = vcombine.high %v41_v13, %v41_v13  ;;  %v8374_v20 = vld [vmem:[%s10571_s1 + $0xbc0] sm:$0xff]   ;;  %v8417_v13 = vld [vmem:[%s10571_s1 + $0xc50] sm:$0xff]  }
 0x13d   :  { %7585 = vmatpush3.bf16.msra.mxu1 %v8328_v22  ;;  %7564 = vmatprep.subr.bf16.mxu0 %v8329_v23  ;;  %v8368_v12 = vld [vmem:[%s10571_s1 + $0xab8] sm:$0xff]   ;;  %v8375_v21 = vld [vmem:[%s10571_s1 + $0xb00] sm:$0xff]   ;;  %v8377_v23 = vld [vmem:[%s10571_s1 + $0xb48] sm:$0xff]  }
 0x13e   :  { %7586 = vmatprep.subr.bf16.mxu1 %v8330_v24  ;;  %v8376_v22 = vld [vmem:[%s10571_s1 + $0xb80] sm:$0xff]   ;;  %v8378_v24 = vld [vmem:[%s10571_s1 + $0xbc8] sm:$0xff]  }
 0x140   :  { %7565 = vmatpush3.bf16.msra.mxu0 %v8331_v25  ;;  %v8379_v25 = vld [vmem:[%s10571_s1 + $0xb08] sm:$0xff]  }
 0x141   :  { %7587 = vmatpush3.bf16.msra.mxu1 %v8332_v26  ;;  %7594 = vmatprep.subr.bf16.mxu0 %v8337_v32  ;;  %v8380_v26 = vld [vmem:[%s10571_s1 + $0xb88] sm:$0xff]   ;;  %v8386_v32 = vld [vmem:[%s10571_s1 + $0xbd8] sm:$0xff]  }
 0x142   :  { %7616 = vmatprep.subr.bf16.mxu1 %v8338_v34  ;;  %v8388_v34 = vld [vmem:[%s10571_s1 + $0xb98] sm:$0xff]  }
 0x143   :  { %5677 = vmatmul.mubr.bf16.vlgmr.msra.gmra.mrb[36].mxu0 %v6533_v29  ;;  %v8383_v29 = vld [vmem:[%s10571_s1 + $0xb10] sm:$0xff]  }
 0x144   :  { %5717 = vmatmul.mubr.bf16.vlgmr.msra.gmra.mrb[36].mxu1 %v6535_v31  ;;  %7595 = vmatpush3.bf16.msra.mxu0 %v8339_v35  ;;  %v8385_v31 = vld [vmem:[%s10571_s1 + $0xb58] sm:$0xff]   ;;  %v8389_v35 = vld [vmem:[%s10571_s1 + $0xb60] sm:$0xff]  }
 0x145   :  { %7617 = vmatpush3.bf16.msra.mxu1 %v8340_v36  ;;  %7596 = vmatprep.subr.bf16.mxu0 %v8341_v37  ;;  %v8390_v36 = vld [vmem:[%s10571_s1 + $0xbe0] sm:$0xff]  }
 0x146   :  { %7618 = vmatprep.subr.bf16.mxu1 %v8342_v38  ;;  %5756 = vmatprep.mubr.bf16.mxu0 %v6538_v15  ;;  %v8391_v38 = vld [vmem:[%s10571_s1 + $0xb20] sm:$0xff]   ;;  %v8419_v15 = vld [vmem:[%s10571_s1 + $0xc10] sm:$0xff]  }
 0x147   :  { %5796 = vmatprep.mubr.bf16.mxu1 %v6540_v18  ;;  %v8422_v18 = vld [vmem:[%s10571_s1 + $0xcd8] sm:$0xff]  }
 0x148   :  { %7597 = vmatpush3.bf16.msra.mxu0 %v8343_v39 }
 0x149   :  { %7619 = vmatpush3.bf16.msra.mxu1 %v8344_v40  ;;  %7598 = vmatprep.subr.bf16.mxu0 %v8345_v41  ;;  %v8392_v40 = vld [vmem:[%s10571_s1 + $0xba0] sm:$0xff]  }
 0x14a   :  { %7620 = vmatprep.subr.bf16.mxu1 %v8346_v42 }
 0x14c   :  { %7599 = vmatpush3.bf16.msra.mxu0 %v8347_v43  ;;  %v8393_v43 = vld [vmem:[%s10571_s1 + $0xb68] sm:$0xff]  }
 0x14d   :  { %7621 = vmatpush3.bf16.msra.mxu1 %v8348_v44  ;;  %7600 = vmatprep.subr.bf16.mxu0 %v8349_v45 }
 0x14e   :  { %7622 = vmatprep.subr.bf16.mxu1 %v8350_v46  ;;  %v8394_v46 = vld [vmem:[%s10571_s1 + $0xbe8] sm:$0xff]  }
 0x150   :  { %7601 = vmatpush3.bf16.msra.mxu0 %v8351_v47 }
 0x151   :  { %7623 = vmatpush3.bf16.msra.mxu1 %v8352_v48  ;;  %7602 = vmatprep.subr.bf16.mxu0 %v8353_v49  ;;  %v8395_v49 = vld [vmem:[%s10571_s1 + $0xb28] sm:$0xff]  }
 0x152   :  { %7624 = vmatprep.subr.bf16.mxu1 %v8354_v50 }
 0x154   :  { %7603 = vmatpush3.bf16.msra.mxu0 %v8355_v52 }
 0x155   :  { %7625 = vmatpush3.bf16.msra.mxu1 %v8356_v54  ;;  %7604 = vmatprep.subr.bf16.mxu0 %v8357_v57  ;;  %v8397_v54 = vld [vmem:[%s10571_s1 + $0xb70] sm:$0xff]  }
 0x156   :  { %v7302_v51 = vpop.f32.mrb[12].mxu0  ;;  %7626 = vmatprep.subr.bf16.mxu1 %v8358_v60  ;;  %v8399_v57 = vld [vmem:[%s10571_s1 + $0xb30] sm:$0xff]   ;;  %v8402_v60 = vld [vmem:[%s10571_s1 + $0xbf8] sm:$0xff]  }
 0x157   :  { %v7324_v53 = vpop.f32.mrb[12].mxu1  ;;  %v7303_v55 = vpop.f32.mrb[13].mxu0 }
 0x158   :  { %v7325_v56 = vpop.f32.mrb[13].mxu1  ;;  %v7304_v58 = vadd.f32 %v7303_v55, %v7302_v51  ;;  %v7305_v61 = vpop.f32.mrb[14].mxu0  ;;  %7605 = vmatpush3.bf16.msra.mxu0 %v8359_v63  ;;  %v8396_v51 = vld [vmem:[%s10571_s1 + $0xba8] sm:$0xff]   ;;  %v43_v63 = vld [vmem:[%s10572_s0 + $0xb0] sm:$0xff] }
 0x159   :  { %v7326_v59 = vadd.f32 %v7325_v56, %v7324_v53  ;;  %v7327_v62 = vpop.f32.mrb[14].mxu1  ;;  %v7306_v2 = vpop.f32.mrb[15].mxu0  ;;  %7627 = vmatpush3.bf16.msra.mxu1 %v8360_v1  ;;  %7606 = vmatprep.subr.bf16.mxu0 %v8361_v4  ;;  %v8398_v56 = vld [vmem:[%s10571_s1 + $0xbf0] sm:$0xff]   ;;  %v8403_v61 = vld [vmem:[%s10571_s1 + $0xb38] sm:$0xff]   ;;  %v6541_v1 = vcombine.low %v43_v63, %v43_v63 }
 0x15a   :  { %v5199_v0 = vadd.f32 %v7304_v58, %v9668_v17  ;;  %v7328_v3 = vpop.f32.mrb[15].mxu1  ;;  %7628 = vmatprep.subr.bf16.mxu1 %v8362_v6  ;;  %v6539_v17 = vcombine.low %v42_v16, %v42_v16  ;;  %v8400_v58 = vld [vmem:[%s10571_s1 + $0xbb0] sm:$0xff]   ;;  %v8404_v62 = vld [vmem:[%s10571_s1 + $0xbb8] sm:$0xff]   ;;  %v6542_v2 = vcombine.high %v43_v63, %v43_v63  ;;  %v8410_v6 = vld [vmem:[%s10571_s1 + $0xcc0] sm:$0xff]  }
 0x15b   :  { %v8420_v16 = vld [vmem:[%s10571_s1 + $0xc90] sm:$0xff]  }
 0x15c   :  { %v9776_v5 = vadd.f32 %v7326_v59, %v5199_v0  ;;  %7607 = vmatpush3.bf16.msra.mxu0 %v8363_v7  ;;  %v8401_v59 = vld [vmem:[%s10571_s1 + $0xb78] sm:$0xff]   ;;  %v8411_v7 = vld [vmem:[%s10571_s1 + $0xc00] sm:$0xff]   ;;  %v8453_v63 = vld [vmem:[%s10571_s1 + $0xd50] sm:$0xff]  }
 0x15d   :  { %7629 = vmatpush3.bf16.msra.mxu1 %v8364_v8  ;;  %7608 = vmatprep.subr.bf16.mxu0 %v8365_v9  ;;  %v44_v0 = vld [vmem:[%s10572_s0 + $0xb8] sm:$0xff]  ;;  %v8412_v8 = vld [vmem:[%s10571_s1 + $0xc80] sm:$0xff]   ;;  %v8413_v9 = vld [vmem:[%s10571_s1 + $0xc48] sm:$0xff]  }
 0x15e   :  { %7630 = vmatprep.subr.bf16.mxu1 %v8366_v10  ;;  %v6543_v3 = vcombine.low %v44_v0, %v44_v0  ;;  %v6544_v4 = vcombine.high %v44_v0, %v44_v0  ;;  %v8414_v10 = vld [vmem:[%s10571_s1 + $0xcc8] sm:$0xff]   ;;  %v8454_v0 = vld [vmem:[%s10571_s1 + $0xdd0] sm:$0xff]  }
 0x160   :  { %7609 = vmatpush3.bf16.msra.mxu0 %v8367_v11  ;;  %v8415_v11 = vld [vmem:[%s10571_s1 + $0xc08] sm:$0xff]  }
 0x161   :  { %7631 = vmatpush3.bf16.msra.mxu1 %v8368_v12  ;;  %7638 = vmatprep.subr.bf16.mxu0 %v8373_v19  ;;  %v8416_v12 = vld [vmem:[%s10571_s1 + $0xc88] sm:$0xff]   ;;  %v8423_v19 = vld [vmem:[%s10571_s1 + $0xc18] sm:$0xff]  }
 0x162   :  { %7660 = vmatprep.subr.bf16.mxu1 %v8374_v20  ;;  %v8424_v20 = vld [vmem:[%s10571_s1 + $0xc98] sm:$0xff]  }
 0x163   :  { %5757 = vmatmul.mubr.bf16.vlgmr.msra.gmra.mrb[40].mxu0 %v6537_v14  ;;  %v8418_v14 = vld [vmem:[%s10571_s1 + $0xcd0] sm:$0xff]  }
 0x164   :  { %5797 = vmatmul.mubr.bf16.vlgmr.msra.gmra.mrb[40].mxu1 %v6539_v17  ;;  %7639 = vmatpush3.bf16.msra.mxu0 %v8375_v21  ;;  %v8421_v17 = vld [vmem:[%s10571_s1 + $0xc58] sm:$0xff]   ;;  %v8425_v21 = vld [vmem:[%s10571_s1 + $0xc60] sm:$0xff]  }
 0x165   :  { %7661 = vmatpush3.bf16.msra.mxu1 %v8376_v22  ;;  %7640 = vmatprep.subr.bf16.mxu0 %v8377_v23  ;;  %v8426_v22 = vld [vmem:[%s10571_s1 + $0xce0] sm:$0xff]  }
 0x166   :  { %7662 = vmatprep.subr.bf16.mxu1 %v8378_v24  ;;  %5836 = vmatprep.mubr.bf16.mxu0 %v6542_v2  ;;  %v8427_v24 = vld [vmem:[%s10571_s1 + $0xc20] sm:$0xff]   ;;  %v8456_v2 = vld [vmem:[%s10571_s1 + $0xd90] sm:$0xff]  }
 0x167   :  { %5876 = vmatprep.mubr.bf16.mxu1 %v6544_v4  ;;  %v8458_v4 = vld [vmem:[%s10571_s1 + $0xdd8] sm:$0xff]  }
 0x168   :  { %7641 = vmatpush3.bf16.msra.mxu0 %v8379_v25 }
 0x169   :  { %7663 = vmatpush3.bf16.msra.mxu1 %v8380_v26  ;;  %7642 = vmatprep.subr.bf16.mxu0 %v8381_v27  ;;  %v8428_v26 = vld [vmem:[%s10571_s1 + $0xca0] sm:$0xff]  }
 0x16a   :  { %7664 = vmatprep.subr.bf16.mxu1 %v8382_v28 }
 0x16c   :  { %7643 = vmatpush3.bf16.msra.mxu0 %v8383_v29 }
 0x16d   :  { %7665 = vmatpush3.bf16.msra.mxu1 %v8384_v30  ;;  %7644 = vmatprep.subr.bf16.mxu0 %v8385_v31  ;;  %v8429_v30 = vld [vmem:[%s10571_s1 + $0xc68] sm:$0xff]  }
 0x16e   :  { %7666 = vmatprep.subr.bf16.mxu1 %v8386_v32  ;;  %v8430_v32 = vld [vmem:[%s10571_s1 + $0xce8] sm:$0xff]  }
 0x170   :  { %7645 = vmatpush3.bf16.msra.mxu0 %v8387_v33 }
 0x171   :  { %7667 = vmatpush3.bf16.msra.mxu1 %v8388_v34  ;;  %7646 = vmatprep.subr.bf16.mxu0 %v8389_v35 }
 0x172   :  { %7668 = vmatprep.subr.bf16.mxu1 %v8390_v36  ;;  %v8431_v36 = vld [vmem:[%s10571_s1 + $0xc28] sm:$0xff]  }
 0x174   :  { %7647 = vmatpush3.bf16.msra.mxu0 %v8391_v38 }
 0x175   :  { %7669 = vmatpush3.bf16.msra.mxu1 %v8392_v40  ;;  %7648 = vmatprep.subr.bf16.mxu0 %v8393_v43  ;;  %v8435_v43 = vld [vmem:[%s10571_s1 + $0xc30] sm:$0xff]  }
 0x176   :  { %v7346_v37 = vpop.f32.mrb[16].mxu0  ;;  %7670 = vmatprep.subr.bf16.mxu1 %v8394_v46  ;;  %v8438_v46 = vld [vmem:[%s10571_s1 + $0xcf8] sm:$0xff]  }
 0x177   :  { %v7368_v39 = vpop.f32.mrb[16].mxu1  ;;  %v7347_v41 = vpop.f32.mrb[17].mxu0 }
 0x178   :  { %v7369_v42 = vpop.f32.mrb[17].mxu1  ;;  %v7348_v44 = vadd.f32 %v7347_v41, %v7346_v37  ;;  %v7349_v47 = vpop.f32.mrb[18].mxu0  ;;  %7649 = vmatpush3.bf16.msra.mxu0 %v8395_v49  ;;  %v8432_v37 = vld [vmem:[%s10571_s1 + $0xca8] sm:$0xff]   ;;  %v8433_v41 = vld [vmem:[%s10571_s1 + $0xc70] sm:$0xff]   ;;  %v45_v49 = vld [vmem:[%s10572_s0 + $0xc0] sm:$0xff] }
 0x179   :  { %v7370_v45 = vadd.f32 %v7369_v42, %v7368_v39  ;;  %v7371_v48 = vpop.f32.mrb[18].mxu1  ;;  %v7350_v52 = vpop.f32.mrb[19].mxu0  ;;  %7671 = vmatpush3.bf16.msra.mxu1 %v8396_v51  ;;  %7650 = vmatprep.subr.bf16.mxu0 %v8397_v54  ;;  %v8434_v42 = vld [vmem:[%s10571_s1 + $0xcf0] sm:$0xff]   ;;  %v8439_v47 = vld [vmem:[%s10571_s1 + $0xc38] sm:$0xff]   ;;  %v6545_v51 = vcombine.low %v45_v49, %v45_v49  ;;  %v8445_v54 = vld [vmem:[%s10571_s1 + $0xd40] sm:$0xff]  }
 0x17a   :  { %v5279_v50 = vadd.f32 %v7348_v44, %v9776_v5  ;;  %v7372_v53 = vpop.f32.mrb[19].mxu1  ;;  %7672 = vmatprep.subr.bf16.mxu1 %v8398_v56  ;;  %v8409_v5 = vld [vmem:[%s10571_s1 + $0xc40] sm:$0xff]   ;;  %v8436_v44 = vld [vmem:[%s10571_s1 + $0xcb0] sm:$0xff]   ;;  %v8440_v48 = vld [vmem:[%s10571_s1 + $0xcb8] sm:$0xff]   ;;  %v6546_v52 = vcombine.high %v45_v49, %v45_v49 }
 0x17b   :  { %v8446_v56 = vld [vmem:[%s10571_s1 + $0xdc0] sm:$0xff]   ;;  %v8489_v49 = vld [vmem:[%s10571_s1 + $0xe50] sm:$0xff]  }
 0x17c   :  { %v9881_v55 = vadd.f32 %v7370_v45, %v5279_v50  ;;  %7651 = vmatpush3.bf16.msra.mxu0 %v8399_v57  ;;  %v8437_v45 = vld [vmem:[%s10571_s1 + $0xc78] sm:$0xff]   ;;  %v46_v50 = vld [vmem:[%s10572_s0 + $0xc8] sm:$0xff]  ;;  %v8447_v57 = vld [vmem:[%s10571_s1 + $0xd00] sm:$0xff]  }
 0x17d   :  { %7673 = vmatpush3.bf16.msra.mxu1 %v8400_v58  ;;  %7652 = vmatprep.subr.bf16.mxu0 %v8401_v59  ;;  %v6547_v53 = vcombine.low %v46_v50, %v46_v50  ;;  %v8448_v58 = vld [vmem:[%s10571_s1 + $0xd80] sm:$0xff]   ;;  %v8449_v59 = vld [vmem:[%s10571_s1 + $0xd48] sm:$0xff]  }
 0x17e   :  { %7674 = vmatprep.subr.bf16.mxu1 %v8402_v60  ;;  %v8450_v60 = vld [vmem:[%s10571_s1 + $0xdc8] sm:$0xff]  }
 0x180   :  { %7653 = vmatpush3.bf16.msra.mxu0 %v8403_v61  ;;  %v8451_v61 = vld [vmem:[%s10571_s1 + $0xd08] sm:$0xff]  }
 0x181   :  { %7675 = vmatpush3.bf16.msra.mxu1 %v8404_v62  ;;  %7682 = vmatprep.subr.bf16.mxu0 %v8409_v5  ;;  %v8452_v62 = vld [vmem:[%s10571_s1 + $0xd88] sm:$0xff]   ;;  %v8459_v5 = vld [vmem:[%s10571_s1 + $0xd18] sm:$0xff]  }
 0x182   :  { %7704 = vmatprep.subr.bf16.mxu1 %v8410_v6  ;;  %v8460_v6 = vld [vmem:[%s10571_s1 + $0xd98] sm:$0xff]  }
 0x183   :  { %5837 = vmatmul.mubr.bf16.vlgmr.msra.gmra.mrb[44].mxu0 %v6541_v1  ;;  %v8455_v1 = vld [vmem:[%s10571_s1 + $0xd10] sm:$0xff]  }
 0x184   :  { %5877 = vmatmul.mubr.bf16.vlgmr.msra.gmra.mrb[44].mxu1 %v6543_v3  ;;  %7683 = vmatpush3.bf16.msra.mxu0 %v8411_v7  ;;  %v8457_v3 = vld [vmem:[%s10571_s1 + $0xd58] sm:$0xff]   ;;  %v8461_v7 = vld [vmem:[%s10571_s1 + $0xd60] sm:$0xff]  }
 0x185   :  { %7705 = vmatpush3.bf16.msra.mxu1 %v8412_v8  ;;  %7684 = vmatprep.subr.bf16.mxu0 %v8413_v9  ;;  %v8462_v8 = vld [vmem:[%s10571_s1 + $0xde0] sm:$0xff]  }
 0x186   :  { %7706 = vmatprep.subr.bf16.mxu1 %v8414_v10  ;;  %5916 = vmatprep.mubr.bf16.mxu0 %v6546_v52  ;;  %v8463_v10 = vld [vmem:[%s10571_s1 + $0xd20] sm:$0xff]   ;;  %v8492_v52 = vld [vmem:[%s10571_s1 + $0xe90] sm:$0xff]  }
 0x188   :  { %7685 = vmatpush3.bf16.msra.mxu0 %v8415_v11 }
 0x189   :  { %7707 = vmatpush3.bf16.msra.mxu1 %v8416_v12  ;;  %7686 = vmatprep.subr.bf16.mxu0 %v8417_v13  ;;  %v8464_v12 = vld [vmem:[%s10571_s1 + $0xda0] sm:$0xff]  }
 0x18a   :  { %7708 = vmatprep.subr.bf16.mxu1 %v8418_v14 }
 0x18c   :  { %7687 = vmatpush3.bf16.msra.mxu0 %v8419_v15  ;;  %v8465_v15 = vld [vmem:[%s10571_s1 + $0xd68] sm:$0xff]  }
 0x18d   :  { %7709 = vmatpush3.bf16.msra.mxu1 %v8420_v16  ;;  %7688 = vmatprep.subr.bf16.mxu0 %v8421_v17 }
 0x18e   :  { %7710 = vmatprep.subr.bf16.mxu1 %v8422_v18  ;;  %v8466_v18 = vld [vmem:[%s10571_s1 + $0xde8] sm:$0xff]  }
 0x190   :  { %7689 = vmatpush3.bf16.msra.mxu0 %v8423_v19 }
 0x191   :  { %7711 = vmatpush3.bf16.msra.mxu1 %v8424_v20  ;;  %7690 = vmatprep.subr.bf16.mxu0 %v8425_v21  ;;  %v8467_v21 = vld [vmem:[%s10571_s1 + $0xd28] sm:$0xff]  }
 0x192   :  { %7712 = vmatprep.subr.bf16.mxu1 %v8426_v22 }
 0x194   :  { %7691 = vmatpush3.bf16.msra.mxu0 %v8427_v24 }
 0x195   :  { %7713 = vmatpush3.bf16.msra.mxu1 %v8428_v26  ;;  %7692 = vmatprep.subr.bf16.mxu0 %v8429_v30  ;;  %v8469_v26 = vld [vmem:[%s10571_s1 + $0xd70] sm:$0xff]  }
 0x196   :  { %v7390_v23 = vpop.f32.mrb[20].mxu0  ;;  %7714 = vmatprep.subr.bf16.mxu1 %v8430_v32  ;;  %v8472_v30 = vld [vmem:[%s10571_s1 + $0xdb0] sm:$0xff]   ;;  %v8474_v32 = vld [vmem:[%s10571_s1 + $0xdf8] sm:$0xff]  }
 0x197   :  { %v7412_v25 = vpop.f32.mrb[20].mxu1  ;;  %v7391_v27 = vpop.f32.mrb[21].mxu0 }
 0x198   :  { %v7392_v28 = vadd.f32 %v7391_v27, %v7390_v23  ;;  %v7413_v29 = vpop.f32.mrb[21].mxu1  ;;  %v7393_v33 = vpop.f32.mrb[22].mxu0  ;;  %7693 = vmatpush3.bf16.msra.mxu0 %v8431_v36  ;;  %v8468_v23 = vld [vmem:[%s10571_s1 + $0xda8] sm:$0xff]  }
 0x199   :  { %v7414_v31 = vadd.f32 %v7413_v29, %v7412_v25  ;;  %v7415_v35 = vpop.f32.mrb[22].mxu1  ;;  %v7394_v38 = vpop.f32.mrb[23].mxu0  ;;  %7715 = vmatpush3.bf16.msra.mxu1 %v8432_v37  ;;  %7694 = vmatprep.subr.bf16.mxu0 %v8433_v41  ;;  %v8471_v29 = vld [vmem:[%s10571_s1 + $0xd30] sm:$0xff]   ;;  %v8475_v33 = vld [vmem:[%s10571_s1 + $0xd38] sm:$0xff]   ;;  %v8481_v41 = vld [vmem:[%s10571_s1 + $0xe40] sm:$0xff]  }
 0x19a   :  { %v5359_v34 = vadd.f32 %v7392_v28, %v9881_v55  ;;  %v7416_v40 = vpop.f32.mrb[23].mxu1  ;;  %7716 = vmatprep.subr.bf16.mxu1 %v8434_v42  ;;  %v6548_v55 = vcombine.high %v46_v50, %v46_v50  ;;  %v8470_v28 = vld [vmem:[%s10571_s1 + $0xdf0] sm:$0xff]   ;;  %v48_v38 = vld [vmem:[%s10572_s0 + $0xd8] sm:$0xff]  ;;  %v8482_v42 = vld [vmem:[%s10571_s1 + $0xec0] sm:$0xff]  }
 0x19b   :  { %v47_v35 = vld [vmem:[%s10572_s0 + $0xd0] sm:$0xff]  ;;  %v6552_v40 = vcombine.high %v48_v38, %v48_v38 }
 0x19c   :  { %v9983_v39 = vadd.f32 %v7414_v31, %v5359_v34  ;;  %7695 = vmatpush3.bf16.msra.mxu0 %v8435_v43  ;;  %5956 = vmatprep.mubr.bf16.mxu1 %v6548_v55  ;;  %v8473_v31 = vld [vmem:[%s10571_s1 + $0xd78] sm:$0xff]   ;;  %v6549_v36 = vcombine.low %v47_v35, %v47_v35  ;;  %v6550_v37 = vcombine.high %v47_v35, %v47_v35  ;;  %v8483_v43 = vld [vmem:[%s10571_s1 + $0xe00] sm:$0xff]   ;;  %v8490_v50 = vld [vmem:[%s10571_s1 + $0xed0] sm:$0xff]  }
 0x19d   :  { %7717 = vmatpush3.bf16.msra.mxu1 %v8436_v44  ;;  %7696 = vmatprep.subr.bf16.mxu0 %v8437_v45  ;;  %v8476_v34 = vld [vmem:[%s10571_s1 + $0xdb8] sm:$0xff]   ;;  %v8484_v44 = vld [vmem:[%s10571_s1 + $0xe80] sm:$0xff]   ;;  %v8485_v45 = vld [vmem:[%s10571_s1 + $0xe48] sm:$0xff]  }
 0x19e   :  { %7718 = vmatprep.subr.bf16.mxu1 %v8438_v46  ;;  %v8486_v46 = vld [vmem:[%s10571_s1 + $0xec8] sm:$0xff]   ;;  %v8495_v55 = vld [vmem:[%s10571_s1 + $0xe18] sm:$0xff]   ;;  %v8525_v35 = vld [vmem:[%s10571_s1 + $0xf50] sm:$0xff]  }
 0x1a0   :  { %7697 = vmatpush3.bf16.msra.mxu0 %v8439_v47  ;;  %v8487_v47 = vld [vmem:[%s10571_s1 + $0xe08] sm:$0xff]  }
 0x1a1   :  { %7719 = vmatpush3.bf16.msra.mxu1 %v8440_v48  ;;  %7726 = vmatprep.subr.bf16.mxu0 %v8445_v54  ;;  %v8488_v48 = vld [vmem:[%s10571_s1 + $0xe88] sm:$0xff]   ;;  %v8494_v54 = vld [vmem:[%s10571_s1 + $0xed8] sm:$0xff]  }
 0x1a2   :  { %7748 = vmatprep.subr.bf16.mxu1 %v8446_v56  ;;  %v8496_v56 = vld [vmem:[%s10571_s1 + $0xe98] sm:$0xff]  }
 0x1a3   :  { %5917 = vmatmul.mubr.bf16.vlgmr.msra.gmra.mrb[48].mxu0 %v6545_v51  ;;  %v8491_v51 = vld [vmem:[%s10571_s1 + $0xe10] sm:$0xff]  }
 0x1a4   :  { %5957 = vmatmul.mubr.bf16.vlgmr.msra.gmra.mrb[48].mxu1 %v6547_v53  ;;  %7727 = vmatpush3.bf16.msra.mxu0 %v8447_v57  ;;  %v8493_v53 = vld [vmem:[%s10571_s1 + $0xe58] sm:$0xff]   ;;  %v8497_v57 = vld [vmem:[%s10571_s1 + $0xe60] sm:$0xff]  }
 0x1a5   :  { %7749 = vmatpush3.bf16.msra.mxu1 %v8448_v58  ;;  %7728 = vmatprep.subr.bf16.mxu0 %v8449_v59  ;;  %v8498_v58 = vld [vmem:[%s10571_s1 + $0xee0] sm:$0xff]  }
 0x1a6   :  { %7750 = vmatprep.subr.bf16.mxu1 %v8450_v60  ;;  %5996 = vmatprep.mubr.bf16.mxu0 %v6550_v37  ;;  %v8499_v60 = vld [vmem:[%s10571_s1 + $0xe20] sm:$0xff]   ;;  %v8527_v37 = vld [vmem:[%s10571_s1 + $0xf10] sm:$0xff]  }
 0x1a7   :  { %6036 = vmatprep.mubr.bf16.mxu1 %v6552_v40  ;;  %v8530_v40 = vld [vmem:[%s10571_s1 + $0xfd8] sm:$0xff]  }
 0x1a8   :  { %7729 = vmatpush3.bf16.msra.mxu0 %v8451_v61 }
 0x1a9   :  { %7751 = vmatpush3.bf16.msra.mxu1 %v8452_v62  ;;  %7730 = vmatprep.subr.bf16.mxu0 %v8453_v63  ;;  %v8500_v62 = vld [vmem:[%s10571_s1 + $0xea0] sm:$0xff]  }
 0x1aa   :  { %7752 = vmatprep.subr.bf16.mxu1 %v8454_v0 }
 0x1ac   :  { %7731 = vmatpush3.bf16.msra.mxu0 %v8455_v1  ;;  %v8501_v1 = vld [vmem:[%s10571_s1 + $0xe68] sm:$0xff]  }
 0x1ad   :  { %7753 = vmatpush3.bf16.msra.mxu1 %v8456_v2  ;;  %7732 = vmatprep.subr.bf16.mxu0 %v8457_v3 }
 0x1ae   :  { %7754 = vmatprep.subr.bf16.mxu1 %v8458_v4  ;;  %v8502_v4 = vld [vmem:[%s10571_s1 + $0xee8] sm:$0xff]  }
 0x1b0   :  { %7733 = vmatpush3.bf16.msra.mxu0 %v8459_v5 }
 0x1b1   :  { %7755 = vmatpush3.bf16.msra.mxu1 %v8460_v6  ;;  %7734 = vmatprep.subr.bf16.mxu0 %v8461_v7  ;;  %v8503_v7 = vld [vmem:[%s10571_s1 + $0xe28] sm:$0xff]  }
 0x1b2   :  { %7756 = vmatprep.subr.bf16.mxu1 %v8462_v8 }
 0x1b4   :  { %7735 = vmatpush3.bf16.msra.mxu0 %v8463_v10 }
 0x1b5   :  { %7757 = vmatpush3.bf16.msra.mxu1 %v8464_v12  ;;  %7736 = vmatprep.subr.bf16.mxu0 %v8465_v15  ;;  %v8505_v12 = vld [vmem:[%s10571_s1 + $0xe70] sm:$0xff]  }
 0x1b6   :  { %v7434_v9 = vpop.f32.mrb[24].mxu0  ;;  %7758 = vmatprep.subr.bf16.mxu1 %v8466_v18  ;;  %v8507_v15 = vld [vmem:[%s10571_s1 + $0xe30] sm:$0xff]   ;;  %v8510_v18 = vld [vmem:[%s10571_s1 + $0xef8] sm:$0xff]  }
 0x1b7   :  { %v7456_v11 = vpop.f32.mrb[24].mxu1  ;;  %v7435_v13 = vpop.f32.mrb[25].mxu0 }
 0x1b8   :  { %v7457_v14 = vpop.f32.mrb[25].mxu1  ;;  %v7436_v16 = vadd.f32 %v7435_v13, %v7434_v9  ;;  %v7437_v19 = vpop.f32.mrb[26].mxu0  ;;  %7737 = vmatpush3.bf16.msra.mxu0 %v8467_v21  ;;  %v8504_v9 = vld [vmem:[%s10571_s1 + $0xea8] sm:$0xff]   ;;  %v49_v21 = vld [vmem:[%s10572_s0 + $0xe0] sm:$0xff] }
 0x1b9   :  { %v7458_v17 = vadd.f32 %v7457_v14, %v7456_v11  ;;  %v7459_v20 = vpop.f32.mrb[26].mxu1  ;;  %v7438_v24 = vpop.f32.mrb[27].mxu0  ;;  %7759 = vmatpush3.bf16.msra.mxu1 %v8468_v23  ;;  %7738 = vmatprep.subr.bf16.mxu0 %v8469_v26  ;;  %v8506_v14 = vld [vmem:[%s10571_s1 + $0xef0] sm:$0xff]   ;;  %v8511_v19 = vld [vmem:[%s10571_s1 + $0xe38] sm:$0xff]   ;;  %v6553_v23 = vcombine.low %v49_v21, %v49_v21 }
 0x1ba   :  { %v5439_v22 = vadd.f32 %v7436_v16, %v9983_v39  ;;  %v7460_v25 = vpop.f32.mrb[27].mxu1  ;;  %7760 = vmatprep.subr.bf16.mxu1 %v8470_v28  ;;  %v6551_v39 = vcombine.low %v48_v38, %v48_v38  ;;  %v8508_v16 = vld [vmem:[%s10571_s1 + $0xeb0] sm:$0xff]   ;;  %v8512_v20 = vld [vmem:[%s10571_s1 + $0xeb8] sm:$0xff]   ;;  %v6554_v24 = vcombine.high %v49_v21, %v49_v21  ;;  %v8518_v28 = vld [vmem:[%s10571_s1 + $0xfc0] sm:$0xff]  }
 0x1bb   :  { %v8528_v38 = vld [vmem:[%s10571_s1 + $0xf90] sm:$0xff]  }
 0x1bc   :  { %v10091_v27 = vadd.f32 %v7458_v17, %v5439_v22  ;;  %7739 = vmatpush3.bf16.msra.mxu0 %v8471_v29  ;;  %v8509_v17 = vld [vmem:[%s10571_s1 + $0xe78] sm:$0xff]   ;;  %v50_v22 = vld [vmem:[%s10572_s0 + $0xe8] sm:$0xff]  ;;  %v8519_v29 = vld [vmem:[%s10571_s1 + $0xf00] sm:$0xff]  }
 0x1bd   :  { %7761 = vmatpush3.bf16.msra.mxu1 %v8472_v30  ;;  %7740 = vmatprep.subr.bf16.mxu0 %v8473_v31  ;;  %v6555_v25 = vcombine.low %v50_v22, %v50_v22  ;;  %v6556_v26 = vcombine.high %v50_v22, %v50_v22  ;;  %v8520_v30 = vld [vmem:[%s10571_s1 + $0xf80] sm:$0xff]   ;;  %v8521_v31 = vld [vmem:[%s10571_s1 + $0xf48] sm:$0xff]   ;;  %v8561_v21 = vld [vmem:[%s10571_s1 + $0x1050] sm:$0xff]  }
 0x1be   :  { %7762 = vmatprep.subr.bf16.mxu1 %v8474_v32  ;;  %v8522_v32 = vld [vmem:[%s10571_s1 + $0xfc8] sm:$0xff]   ;;  %v8562_v22 = vld [vmem:[%s10571_s1 + $0x10d0] sm:$0xff]  }
 0x1c0   :  { %7741 = vmatpush3.bf16.msra.mxu0 %v8475_v33  ;;  %v8523_v33 = vld [vmem:[%s10571_s1 + $0xf08] sm:$0xff]  }
 0x1c1   :  { %7763 = vmatpush3.bf16.msra.mxu1 %v8476_v34  ;;  %7770 = vmatprep.subr.bf16.mxu0 %v8481_v41  ;;  %v8524_v34 = vld [vmem:[%s10571_s1 + $0xf88] sm:$0xff]   ;;  %v8531_v41 = vld [vmem:[%s10571_s1 + $0xf18] sm:$0xff]  }
 0x1c2   :  { %7792 = vmatprep.subr.bf16.mxu1 %v8482_v42  ;;  %v8532_v42 = vld [vmem:[%s10571_s1 + $0xf98] sm:$0xff]  }
 0x1c3   :  { %5997 = vmatmul.mubr.bf16.vlgmr.msra.gmra.mrb[52].mxu0 %v6549_v36  ;;  %v8526_v36 = vld [vmem:[%s10571_s1 + $0xfd0] sm:$0xff]  }
 0x1c4   :  { %6037 = vmatmul.mubr.bf16.vlgmr.msra.gmra.mrb[52].mxu1 %v6551_v39  ;;  %7771 = vmatpush3.bf16.msra.mxu0 %v8483_v43  ;;  %v8529_v39 = vld [vmem:[%s10571_s1 + $0xf58] sm:$0xff]   ;;  %v8533_v43 = vld [vmem:[%s10571_s1 + $0xf60] sm:$0xff]  }
 0x1c5   :  { %7793 = vmatpush3.bf16.msra.mxu1 %v8484_v44  ;;  %7772 = vmatprep.subr.bf16.mxu0 %v8485_v45  ;;  %v8534_v44 = vld [vmem:[%s10571_s1 + $0xfe0] sm:$0xff]  }
 0x1c6   :  { %7794 = vmatprep.subr.bf16.mxu1 %v8486_v46  ;;  %6076 = vmatprep.mubr.bf16.mxu0 %v6554_v24  ;;  %v8535_v45 = vld [vmem:[%s10571_s1 + $0xf20] sm:$0xff]   ;;  %v8564_v24 = vld [vmem:[%s10571_s1 + $0x1090] sm:$0xff]  }
 0x1c7   :  { %6116 = vmatprep.mubr.bf16.mxu1 %v6556_v26  ;;  %v8566_v26 = vld [vmem:[%s10571_s1 + $0x10d8] sm:$0xff]  }
 0x1c8   :  { %7773 = vmatpush3.bf16.msra.mxu0 %v8487_v47  ;;  %v8536_v47 = vld [vmem:[%s10571_s1 + $0xfa0] sm:$0xff]  }
 0x1c9   :  { %7795 = vmatpush3.bf16.msra.mxu1 %v8488_v48  ;;  %7774 = vmatprep.subr.bf16.mxu0 %v8489_v49 }
 0x1ca   :  { %7796 = vmatprep.subr.bf16.mxu1 %v8490_v50 }
 0x1cc   :  { %7775 = vmatpush3.bf16.msra.mxu0 %v8491_v51 }
 0x1cd   :  { %7797 = vmatpush3.bf16.msra.mxu1 %v8492_v52  ;;  %7776 = vmatprep.subr.bf16.mxu0 %v8493_v53  ;;  %v8537_v53 = vld [vmem:[%s10571_s1 + $0xf68] sm:$0xff]  }
 0x1ce   :  { %7798 = vmatprep.subr.bf16.mxu1 %v8494_v54 }
 0x1d0   :  { %7777 = vmatpush3.bf16.msra.mxu0 %v8495_v55  ;;  %v8538_v55 = vld [vmem:[%s10571_s1 + $0xfe8] sm:$0xff]  }
 0x1d1   :  { %7799 = vmatpush3.bf16.msra.mxu1 %v8496_v56  ;;  %7778 = vmatprep.subr.bf16.mxu0 %v8497_v57 }
 0x1d2   :  { %7800 = vmatprep.subr.bf16.mxu1 %v8498_v58  ;;  %v8539_v58 = vld [vmem:[%s10571_s1 + $0xf28] sm:$0xff]  }
 0x1d4   :  { %7779 = vmatpush3.bf16.msra.mxu0 %v8499_v60  ;;  %v8540_v60 = vld [vmem:[%s10571_s1 + $0xfa8] sm:$0xff]  }
 0x1d5   :  { %7801 = vmatpush3.bf16.msra.mxu1 %v8500_v62  ;;  %7780 = vmatprep.subr.bf16.mxu0 %v8501_v1  ;;  %v8543_v1 = vld [vmem:[%s10571_s1 + $0xf30] sm:$0xff]  }
 0x1d6   :  { %v7478_v59 = vpop.f32.mrb[28].mxu0  ;;  %7802 = vmatprep.subr.bf16.mxu1 %v8502_v4  ;;  %v8546_v4 = vld [vmem:[%s10571_s1 + $0xff8] sm:$0xff]  }
 0x1d7   :  { %v7500_v61 = vpop.f32.mrb[28].mxu1  ;;  %v7479_v63 = vpop.f32.mrb[29].mxu0 }
 0x1d8   :  { %v7501_v0 = vpop.f32.mrb[29].mxu1  ;;  %v7480_v2 = vadd.f32 %v7479_v63, %v7478_v59  ;;  %v7481_v5 = vpop.f32.mrb[30].mxu0  ;;  %7781 = vmatpush3.bf16.msra.mxu0 %v8503_v7  ;;  %v8541_v63 = vld [vmem:[%s10571_s1 + $0xf70] sm:$0xff]  }
 0x1d9   :  { %v7502_v3 = vadd.f32 %v7501_v0, %v7500_v61  ;;  %v7503_v6 = vpop.f32.mrb[30].mxu1  ;;  %v7482_v10 = vpop.f32.mrb[31].mxu0  ;;  %7803 = vmatpush3.bf16.msra.mxu1 %v8504_v9  ;;  %7782 = vmatprep.subr.bf16.mxu0 %v8505_v12  ;;  %v8542_v0 = vld [vmem:[%s10571_s1 + $0xff0] sm:$0xff]   ;;  %v8547_v5 = vld [vmem:[%s10571_s1 + $0xf38] sm:$0xff]  }
 0x1da   :  { %v5519_v8 = vadd.f32 %v7480_v2, %v10091_v27  ;;  %v7504_v11 = vpop.f32.mrb[31].mxu1  ;;  %7804 = vmatprep.subr.bf16.mxu1 %v8506_v14  ;;  %v8517_v27 = vld [vmem:[%s10571_s1 + $0xf40] sm:$0xff]   ;;  %v8544_v2 = vld [vmem:[%s10571_s1 + $0xfb0] sm:$0xff]   ;;  %v8548_v6 = vld [vmem:[%s10571_s1 + $0xfb8] sm:$0xff]  }
 0x1db   :  { %v51_v7 = vld [vmem:[%s10572_s0 + $0xf0] sm:$0xff]  ;;  %v8554_v14 = vld [vmem:[%s10571_s1 + $0x10c0] sm:$0xff]  }
 0x1dc   :  { %v10196_v13 = vadd.f32 %v7502_v3, %v5519_v8  ;;  %7783 = vmatpush3.bf16.msra.mxu0 %v8507_v15  ;;  %v8545_v3 = vld [vmem:[%s10571_s1 + $0xf78] sm:$0xff]   ;;  %v6557_v9 = vcombine.low %v51_v7, %v51_v7  ;;  %v6558_v10 = vcombine.high %v51_v7, %v51_v7  ;;  %v8555_v15 = vld [vmem:[%s10571_s1 + $0x1000] sm:$0xff]   ;;  %v8597_v7 = vld [vmem:[%s10571_s1 + $0x1150] sm:$0xff]  }
 0x1dd   :  { %7805 = vmatpush3.bf16.msra.mxu1 %v8508_v16  ;;  %7784 = vmatprep.subr.bf16.mxu0 %v8509_v17  ;;  %v52_v8 = vld [vmem:[%s10572_s0 + $0xf8] sm:$0xff]  ;;  %v8556_v16 = vld [vmem:[%s10571_s1 + $0x1080] sm:$0xff]   ;;  %v8557_v17 = vld [vmem:[%s10571_s1 + $0x1048] sm:$0xff]  }
 0x1de   :  { %7806 = vmatprep.subr.bf16.mxu1 %v8510_v18  ;;  %v6559_v11 = vcombine.low %v52_v8, %v52_v8  ;;  %v6560_v12 = vcombine.high %v52_v8, %v52_v8  ;;  %v8558_v18 = vld [vmem:[%s10571_s1 + $0x10c8] sm:$0xff]   ;;  %v8598_v8 = vld [vmem:[%s10571_s1 + $0x11d0] sm:$0xff]  }
 0x1e0   :  { %7785 = vmatpush3.bf16.msra.mxu0 %v8511_v19  ;;  %v8559_v19 = vld [vmem:[%s10571_s1 + $0x1008] sm:$0xff]  }
 0x1e1   :  { %7807 = vmatpush3.bf16.msra.mxu1 %v8512_v20  ;;  %7814 = vmatprep.subr.bf16.mxu0 %v8517_v27  ;;  %v8560_v20 = vld [vmem:[%s10571_s1 + $0x1088] sm:$0xff]   ;;  %v8567_v27 = vld [vmem:[%s10571_s1 + $0x1018] sm:$0xff]  }
 0x1e2   :  { %7836 = vmatprep.subr.bf16.mxu1 %v8518_v28  ;;  %v8568_v28 = vld [vmem:[%s10571_s1 + $0x1098] sm:$0xff]  }
 0x1e3   :  { %6077 = vmatmul.mubr.bf16.vlgmr.msra.gmra.mrb[56].mxu0 %v6553_v23  ;;  %v8563_v23 = vld [vmem:[%s10571_s1 + $0x1010] sm:$0xff]  }
 0x1e4   :  { %6117 = vmatmul.mubr.bf16.vlgmr.msra.gmra.mrb[56].mxu1 %v6555_v25  ;;  %7815 = vmatpush3.bf16.msra.mxu0 %v8519_v29  ;;  %v8565_v25 = vld [vmem:[%s10571_s1 + $0x1058] sm:$0xff]   ;;  %v8569_v29 = vld [vmem:[%s10571_s1 + $0x1060] sm:$0xff]  }
 0x1e5   :  { %7837 = vmatpush3.bf16.msra.mxu1 %v8520_v30  ;;  %7816 = vmatprep.subr.bf16.mxu0 %v8521_v31  ;;  %v8570_v30 = vld [vmem:[%s10571_s1 + $0x10e0] sm:$0xff]  }
 0x1e6   :  { %7838 = vmatprep.subr.bf16.mxu1 %v8522_v32  ;;  %6156 = vmatprep.mubr.bf16.mxu0 %v6558_v10  ;;  %v8571_v31 = vld [vmem:[%s10571_s1 + $0x1020] sm:$0xff]   ;;  %v8600_v10 = vld [vmem:[%s10571_s1 + $0x1190] sm:$0xff]  }
 0x1e7   :  { %6196 = vmatprep.mubr.bf16.mxu1 %v6560_v12  ;;  %v8602_v12 = vld [vmem:[%s10571_s1 + $0x11d8] sm:$0xff]  }
 0x1e8   :  { %7817 = vmatpush3.bf16.msra.mxu0 %v8523_v33  ;;  %v8572_v33 = vld [vmem:[%s10571_s1 + $0x10a0] sm:$0xff]  }
 0x1e9   :  { %7839 = vmatpush3.bf16.msra.mxu1 %v8524_v34  ;;  %7818 = vmatprep.subr.bf16.mxu0 %v8525_v35 }
 0x1ea   :  { %7840 = vmatprep.subr.bf16.mxu1 %v8526_v36 }
 0x1ec   :  { %7819 = vmatpush3.bf16.msra.mxu0 %v8527_v37 }
 0x1ed   :  { %7841 = vmatpush3.bf16.msra.mxu1 %v8528_v38  ;;  %7820 = vmatprep.subr.bf16.mxu0 %v8529_v39  ;;  %v8573_v39 = vld [vmem:[%s10571_s1 + $0x1068] sm:$0xff]  }
 0x1ee   :  { %7842 = vmatprep.subr.bf16.mxu1 %v8530_v40 }
 0x1f0   :  { %7821 = vmatpush3.bf16.msra.mxu0 %v8531_v41  ;;  %v8574_v41 = vld [vmem:[%s10571_s1 + $0x10e8] sm:$0xff]  }
 0x1f1   :  { %7843 = vmatpush3.bf16.msra.mxu1 %v8532_v42  ;;  %7822 = vmatprep.subr.bf16.mxu0 %v8533_v43 }
 0x1f2   :  { %7844 = vmatprep.subr.bf16.mxu1 %v8534_v44  ;;  %v8575_v44 = vld [vmem:[%s10571_s1 + $0x1028] sm:$0xff]  }
 0x1f4   :  { %7823 = vmatpush3.bf16.msra.mxu0 %v8535_v45 }
 0x1f5   :  { %7845 = vmatpush3.bf16.msra.mxu1 %v8536_v47  ;;  %7824 = vmatprep.subr.bf16.mxu0 %v8537_v53  ;;  %v8581_v53 = vld [vmem:[%s10571_s1 + $0x1078] sm:$0xff]  }
 0x1f6   :  { %v7522_v46 = vpop.f32.mrb[32].mxu0  ;;  %7846 = vmatprep.subr.bf16.mxu1 %v8538_v55  ;;  %v8583_v55 = vld [vmem:[%s10571_s1 + $0x1038] sm:$0xff]  }
 0x1f7   :  { %v7544_v48 = vpop.f32.mrb[32].mxu1  ;;  %v7523_v49 = vpop.f32.mrb[33].mxu0 }
 0x1f8   :  { %v7545_v50 = vpop.f32.mrb[33].mxu1  ;;  %v7524_v51 = vadd.f32 %v7523_v49, %v7522_v46  ;;  %v7525_v54 = vpop.f32.mrb[34].mxu0  ;;  %7825 = vmatpush3.bf16.msra.mxu0 %v8539_v58  ;;  %v8576_v46 = vld [vmem:[%s10571_s1 + $0x10a8] sm:$0xff]   ;;  %v8577_v49 = vld [vmem:[%s10571_s1 + $0x1070] sm:$0xff]  }
 0x1f9   :  { %v7546_v52 = vadd.f32 %v7545_v50, %v7544_v48  ;;  %v7547_v56 = vpop.f32.mrb[34].mxu1  ;;  %v7526_v59 = vpop.f32.mrb[35].mxu0  ;;  %7847 = vmatpush3.bf16.msra.mxu1 %v8540_v60  ;;  %7826 = vmatprep.subr.bf16.mxu0 %v8541_v63  ;;  %v8578_v50 = vld [vmem:[%s10571_s1 + $0x10f0] sm:$0xff]   ;;  %v8582_v54 = vld [vmem:[%s10571_s1 + $0x10f8] sm:$0xff]   ;;  %v54_v58 = vld [vmem:[%s10572_s0 + $0x108] sm:$0xff] }
 0x1fa   :  { %v5599_v57 = vadd.f32 %v7524_v51, %v10196_v13  ;;  %v7548_v61 = vpop.f32.mrb[35].mxu1  ;;  %7848 = vmatprep.subr.bf16.mxu1 %v8542_v0  ;;  %v8553_v13 = vld [vmem:[%s10571_s1 + $0x1040] sm:$0xff]   ;;  %v8579_v51 = vld [vmem:[%s10571_s1 + $0x1030] sm:$0xff]   ;;  %v8584_v56 = vld [vmem:[%s10571_s1 + $0x10b8] sm:$0xff]  }
 0x1fb   :  { %v6563_v61 = vcombine.low %v54_v58, %v54_v58  ;;  %v8589_v63 = vld [vmem:[%s10571_s1 + $0x1140] sm:$0xff]  }
 0x1fc   :  { %v10298_v62 = vadd.f32 %v7546_v52, %v5599_v57  ;;  %7827 = vmatpush3.bf16.msra.mxu0 %v8543_v1  ;;  %v8580_v52 = vld [vmem:[%s10571_s1 + $0x10b0] sm:$0xff]   ;;  %v53_v57 = vld [vmem:[%s10572_s0 + $0x100] sm:$0xff] }
 0x1fd   :  { %7849 = vmatpush3.bf16.msra.mxu1 %v8544_v2  ;;  %7828 = vmatprep.subr.bf16.mxu0 %v8545_v3  ;;  %v6561_v59 = vcombine.low %v53_v57, %v53_v57  ;;  %v6562_v60 = vcombine.high %v53_v57, %v53_v57  ;;  %v8590_v0 = vld [vmem:[%s10571_s1 + $0x11c0] sm:$0xff]   ;;  %v8593_v3 = vld [vmem:[%s10571_s1 + $0x1148] sm:$0xff]  }
 0x1fe   :  { %7850 = vmatprep.subr.bf16.mxu1 %v8546_v4  ;;  %v8591_v1 = vld [vmem:[%s10571_s1 + $0x1100] sm:$0xff]   ;;  %v8594_v4 = vld [vmem:[%s10571_s1 + $0x11c8] sm:$0xff]  }
 0x1ff   :  { %v8592_v2 = vld [vmem:[%s10571_s1 + $0x1180] sm:$0xff]  }
 0x200   :  { %7829 = vmatpush3.bf16.msra.mxu0 %v8547_v5  ;;  %v8595_v5 = vld [vmem:[%s10571_s1 + $0x1108] sm:$0xff]  }
 0x201   :  { %7851 = vmatpush3.bf16.msra.mxu1 %v8548_v6  ;;  %7858 = vmatprep.subr.bf16.mxu0 %v8553_v13  ;;  %v8596_v6 = vld [vmem:[%s10571_s1 + $0x1188] sm:$0xff]   ;;  %v8603_v13 = vld [vmem:[%s10571_s1 + $0x1118] sm:$0xff]  }
 0x202   :  { %7880 = vmatprep.subr.bf16.mxu1 %v8554_v14  ;;  %v8604_v14 = vld [vmem:[%s10571_s1 + $0x1198] sm:$0xff]  }
 0x203   :  { %6157 = vmatmul.mubr.bf16.vlgmr.msra.gmra.mrb[60].mxu0 %v6557_v9  ;;  %v8599_v9 = vld [vmem:[%s10571_s1 + $0x1110] sm:$0xff]  }
 0x204   :  { %6197 = vmatmul.mubr.bf16.vlgmr.msra.gmra.mrb[60].mxu1 %v6559_v11  ;;  %7859 = vmatpush3.bf16.msra.mxu0 %v8555_v15  ;;  %v8601_v11 = vld [vmem:[%s10571_s1 + $0x1158] sm:$0xff]   ;;  %v8605_v15 = vld [vmem:[%s10571_s1 + $0x1160] sm:$0xff]  }
 0x205   :  { %7881 = vmatpush3.bf16.msra.mxu1 %v8556_v16  ;;  %7860 = vmatprep.subr.bf16.mxu0 %v8557_v17  ;;  %v8606_v16 = vld [vmem:[%s10571_s1 + $0x11e0] sm:$0xff]  }
 0x206   :  { %7882 = vmatprep.subr.bf16.mxu1 %v8558_v18  ;;  %6236 = vmatprep.mubr.bf16.mxu0 %v6562_v60  ;;  %v8607_v17 = vld [vmem:[%s10571_s1 + $0x1120] sm:$0xff]  }
 0x208   :  { %7861 = vmatpush3.bf16.msra.mxu0 %v8559_v19  ;;  %v8608_v19 = vld [vmem:[%s10571_s1 + $0x11a0] sm:$0xff]  }
 0x209   :  { %7883 = vmatpush3.bf16.msra.mxu1 %v8560_v20  ;;  %7862 = vmatprep.subr.bf16.mxu0 %v8561_v21 }
 0x20a   :  { %7884 = vmatprep.subr.bf16.mxu1 %v8562_v22 }
 0x20c   :  { %7863 = vmatpush3.bf16.msra.mxu0 %v8563_v23 }
 0x20d   :  { %7885 = vmatpush3.bf16.msra.mxu1 %v8564_v24  ;;  %7864 = vmatprep.subr.bf16.mxu0 %v8565_v25  ;;  %v8609_v25 = vld [vmem:[%s10571_s1 + $0x1168] sm:$0xff]  }
 0x20e   :  { %7886 = vmatprep.subr.bf16.mxu1 %v8566_v26 }
 0x210   :  { %7865 = vmatpush3.bf16.msra.mxu0 %v8567_v27  ;;  %v8610_v27 = vld [vmem:[%s10571_s1 + $0x11e8] sm:$0xff]  }
 0x211   :  { %7887 = vmatpush3.bf16.msra.mxu1 %v8568_v28  ;;  %7866 = vmatprep.subr.bf16.mxu0 %v8569_v29 }
 0x212   :  { %7888 = vmatprep.subr.bf16.mxu1 %v8570_v30  ;;  %v8611_v30 = vld [vmem:[%s10571_s1 + $0x1128] sm:$0xff]  }
 0x214   :  { %7867 = vmatpush3.bf16.msra.mxu0 %v8571_v31 }
 0x215   :  { %7889 = vmatpush3.bf16.msra.mxu1 %v8572_v33  ;;  %7868 = vmatprep.subr.bf16.mxu0 %v8573_v39  ;;  %v8617_v39 = vld [vmem:[%s10571_s1 + $0x1178] sm:$0xff]  }
 0x216   :  { %v7566_v32 = vpop.f32.mrb[36].mxu0  ;;  %7890 = vmatprep.subr.bf16.mxu1 %v8574_v41  ;;  %v8619_v41 = vld [vmem:[%s10571_s1 + $0x1138] sm:$0xff]  }
 0x217   :  { %v7588_v34 = vpop.f32.mrb[36].mxu1  ;;  %v7567_v35 = vpop.f32.mrb[37].mxu0 }
 0x218   :  { %v7589_v36 = vpop.f32.mrb[37].mxu1  ;;  %v7568_v37 = vadd.f32 %v7567_v35, %v7566_v32  ;;  %v7569_v40 = vpop.f32.mrb[38].mxu0  ;;  %7869 = vmatpush3.bf16.msra.mxu0 %v8575_v44  ;;  %v8612_v32 = vld [vmem:[%s10571_s1 + $0x11a8] sm:$0xff]   ;;  %v8613_v35 = vld [vmem:[%s10571_s1 + $0x1170] sm:$0xff]   ;;  %v56_v44 = vld [vmem:[%s10572_s0 + $0x118] sm:$0xff] }
 0x219   :  { %v7590_v38 = vadd.f32 %v7589_v36, %v7588_v34  ;;  %v7591_v42 = vpop.f32.mrb[38].mxu1  ;;  %v7570_v45 = vpop.f32.mrb[39].mxu0  ;;  %7891 = vmatpush3.bf16.msra.mxu1 %v8576_v46  ;;  %7870 = vmatprep.subr.bf16.mxu0 %v8577_v49  ;;  %v8614_v36 = vld [vmem:[%s10571_s1 + $0x11f0] sm:$0xff]   ;;  %v8618_v40 = vld [vmem:[%s10571_s1 + $0x11f8] sm:$0xff]  }
 0x21a   :  { %v5679_v43 = vadd.f32 %v7568_v37, %v10298_v62  ;;  %v7592_v47 = vpop.f32.mrb[39].mxu1  ;;  %7892 = vmatprep.subr.bf16.mxu1 %v8578_v50  ;;  %v6564_v62 = vcombine.high %v54_v58, %v54_v58  ;;  %v8615_v37 = vld [vmem:[%s10571_s1 + $0x1130] sm:$0xff]   ;;  %v8620_v42 = vld [vmem:[%s10571_s1 + $0x11b8] sm:$0xff]  }
 0x21b   :  { %v6567_v47 = vcombine.low %v56_v44, %v56_v44 }
 0x21c   :  { %v10403_v48 = vadd.f32 %v7590_v38, %v5679_v43  ;;  %7871 = vmatpush3.bf16.msra.mxu0 %v8579_v51  ;;  %6276 = vmatprep.mubr.bf16.mxu1 %v6564_v62  ;;  %v8616_v38 = vld [vmem:[%s10571_s1 + $0x11b0] sm:$0xff]  }
 0x21d   :  { %7893 = vmatpush3.bf16.msra.mxu1 %v8580_v52  ;;  %7872 = vmatprep.subr.bf16.mxu0 %v8581_v53  ;;  %v55_v43 = vld [vmem:[%s10572_s0 + $0x110] sm:$0xff] }
 0x21e   :  { %7894 = vmatprep.subr.bf16.mxu1 %v8582_v54  ;;  %v6565_v45 = vcombine.low %v55_v43, %v55_v43  ;;  %v6566_v46 = vcombine.high %v55_v43, %v55_v43 }
 0x220   :  { %7873 = vmatpush3.bf16.msra.mxu0 %v8583_v55 }
 0x221   :  { %7895 = vmatpush3.bf16.msra.mxu1 %v8584_v56  ;;  %7902 = vmatprep.subr.bf16.mxu0 %v8589_v63 }
 0x222   :  { %7924 = vmatprep.subr.bf16.mxu1 %v8590_v0 }
 0x223   :  { %6237 = vmatmul.mubr.bf16.vlgmr.msra.gmra.mrb[64].mxu0 %v6561_v59 }
 0x224   :  { %6277 = vmatmul.mubr.bf16.vlgmr.msra.gmra.mrb[64].mxu1 %v6563_v61  ;;  %7903 = vmatpush3.bf16.msra.mxu0 %v8591_v1 }
 0x225   :  { %7925 = vmatpush3.bf16.msra.mxu1 %v8592_v2  ;;  %7904 = vmatprep.subr.bf16.mxu0 %v8593_v3 }
 0x226   :  { %7926 = vmatprep.subr.bf16.mxu1 %v8594_v4  ;;  %6316 = vmatprep.mubr.bf16.mxu0 %v6566_v46 }
 0x228   :  { %7905 = vmatpush3.bf16.msra.mxu0 %v8595_v5 }
 0x229   :  { %7927 = vmatpush3.bf16.msra.mxu1 %v8596_v6  ;;  %7906 = vmatprep.subr.bf16.mxu0 %v8597_v7 }
 0x22a   :  { %7928 = vmatprep.subr.bf16.mxu1 %v8598_v8 }
 0x22c   :  { %7907 = vmatpush3.bf16.msra.mxu0 %v8599_v9  ;;  %v8637_v9 = vmov 0.0  }
 0x22d   :  { %7929 = vmatpush3.bf16.msra.mxu1 %v8600_v10  ;;  %7908 = vmatprep.subr.bf16.mxu0 %v8601_v11  ;;  %v8625_v10 = vld [vmem:[%s10574_s3] sm:$0xff]   ;;  %v8626_v11 = vld [vmem:[%s10574_s3 + $0x8] sm:$0xff]  }
 0x22e   :  { %7930 = vmatprep.subr.bf16.mxu1 %v8602_v12  ;;  %v8627_v12 = vld [vmem:[%s10574_s3 + $0x10] sm:$0xff]  }
 0x230   :  { %7909 = vmatpush3.bf16.msra.mxu0 %v8603_v13  ;;  %v8628_v13 = vld [vmem:[%s10574_s3 + $0x18] sm:$0xff]  }
 0x231   :  { %7931 = vmatpush3.bf16.msra.mxu1 %v8604_v14  ;;  %7910 = vmatprep.subr.bf16.mxu0 %v8605_v15  ;;  %v8629_v14 = vld [vmem:[%s10574_s3 + $0x20] sm:$0xff]  }
 0x232   :  { %7932 = vmatprep.subr.bf16.mxu1 %v8606_v16 }
 0x234   :  { %7911 = vmatpush3.bf16.msra.mxu0 %v8607_v17 }
 0x235   :  { %7933 = vmatpush3.bf16.msra.mxu1 %v8608_v19  ;;  %7912 = vmatprep.subr.bf16.mxu0 %v8609_v25  ;;  %v8630_v25 = vld [vmem:[%s10574_s3 + $0x28] sm:$0xff]  }
 0x236   :  { %v7610_v18 = vpop.f32.mrb[40].mxu0  ;;  %7934 = vmatprep.subr.bf16.mxu1 %v8610_v27 }
 0x237   :  { %v7632_v20 = vpop.f32.mrb[40].mxu1  ;;  %v7611_v21 = vpop.f32.mrb[41].mxu0 }
 0x238   :  { %v7633_v22 = vpop.f32.mrb[41].mxu1  ;;  %v7612_v23 = vadd.f32 %v7611_v21, %v7610_v18  ;;  %v7613_v26 = vpop.f32.mrb[42].mxu0  ;;  %7913 = vmatpush3.bf16.msra.mxu0 %v8611_v30 }
 0x239   :  { %v7634_v24 = vadd.f32 %v7633_v22, %v7632_v20  ;;  %v7635_v28 = vpop.f32.mrb[42].mxu1  ;;  %v7614_v31 = vpop.f32.mrb[43].mxu0  ;;  %7935 = vmatpush3.bf16.msra.mxu1 %v8612_v32  ;;  %7914 = vmatprep.subr.bf16.mxu0 %v8613_v35 }
 0x23a   :  { %v5759_v29 = vadd.f32 %v7612_v23, %v10403_v48  ;;  %v7636_v33 = vpop.f32.mrb[43].mxu1  ;;  %7936 = vmatprep.subr.bf16.mxu1 %v8614_v36  ;;  %v6568_v48 = vcombine.high %v56_v44, %v56_v44  ;;  %v8631_v28 = vld [vmem:[%s10574_s3 + $0x30] sm:$0xff]  }
 0x23c   :  { %v5799_v34 = vadd.f32 %v7634_v24, %v5759_v29  ;;  %7915 = vmatpush3.bf16.msra.mxu0 %v8615_v37  ;;  %6356 = vmatprep.mubr.bf16.mxu1 %v6568_v48  ;;  %v8632_v29 = vld [vmem:[%s10574_s3 + $0x38] sm:$0xff]  }
 0x23d   :  { %7937 = vmatpush3.bf16.msra.mxu1 %v8616_v38  ;;  %7916 = vmatprep.subr.bf16.mxu0 %v8617_v39 }
 0x23e   :  { %7938 = vmatprep.subr.bf16.mxu1 %v8618_v40 }
 0x240   :  { %7917 = vmatpush3.bf16.msra.mxu0 %v8619_v41 }
 0x241   :  { %7939 = vmatpush3.bf16.msra.mxu1 %v8620_v42  ;;  %7955 = vmatprep.subr.bf16.mxu0 %v8637_v9 }
 0x243   :  { %6317 = vmatmul.mubr.bf16.vlgmr.msra.gmra.mrb[68].mxu0 %v6565_v45 }
 0x244   :  { %6357 = vmatmul.mubr.bf16.vlgmr.msra.gmra.mrb[68].mxu1 %v6567_v47  ;;  %7956 = vmatpush3.bf16.msra.mxu0 %v8625_v10 }
 0x245   :  { %7957 = vmatprep.subr.bf16.mxu0 %v8637_v9  ;;  %7971 = vmatprep.mubr.msk.bf16.mxu0 %vm8638_vm0, %v8637_v9 }
 0x248   :  { %7958 = vmatpush3.bf16.msra.mxu0 %v8626_v11 }
 0x249   :  { %7959 = vmatprep.subr.bf16.mxu0 %v8637_v9 }
 0x24c   :  { %7960 = vmatpush3.bf16.msra.mxu0 %v8627_v12 }
 0x24d   :  { %7961 = vmatprep.subr.bf16.mxu0 %v8637_v9 }
 0x250   :  { %7962 = vmatpush3.bf16.msra.mxu0 %v8628_v13 }
 0x251   :  { %7963 = vmatprep.subr.bf16.mxu0 %v8637_v9 }
 0x254   :  { %7964 = vmatpush3.bf16.msra.mxu0 %v8629_v14 }
 0x255   :  { %7965 = vmatprep.subr.bf16.mxu0 %v8637_v9 }
 0x256   :  { %v7654_v49 = vpop.f32.mrb[44].mxu0 }
 0x257   :  { %v7676_v50 = vpop.f32.mrb[44].mxu1  ;;  %v7655_v51 = vpop.f32.mrb[45].mxu0 }
 0x258   :  { %v7656_v52 = vadd.f32 %v7655_v51, %v7654_v49  ;;  %v7677_v53 = vpop.f32.mrb[45].mxu1  ;;  %v7657_v54 = vpop.f32.mrb[46].mxu0  ;;  %7966 = vmatpush3.bf16.msra.mxu0 %v8630_v25 }
 0x259   :  { %v7678_v55 = vadd.f32 %v7677_v53, %v7676_v50  ;;  %v7679_v56 = vpop.f32.mrb[46].mxu1  ;;  %v7658_v57 = vpop.f32.mrb[47].mxu0  ;;  %7967 = vmatprep.subr.bf16.mxu0 %v8637_v9 }
 0x25a   :  { %v5839_v58 = vadd.f32 %v7656_v52, %v5799_v34  ;;  %v7680_v59 = vpop.f32.mrb[47].mxu1 }
 0x25c   :  { %v5879_v60 = vadd.f32 %v7678_v55, %v5839_v58  ;;  %7968 = vmatpush3.bf16.msra.mxu0 %v8631_v28 }
 0x25d   :  { %7969 = vmatprep.subr.bf16.mxu0 %v8637_v9 }
 0x260   :  { %7970 = vmatpush3.bf16.msra.mxu0 %v8632_v29 }
 0x276   :  { %v7698_v61 = vpop.f32.mrb[48].mxu0 }
 0x277   :  { %v7720_v62 = vpop.f32.mrb[48].mxu1  ;;  %v7699_v63 = vpop.f32.mrb[49].mxu0 }
 0x278   :  { %v7700_v0 = vadd.f32 %v7699_v63, %v7698_v61  ;;  %v7721_v1 = vpop.f32.mrb[49].mxu1  ;;  %v7701_v2 = vpop.f32.mrb[50].mxu0 }
 0x279   :  { %v7722_v3 = vadd.f32 %v7721_v1, %v7720_v62  ;;  %v7723_v4 = vpop.f32.mrb[50].mxu1  ;;  %v7702_v5 = vpop.f32.mrb[51].mxu0 }
 0x27a   :  { %v5919_v6 = vadd.f32 %v7700_v0, %v5879_v60  ;;  %v7724_v7 = vpop.f32.mrb[51].mxu1 }
 0x27c   :  { %v5959_v8 = vadd.f32 %v7722_v3, %v5919_v6 }
 0x296   :  { %v7742_v15 = vpop.f32.mrb[52].mxu0 }
 0x297   :  { %v7764_v16 = vpop.f32.mrb[52].mxu1  ;;  %v7743_v17 = vpop.f32.mrb[53].mxu0 }
 0x298   :  { %v7765_v18 = vpop.f32.mrb[53].mxu1  ;;  %v7744_v19 = vadd.f32 %v7743_v17, %v7742_v15  ;;  %v7745_v21 = vpop.f32.mrb[54].mxu0 }
 0x299   :  { %v7766_v20 = vadd.f32 %v7765_v18, %v7764_v16  ;;  %v7767_v22 = vpop.f32.mrb[54].mxu1  ;;  %v7746_v23 = vpop.f32.mrb[55].mxu0  ;;  %v7145_v16 = vld [vmem:[%s10575_s4] ss:$0 sm:$0xff] }
 0x29a   :  { %v7768_v24 = vpop.f32.mrb[55].mxu1  ;;  %v5999_v26 = vadd.f32 %v7744_v19, %v5959_v8 }
 0x29c   :  { %v6039_v27 = vadd.f32 %v7766_v20, %v5999_v26 }
 0x2b6   :  { %v7786_v30 = vpop.f32.mrb[56].mxu0 }
 0x2b7   :  { %v7808_v31 = vpop.f32.mrb[56].mxu1  ;;  %v7787_v32 = vpop.f32.mrb[57].mxu0 }
 0x2b8   :  { %v7788_v33 = vadd.f32 %v7787_v32, %v7786_v30  ;;  %v7809_v34 = vpop.f32.mrb[57].mxu1  ;;  %v7789_v35 = vpop.f32.mrb[58].mxu0 }
 0x2b9   :  { %v7810_v36 = vadd.f32 %v7809_v34, %v7808_v31  ;;  %v7811_v37 = vpop.f32.mrb[58].mxu1  ;;  %v7790_v38 = vpop.f32.mrb[59].mxu0 }
 0x2ba   :  { %v6079_v39 = vadd.f32 %v7788_v33, %v6039_v27  ;;  %v7812_v40 = vpop.f32.mrb[59].mxu1 }
 0x2bc   :  { %v6119_v41 = vadd.f32 %v7810_v36, %v6079_v39 }
 0x2d6   :  { %v7830_v42 = vpop.f32.mrb[60].mxu0 }
 0x2d7   :  { %v7852_v43 = vpop.f32.mrb[60].mxu1  ;;  %v7831_v44 = vpop.f32.mrb[61].mxu0 }
 0x2d8   :  { %v7832_v45 = vadd.f32 %v7831_v44, %v7830_v42  ;;  %v7853_v46 = vpop.f32.mrb[61].mxu1  ;;  %v7833_v47 = vpop.f32.mrb[62].mxu0 }
 0x2d9   :  { %v7854_v48 = vadd.f32 %v7853_v46, %v7852_v43  ;;  %v7855_v49 = vpop.f32.mrb[62].mxu1  ;;  %v7834_v50 = vpop.f32.mrb[63].mxu0 }
 0x2da   :  { %v6159_v51 = vadd.f32 %v7832_v45, %v6119_v41  ;;  %v7856_v52 = vpop.f32.mrb[63].mxu1 }
 0x2dc   :  { %v6199_v53 = vadd.f32 %v7854_v48, %v6159_v51 }
 0x2f6   :  { %v7874_v54 = vpop.f32.mrb[64].mxu0 }
 0x2f7   :  { %v7896_v55 = vpop.f32.mrb[64].mxu1  ;;  %v7875_v56 = vpop.f32.mrb[65].mxu0 }
 0x2f8   :  { %v7876_v57 = vadd.f32 %v7875_v56, %v7874_v54  ;;  %v7897_v58 = vpop.f32.mrb[65].mxu1  ;;  %v7877_v59 = vpop.f32.mrb[66].mxu0 }
 0x2f9   :  { %v7898_v60 = vadd.f32 %v7897_v58, %v7896_v55  ;;  %v7899_v61 = vpop.f32.mrb[66].mxu1  ;;  %v7878_v62 = vpop.f32.mrb[67].mxu0 }
 0x2fa   :  { %v6239_v63 = vadd.f32 %v7876_v57, %v6199_v53  ;;  %v7900_v0 = vpop.f32.mrb[67].mxu1 }
 0x2fc   :  { %v6279_v1 = vadd.f32 %v7898_v60, %v6239_v63 }
 0x316   :  { %v7918_v2 = vpop.f32.mrb[68].mxu0 }
 0x317   :  { %v7940_v3 = vpop.f32.mrb[68].mxu1  ;;  %v7919_v4 = vpop.f32.mrb[69].mxu0 }
 0x318   :  { %v7920_v5 = vadd.f32 %v7919_v4, %v7918_v2  ;;  %v7941_v6 = vpop.f32.mrb[69].mxu1  ;;  %v7921_v7 = vpop.f32.mrb[70].mxu0 }
 0x319   :  { %v7942_v8 = vadd.f32 %v7941_v6, %v7940_v3  ;;  %v7943_v9 = vpop.f32.mrb[70].mxu1  ;;  %v7922_v10 = vpop.f32.mrb[71].mxu0 }
 0x31a   :  { %v6319_v11 = vadd.f32 %v7920_v5, %v6279_v1  ;;  %v7944_v12 = vpop.f32.mrb[71].mxu1 }
 0x31c   :  { %v6359_v13 = vadd.f32 %v7942_v8, %v6319_v11 }
 0x31e   :  { %v6364_v14 = vmax.f32 %v6359_v13, 0.0 }
 0x320   :  { %v6365_v15 = vpack.c.bf16 %v6364_v14, %v6364_v14 }
 0x322   :  { %7972 = vmatmul.mubr.bf16.vlgmr.msra.gmra.mrb[72].mxu0 %v6365_v15 }
 0x3f5   :  { %v6471_v17 = vpop.f32.mrb[72].mxu0 }
 0x3f6   :  { %v6472_v18 = vadd.f32 %v7145_v16, %v6471_v17  ;;  %v7973_v19 = vpop.f32.mrb[73].mxu0 }
 0x3f7   :  { %v6474_v20 = vpop.f32.mrb[74].mxu0 }
 0x3f8   :  { %v7974_v21 = vpop.f32.mrb[75].mxu0  ;;  %v6478_v22 = vsel %vm6477_vm1, %v6472_v18, -inf }
 0x3f9   :  { %6479 = vmax.xlane.f32.xlu0 %v6478_v22 }
 0x486   :  { %v6480_v23 = vpop.xlane.xlu0 %6479 }
 0x487   :  { %v6481_v24 = vsub.f32 %v6472_v18, %v6480_v23 }
 0x489   :  { %v6482_v25 = vmul.f32 1.442695, %v6481_v24 }
 0x48b   :  { %8633 = vpow2.f32 %v6482_v25 }
 0x495   :  { %v8634_v26 = vpop.eup %8633 }
 0x496   :  { %v6484_v27 = vsel %vm6477_vm1, %v8634_v26, 0.0 }
 0x497   :  { %6485 = vadd.xlane.f32.xlu0 %v6484_v27 }
 0x524   :  { %v6486_v28 = vpop.xlane.xlu0 %6485 }
 0x525   :  { %8635 = vlog2.f32 %v6486_v28 }
 0x52f   :  { %v8636_v29 = vpop.eup %8635 }
 0x530   :  { %v6488_v30 = vmul.f32 0.6931472, %v8636_v29 }
 0x532   :  { %v6489_v31 = vadd.f32 %v6488_v30, %v6480_v23 }
 0x534   :  { %v6490_v32 = vsub.f32 %v6472_v18, %v6489_v31 }
 0x536   :  { %6491 = vst.msk [vmem:[%s10576_s5] sm:$0xff] %vm6477_vm1, %v6490_v32 }

</bundles_post_ra>
